<compile_context>
chip_gen: v7x
topology: tpu7x:2x2x1
jax: 0.10.0
libtpu: 0.0.40
codegen_flags: <defaults>
</compile_context>

<pallas_src>
import functools

import jax
import jax.numpy as jnp
from jax.experimental import pallas as pl
from jax.experimental.pallas import tpu as pltpu

EPS = 1e-5


def _compiler_params():
    # "parallel" over the batch grid -> megacore sharding on v7x.
    # vmem limit raised above the scoped default (conservative enough for v5e/v7x).
    return pltpu.CompilerParams(
        dimension_semantics=("parallel",),
        vmem_limit_bytes=32 * 1024 * 1024,
    )


# -----------------------------------------------------------------------------
# Kernel 1: 3x3 conv (in-kernel zero-halo padding) + single-pass BN partial stats.
#   x_ref  : (1, H, W, Cin)      bf16  (one image per grid step)
#   w_ref  : (9*Cin, Cout)       bf16  (HWIO flattened, rows ordered (dy, dx, ci))
#   y_ref  : (1, H*W, Cout)      f32   conv pre-activation
#   st_ref : (1, 2, Cout)        f32   [sum ; sum of squares] over this image
#   pad_ref: (H+2, W+2, Cin)     bf16  VMEM scratch (zero halo)
# -----------------------------------------------------------------------------
def _conv3x3_stats_kernel(x_ref, w_ref, y_ref, st_ref, pad_ref, *, H, W):
    Cin = x_ref.shape[-1]
    Cout = w_ref.shape[-1]

    # In-kernel halo padding (no wrapper jnp.pad / extra HBM pass).
    pad_ref[...] = jnp.zeros(pad_ref.shape, pad_ref.dtype)
    pad_ref[1:H + 1, 1:W + 1, :] = x_ref[0]

    # im2col: one (H*W, 9*Cin) patch matrix -> a single MXU GEMM with K = 9*Cin.
    taps = []
    for dy in range(3):
        for dx in range(3):
            taps.append(pad_ref[dy:dy + H, dx:dx + W, :].reshape(H * W, Cin))
    col = jnp.concatenate(taps, axis=1)                       # (H*W, 9*Cin) bf16

    y = jnp.dot(col, w_ref[...], preferred_element_type=jnp.float32)  # (H*W, Cout) f32

    # Single-pass BN partial statistics for this image.
    s = jnp.sum(y, axis=0, keepdims=True)                     # (1, Cout)
    sq = jnp.sum(y * y, axis=0, keepdims=True)                # (1, Cout)

    y_ref[...] = y.reshape(1, H * W, Cout)
    st_ref[...] = jnp.concatenate([s, sq], axis=0).reshape(1, 2, Cout)


def conv3x3_stats(a, w2d, H, W):
    N = a.shape[0]
    Cin = a.shape[-1]
    Cout = w2d.shape[-1]
    kern = functools.partial(_conv3x3_stats_kernel, H=H, W=W)
    return pl.pallas_call(
        kern,
        grid=(N,),
        in_specs=[
            pl.BlockSpec((1, H, W, Cin), lambda n: (n, 0, 0, 0)),
            pl.BlockSpec((9 * Cin, Cout), lambda n: (0, 0)),
        ],
        out_specs=[
            pl.BlockSpec((1, H * W, Cout), lambda n: (n, 0, 0)),
            pl.BlockSpec((1, 2, Cout), lambda n: (n, 0, 0)),
        ],
        out_shape=[
            jax.ShapeDtypeStruct((N, H * W, Cout), jnp.float32),
            jax.ShapeDtypeStruct((N, 2, Cout), jnp.float32),
        ],
        scratch_shapes=[pltpu.VMEM((H + 2, W + 2, Cin), jnp.bfloat16)],
        compiler_params=_compiler_params(),
    )(a, w2d)


# -----------------------------------------------------------------------------
# Kernel 2: fold partial BN stats -> normalize + ReLU -> bf16 NHWC activation.
#   y_ref  : (1, H*W, C)  f32   pre-activation for this image
#   st_ref : (N, 2, C)    f32   partial stats from ALL images (resident block)
#   g_ref  : (1, C) f32, b_ref : (1, C) f32
#   a_ref  : (1, H, W, C) bf16  activation (next layer's MXU input)
# -----------------------------------------------------------------------------
def _bn_relu_kernel(y_ref, st_ref, g_ref, b_ref, a_ref, *, H, W, count):
    C = y_ref.shape[-1]
    st = jnp.sum(st_ref[...], axis=0)                  # (2, C) global sums
    mean = st[0:1, :] * (1.0 / count)
    ex2 = st[1:2, :] * (1.0 / count)
    var = jnp.maximum(ex2 - mean * mean, 0.0)          # biased variance (E[x^2]-E[x]^2)
    inv = jax.lax.rsqrt(var + EPS)
    scale = g_ref[...] * inv                           # (1, C)
    shift = b_ref[...] - mean * scale                  # (1, C)

    y = y_ref[0]                                       # (H*W, C) f32
    act = jnp.maximum(y * scale + shift, 0.0)
    a_ref[...] = act.astype(a_ref.dtype).reshape(1, H, W, C)


def bn_relu(y, st, gamma, beta, H, W):
    N, HW, C = y.shape
    kern = functools.partial(_bn_relu_kernel, H=H, W=W, count=float(N * HW))
    return pl.pallas_call(
        kern,
        grid=(N,),
        in_specs=[
            pl.BlockSpec((1, HW, C), lambda n: (n, 0, 0)),
            pl.BlockSpec((N, 2, C), lambda n: (0, 0, 0)),
            pl.BlockSpec((1, C), lambda n: (0, 0)),
            pl.BlockSpec((1, C), lambda n: (0, 0)),
        ],
        out_specs=pl.BlockSpec((1, H, W, C), lambda n: (n, 0, 0, 0)),
        out_shape=jax.ShapeDtypeStruct((N, H, W, C), jnp.bfloat16),
        compiler_params=_compiler_params(),
    )(y, st, gamma.reshape(1, C), beta.reshape(1, C))


# -----------------------------------------------------------------------------
# Kernel 3: ConvTranspose2d(k=2, s=2) as ONE GEMM (4 taps fused into the N dim)
#           + single-pass BN partial stats.
#   a_ref  : (1, H, W, F)       bf16
#   w_ref  : (F, 4*Cout)        bf16   columns ordered ((dy*2+dx)*Cout + co)
#   z_ref  : (1, H*W, 4*Cout)   f32
#   st_ref : (1, 2, 4*Cout)     f32
# -----------------------------------------------------------------------------
def _deconv2x2_stats_kernel(a_ref, w_ref, z_ref, st_ref, *, H, W):
    F = a_ref.shape[-1]
    C4 = w_ref.shape[-1]
    a = a_ref[0].reshape(H * W, F)                                    # bf16
    z = jnp.dot(a, w_ref[...], preferred_element_type=jnp.float32)    # (H*W, 4*Cout)
    s = jnp.sum(z, axis=0, keepdims=True)
    sq = jnp.sum(z * z, axis=0, keepdims=True)
    z_ref[...] = z.reshape(1, H * W, C4)
    st_ref[...] = jnp.concatenate([s, sq], axis=0).reshape(1, 2, C4)


def deconv2x2_stats(a, wt2d, H, W):
    N = a.shape[0]
    F = a.shape[-1]
    C4 = wt2d.shape[-1]
    kern = functools.partial(_deconv2x2_stats_kernel, H=H, W=W)
    return pl.pallas_call(
        kern,
        grid=(N,),
        in_specs=[
            pl.BlockSpec((1, H, W, F), lambda n: (n, 0, 0, 0)),
            pl.BlockSpec((F, C4), lambda n: (0, 0)),
        ],
        out_specs=[
            pl.BlockSpec((1, H * W, C4), lambda n: (n, 0, 0)),
            pl.BlockSpec((1, 2, C4), lambda n: (n, 0, 0)),
        ],
        out_shape=[
            jax.ShapeDtypeStruct((N, H * W, C4), jnp.float32),
            jax.ShapeDtypeStruct((N, 2, C4), jnp.float32),
        ],
        compiler_params=_compiler_params(),
    )(a, wt2d)


# -----------------------------------------------------------------------------
# Kernel 4: final BN + ReLU over the deconv output, written pre-interleaved as
#           (1, H, 2, W, 2*Cout) so the x2 upsample is a free reshape outside.
#   z_ref  : (1, H*W, 4*Cout)  f32   columns ordered (dy, dx, co)
#   st_ref : (N, 2, 4*Cout)    f32   partial stats (per tap & channel)
#   g_ref  : (1, Cout) f32, b_ref : (1, Cout) f32
#   o_ref  : (1, H, 2, W, 2*Cout) f32
# -----------------------------------------------------------------------------
def _bn_relu_interleave_kernel(z_ref, st_ref, g_ref, b_ref, o_ref, *, H, W, Cout, count):
    st = jnp.sum(st_ref[...], axis=0)                  # (2, 4*Cout)
    s, sq = st[0:1, :], st[1:2, :]
    # fold the 4 (dy, dx) taps into per-output-channel statistics
    s_c = s[:, 0:Cout] + s[:, Cout:2 * Cout] + s[:, 2 * Cout:3 * Cout] + s[:, 3 * Cout:4 * Cout]
    sq_c = sq[:, 0:Cout] + sq[:, Cout:2 * Cout] + sq[:, 2 * Cout:3 * Cout] + sq[:, 3 * Cout:4 * Cout]
    mean = s_c * (1.0 / count)
    ex2 = sq_c * (1.0 / count)
    var = jnp.maximum(ex2 - mean * mean, 0.0)
    inv = jax.lax.rsqrt(var + EPS)
    scale = g_ref[...] * inv
    shift = b_ref[...] - mean * scale
    scale4 = jnp.concatenate([scale] * 4, axis=1)      # (1, 4*Cout)
    shift4 = jnp.concatenate([shift] * 4, axis=1)

    z = z_ref[0]                                       # (H*W, 4*Cout)
    out = jnp.maximum(z * scale4 + shift4, 0.0)

    # Interleave the (dy, dx) taps directly into the upsampled layout:
    # output block dims = (1, h, dy, w, (dx, co)).
    for dy in range(2):
        row = out[:, dy * 2 * Cout:(dy + 1) * 2 * Cout]        # (H*W, 2*Cout)
        o_ref[0, :, dy, :, :] = row.reshape(H, W, 2 * Cout)


def bn_relu_interleave(z, st, gamma, beta, H, W, Cout):
    N, HW, C4 = z.shape
    count = float(4 * N * HW)                          # BN over all N * 2H * 2W pixels
    kern = functools.partial(_bn_relu_interleave_kernel, H=H, W=W, Cout=Cout, count=count)
    out5 = pl.pallas_call(
        kern,
        grid=(N,),
        in_specs=[
            pl.BlockSpec((1, HW, C4), lambda n: (n, 0, 0)),
            pl.BlockSpec((N, 2, C4), lambda n: (0, 0, 0)),
            pl.BlockSpec((1, Cout), lambda n: (0, 0)),
            pl.BlockSpec((1, Cout), lambda n: (0, 0)),
        ],
        out_specs=pl.BlockSpec((1, H, 2, W, 2 * Cout), lambda n: (n, 0, 0, 0, 0)),
        out_shape=jax.ShapeDtypeStruct((N, H, 2, W, 2 * Cout), jnp.float32),
        compiler_params=_compiler_params(),
    )(z, st, gamma.reshape(1, Cout), beta.reshape(1, Cout))
    # free, row-major reshape: (N, H, 2, W, 2*Cout) -> (N, 2H, 2W, Cout)
    return out5.reshape(N, 2 * H, 2 * W, Cout)


# -----------------------------------------------------------------------------
# UNetUp forward
# -----------------------------------------------------------------------------
def init_params(key, in_channels, features, out_channels):
    ks = jax.random.split(key, 6)
    # b1/b2/bt mirror the PyTorch conv/deconv biases but are mathematically
    # cancelled by the training-mode BatchNorm that follows, so they are unused.
    return {
        "w1": 0.1 * jax.random.normal(ks[0], (3, 3, in_channels, features), jnp.float32),
        "b1": 0.1 * jax.random.normal(ks[1], (features,), jnp.float32),
        "g1": jnp.ones((features,), jnp.float32),
        "be1": jnp.zeros((features,), jnp.float32),
        "w2": 0.1 * jax.random.normal(ks[2], (3, 3, features, features), jnp.float32),
        "b2": 0.1 * jax.random.normal(ks[3], (features,), jnp.float32),
        "g2": jnp.ones((features,), jnp.float32),
        "be2": jnp.zeros((features,), jnp.float32),
        "wt": 0.1 * jax.random.normal(ks[4], (2, 2, features, out_channels), jnp.float32),
        "bt": 0.1 * jax.random.normal(ks[5], (out_channels,), jnp.float32),
        "g3": jnp.ones((out_channels,), jnp.float32),
        "be3": jnp.zeros((out_channels,), jnp.float32),
    }


def unet_up_forward(x_nchw, p):
    N, Cin, H, W = x_nchw.shape
    F = p["w1"].shape[-1]
    Cout = p["wt"].shape[-1]

    # boundary layout glue only: NCHW -> NHWC; bf16 MXU operands
    x = jnp.transpose(x_nchw, (0, 2, 3, 1)).astype(jnp.bfloat16)
    w1 = p["w1"].reshape(9 * Cin, F).astype(jnp.bfloat16)          # rows (dy, dx, ci)
    w2 = p["w2"].reshape(9 * F, F).astype(jnp.bfloat16)
    wt = jnp.transpose(p["wt"], (2, 0, 1, 3)).reshape(F, 4 * Cout).astype(jnp.bfloat16)

    y1, st1 = conv3x3_stats(x, w1, H, W)
    a1 = bn_relu(y1, st1, p["g1"], p["be1"], H, W)
    y2, st2 = conv3x3_stats(a1, w2, H, W)
    a2 = bn_relu(y2, st2, p["g2"], p["be2"], H, W)
    z, st3 = deconv2x2_stats(a2, wt, H, W)
    out_nhwc = bn_relu_interleave(z, st3, p["g3"], p["be3"], H, W, Cout)
    return jnp.transpose(out_nhwc, (0, 3, 1, 2))                   # NHWC -> NCHW


if __name__ == "__main__":
    key = jax.random.PRNGKey(0)
    k_x, k_p = jax.random.split(key)

    N, C_IN, FEAT, C_OUT, H, W = 2, 4, 8, 4, 16, 16
    x = jax.random.normal(k_x, (N, C_IN, H, W), jnp.float32)
    params = init_params(k_p, C_IN, FEAT, C_OUT)

    fwd = jax.jit(lambda xx: unet_up_forward(xx, params))
    out = fwd(x)
    jax.block_until_ready(out)

    assert out.shape == (N, C_OUT, 2 * H, 2 * W), out.shape
    assert out.dtype == jnp.float32
    assert bool(jnp.all(out >= 0.0))  # final ReLU
    print("KERNEL_OK")
</pallas_src>

<mosaic_0001>
module attributes {stable_mosaic.version = 11 : i64} {
  func.func @_conv3x3_stats_kernel(%arg0: i32, %arg1: memref<1x16x16x4xbf16, #tpu.memory_space<vmem>>, %arg2: memref<36x8xbf16, #tpu.memory_space<vmem>>, %arg3: memref<1x256x8xf32, #tpu.memory_space<vmem>>, %arg4: memref<1x2x8xf32, #tpu.memory_space<vmem>>, %arg5: memref<18x18x4xbf16, #tpu.memory_space<vmem>>) attributes {dimension_semantics = [#tpu.dimension_semantics<parallel>], iteration_bounds = array<i64: 2>, scalar_prefetch = 0 : i64, scratch_operands = 1 : i64, tpu.core_type = #tpu.core_type<tc>, window_params = [{transform_indices = @transform_0, window_bounds = array<i64: 1, 16, 16, 4>}, {pipeline_mode = #tpu.pipeline_mode<synchronous>, transform_indices = @transform_1, window_bounds = array<i64: 36, 8>}, {transform_indices = @transform_2, window_bounds = array<i64: 1, 256, 8>}, {transform_indices = @transform_3, window_bounds = array<i64: 1, 2, 8>}]} {
    %cst = arith.constant 0.000000e+00 : bf16
    %0 = vector.broadcast %cst : bf16 to vector<18x18x4xbf16>
    %c0 = arith.constant 0 : index
    %c0_0 = arith.constant 0 : index
    %c0_1 = arith.constant 0 : index
    %1 = vector.load %arg5[%c0, %c0_0, %c0_1] : memref<18x18x4xbf16, #tpu.memory_space<vmem>>, vector<18x18x4xbf16>
    tpu.vector_store %arg5[%c0, %c0_0, %c0_1], %0 {strides = array<i32>} : memref<18x18x4xbf16, #tpu.memory_space<vmem>>, vector<18x18x4xbf16>,
    %c0_2 = arith.constant 0 : index
    %c0_3 = arith.constant 0 : index
    %c0_4 = arith.constant 0 : index
    %c0_5 = arith.constant 0 : index
    %2 = vector.load %arg1[%c0_2, %c0_3, %c0_4, %c0_5] : memref<1x16x16x4xbf16, #tpu.memory_space<vmem>>, vector<1x16x16x4xbf16>
    %3 = vector.shape_cast %2 : vector<1x16x16x4xbf16> to vector<16x16x4xbf16>
    %c1 = arith.constant 1 : index
    %c1_6 = arith.constant 1 : index
    %c0_7 = arith.constant 0 : index
    %4 = vector.load %arg5[%c1, %c1_6, %c0_7] : memref<18x18x4xbf16, #tpu.memory_space<vmem>>, vector<16x16x4xbf16>
    tpu.vector_store %arg5[%c1, %c1_6, %c0_7], %3 {strides = array<i32>} : memref<18x18x4xbf16, #tpu.memory_space<vmem>>, vector<16x16x4xbf16>,
    %c0_8 = arith.constant 0 : index
    %c0_9 = arith.constant 0 : index
    %c0_10 = arith.constant 0 : index
    %5 = vector.load %arg5[%c0_8, %c0_9, %c0_10] : memref<18x18x4xbf16, #tpu.memory_space<vmem>>, vector<16x16x4xbf16>
    %6 = vector.shape_cast %5 : vector<16x16x4xbf16> to vector<256x4xbf16>
    %c0_11 = arith.constant 0 : index
    %c1_12 = arith.constant 1 : index
    %c0_13 = arith.constant 0 : index
    %7 = vector.load %arg5[%c0_11, %c1_12, %c0_13] : memref<18x18x4xbf16, #tpu.memory_space<vmem>>, vector<16x16x4xbf16>
    %8 = vector.shape_cast %7 : vector<16x16x4xbf16> to vector<256x4xbf16>
    %c0_14 = arith.constant 0 : index
    %c2 = arith.constant 2 : index
    %c0_15 = arith.constant 0 : index
    %9 = vector.load %arg5[%c0_14, %c2, %c0_15] : memref<18x18x4xbf16, #tpu.memory_space<vmem>>, vector<16x16x4xbf16>
    %10 = vector.shape_cast %9 : vector<16x16x4xbf16> to vector<256x4xbf16>
    %c1_16 = arith.constant 1 : index
    %c0_17 = arith.constant 0 : index
    %c0_18 = arith.constant 0 : index
    %11 = vector.load %arg5[%c1_16, %c0_17, %c0_18] : memref<18x18x4xbf16, #tpu.memory_space<vmem>>, vector<16x16x4xbf16>
    %12 = vector.shape_cast %11 : vector<16x16x4xbf16> to vector<256x4xbf16>
    %c1_19 = arith.constant 1 : index
    %c1_20 = arith.constant 1 : index
    %c0_21 = arith.constant 0 : index
    %13 = vector.load %arg5[%c1_19, %c1_20, %c0_21] : memref<18x18x4xbf16, #tpu.memory_space<vmem>>, vector<16x16x4xbf16>
    %14 = vector.shape_cast %13 : vector<16x16x4xbf16> to vector<256x4xbf16>
    %c1_22 = arith.constant 1 : index
    %c2_23 = arith.constant 2 : index
    %c0_24 = arith.constant 0 : index
    %15 = vector.load %arg5[%c1_22, %c2_23, %c0_24] : memref<18x18x4xbf16, #tpu.memory_space<vmem>>, vector<16x16x4xbf16>
    %16 = vector.shape_cast %15 : vector<16x16x4xbf16> to vector<256x4xbf16>
    %c2_25 = arith.constant 2 : index
    %c0_26 = arith.constant 0 : index
    %c0_27 = arith.constant 0 : index
    %17 = vector.load %arg5[%c2_25, %c0_26, %c0_27] : memref<18x18x4xbf16, #tpu.memory_space<vmem>>, vector<16x16x4xbf16>
    %18 = vector.shape_cast %17 : vector<16x16x4xbf16> to vector<256x4xbf16>
    %c2_28 = arith.constant 2 : index
    %c1_29 = arith.constant 1 : index
    %c0_30 = arith.constant 0 : index
    %19 = vector.load %arg5[%c2_28, %c1_29, %c0_30] : memref<18x18x4xbf16, #tpu.memory_space<vmem>>, vector<16x16x4xbf16>
    %20 = vector.shape_cast %19 : vector<16x16x4xbf16> to vector<256x4xbf16>
    %c2_31 = arith.constant 2 : index
    %c2_32 = arith.constant 2 : index
    %c0_33 = arith.constant 0 : index
    %21 = vector.load %arg5[%c2_31, %c2_32, %c0_33] : memref<18x18x4xbf16, #tpu.memory_space<vmem>>, vector<16x16x4xbf16>
    %22 = vector.shape_cast %21 : vector<16x16x4xbf16> to vector<256x4xbf16>
    %23 = tpu.concatenate %6, %8, %10, %12, %14, %16, %18, %20, %22 in 1 : vector<256x4xbf16>, vector<256x4xbf16>, vector<256x4xbf16>, vector<256x4xbf16>, vector<256x4xbf16>, vector<256x4xbf16>, vector<256x4xbf16>, vector<256x4xbf16>, vector<256x4xbf16> -> vector<256x36xbf16>
    %c0_34 = arith.constant 0 : index
    %c0_35 = arith.constant 0 : index
    %24 = vector.load %arg2[%c0_34, %c0_35] : memref<36x8xbf16, #tpu.memory_space<vmem>>, vector<36x8xbf16>
    %cst_36 = arith.constant dense<0.000000e+00> : vector<256x8xf32>
    %25 = tpu.matmul %23, %24, %cst_36 {dimension_numbers = #tpu.dot_dimension_numbers<[1], [0], [0], [1], [0, 0, 1, 1], [], []>} : vector<256x36xbf16>, vector<36x8xbf16>, vector<256x8xf32> -> vector<256x8xf32>
    %cst_37 = arith.constant dense<0.000000e+00> : vector<8xf32>
    %26 = vector.multi_reduction <add>, %25, %cst_37 [0] : vector<256x8xf32> to vector<8xf32>
    %27 = vector.shape_cast %26 : vector<8xf32> to vector<1x8xf32>
    %28 = arith.mulf %25, %25 : vector<256x8xf32>
    %cst_38 = arith.constant dense<0.000000e+00> : vector<8xf32>
    %29 = vector.multi_reduction <add>, %28, %cst_38 [0] : vector<256x8xf32> to vector<8xf32>
    %30 = vector.shape_cast %29 : vector<8xf32> to vector<1x8xf32>
    %31 = vector.shape_cast %25 : vector<256x8xf32> to vector<1x256x8xf32>
    %c0_39 = arith.constant 0 : index
    %c0_40 = arith.constant 0 : index
    %c0_41 = arith.constant 0 : index
    %32 = vector.load %arg3[%c0_39, %c0_40, %c0_41] : memref<1x256x8xf32, #tpu.memory_space<vmem>>, vector<1x256x8xf32>
    tpu.vector_store %arg3[%c0_39, %c0_40, %c0_41], %31 {strides = array<i32>} : memref<1x256x8xf32, #tpu.memory_space<vmem>>, vector<1x256x8xf32>,
    %33 = tpu.concatenate %27, %30 in 0 : vector<1x8xf32>, vector<1x8xf32> -> vector<2x8xf32>
    %34 = vector.shape_cast %33 : vector<2x8xf32> to vector<1x2x8xf32>
    %c0_42 = arith.constant 0 : index
    %c0_43 = arith.constant 0 : index
    %c0_44 = arith.constant 0 : index
    %35 = vector.load %arg4[%c0_42, %c0_43, %c0_44] : memref<1x2x8xf32, #tpu.memory_space<vmem>>, vector<1x2x8xf32>
    tpu.vector_store %arg4[%c0_42, %c0_43, %c0_44], %34 {strides = array<i32>} : memref<1x2x8xf32, #tpu.memory_space<vmem>>, vector<1x2x8xf32>,
    return
  }
  func.func @transform_0(%arg0: i32) -> (i32, i32, i32, i32) {
    %c0_i32 = arith.constant 0 : i32
    %c0_i32_0 = arith.constant 0 : i32
    %c0_i32_1 = arith.constant 0 : i32
    %c0_i32_2 = arith.constant 0 : i32
    return %arg0, %c0_i32, %c0_i32_0, %c0_i32_1 : i32, i32, i32, i32
  }
  func.func @transform_1(%arg0: i32) -> (i32, i32) {
    %c0_i32 = arith.constant 0 : i32
    %c0_i32_0 = arith.constant 0 : i32
    %c0_i32_1 = arith.constant 0 : i32
    return %c0_i32, %c0_i32_0 : i32, i32
  }
  func.func @transform_2(%arg0: i32) -> (i32, i32, i32) {
    %c0_i32 = arith.constant 0 : i32
    %c0_i32_0 = arith.constant 0 : i32
    %c0_i32_1 = arith.constant 0 : i32
    return %arg0, %c0_i32, %c0_i32_0 : i32, i32, i32
  }
  func.func @transform_3(%arg0: i32) -> (i32, i32, i32) {
    %c0_i32 = arith.constant 0 : i32
    %c0_i32_0 = arith.constant 0 : i32
    %c0_i32_1 = arith.constant 0 : i32
    return %arg0, %c0_i32, %c0_i32_0 : i32, i32, i32
  }
}

module attributes {stable_mosaic.version = 11 : i64} {
  func.func @_deconv2x2_stats_kernel(%arg0: i32, %arg1: memref<1x16x16x8xbf16, #tpu.memory_space<vmem>>, %arg2: memref<8x16xbf16, #tpu.memory_space<vmem>>, %arg3: memref<1x256x16xf32, #tpu.memory_space<vmem>>, %arg4: memref<1x2x16xf32, #tpu.memory_space<vmem>>) attributes {dimension_semantics = [#tpu.dimension_semantics<parallel>], iteration_bounds = array<i64: 2>, scalar_prefetch = 0 : i64, scratch_operands = 0 : i64, tpu.core_type = #tpu.core_type<tc>, window_params = [{transform_indices = @transform_0, window_bounds = array<i64: 1, 16, 16, 8>}, {pipeline_mode = #tpu.pipeline_mode<synchronous>, transform_indices = @transform_1, window_bounds = array<i64: 8, 16>}, {transform_indices = @transform_2, window_bounds = array<i64: 1, 256, 16>}, {transform_indices = @transform_3, window_bounds = array<i64: 1, 2, 16>}]} {
    %c0 = arith.constant 0 : index
    %c0_0 = arith.constant 0 : index
    %c0_1 = arith.constant 0 : index
    %c0_2 = arith.constant 0 : index
    %0 = vector.load %arg1[%c0, %c0_0, %c0_1, %c0_2] : memref<1x16x16x8xbf16, #tpu.memory_space<vmem>>, vector<1x16x16x8xbf16>
    %1 = vector.shape_cast %0 : vector<1x16x16x8xbf16> to vector<16x16x8xbf16>
    %2 = vector.shape_cast %1 : vector<16x16x8xbf16> to vector<256x8xbf16>
    %c0_3 = arith.constant 0 : index
    %c0_4 = arith.constant 0 : index
    %3 = vector.load %arg2[%c0_3, %c0_4] : memref<8x16xbf16, #tpu.memory_space<vmem>>, vector<8x16xbf16>
    %cst = arith.constant dense<0.000000e+00> : vector<256x16xf32>
    %4 = tpu.matmul %2, %3, %cst {dimension_numbers = #tpu.dot_dimension_numbers<[1], [0], [0], [1], [0, 0, 1, 1], [], []>} : vector<256x8xbf16>, vector<8x16xbf16>, vector<256x16xf32> -> vector<256x16xf32>
    %cst_5 = arith.constant dense<0.000000e+00> : vector<16xf32>
    %5 = vector.multi_reduction <add>, %4, %cst_5 [0] : vector<256x16xf32> to vector<16xf32>
    %6 = vector.shape_cast %5 : vector<16xf32> to vector<1x16xf32>
    %7 = arith.mulf %4, %4 : vector<256x16xf32>
    %cst_6 = arith.constant dense<0.000000e+00> : vector<16xf32>
    %8 = vector.multi_reduction <add>, %7, %cst_6 [0] : vector<256x16xf32> to vector<16xf32>
    %9 = vector.shape_cast %8 : vector<16xf32> to vector<1x16xf32>
    %10 = vector.shape_cast %4 : vector<256x16xf32> to vector<1x256x16xf32>
    %c0_7 = arith.constant 0 : index
    %c0_8 = arith.constant 0 : index
    %c0_9 = arith.constant 0 : index
    %11 = vector.load %arg3[%c0_7, %c0_8, %c0_9] : memref<1x256x16xf32, #tpu.memory_space<vmem>>, vector<1x256x16xf32>
    tpu.vector_store %arg3[%c0_7, %c0_8, %c0_9], %10 {strides = array<i32>} : memref<1x256x16xf32, #tpu.memory_space<vmem>>, vector<1x256x16xf32>,
    %12 = tpu.concatenate %6, %9 in 0 : vector<1x16xf32>, vector<1x16xf32> -> vector<2x16xf32>
    %13 = vector.shape_cast %12 : vector<2x16xf32> to vector<1x2x16xf32>
    %c0_10 = arith.constant 0 : index
    %c0_11 = arith.constant 0 : index
    %c0_12 = arith.constant 0 : index
    %14 = vector.load %arg4[%c0_10, %c0_11, %c0_12] : memref<1x2x16xf32, #tpu.memory_space<vmem>>, vector<1x2x16xf32>
    tpu.vector_store %arg4[%c0_10, %c0_11, %c0_12], %13 {strides = array<i32>} : memref<1x2x16xf32, #tpu.memory_space<vmem>>, vector<1x2x16xf32>,
    return
  }
  func.func @transform_0(%arg0: i32) -> (i32, i32, i32, i32) {
    %c0_i32 = arith.constant 0 : i32
    %c0_i32_0 = arith.constant 0 : i32
    %c0_i32_1 = arith.constant 0 : i32
    %c0_i32_2 = arith.constant 0 : i32
    return %arg0, %c0_i32, %c0_i32_0, %c0_i32_1 : i32, i32, i32, i32
  }
  func.func @transform_1(%arg0: i32) -> (i32, i32) {
    %c0_i32 = arith.constant 0 : i32
    %c0_i32_0 = arith.constant 0 : i32
    %c0_i32_1 = arith.constant 0 : i32
    return %c0_i32, %c0_i32_0 : i32, i32
  }
  func.func @transform_2(%arg0: i32) -> (i32, i32, i32) {
    %c0_i32 = arith.constant 0 : i32
    %c0_i32_0 = arith.constant 0 : i32
    %c0_i32_1 = arith.constant 0 : i32
    return %arg0, %c0_i32, %c0_i32_0 : i32, i32, i32
  }
  func.func @transform_3(%arg0: i32) -> (i32, i32, i32) {
    %c0_i32 = arith.constant 0 : i32
    %c0_i32_0 = arith.constant 0 : i32
    %c0_i32_1 = arith.constant 0 : i32
    return %arg0, %c0_i32, %c0_i32_0 : i32, i32, i32
  }
}

module attributes {stable_mosaic.version = 11 : i64} {
  func.func @_bn_relu_kernel(%arg0: i32, %arg1: memref<1x256x8xf32, #tpu.memory_space<vmem>>, %arg2: memref<2x2x8xf32, #tpu.memory_space<vmem>>, %arg3: memref<1x8xf32, #tpu.memory_space<vmem>>, %arg4: memref<1x8xf32, #tpu.memory_space<vmem>>, %arg5: memref<1x16x16x8xbf16, #tpu.memory_space<vmem>>) attributes {dimension_semantics = [#tpu.dimension_semantics<parallel>], iteration_bounds = array<i64: 2>, scalar_prefetch = 0 : i64, scratch_operands = 0 : i64, tpu.core_type = #tpu.core_type<tc>, window_params = [{transform_indices = @transform_0, window_bounds = array<i64: 1, 256, 8>}, {pipeline_mode = #tpu.pipeline_mode<synchronous>, transform_indices = @transform_1, window_bounds = array<i64: 2, 2, 8>}, {pipeline_mode = #tpu.pipeline_mode<synchronous>, transform_indices = @transform_2, window_bounds = array<i64: 1, 8>}, {pipeline_mode = #tpu.pipeline_mode<synchronous>, transform_indices = @transform_3, window_bounds = array<i64: 1, 8>}, {transform_indices = @transform_4, window_bounds = array<i64: 1, 16, 16, 8>}]} {
    %c0 = arith.constant 0 : index
    %c0_0 = arith.constant 0 : index
    %c0_1 = arith.constant 0 : index
    %0 = vector.load %arg2[%c0, %c0_0, %c0_1] : memref<2x2x8xf32, #tpu.memory_space<vmem>>, vector<2x2x8xf32>
    %cst = arith.constant dense<0.000000e+00> : vector<2x8xf32>
    %1 = vector.multi_reduction <add>, %0, %cst [0] : vector<2x2x8xf32> to vector<2x8xf32>
    %2 = vector.extract_strided_slice %1 {offsets = [0, 0], sizes = [1, 8], strides = [1, 1]} : vector<2x8xf32> to vector<1x8xf32>
    %cst_2 = arith.constant 0.001953125 : f32
    %3 = vector.broadcast %cst_2 : f32 to vector<1x8xf32>
    %4 = arith.mulf %2, %3 : vector<1x8xf32>
    %5 = vector.extract_strided_slice %1 {offsets = [1, 0], sizes = [1, 8], strides = [1, 1]} : vector<2x8xf32> to vector<1x8xf32>
    %cst_3 = arith.constant 0.001953125 : f32
    %6 = vector.broadcast %cst_3 : f32 to vector<1x8xf32>
    %7 = arith.mulf %5, %6 : vector<1x8xf32>
    %8 = arith.mulf %4, %4 : vector<1x8xf32>
    %9 = arith.subf %7, %8 : vector<1x8xf32>
    %cst_4 = arith.constant 0.000000e+00 : f32
    %10 = vector.broadcast %cst_4 : f32 to vector<1x8xf32>
    %11 = arith.maximumf %9, %10 : vector<1x8xf32>
    %cst_5 = arith.constant 9.99999974E-6 : f32
    %12 = vector.broadcast %cst_5 : f32 to vector<1x8xf32>
    %13 = arith.addf %11, %12 : vector<1x8xf32>
    %14 = math.rsqrt %13 : vector<1x8xf32>
    %c0_6 = arith.constant 0 : index
    %c0_7 = arith.constant 0 : index
    %15 = vector.load %arg3[%c0_6, %c0_7] : memref<1x8xf32, #tpu.memory_space<vmem>>, vector<1x8xf32>
    %16 = arith.mulf %15, %14 : vector<1x8xf32>
    %c0_8 = arith.constant 0 : index
    %c0_9 = arith.constant 0 : index
    %17 = vector.load %arg4[%c0_8, %c0_9] : memref<1x8xf32, #tpu.memory_space<vmem>>, vector<1x8xf32>
    %18 = arith.mulf %4, %16 : vector<1x8xf32>
    %19 = arith.subf %17, %18 : vector<1x8xf32>
    %c0_10 = arith.constant 0 : index
    %c0_11 = arith.constant 0 : index
    %c0_12 = arith.constant 0 : index
    %20 = vector.load %arg1[%c0_10, %c0_11, %c0_12] : memref<1x256x8xf32, #tpu.memory_space<vmem>>, vector<1x256x8xf32>
    %21 = vector.shape_cast %20 : vector<1x256x8xf32> to vector<256x8xf32>
    %22 = vector.broadcast %16 : vector<1x8xf32> to vector<256x8xf32>
    %23 = arith.mulf %21, %22 : vector<256x8xf32>
    %24 = vector.broadcast %19 : vector<1x8xf32> to vector<256x8xf32>
    %25 = arith.addf %23, %24 : vector<256x8xf32>
    %cst_13 = arith.constant 0.000000e+00 : f32
    %26 = vector.broadcast %cst_13 : f32 to vector<256x8xf32>
    %27 = arith.maximumf %25, %26 : vector<256x8xf32>
    %28 = arith.truncf %27 : vector<256x8xf32> to vector<256x8xbf16>
    %29 = vector.shape_cast %28 : vector<256x8xbf16> to vector<1x16x16x8xbf16>
    %c0_14 = arith.constant 0 : index
    %c0_15 = arith.constant 0 : index
    %c0_16 = arith.constant 0 : index
    %c0_17 = arith.constant 0 : index
    %30 = vector.load %arg5[%c0_14, %c0_15, %c0_16, %c0_17] : memref<1x16x16x8xbf16, #tpu.memory_space<vmem>>, vector<1x16x16x8xbf16>
    tpu.vector_store %arg5[%c0_14, %c0_15, %c0_16, %c0_17], %29 {strides = array<i32>} : memref<1x16x16x8xbf16, #tpu.memory_space<vmem>>, vector<1x16x16x8xbf16>,
    return
  }
  func.func @transform_0(%arg0: i32) -> (i32, i32, i32) {
    %c0_i32 = arith.constant 0 : i32
    %c0_i32_0 = arith.constant 0 : i32
    %c0_i32_1 = arith.constant 0 : i32
    return %arg0, %c0_i32, %c0_i32_0 : i32, i32, i32
  }
  func.func @transform_1(%arg0: i32) -> (i32, i32, i32) {
    %c0_i32 = arith.constant 0 : i32
    %c0_i32_0 = arith.constant 0 : i32
    %c0_i32_1 = arith.constant 0 : i32
    %c0_i32_2 = arith.constant 0 : i32
    return %c0_i32, %c0_i32_0, %c0_i32_1 : i32, i32, i32
  }
  func.func @transform_2(%arg0: i32) -> (i32, i32) {
    %c0_i32 = arith.constant 0 : i32
    %c0_i32_0 = arith.constant 0 : i32
    %c0_i32_1 = arith.constant 0 : i32
    return %c0_i32, %c0_i32_0 : i32, i32
  }
  func.func @transform_3(%arg0: i32) -> (i32, i32) {
    %c0_i32 = arith.constant 0 : i32
    %c0_i32_0 = arith.constant 0 : i32
    %c0_i32_1 = arith.constant 0 : i32
    return %c0_i32, %c0_i32_0 : i32, i32
  }
  func.func @transform_4(%arg0: i32) -> (i32, i32, i32, i32) {
    %c0_i32 = arith.constant 0 : i32
    %c0_i32_0 = arith.constant 0 : i32
    %c0_i32_1 = arith.constant 0 : i32
    %c0_i32_2 = arith.constant 0 : i32
    return %arg0, %c0_i32, %c0_i32_0, %c0_i32_1 : i32, i32, i32, i32
  }
}

module attributes {stable_mosaic.version = 11 : i64} {
  func.func @_conv3x3_stats_kernel(%arg0: i32, %arg1: memref<1x16x16x8xbf16, #tpu.memory_space<vmem>>, %arg2: memref<72x8xbf16, #tpu.memory_space<vmem>>, %arg3: memref<1x256x8xf32, #tpu.memory_space<vmem>>, %arg4: memref<1x2x8xf32, #tpu.memory_space<vmem>>, %arg5: memref<18x18x8xbf16, #tpu.memory_space<vmem>>) attributes {dimension_semantics = [#tpu.dimension_semantics<parallel>], iteration_bounds = array<i64: 2>, scalar_prefetch = 0 : i64, scratch_operands = 1 : i64, tpu.core_type = #tpu.core_type<tc>, window_params = [{transform_indices = @transform_0, window_bounds = array<i64: 1, 16, 16, 8>}, {pipeline_mode = #tpu.pipeline_mode<synchronous>, transform_indices = @transform_1, window_bounds = array<i64: 72, 8>}, {transform_indices = @transform_2, window_bounds = array<i64: 1, 256, 8>}, {transform_indices = @transform_3, window_bounds = array<i64: 1, 2, 8>}]} {
    %cst = arith.constant 0.000000e+00 : bf16
    %0 = vector.broadcast %cst : bf16 to vector<18x18x8xbf16>
    %c0 = arith.constant 0 : index
    %c0_0 = arith.constant 0 : index
    %c0_1 = arith.constant 0 : index
    %1 = vector.load %arg5[%c0, %c0_0, %c0_1] : memref<18x18x8xbf16, #tpu.memory_space<vmem>>, vector<18x18x8xbf16>
    tpu.vector_store %arg5[%c0, %c0_0, %c0_1], %0 {strides = array<i32>} : memref<18x18x8xbf16, #tpu.memory_space<vmem>>, vector<18x18x8xbf16>,
    %c0_2 = arith.constant 0 : index
    %c0_3 = arith.constant 0 : index
    %c0_4 = arith.constant 0 : index
    %c0_5 = arith.constant 0 : index
    %2 = vector.load %arg1[%c0_2, %c0_3, %c0_4, %c0_5] : memref<1x16x16x8xbf16, #tpu.memory_space<vmem>>, vector<1x16x16x8xbf16>
    %3 = vector.shape_cast %2 : vector<1x16x16x8xbf16> to vector<16x16x8xbf16>
    %c1 = arith.constant 1 : index
    %c1_6 = arith.constant 1 : index
    %c0_7 = arith.constant 0 : index
    %4 = vector.load %arg5[%c1, %c1_6, %c0_7] : memref<18x18x8xbf16, #tpu.memory_space<vmem>>, vector<16x16x8xbf16>
    tpu.vector_store %arg5[%c1, %c1_6, %c0_7], %3 {strides = array<i32>} : memref<18x18x8xbf16, #tpu.memory_space<vmem>>, vector<16x16x8xbf16>,
    %c0_8 = arith.constant 0 : index
    %c0_9 = arith.constant 0 : index
    %c0_10 = arith.constant 0 : index
    %5 = vector.load %arg5[%c0_8, %c0_9, %c0_10] : memref<18x18x8xbf16, #tpu.memory_space<vmem>>, vector<16x16x8xbf16>
    %6 = vector.shape_cast %5 : vector<16x16x8xbf16> to vector<256x8xbf16>
    %c0_11 = arith.constant 0 : index
    %c1_12 = arith.constant 1 : index
    %c0_13 = arith.constant 0 : index
    %7 = vector.load %arg5[%c0_11, %c1_12, %c0_13] : memref<18x18x8xbf16, #tpu.memory_space<vmem>>, vector<16x16x8xbf16>
    %8 = vector.shape_cast %7 : vector<16x16x8xbf16> to vector<256x8xbf16>
    %c0_14 = arith.constant 0 : index
    %c2 = arith.constant 2 : index
    %c0_15 = arith.constant 0 : index
    %9 = vector.load %arg5[%c0_14, %c2, %c0_15] : memref<18x18x8xbf16, #tpu.memory_space<vmem>>, vector<16x16x8xbf16>
    %10 = vector.shape_cast %9 : vector<16x16x8xbf16> to vector<256x8xbf16>
    %c1_16 = arith.constant 1 : index
    %c0_17 = arith.constant 0 : index
    %c0_18 = arith.constant 0 : index
    %11 = vector.load %arg5[%c1_16, %c0_17, %c0_18] : memref<18x18x8xbf16, #tpu.memory_space<vmem>>, vector<16x16x8xbf16>
    %12 = vector.shape_cast %11 : vector<16x16x8xbf16> to vector<256x8xbf16>
    %c1_19 = arith.constant 1 : index
    %c1_20 = arith.constant 1 : index
    %c0_21 = arith.constant 0 : index
    %13 = vector.load %arg5[%c1_19, %c1_20, %c0_21] : memref<18x18x8xbf16, #tpu.memory_space<vmem>>, vector<16x16x8xbf16>
    %14 = vector.shape_cast %13 : vector<16x16x8xbf16> to vector<256x8xbf16>
    %c1_22 = arith.constant 1 : index
    %c2_23 = arith.constant 2 : index
    %c0_24 = arith.constant 0 : index
    %15 = vector.load %arg5[%c1_22, %c2_23, %c0_24] : memref<18x18x8xbf16, #tpu.memory_space<vmem>>, vector<16x16x8xbf16>
    %16 = vector.shape_cast %15 : vector<16x16x8xbf16> to vector<256x8xbf16>
    %c2_25 = arith.constant 2 : index
    %c0_26 = arith.constant 0 : index
    %c0_27 = arith.constant 0 : index
    %17 = vector.load %arg5[%c2_25, %c0_26, %c0_27] : memref<18x18x8xbf16, #tpu.memory_space<vmem>>, vector<16x16x8xbf16>
    %18 = vector.shape_cast %17 : vector<16x16x8xbf16> to vector<256x8xbf16>
    %c2_28 = arith.constant 2 : index
    %c1_29 = arith.constant 1 : index
    %c0_30 = arith.constant 0 : index
    %19 = vector.load %arg5[%c2_28, %c1_29, %c0_30] : memref<18x18x8xbf16, #tpu.memory_space<vmem>>, vector<16x16x8xbf16>
    %20 = vector.shape_cast %19 : vector<16x16x8xbf16> to vector<256x8xbf16>
    %c2_31 = arith.constant 2 : index
    %c2_32 = arith.constant 2 : index
    %c0_33 = arith.constant 0 : index
    %21 = vector.load %arg5[%c2_31, %c2_32, %c0_33] : memref<18x18x8xbf16, #tpu.memory_space<vmem>>, vector<16x16x8xbf16>
    %22 = vector.shape_cast %21 : vector<16x16x8xbf16> to vector<256x8xbf16>
    %23 = tpu.concatenate %6, %8, %10, %12, %14, %16, %18, %20, %22 in 1 : vector<256x8xbf16>, vector<256x8xbf16>, vector<256x8xbf16>, vector<256x8xbf16>, vector<256x8xbf16>, vector<256x8xbf16>, vector<256x8xbf16>, vector<256x8xbf16>, vector<256x8xbf16> -> vector<256x72xbf16>
    %c0_34 = arith.constant 0 : index
    %c0_35 = arith.constant 0 : index
    %24 = vector.load %arg2[%c0_34, %c0_35] : memref<72x8xbf16, #tpu.memory_space<vmem>>, vector<72x8xbf16>
    %cst_36 = arith.constant dense<0.000000e+00> : vector<256x8xf32>
    %25 = tpu.matmul %23, %24, %cst_36 {dimension_numbers = #tpu.dot_dimension_numbers<[1], [0], [0], [1], [0, 0, 1, 1], [], []>} : vector<256x72xbf16>, vector<72x8xbf16>, vector<256x8xf32> -> vector<256x8xf32>
    %cst_37 = arith.constant dense<0.000000e+00> : vector<8xf32>
    %26 = vector.multi_reduction <add>, %25, %cst_37 [0] : vector<256x8xf32> to vector<8xf32>
    %27 = vector.shape_cast %26 : vector<8xf32> to vector<1x8xf32>
    %28 = arith.mulf %25, %25 : vector<256x8xf32>
    %cst_38 = arith.constant dense<0.000000e+00> : vector<8xf32>
    %29 = vector.multi_reduction <add>, %28, %cst_38 [0] : vector<256x8xf32> to vector<8xf32>
    %30 = vector.shape_cast %29 : vector<8xf32> to vector<1x8xf32>
    %31 = vector.shape_cast %25 : vector<256x8xf32> to vector<1x256x8xf32>
    %c0_39 = arith.constant 0 : index
    %c0_40 = arith.constant 0 : index
    %c0_41 = arith.constant 0 : index
    %32 = vector.load %arg3[%c0_39, %c0_40, %c0_41] : memref<1x256x8xf32, #tpu.memory_space<vmem>>, vector<1x256x8xf32>
    tpu.vector_store %arg3[%c0_39, %c0_40, %c0_41], %31 {strides = array<i32>} : memref<1x256x8xf32, #tpu.memory_space<vmem>>, vector<1x256x8xf32>,
    %33 = tpu.concatenate %27, %30 in 0 : vector<1x8xf32>, vector<1x8xf32> -> vector<2x8xf32>
    %34 = vector.shape_cast %33 : vector<2x8xf32> to vector<1x2x8xf32>
    %c0_42 = arith.constant 0 : index
    %c0_43 = arith.constant 0 : index
    %c0_44 = arith.constant 0 : index
    %35 = vector.load %arg4[%c0_42, %c0_43, %c0_44] : memref<1x2x8xf32, #tpu.memory_space<vmem>>, vector<1x2x8xf32>
    tpu.vector_store %arg4[%c0_42, %c0_43, %c0_44], %34 {strides = array<i32>} : memref<1x2x8xf32, #tpu.memory_space<vmem>>, vector<1x2x8xf32>,
    return
  }
  func.func @transform_0(%arg0: i32) -> (i32, i32, i32, i32) {
    %c0_i32 = arith.constant 0 : i32
    %c0_i32_0 = arith.constant 0 : i32
    %c0_i32_1 = arith.constant 0 : i32
    %c0_i32_2 = arith.constant 0 : i32
    return %arg0, %c0_i32, %c0_i32_0, %c0_i32_1 : i32, i32, i32, i32
  }
  func.func @transform_1(%arg0: i32) -> (i32, i32) {
    %c0_i32 = arith.constant 0 : i32
    %c0_i32_0 = arith.constant 0 : i32
    %c0_i32_1 = arith.constant 0 : i32
    return %c0_i32, %c0_i32_0 : i32, i32
  }
  func.func @transform_2(%arg0: i32) -> (i32, i32, i32) {
    %c0_i32 = arith.constant 0 : i32
    %c0_i32_0 = arith.constant 0 : i32
    %c0_i32_1 = arith.constant 0 : i32
    return %arg0, %c0_i32, %c0_i32_0 : i32, i32, i32
  }
  func.func @transform_3(%arg0: i32) -> (i32, i32, i32) {
    %c0_i32 = arith.constant 0 : i32
    %c0_i32_0 = arith.constant 0 : i32
    %c0_i32_1 = arith.constant 0 : i32
    return %arg0, %c0_i32, %c0_i32_0 : i32, i32, i32
  }
}

module attributes {stable_mosaic.version = 11 : i64} {
  func.func @_bn_relu_interleave_kernel(%arg0: i32, %arg1: memref<1x256x16xf32, #tpu.memory_space<vmem>>, %arg2: memref<2x2x16xf32, #tpu.memory_space<vmem>>, %arg3: memref<1x4xf32, #tpu.memory_space<vmem>>, %arg4: memref<1x4xf32, #tpu.memory_space<vmem>>, %arg5: memref<1x16x2x16x8xf32, #tpu.memory_space<vmem>>) attributes {dimension_semantics = [#tpu.dimension_semantics<parallel>], iteration_bounds = array<i64: 2>, scalar_prefetch = 0 : i64, scratch_operands = 0 : i64, tpu.core_type = #tpu.core_type<tc>, window_params = [{transform_indices = @transform_0, window_bounds = array<i64: 1, 256, 16>}, {pipeline_mode = #tpu.pipeline_mode<synchronous>, transform_indices = @transform_1, window_bounds = array<i64: 2, 2, 16>}, {pipeline_mode = #tpu.pipeline_mode<synchronous>, transform_indices = @transform_2, window_bounds = array<i64: 1, 4>}, {pipeline_mode = #tpu.pipeline_mode<synchronous>, transform_indices = @transform_3, window_bounds = array<i64: 1, 4>}, {transform_indices = @transform_4, window_bounds = array<i64: 1, 16, 2, 16, 8>}]} {
    %c0 = arith.constant 0 : index
    %c0_0 = arith.constant 0 : index
    %c0_1 = arith.constant 0 : index
    %0 = vector.load %arg2[%c0, %c0_0, %c0_1] : memref<2x2x16xf32, #tpu.memory_space<vmem>>, vector<2x2x16xf32>
    %cst = arith.constant dense<0.000000e+00> : vector<2x16xf32>
    %1 = vector.multi_reduction <add>, %0, %cst [0] : vector<2x2x16xf32> to vector<2x16xf32>
    %2 = vector.extract_strided_slice %1 {offsets = [0, 0], sizes = [1, 16], strides = [1, 1]} : vector<2x16xf32> to vector<1x16xf32>
    %3 = vector.extract_strided_slice %1 {offsets = [1, 0], sizes = [1, 16], strides = [1, 1]} : vector<2x16xf32> to vector<1x16xf32>
    %4 = vector.extract_strided_slice %2 {offsets = [0, 0], sizes = [1, 4], strides = [1, 1]} : vector<1x16xf32> to vector<1x4xf32>
    %5 = vector.extract_strided_slice %2 {offsets = [0, 4], sizes = [1, 4], strides = [1, 1]} : vector<1x16xf32> to vector<1x4xf32>
    %6 = arith.addf %4, %5 : vector<1x4xf32>
    %7 = vector.extract_strided_slice %2 {offsets = [0, 8], sizes = [1, 4], strides = [1, 1]} : vector<1x16xf32> to vector<1x4xf32>
    %8 = arith.addf %6, %7 : vector<1x4xf32>
    %9 = vector.extract_strided_slice %2 {offsets = [0, 12], sizes = [1, 4], strides = [1, 1]} : vector<1x16xf32> to vector<1x4xf32>
    %10 = arith.addf %8, %9 : vector<1x4xf32>
    %11 = vector.extract_strided_slice %3 {offsets = [0, 0], sizes = [1, 4], strides = [1, 1]} : vector<1x16xf32> to vector<1x4xf32>
    %12 = vector.extract_strided_slice %3 {offsets = [0, 4], sizes = [1, 4], strides = [1, 1]} : vector<1x16xf32> to vector<1x4xf32>
    %13 = arith.addf %11, %12 : vector<1x4xf32>
    %14 = vector.extract_strided_slice %3 {offsets = [0, 8], sizes = [1, 4], strides = [1, 1]} : vector<1x16xf32> to vector<1x4xf32>
    %15 = arith.addf %13, %14 : vector<1x4xf32>
    %16 = vector.extract_strided_slice %3 {offsets = [0, 12], sizes = [1, 4], strides = [1, 1]} : vector<1x16xf32> to vector<1x4xf32>
    %17 = arith.addf %15, %16 : vector<1x4xf32>
    %cst_2 = arith.constant 4.8828125E-4 : f32
    %18 = vector.broadcast %cst_2 : f32 to vector<1x4xf32>
    %19 = arith.mulf %10, %18 : vector<1x4xf32>
    %cst_3 = arith.constant 4.8828125E-4 : f32
    %20 = vector.broadcast %cst_3 : f32 to vector<1x4xf32>
    %21 = arith.mulf %17, %20 : vector<1x4xf32>
    %22 = arith.mulf %19, %19 : vector<1x4xf32>
    %23 = arith.subf %21, %22 : vector<1x4xf32>
    %cst_4 = arith.constant 0.000000e+00 : f32
    %24 = vector.broadcast %cst_4 : f32 to vector<1x4xf32>
    %25 = arith.maximumf %23, %24 : vector<1x4xf32>
    %cst_5 = arith.constant 9.99999974E-6 : f32
    %26 = vector.broadcast %cst_5 : f32 to vector<1x4xf32>
    %27 = arith.addf %25, %26 : vector<1x4xf32>
    %28 = math.rsqrt %27 : vector<1x4xf32>
    %c0_6 = arith.constant 0 : index
    %c0_7 = arith.constant 0 : index
    %29 = vector.load %arg3[%c0_6, %c0_7] : memref<1x4xf32, #tpu.memory_space<vmem>>, vector<1x4xf32>
    %30 = arith.mulf %29, %28 : vector<1x4xf32>
    %c0_8 = arith.constant 0 : index
    %c0_9 = arith.constant 0 : index
    %31 = vector.load %arg4[%c0_8, %c0_9] : memref<1x4xf32, #tpu.memory_space<vmem>>, vector<1x4xf32>
    %32 = arith.mulf %19, %30 : vector<1x4xf32>
    %33 = arith.subf %31, %32 : vector<1x4xf32>
    %34 = tpu.concatenate %30, %30, %30, %30 in 1 : vector<1x4xf32>, vector<1x4xf32>, vector<1x4xf32>, vector<1x4xf32> -> vector<1x16xf32>
    %35 = tpu.concatenate %33, %33, %33, %33 in 1 : vector<1x4xf32>, vector<1x4xf32>, vector<1x4xf32>, vector<1x4xf32> -> vector<1x16xf32>
    %c0_10 = arith.constant 0 : index
    %c0_11 = arith.constant 0 : index
    %c0_12 = arith.constant 0 : index
    %36 = vector.load %arg1[%c0_10, %c0_11, %c0_12] : memref<1x256x16xf32, #tpu.memory_space<vmem>>, vector<1x256x16xf32>
    %37 = vector.shape_cast %36 : vector<1x256x16xf32> to vector<256x16xf32>
    %38 = vector.broadcast %34 : vector<1x16xf32> to vector<256x16xf32>
    %39 = arith.mulf %37, %38 : vector<256x16xf32>
    %40 = vector.broadcast %35 : vector<1x16xf32> to vector<256x16xf32>
    %41 = arith.addf %39, %40 : vector<256x16xf32>
    %cst_13 = arith.constant 0.000000e+00 : f32
    %42 = vector.broadcast %cst_13 : f32 to vector<256x16xf32>
    %43 = arith.maximumf %41, %42 : vector<256x16xf32>
    %44 = vector.extract_strided_slice %43 {offsets = [0, 0], sizes = [256, 8], strides = [1, 1]} : vector<256x16xf32> to vector<256x8xf32>
    %45 = vector.shape_cast %44 : vector<256x8xf32> to vector<16x16x8xf32>
    %c0_14 = arith.constant 0 : index
    %c0_15 = arith.constant 0 : index
    %c0_16 = arith.constant 0 : index
    %c0_17 = arith.constant 0 : index
    %c0_18 = arith.constant 0 : index
    %46 = vector.load %arg5[%c0_14, %c0_15, %c0_16, %c0_17, %c0_18] : memref<1x16x2x16x8xf32, #tpu.memory_space<vmem>>, vector<1x16x1x16x8xf32>
    %47 = vector.shape_cast %46 : vector<1x16x1x16x8xf32> to vector<16x16x8xf32>
    %48 = vector.shape_cast %45 : vector<16x16x8xf32> to vector<1x16x1x16x8xf32>
    tpu.vector_store %arg5[%c0_14, %c0_15, %c0_16, %c0_17, %c0_18], %48 {strides = array<i32>} : memref<1x16x2x16x8xf32, #tpu.memory_space<vmem>>, vector<1x16x1x16x8xf32>,
    %49 = vector.extract_strided_slice %43 {offsets = [0, 8], sizes = [256, 8], strides = [1, 1]} : vector<256x16xf32> to vector<256x8xf32>
    %50 = vector.shape_cast %49 : vector<256x8xf32> to vector<16x16x8xf32>
    %c0_19 = arith.constant 0 : index
    %c0_20 = arith.constant 0 : index
    %c1 = arith.constant 1 : index
    %c0_21 = arith.constant 0 : index
    %c0_22 = arith.constant 0 : index
    %51 = vector.load %arg5[%c0_19, %c0_20, %c1, %c0_21, %c0_22] : memref<1x16x2x16x8xf32, #tpu.memory_space<vmem>>, vector<1x16x1x16x8xf32>
    %52 = vector.shape_cast %51 : vector<1x16x1x16x8xf32> to vector<16x16x8xf32>
    %53 = vector.shape_cast %50 : vector<16x16x8xf32> to vector<1x16x1x16x8xf32>
    tpu.vector_store %arg5[%c0_19, %c0_20, %c1, %c0_21, %c0_22], %53 {strides = array<i32>} : memref<1x16x2x16x8xf32, #tpu.memory_space<vmem>>, vector<1x16x1x16x8xf32>,
    return
  }
  func.func @transform_0(%arg0: i32) -> (i32, i32, i32) {
    %c0_i32 = arith.constant 0 : i32
    %c0_i32_0 = arith.constant 0 : i32
    %c0_i32_1 = arith.constant 0 : i32
    return %arg0, %c0_i32, %c0_i32_0 : i32, i32, i32
  }
  func.func @transform_1(%arg0: i32) -> (i32, i32, i32) {
    %c0_i32 = arith.constant 0 : i32
    %c0_i32_0 = arith.constant 0 : i32
    %c0_i32_1 = arith.constant 0 : i32
    %c0_i32_2 = arith.constant 0 : i32
    return %c0_i32, %c0_i32_0, %c0_i32_1 : i32, i32, i32
  }
  func.func @transform_2(%arg0: i32) -> (i32, i32) {
    %c0_i32 = arith.constant 0 : i32
    %c0_i32_0 = arith.constant 0 : i32
    %c0_i32_1 = arith.constant 0 : i32
    return %c0_i32, %c0_i32_0 : i32, i32
  }
  func.func @transform_3(%arg0: i32) -> (i32, i32) {
    %c0_i32 = arith.constant 0 : i32
    %c0_i32_0 = arith.constant 0 : i32
    %c0_i32_1 = arith.constant 0 : i32
    return %c0_i32, %c0_i32_0 : i32, i32
  }
  func.func @transform_4(%arg0: i32) -> (i32, i32, i32, i32, i32) {
    %c0_i32 = arith.constant 0 : i32
    %c0_i32_0 = arith.constant 0 : i32
    %c0_i32_1 = arith.constant 0 : i32
    %c0_i32_2 = arith.constant 0 : i32
    %c0_i32_3 = arith.constant 0 : i32
    return %arg0, %c0_i32, %c0_i32_0, %c0_i32_1, %c0_i32_2 : i32, i32, i32, i32, i32
  }
}

</mosaic_0001>

<bundles_post_ra>
// kernel: _lambda_.7
= control target key start
LH: loop header
LB: loop body
LE: loop exit
PB: predicated region body
PF: predicated region fallthrough
CT: control target
= control target key end

     0   :  { %s713_s15 = smov 0   ;;  %s914_s0 = inlined_call_operand.vmem [shape: f32[2,256,8], index: 0, kind: input, shape index: {}]   ;;  %s915_s1 = inlined_call_operand.vmem [shape: f32[2,2,8], index: 1, kind: input, shape index: {}]   ;;  %s916_s2 = inlined_call_operand.vmem [shape: f32[1,8], index: 2, kind: input, shape index: {}]   ;;  %s917_s3 = inlined_call_operand.vmem [shape: f32[1,8], index: 3, kind: input, shape index: {}]   ;;  %s918_s4 = inlined_call_operand.vmem [shape: bf16[2,16,16,8], index: 4, kind: output, shape index: {}]  }
   0x1 LB: > { %s591_s16 = sadd.s32 4294967295, %s685_s15   ;;  %p595_p0 = scmp.ge.s32.totalorder %s685_s15, 1  ;;  %s685_s15 = sphi %s713_s15, %s14_s15  }
   0x2   : > { %p162_p1 = scmp.lt.s32.totalorder %s685_s15, 3 }
   0x4   : > { %p163_p2 = pnand %p595_p0, %p162_p1 }
   0x5   : > { %v198_v0 = vld [vmem:[%s915_s1] sm:$0x3] (!%p163_p2)  ;;  %v199_v1 = vld [vmem:[%s915_s1 + $0x2] sm:$0x3] (!%p163_p2)  ;;  %vm200_vm0 = vcmask (!%p163_p2), 58368   ;;  %v218_v13 = vlaneseq (!%p163_p2)  ;;  %p188_p3 = scmp.lt.s32.totalorder (!%p163_p2), %s591_s16, 1 }
   0x6   : > { %166 = sbr.rel (%p163_p2) target bundleno = 81 (0x51), region = 36  ;;  %v201_v2 = vsel (!%p163_p2), %vm200_vm0, %v198_v0, 0.0  ;;  %v202_v3 = vsel (!%p163_p2), %vm200_vm0, %v199_v1, 0.0  ;;  %v687_v11 = vmov (!%p163_p2), 1966171168   ;;  %vm503_vm1 = vcmask (!%p163_p2), 60416  }
   0x7   : > { %v203_v4 = vadd.f32 (!%p163_p2), %v202_v3, %v201_v2  ;;  %v216_v12 = vunpack.c.l.s4 (!%p163_p2), %v687_v11  ;;  %v219_v15 = vshrl.u32 (!%p163_p2), %v218_v13, 7  ;;  %v213_v20 = vld [vmem:[%s916_s2] sm:$0x1] (!%p163_p2) }
   0x8   : > { %v232_v24 = vld [vmem:[%s917_s3] sm:$0x1] (!%p163_p2) }
   0x9   : > { %v204_v5 = vmul.f32 (!%p163_p2), 0.001953125, %v203_v4  ;;  %v217_v14 = vunpack.c.0.s8 (!%p163_p2), %v216_v12  ;;  %v270_v22 = vsub.s32 (!%p163_p2), 0, %v219_v15 }
   0xb   : > { %v205_v6 = vmul.f32 (!%p163_p2), %v204_v5, %v204_v5  ;;  %v220_v16 = vsub.s32 (!%p163_p2), %v217_v14, %v219_v15 }
   0xd   : > { %v207_v7 = vrot.slane %v205_v6, 7  ;;  %s920_s16 = smov (!%p188_p3, %s591_s16), 1 }
   0xe   : > { %s634_s21 = sshll.u32 %s920_s16, 8  ;;  %s635_s29 = sshll.u32 %s920_s16, 7 }
   0xf   : > { %v209_v8 = vsub.f32 %v204_v5, %v207_v7  ;;  %s733_s24 = scalar_lea.vmem %s914_s0, %s634_s21  ;;  %s785_s6 = scalar_lea.vmem %s918_s4, %s635_s29 }
  0x10   : > { %v235_v25 = vld [vmem:[%s733_s24] sm:$0xff]  ;;  %v236_v26 = vld [vmem:[%s733_s24 + $0x8] sm:$0xff]  ;;  %v237_v27 = vld [vmem:[%s733_s24 + $0x10] sm:$0xff] }
  0x11   : > { %v210_v9 = vmax.f32 %v209_v8, 0.0  ;;  %v238_v28 = vld [vmem:[%s733_s24 + $0x18] sm:$0xff]  ;;  %v239_v29 = vld [vmem:[%s733_s24 + $0x20] sm:$0xff]  ;;  %v240_v32 = vld [vmem:[%s733_s24 + $0x28] sm:$0xff] }
  0x12   : > { %v241_v33 = vld [vmem:[%s733_s24 + $0x30] sm:$0xff]  ;;  %v242_v34 = vld [vmem:[%s733_s24 + $0x38] sm:$0xff]  ;;  %v243_v35 = vld [vmem:[%s733_s24 + $0x40] sm:$0xff] }
  0x13   : > { %v211_v10 = vadd.f32 1e-05, %v210_v9  ;;  %v244_v36 = vld [vmem:[%s733_s24 + $0x48] sm:$0xff]  ;;  %v245_v37 = vld [vmem:[%s733_s24 + $0x50] sm:$0xff]  ;;  %v246_v42 = vld [vmem:[%s733_s24 + $0x58] sm:$0xff] }
  0x14   : > { %v247_v43 = vld [vmem:[%s733_s24 + $0x60] sm:$0xff]  ;;  %v248_v44 = vld [vmem:[%s733_s24 + $0x68] sm:$0xff]  ;;  %v249_v13 = vld [vmem:[%s733_s24 + $0x70] sm:$0xff] }
  0x15   : > { %677 = vrsqrt.f32 %v211_v10  ;;  %v250_v14 = vld [vmem:[%s733_s24 + $0x78] sm:$0xff] }
  0x1f   : > { %v678_v17 = vpop.eup %677 }
  0x20   : > { %v221_v18 = vrot.slane %v678_v17, %v220_v16 }
  0x22   : > { %v222_v19 = vcombine.high %v221_v18, %v221_v18 }
  0x24   : > { %v229_v21 = vrot.slane %v222_v19, %v220_v16 }
  0x26   : > { %v231_v23 = vmul.f32 %v229_v21, %v213_v20 }
  0x28   : > { %v233_v30 = vmul.f32 %v231_v23, %v204_v5  ;;  %v746_v31 = vrot.slane %v231_v23, %v270_v22 }
  0x2a   : > { %v234_v38 = vsub.f32 %v232_v24, %v233_v30  ;;  %v273_v39 = vmul.f32 %v746_v31, %v235_v25  ;;  %v274_v40 = vmul.f32 %v746_v31, %v236_v26  ;;  %v275_v41 = vmul.f32 %v746_v31, %v237_v27 }
  0x2b   : > { %v276_v45 = vmul.f32 %v746_v31, %v238_v28  ;;  %v277_v46 = vmul.f32 %v746_v31, %v239_v29  ;;  %v278_v47 = vmul.f32 %v746_v31, %v240_v32  ;;  %v279_v48 = vmul.f32 %v746_v31, %v241_v33  ;;  %v251_v32 = vld [vmem:[%s733_s24 + $0x80] sm:$0xff] }
  0x2c   : > { %v764_v49 = vrot.slane %v234_v38, %v270_v22  ;;  %v280_v50 = vmul.f32 %v746_v31, %v242_v34  ;;  %v281_v51 = vmul.f32 %v746_v31, %v243_v35  ;;  %v282_v52 = vmul.f32 %v746_v31, %v244_v36  ;;  %v253_v38 = vld [vmem:[%s733_s24 + $0x90] sm:$0xff] }
  0x2d   : > { %v283_v53 = vmul.f32 %v746_v31, %v245_v37  ;;  %v284_v54 = vmul.f32 %v746_v31, %v246_v42  ;;  %v285_v55 = vmul.f32 %v746_v31, %v247_v43  ;;  %v286_v56 = vmul.f32 %v746_v31, %v248_v44  ;;  %v252_v37 = vld [vmem:[%s733_s24 + $0x88] sm:$0xff]  ;;  %v255_v44 = vld [vmem:[%s733_s24 + $0xa0] sm:$0xff] }
  0x2e   : > { %v311_v57 = vadd.f32 %v764_v49, %v273_v39  ;;  %v312_v58 = vadd.f32 %v764_v49, %v274_v40  ;;  %v313_v59 = vadd.f32 %v764_v49, %v275_v41  ;;  %v314_v60 = vadd.f32 %v764_v49, %v276_v45  ;;  %v254_v39 = vld [vmem:[%s733_s24 + $0x98] sm:$0xff]  ;;  %v256_v45 = vld [vmem:[%s733_s24 + $0xa8] sm:$0xff] }
  0x2f   : > { %v315_v61 = vadd.f32 %v764_v49, %v277_v46  ;;  %v316_v62 = vadd.f32 %v764_v49, %v278_v47  ;;  %v317_v63 = vadd.f32 %v764_v49, %v279_v48  ;;  %v318_v0 = vadd.f32 %v764_v49, %v280_v50 }
  0x30   : > { %v343_v1 = vmax.f32 %v311_v57, 0.0  ;;  %v344_v2 = vmax.f32 %v312_v58, 0.0  ;;  %v345_v3 = vmax.f32 %v313_v59, 0.0  ;;  %v346_v4 = vmax.f32 %v314_v60, 0.0 }
  0x31   : > { %v347_v5 = vmax.f32 %v315_v61, 0.0  ;;  %v348_v6 = vmax.f32 %v316_v62, 0.0  ;;  %v349_v7 = vmax.f32 %v317_v63, 0.0  ;;  %v350_v8 = vmax.f32 %v318_v0, 0.0 }
  0x32   : > { %v636_v9 = vpack.c.bf16 %v343_v1, %v343_v1  ;;  %v637_v10 = vpack.c.bf16 %v344_v2, %v344_v2  ;;  %v638_v11 = vpack.c.bf16 %v345_v3, %v345_v3  ;;  %v639_v12 = vpack.c.bf16 %v346_v4, %v346_v4 }
  0x33   : > { %v640_v15 = vpack.c.bf16 %v347_v5, %v347_v5  ;;  %v641_v16 = vpack.c.bf16 %v348_v6, %v348_v6  ;;  %v642_v17 = vpack.c.bf16 %v349_v7, %v349_v7  ;;  %v643_v18 = vpack.c.bf16 %v350_v8, %v350_v8 }
  0x34   : > { %504 = vst.msk [vmem:[%s785_s6] sm:$0xf] %vm503_vm1, %v636_v9  ;;  %505 = vst.msk [vmem:[%s785_s6 + $0x4] sm:$0xf] %vm503_vm1, %v637_v10  ;;  %v319_v19 = vadd.f32 %v764_v49, %v281_v51  ;;  %v320_v20 = vadd.f32 %v764_v49, %v282_v52  ;;  %v321_v21 = vadd.f32 %v764_v49, %v283_v53  ;;  %v259_v9 = vld [vmem:[%s733_s24 + $0xc0] sm:$0xff] }
  0x35   : > { %506 = vst.msk [vmem:[%s785_s6 + $0x8] sm:$0xf] %vm503_vm1, %v638_v11  ;;  %507 = vst.msk [vmem:[%s785_s6 + $0xc] sm:$0xf] %vm503_vm1, %v639_v12  ;;  %v322_v22 = vadd.f32 %v764_v49, %v284_v54  ;;  %v323_v23 = vadd.f32 %v764_v49, %v285_v55  ;;  %v324_v24 = vadd.f32 %v764_v49, %v286_v56  ;;  %v257_v55 = vld [vmem:[%s733_s24 + $0xb0] sm:$0xff]  ;;  %v258_v56 = vld [vmem:[%s733_s24 + $0xb8] sm:$0xff] }
  0x36   : > { %508 = vst.msk [vmem:[%s785_s6 + $0x10] sm:$0xf] %vm503_vm1, %v640_v15  ;;  %509 = vst.msk [vmem:[%s785_s6 + $0x14] sm:$0xf] %vm503_vm1, %v641_v16  ;;  %v287_v25 = vmul.f32 %v746_v31, %v249_v13  ;;  %v288_v26 = vmul.f32 %v746_v31, %v250_v14  ;;  %v351_v27 = vmax.f32 %v319_v19, 0.0  ;;  %v352_v28 = vmax.f32 %v320_v20, 0.0 }
  0x37   : > { %510 = vst.msk [vmem:[%s785_s6 + $0x18] sm:$0xf] %vm503_vm1, %v642_v17  ;;  %511 = vst.msk [vmem:[%s785_s6 + $0x1c] sm:$0xf] %vm503_vm1, %v643_v18  ;;  %v353_v29 = vmax.f32 %v321_v21, 0.0  ;;  %v354_v30 = vmax.f32 %v322_v22, 0.0  ;;  %v289_v51 = vmul.f32 %v746_v31, %v251_v32  ;;  %v290_v52 = vmul.f32 %v746_v31, %v252_v37 }
  0x38   : > { %v355_v33 = vmax.f32 %v323_v23, 0.0  ;;  %v356_v34 = vmax.f32 %v324_v24, 0.0  ;;  %v325_v35 = vadd.f32 %v764_v49, %v287_v25  ;;  %v326_v36 = vadd.f32 %v764_v49, %v288_v26  ;;  %v260_v14 = vld [vmem:[%s733_s24 + $0xc8] sm:$0xff]  ;;  %v261_v15 = vld [vmem:[%s733_s24 + $0xd0] sm:$0xff]  ;;  %v262_v16 = vld [vmem:[%s733_s24 + $0xd8] sm:$0xff] }
  0x39   : > { %v644_v40 = vpack.c.bf16 %v351_v27, %v351_v27  ;;  %v645_v41 = vpack.c.bf16 %v352_v28, %v352_v28  ;;  %v646_v42 = vpack.c.bf16 %v353_v29, %v353_v29  ;;  %v647_v43 = vpack.c.bf16 %v354_v30, %v354_v30  ;;  %v263_v21 = vld [vmem:[%s733_s24 + $0xe0] sm:$0xff]  ;;  %v264_v22 = vld [vmem:[%s733_s24 + $0xe8] sm:$0xff]  ;;  %v265_v32 = vld [vmem:[%s733_s24 + $0xf0] sm:$0xff] }
  0x3a   : > { %v648_v46 = vpack.c.bf16 %v355_v33, %v355_v33  ;;  %v649_v47 = vpack.c.bf16 %v356_v34, %v356_v34  ;;  %v357_v48 = vmax.f32 %v325_v35, 0.0  ;;  %v358_v50 = vmax.f32 %v326_v36, 0.0  ;;  %v266_v33 = vld [vmem:[%s733_s24 + $0xf8] sm:$0xff] }
  0x3b   : > { %512 = vst.msk [vmem:[%s785_s6 + $0x20] sm:$0xf] %vm503_vm1, %v644_v40  ;;  %513 = vst.msk [vmem:[%s785_s6 + $0x24] sm:$0xf] %vm503_vm1, %v645_v41  ;;  %v291_v53 = vmul.f32 %v746_v31, %v253_v38  ;;  %v292_v54 = vmul.f32 %v746_v31, %v254_v39  ;;  %v293_v59 = vmul.f32 %v746_v31, %v255_v44 }
  0x3c   : > { %514 = vst.msk [vmem:[%s785_s6 + $0x28] sm:$0xf] %vm503_vm1, %v646_v42  ;;  %515 = vst.msk [vmem:[%s785_s6 + $0x2c] sm:$0xf] %vm503_vm1, %v647_v43  ;;  %v650_v57 = vpack.c.bf16 %v357_v48, %v357_v48  ;;  %v651_v58 = vpack.c.bf16 %v358_v50, %v358_v50  ;;  %v294_v60 = vmul.f32 %v746_v31, %v256_v45 }
  0x3d   : > { %516 = vst.msk [vmem:[%s785_s6 + $0x30] sm:$0xf] %vm503_vm1, %v648_v46  ;;  %517 = vst.msk [vmem:[%s785_s6 + $0x34] sm:$0xf] %vm503_vm1, %v649_v47  ;;  %v327_v61 = vadd.f32 %v764_v49, %v289_v51  ;;  %v328_v62 = vadd.f32 %v764_v49, %v290_v52  ;;  %v329_v63 = vadd.f32 %v764_v49, %v291_v53 }
  0x3e   : > { %v330_v0 = vadd.f32 %v764_v49, %v292_v54  ;;  %518 = vst.msk [vmem:[%s785_s6 + $0x38] sm:$0xf] %vm503_vm1, %v650_v57  ;;  %519 = vst.msk [vmem:[%s785_s6 + $0x3c] sm:$0xf] %vm503_vm1, %v651_v58  ;;  %v331_v1 = vadd.f32 %v764_v49, %v293_v59  ;;  %v332_v2 = vadd.f32 %v764_v49, %v294_v60 }
  0x3f   : > { %v295_v3 = vmul.f32 %v746_v31, %v257_v55  ;;  %v296_v4 = vmul.f32 %v746_v31, %v258_v56  ;;  %v359_v5 = vmax.f32 %v327_v61, 0.0  ;;  %v360_v6 = vmax.f32 %v328_v62, 0.0 }
  0x40   : > { %v361_v7 = vmax.f32 %v329_v63, 0.0  ;;  %v362_v8 = vmax.f32 %v330_v0, 0.0  ;;  %v363_v10 = vmax.f32 %v331_v1, 0.0  ;;  %v364_v11 = vmax.f32 %v332_v2, 0.0 }
  0x41   : > { %v333_v12 = vadd.f32 %v764_v49, %v295_v3  ;;  %v334_v13 = vadd.f32 %v764_v49, %v296_v4  ;;  %v652_v17 = vpack.c.bf16 %v359_v5, %v359_v5  ;;  %v653_v18 = vpack.c.bf16 %v360_v6, %v360_v6 }
  0x42   : > { %v654_v19 = vpack.c.bf16 %v361_v7, %v361_v7  ;;  %v655_v20 = vpack.c.bf16 %v362_v8, %v362_v8  ;;  %v656_v23 = vpack.c.bf16 %v363_v10, %v363_v10  ;;  %v657_v24 = vpack.c.bf16 %v364_v11, %v364_v11 }
  0x43   : > { %v365_v25 = vmax.f32 %v333_v12, 0.0  ;;  %v366_v26 = vmax.f32 %v334_v13, 0.0  ;;  %520 = vst.msk [vmem:[%s785_s6 + $0x40] sm:$0xf] %vm503_vm1, %v652_v17  ;;  %521 = vst.msk [vmem:[%s785_s6 + $0x44] sm:$0xf] %vm503_vm1, %v653_v18  ;;  %v297_v27 = vmul.f32 %v746_v31, %v259_v9  ;;  %v298_v28 = vmul.f32 %v746_v31, %v260_v14 }
  0x44   : > { %522 = vst.msk [vmem:[%s785_s6 + $0x48] sm:$0xf] %vm503_vm1, %v654_v19  ;;  %523 = vst.msk [vmem:[%s785_s6 + $0x4c] sm:$0xf] %vm503_vm1, %v655_v20  ;;  %v299_v29 = vmul.f32 %v746_v31, %v261_v15  ;;  %v300_v30 = vmul.f32 %v746_v31, %v262_v16  ;;  %v301_v36 = vmul.f32 %v746_v31, %v263_v21 }
  0x45   : > { %524 = vst.msk [vmem:[%s785_s6 + $0x50] sm:$0xf] %vm503_vm1, %v656_v23  ;;  %525 = vst.msk [vmem:[%s785_s6 + $0x54] sm:$0xf] %vm503_vm1, %v657_v24  ;;  %v658_v34 = vpack.c.bf16 %v365_v25, %v365_v25  ;;  %v659_v35 = vpack.c.bf16 %v366_v26, %v366_v26  ;;  %v302_v37 = vmul.f32 %v746_v31, %v264_v22 }
  0x46   : > { %v335_v38 = vadd.f32 %v764_v49, %v297_v27  ;;  %v336_v39 = vadd.f32 %v764_v49, %v298_v28  ;;  %v337_v40 = vadd.f32 %v764_v49, %v299_v29  ;;  %v338_v41 = vadd.f32 %v764_v49, %v300_v30 }
  0x47   : > { %526 = vst.msk [vmem:[%s785_s6 + $0x58] sm:$0xf] %vm503_vm1, %v658_v34  ;;  %527 = vst.msk [vmem:[%s785_s6 + $0x5c] sm:$0xf] %vm503_vm1, %v659_v35  ;;  %v339_v42 = vadd.f32 %v764_v49, %v301_v36  ;;  %v340_v43 = vadd.f32 %v764_v49, %v302_v37  ;;  %v303_v44 = vmul.f32 %v746_v31, %v265_v32 }
  0x48   : > { %v304_v45 = vmul.f32 %v746_v31, %v266_v33  ;;  %v367_v46 = vmax.f32 %v335_v38, 0.0  ;;  %v368_v47 = vmax.f32 %v336_v39, 0.0  ;;  %v369_v48 = vmax.f32 %v337_v40, 0.0 }
  0x49   : > { %v370_v50 = vmax.f32 %v338_v41, 0.0  ;;  %v371_v51 = vmax.f32 %v339_v42, 0.0  ;;  %v372_v52 = vmax.f32 %v340_v43, 0.0  ;;  %v341_v53 = vadd.f32 %v764_v49, %v303_v44 }
  0x4a   : > { %v342_v54 = vadd.f32 %v764_v49, %v304_v45  ;;  %v660_v55 = vpack.c.bf16 %v367_v46, %v367_v46  ;;  %v661_v56 = vpack.c.bf16 %v368_v47, %v368_v47  ;;  %v662_v31 = vpack.c.bf16 %v369_v48, %v369_v48 }
  0x4b   : > { %v663_v57 = vpack.c.bf16 %v370_v50, %v370_v50  ;;  %v664_v58 = vpack.c.bf16 %v371_v51, %v371_v51  ;;  %v665_v59 = vpack.c.bf16 %v372_v52, %v372_v52  ;;  %v373_v60 = vmax.f32 %v341_v53, 0.0 }
  0x4c   : > { %v374_v61 = vmax.f32 %v342_v54, 0.0  ;;  %528 = vst.msk [vmem:[%s785_s6 + $0x60] sm:$0xf] %vm503_vm1, %v660_v55  ;;  %529 = vst.msk [vmem:[%s785_s6 + $0x64] sm:$0xf] %vm503_vm1, %v661_v56 }
  0x4d   : > { %530 = vst.msk [vmem:[%s785_s6 + $0x68] sm:$0xf] %vm503_vm1, %v662_v31  ;;  %531 = vst.msk [vmem:[%s785_s6 + $0x6c] sm:$0xf] %vm503_vm1, %v663_v57  ;;  %v666_v49 = vpack.c.bf16 %v373_v60, %v373_v60 }
  0x4e   : > { %532 = vst.msk [vmem:[%s785_s6 + $0x70] sm:$0xf] %vm503_vm1, %v664_v58  ;;  %533 = vst.msk [vmem:[%s785_s6 + $0x74] sm:$0xf] %vm503_vm1, %v665_v59  ;;  %v667_v62 = vpack.c.bf16 %v374_v61, %v374_v61 }
  0x4f   : > { %534 = vst.msk [vmem:[%s785_s6 + $0x78] sm:$0xf] %vm503_vm1, %v666_v49 }
  0x50   : > { %535 = vst.msk [vmem:[%s785_s6 + $0x7c] sm:$0xf] %vm503_vm1, %v667_v62 }
  0x51 PF: > { %s14_s15 = sadd.s32 1, %s685_s15  }
  0x52   : > { %p11_p4 = scmp.ge.s32.totalorder %s14_s15, 4  }
  0x54   :  { %13 = sbr.rel (!%p11_p4) target bundleno = 1 (0x1), region = 66 }

// kernel: _lambda_.10
= control target key start
LH: loop header
LB: loop body
LE: loop exit
PB: predicated region body
PF: predicated region fallthrough
CT: control target
= control target key end

     0   :  { %s956_s12 = smov 0   ;;  %s1244_s0 = inlined_call_operand.vmem [shape: bf16[2,16,16,8], index: 0, kind: input, shape index: {}]   ;;  %s1245_s1 = inlined_call_operand.vmem [shape: bf16[8,16], index: 1, kind: input, shape index: {}]   ;;  %s1246_s2 = inlined_call_operand.vmem [shape: f32[2,256,16], index: 2, kind: output, shape index: {0}]   ;;  %s1247_s3 = inlined_call_operand.vmem [shape: f32[2,2,16], index: 3, kind: output, shape index: {1}]  }
   0x1 LB: > { %s803_s13 = sadd.s32 4294967295, %s934_s12   ;;  %p807_p0 = scmp.ge.s32.totalorder %s934_s12, 1  ;;  %s934_s12 = sphi %s956_s12, %s14_s12  }
   0x2   : > { %p140_p1 = scmp.lt.s32.totalorder %s934_s12, 3 }
   0x4   : > { %p141_p2 = pnand %p807_p0, %p140_p1 }
   0x5   : > { %v215_v0 = vld [vmem:[%s1245_s1] sm:$0xf] (!%p141_p2)  ;;  %vm345_vm0 = vcmask (!%p141_p2), 1043456   ;;  %p168_p3 = scmp.lt.s32.totalorder (!%p141_p2), %s803_s13, 1  ;;  %vm296_vm1 = vcmask (!%p141_p2), 64512   ;;  %vm510_vm2 = vcmask (!%p141_p2), 130048  }
   0x6   : > { %144 = sbr.rel (%p141_p2) target bundleno = 312 (0x138), region = 28  ;;  %902 = vmatprep.subr.msk.bf16.mxu0 (!%p141_p2), %vm345_vm0, %v215_v0  ;;  %v347_v1 = vsel (!%p141_p2), %vm345_vm0, %v215_v0, 0  ;;  %903 = vmatprep.subr.msk.bf16.mxu1 (!%p141_p2), %vm345_vm0, %v215_v0  ;;  %vm713_vm3 = vcmask (!%p141_p2), 1040384   ;;  %vm715_vm4 = vcmask (!%p141_p2), 123904  }
   0x7   : > { %867 = vmatpush3.bf16.msra.mxu0 (!%p141_p2), %v347_v1  ;;  %901 = vmatpush3.bf16.msra.mxu1 (!%p141_p2), %v347_v1 }
   0xd   : > { %s1249_s13 = smov (!%p168_p3, %s803_s13), 1 }
   0xe   : > { %s847_s16 = sshll.u32 %s1249_s13, 7  ;;  %s848_s20 = sshll.u32 %s1249_s13, 8 }
   0xf   : > { %s973_s19 = scalar_lea.vmem %s1244_s0, %s847_s16  ;;  %s1011_s23 = scalar_lea.vmem %s1246_s2, %s848_s20 }
  0x10   : > { %v912_v2 = vld [vmem:[%s973_s19] sm:$0xff]   ;;  %v913_v3 = vld [vmem:[%s973_s19 + $0x8] sm:$0xff]   ;;  %v914_v4 = vld [vmem:[%s973_s19 + $0x10] sm:$0xff]   ;;  %s812_s24 = sshll.u32 %s1249_s13, 1 }
  0x11   : > { %868 = vmatprep.mubr.msk.bf16.mxu0 %vm296_vm1, %v912_v2  ;;  %v915_v5 = vld [vmem:[%s973_s19 + $0x18] sm:$0xff]   ;;  %v916_v6 = vld [vmem:[%s973_s19 + $0x20] sm:$0xff]   ;;  %v921_v8 = vld [vmem:[%s973_s19 + $0x48] sm:$0xff]   ;;  %s181_s27 = scalar_lea.vmem %s1247_s3, %s812_s24 }
  0x12   : > { %869 = vmatmul.mubr.msk.bf16.vlgmr.msra.gmra.mrb[0].mxu0 %vm296_vm1, %v913_v3  ;;  %v920_v7 = vld [vmem:[%s973_s19 + $0x40] sm:$0xff]   ;;  %v922_v9 = vld [vmem:[%s973_s19 + $0x50] sm:$0xff]   ;;  %v917_v10 = vld [vmem:[%s973_s19 + $0x28] sm:$0xff]  }
  0x13   : > { %872 = vmatprep.mubr.msk.bf16.mxu0 %vm296_vm1, %v914_v4  ;;  %884 = vmatprep.mubr.msk.bf16.mxu1 %vm296_vm1, %v920_v7  ;;  %v923_v11 = vld [vmem:[%s973_s19 + $0x58] sm:$0xff]   ;;  %v918_v12 = vld [vmem:[%s973_s19 + $0x30] sm:$0xff]   ;;  %v924_v13 = vld [vmem:[%s973_s19 + $0x60] sm:$0xff]  }
  0x14   : > { %885 = vmatmul.mubr.msk.bf16.vlgmr.msra.gmra.mrb[0].mxu1 %vm296_vm1, %v921_v8  ;;  %v919_v14 = vld [vmem:[%s973_s19 + $0x38] sm:$0xff]   ;;  %v925_v15 = vld [vmem:[%s973_s19 + $0x68] sm:$0xff]   ;;  %v926_v16 = vld [vmem:[%s973_s19 + $0x70] sm:$0xff]  }
  0x15   : > { %888 = vmatprep.mubr.msk.bf16.mxu1 %vm296_vm1, %v922_v9  ;;  %v927_v17 = vld [vmem:[%s973_s19 + $0x78] sm:$0xff]  }
  0x1a   : > { %873 = vmatmul.mubr.msk.bf16.gmra.mrb[4].mxu0 %vm296_vm1, %v915_v5 }
  0x1b   : > { %876 = vmatprep.mubr.msk.bf16.mxu0 %vm296_vm1, %v916_v6 }
  0x1c   : > { %889 = vmatmul.mubr.msk.bf16.gmra.mrb[4].mxu1 %vm296_vm1, %v923_v11 }
  0x1d   : > { %892 = vmatprep.mubr.msk.bf16.mxu1 %vm296_vm1, %v924_v13 }
  0x22   : > { %877 = vmatmul.mubr.msk.bf16.gmra.mrb[8].mxu0 %vm296_vm1, %v917_v10 }
  0x23   : > { %880 = vmatprep.mubr.msk.bf16.mxu0 %vm296_vm1, %v918_v12 }
  0x24   : > { %893 = vmatmul.mubr.msk.bf16.gmra.mrb[8].mxu1 %vm296_vm1, %v925_v15 }
  0x25   : > { %896 = vmatprep.mubr.msk.bf16.mxu1 %vm296_vm1, %v926_v16 }
  0x2a   : > { %881 = vmatmul.mubr.msk.bf16.gmra.mrb[12].mxu0 %vm296_vm1, %v919_v14 }
  0x2c   : > { %897 = vmatmul.mubr.msk.bf16.gmra.mrb[12].mxu1 %vm296_vm1, %v927_v17 }
  0xe5   : > { %v870_v18 = vpop.f32.mrb[0].mxu0 }
  0xe6   : > { %683 = vst.msk [vmem:[%s1011_s23 + $0x10] sm:$0xff] %vm510_vm2, %v870_v18  ;;  %v383_v19 = vpop.f32.mrb[1].mxu0  ;;  %v582_v23 = vmul.f32 %v870_v18, %v870_v18  ;;  %v514_v28 = vsel %vm510_vm2, %v870_v18, 0.0 }
  0xe7   : > { %v580_v20 = vmul.f32 %v383_v19, %v383_v19  ;;  %681 = vst.msk [vmem:[%s1011_s23] sm:$0xff] %vm510_vm2, %v383_v19  ;;  %v871_v21 = vpop.f32.mrb[2].mxu0  ;;  %v511_v24 = vsel %vm510_vm2, %v383_v19, 0.0  ;;  %v1028_v37 = vpop.f32.mrb[0].mxu1 }
  0xe8   : > { %684 = vst.msk [vmem:[%s1011_s23 + $0x18] sm:$0xff] %vm510_vm2, %v871_v21  ;;  %v386_v22 = vpop.f32.mrb[3].mxu0  ;;  %v583_v30 = vmul.f32 %v871_v21, %v871_v21  ;;  %v615_v34 = vsel %vm510_vm2, %v582_v23, 0.0  ;;  %v516_v35 = vsel %vm510_vm2, %v871_v21, 0.0  ;;  %699 = vst.msk [vmem:[%s1011_s23 + $0x90] sm:$0xff] %vm510_vm2, %v1028_v37  ;;  %v1035_v41 = vpop.f32.mrb[1].mxu1 }
  0xe9   : > { %v512_v25 = vsel %vm510_vm2, %v386_v22, 0.0  ;;  %v581_v26 = vmul.f32 %v386_v22, %v386_v22  ;;  %682 = vst.msk [vmem:[%s1011_s23 + $0x8] sm:$0xff] %vm510_vm2, %v386_v22  ;;  %v612_v29 = vsel %vm510_vm2, %v580_v20, 0.0  ;;  %697 = vst.msk [vmem:[%s1011_s23 + $0x80] sm:$0xff] %vm510_vm2, %v1035_v41  ;;  %v1044_v46 = vpop.f32.mrb[2].mxu1 }
  0xea   : > { %v513_v27 = vadd.f32 %v512_v25, %v511_v24  ;;  %v617_v42 = vsel %vm510_vm2, %v583_v30, 0.0  ;;  %700 = vst.msk [vmem:[%s1011_s23 + $0x98] sm:$0xff] %vm510_vm2, %v1044_v46  ;;  %v1051_v50 = vpop.f32.mrb[3].mxu1 }
  0xeb   : > { %v613_v31 = vsel %vm510_vm2, %v581_v26, 0.0  ;;  %698 = vst.msk [vmem:[%s1011_s23 + $0x88] sm:$0xff] %vm510_vm2, %v1051_v50 }
  0xec   : > { %v515_v32 = vadd.f32 %v514_v28, %v513_v27  ;;  %v614_v33 = vadd.f32 %v613_v31, %v612_v29 }
  0xed   : > { %v874_v36 = vpop.f32.mrb[4].mxu0 }
  0xee   : > { %v616_v38 = vadd.f32 %v615_v34, %v614_v33  ;;  %687 = vst.msk [vmem:[%s1011_s23 + $0x30] sm:$0xff] %vm510_vm2, %v874_v36  ;;  %v399_v39 = vpop.f32.mrb[5].mxu0  ;;  %v517_v40 = vadd.f32 %v516_v35, %v515_v32  ;;  %v586_v51 = vmul.f32 %v874_v36, %v874_v36  ;;  %v522_v57 = vsel %vm510_vm2, %v874_v36, 0.0 }
  0xef   : > { %v518_v43 = vsel %vm510_vm2, %v399_v39, 0.0  ;;  %v584_v44 = vmul.f32 %v399_v39, %v399_v39  ;;  %685 = vst.msk [vmem:[%s1011_s23 + $0x20] sm:$0xff] %vm510_vm2, %v399_v39  ;;  %v875_v45 = vpop.f32.mrb[6].mxu0  ;;  %v1064_v1 = vpop.f32.mrb[4].mxu1 }
  0xf0   : > { %v519_v47 = vadd.f32 %v518_v43, %v517_v40  ;;  %v618_v48 = vadd.f32 %v617_v42, %v616_v38  ;;  %688 = vst.msk [vmem:[%s1011_s23 + $0x38] sm:$0xff] %vm510_vm2, %v875_v45  ;;  %v402_v49 = vpop.f32.mrb[7].mxu0  ;;  %v587_v58 = vmul.f32 %v875_v45, %v875_v45  ;;  %v623_v62 = vsel %vm510_vm2, %v586_v51, 0.0  ;;  %703 = vst.msk [vmem:[%s1011_s23 + $0xb0] sm:$0xff] %vm510_vm2, %v1064_v1  ;;  %v1071_v5 = vpop.f32.mrb[5].mxu1 }
  0xf1   : > { %v619_v52 = vsel %vm510_vm2, %v584_v44, 0.0  ;;  %v520_v53 = vsel %vm510_vm2, %v402_v49, 0.0  ;;  %v585_v54 = vmul.f32 %v402_v49, %v402_v49  ;;  %686 = vst.msk [vmem:[%s1011_s23 + $0x28] sm:$0xff] %vm510_vm2, %v402_v49  ;;  %v524_v63 = vsel %vm510_vm2, %v875_v45, 0.0  ;;  %701 = vst.msk [vmem:[%s1011_s23 + $0xa0] sm:$0xff] %vm510_vm2, %v1071_v5  ;;  %v1080_v10 = vpop.f32.mrb[6].mxu1 }
  0xf2   : > { %v620_v55 = vadd.f32 %v619_v52, %v618_v48  ;;  %v521_v56 = vadd.f32 %v520_v53, %v519_v47  ;;  %v625_v6 = vsel %vm510_vm2, %v587_v58, 0.0  ;;  %704 = vst.msk [vmem:[%s1011_s23 + $0xb8] sm:$0xff] %vm510_vm2, %v1080_v10  ;;  %v1087_v14 = vpop.f32.mrb[7].mxu1 }
  0xf3   : > { %v621_v59 = vsel %vm510_vm2, %v585_v54, 0.0  ;;  %702 = vst.msk [vmem:[%s1011_s23 + $0xa8] sm:$0xff] %vm510_vm2, %v1087_v14 }
  0xf4   : > { %v523_v60 = vadd.f32 %v522_v57, %v521_v56  ;;  %v622_v61 = vadd.f32 %v621_v59, %v620_v55  ;;  %v596_v56 = vmul.f32 %v1035_v41, %v1035_v41 }
  0xf5   : > { %v878_v0 = vpop.f32.mrb[8].mxu0 }
  0xf6   : > { %v624_v2 = vadd.f32 %v623_v62, %v622_v61  ;;  %691 = vst.msk [vmem:[%s1011_s23 + $0x50] sm:$0xff] %vm510_vm2, %v878_v0  ;;  %v415_v3 = vpop.f32.mrb[9].mxu0  ;;  %v525_v4 = vadd.f32 %v524_v63, %v523_v60  ;;  %v590_v15 = vmul.f32 %v878_v0, %v878_v0  ;;  %v530_v21 = vsel %vm510_vm2, %v878_v0, 0.0 }
  0xf7   : > { %v526_v7 = vsel %vm510_vm2, %v415_v3, 0.0  ;;  %v588_v8 = vmul.f32 %v415_v3, %v415_v3  ;;  %689 = vst.msk [vmem:[%s1011_s23 + $0x40] sm:$0xff] %vm510_vm2, %v415_v3  ;;  %v879_v9 = vpop.f32.mrb[10].mxu0  ;;  %v1100_v29 = vpop.f32.mrb[8].mxu1  ;;  %v542_v61 = vsel %vm510_vm2, %v1035_v41, 0.0 }
  0xf8   : > { %v527_v11 = vadd.f32 %v526_v7, %v525_v4  ;;  %v626_v12 = vadd.f32 %v625_v6, %v624_v2  ;;  %692 = vst.msk [vmem:[%s1011_s23 + $0x58] sm:$0xff] %vm510_vm2, %v879_v9  ;;  %v418_v13 = vpop.f32.mrb[11].mxu0  ;;  %v591_v22 = vmul.f32 %v879_v9, %v879_v9  ;;  %v631_v26 = vsel %vm510_vm2, %v590_v15, 0.0  ;;  %707 = vst.msk [vmem:[%s1011_s23 + $0xd0] sm:$0xff] %vm510_vm2, %v1100_v29  ;;  %v1107_v33 = vpop.f32.mrb[9].mxu1 }
  0xf9   : > { %v627_v16 = vsel %vm510_vm2, %v588_v8, 0.0  ;;  %v528_v17 = vsel %vm510_vm2, %v418_v13, 0.0  ;;  %v589_v18 = vmul.f32 %v418_v13, %v418_v13  ;;  %690 = vst.msk [vmem:[%s1011_s23 + $0x48] sm:$0xff] %vm510_vm2, %v418_v13  ;;  %v532_v27 = vsel %vm510_vm2, %v879_v9, 0.0  ;;  %705 = vst.msk [vmem:[%s1011_s23 + $0xc0] sm:$0xff] %vm510_vm2, %v1107_v33  ;;  %v1116_v39 = vpop.f32.mrb[10].mxu1 }
  0xfa   : > { %v628_v19 = vadd.f32 %v627_v16, %v626_v12  ;;  %v529_v20 = vadd.f32 %v528_v17, %v527_v11  ;;  %v633_v34 = vsel %vm510_vm2, %v591_v22, 0.0  ;;  %708 = vst.msk [vmem:[%s1011_s23 + $0xd8] sm:$0xff] %vm510_vm2, %v1116_v39  ;;  %v1123_v44 = vpop.f32.mrb[11].mxu1  ;;  %v643_v4 = vsel %vm510_vm2, %v596_v56, 0.0 }
  0xfb   : > { %v629_v23 = vsel %vm510_vm2, %v589_v18, 0.0  ;;  %706 = vst.msk [vmem:[%s1011_s23 + $0xc8] sm:$0xff] %vm510_vm2, %v1123_v44  ;;  %v597_v6 = vmul.f32 %v1051_v50, %v1051_v50  ;;  %v598_v12 = vmul.f32 %v1028_v37, %v1028_v37  ;;  %v544_v13 = vsel %vm510_vm2, %v1051_v50, 0.0 }
  0xfc   : > { %v531_v24 = vadd.f32 %v530_v21, %v529_v20  ;;  %v630_v25 = vadd.f32 %v629_v23, %v628_v19  ;;  %v546_v16 = vsel %vm510_vm2, %v1028_v37, 0.0  ;;  %v599_v19 = vmul.f32 %v1044_v46, %v1044_v46 }
  0xfd   : > { %v882_v28 = vpop.f32.mrb[12].mxu0  ;;  %v645_v20 = vsel %vm510_vm2, %v597_v6, 0.0  ;;  %v600_v21 = vmul.f32 %v1071_v5, %v1071_v5  ;;  %v548_v37 = vsel %vm510_vm2, %v1044_v46, 0.0  ;;  %v552_v46 = vsel %vm510_vm2, %v1087_v14, 0.0 }
  0xfe   : > { %v632_v30 = vadd.f32 %v631_v26, %v630_v25  ;;  %695 = vst.msk [vmem:[%s1011_s23 + $0x70] sm:$0xff] %vm510_vm2, %v882_v28  ;;  %v431_v31 = vpop.f32.mrb[13].mxu0  ;;  %v533_v32 = vadd.f32 %v532_v27, %v531_v24  ;;  %v594_v45 = vmul.f32 %v882_v28, %v882_v28  ;;  %v538_v53 = vsel %vm510_vm2, %v882_v28, 0.0 }
  0xff   : > { %v534_v35 = vsel %vm510_vm2, %v431_v31, 0.0  ;;  %v592_v36 = vmul.f32 %v431_v31, %v431_v31  ;;  %693 = vst.msk [vmem:[%s1011_s23 + $0x60] sm:$0xff] %vm510_vm2, %v431_v31  ;;  %v883_v38 = vpop.f32.mrb[14].mxu0  ;;  %v1140_v62 = vpop.f32.mrb[12].mxu1  ;;  %v647_v24 = vsel %vm510_vm2, %v598_v12, 0.0  ;;  %v550_v25 = vsel %vm510_vm2, %v1071_v5, 0.0 }
 0x100   : > { %v535_v40 = vadd.f32 %v534_v35, %v533_v32  ;;  %v634_v42 = vadd.f32 %v633_v34, %v632_v30  ;;  %696 = vst.msk [vmem:[%s1011_s23 + $0x78] sm:$0xff] %vm510_vm2, %v883_v38  ;;  %v434_v43 = vpop.f32.mrb[15].mxu0  ;;  %v595_v54 = vmul.f32 %v883_v38, %v883_v38  ;;  %v639_v59 = vsel %vm510_vm2, %v594_v45, 0.0  ;;  %711 = vst.msk [vmem:[%s1011_s23 + $0xf0] sm:$0xff] %vm510_vm2, %v1140_v62  ;;  %v1145_v2 = vpop.f32.mrb[13].mxu1 }
 0x101   : > { %v635_v47 = vsel %vm510_vm2, %v592_v36, 0.0  ;;  %v536_v48 = vsel %vm510_vm2, %v434_v43, 0.0  ;;  %v593_v49 = vmul.f32 %v434_v43, %v434_v43  ;;  %694 = vst.msk [vmem:[%s1011_s23 + $0x68] sm:$0xff] %vm510_vm2, %v434_v43  ;;  %v540_v60 = vsel %vm510_vm2, %v883_v38, 0.0  ;;  %709 = vst.msk [vmem:[%s1011_s23 + $0xe0] sm:$0xff] %vm510_vm2, %v1145_v2  ;;  %v899_v41 = vpop.f32.mrb[14].mxu1 }
 0x102   : > { %v636_v51 = vadd.f32 %v635_v47, %v634_v42  ;;  %v537_v52 = vadd.f32 %v536_v48, %v535_v40  ;;  %v641_v3 = vsel %vm510_vm2, %v595_v54, 0.0  ;;  %v1155_v9 = vsel %vm510_vm2, %v899_v41, 0.0  ;;  %712 = vst.msk [vmem:[%s1011_s23 + $0xf8] sm:$0xff] %vm510_vm2, %v899_v41  ;;  %v1159_v11 = vpop.f32.mrb[15].mxu1 }
 0x103   : > { %v637_v55 = vsel %vm510_vm2, %v593_v49, 0.0  ;;  %v611_v15 = vmul.f32 %v899_v41, %v899_v41  ;;  %710 = vst.msk [vmem:[%s1011_s23 + $0xe8] sm:$0xff] %vm510_vm2, %v1159_v11  ;;  %v649_v28 = vsel %vm510_vm2, %v599_v19, 0.0  ;;  %v651_v30 = vsel %vm510_vm2, %v600_v21, 0.0 }
 0x104   : > { %v539_v57 = vadd.f32 %v538_v53, %v537_v52  ;;  %v638_v58 = vadd.f32 %v637_v55, %v636_v51  ;;  %v601_v31 = vmul.f32 %v1087_v14, %v1087_v14  ;;  %v602_v35 = vmul.f32 %v1064_v1, %v1064_v1 }
 0x105   : > { %v1176_v22 = vsel %vm510_vm2, %v611_v15, 0.0  ;;  %v554_v5 = vsel %vm510_vm2, %v1064_v1, 0.0  ;;  %v603_v40 = vmul.f32 %v1080_v10, %v1080_v10  ;;  %v604_v43 = vmul.f32 %v1107_v33, %v1107_v33 }
 0x106   : > { %v640_v63 = vadd.f32 %v639_v59, %v638_v58  ;;  %v541_v0 = vadd.f32 %v540_v60, %v539_v57  ;;  %v653_v42 = vsel %vm510_vm2, %v601_v31, 0.0  ;;  %v655_v48 = vsel %vm510_vm2, %v602_v35, 0.0 }
 0x107   : > { %v556_v14 = vsel %vm510_vm2, %v1080_v10, 0.0  ;;  %v558_v49 = vsel %vm510_vm2, %v1107_v33, 0.0  ;;  %v657_v52 = vsel %vm510_vm2, %v603_v40, 0.0  ;;  %v659_v53 = vsel %vm510_vm2, %v604_v43, 0.0 }
 0x108   : > { %v543_v7 = vadd.f32 %v542_v61, %v541_v0  ;;  %v642_v8 = vadd.f32 %v641_v3, %v640_v63  ;;  %v605_v54 = vmul.f32 %v1123_v44, %v1123_v44  ;;  %v606_v57 = vmul.f32 %v1100_v29, %v1100_v29 }
 0x109   : > { %v560_v10 = vsel %vm510_vm2, %v1123_v44, 0.0  ;;  %v562_v33 = vsel %vm510_vm2, %v1100_v29, 0.0  ;;  %v607_v60 = vmul.f32 %v1116_v39, %v1116_v39  ;;  %v608_v63 = vmul.f32 %v1145_v2, %v1145_v2 }
 0x10a   : > { %v644_v17 = vadd.f32 %v643_v4, %v642_v8  ;;  %v545_v18 = vadd.f32 %v544_v13, %v543_v7  ;;  %v661_v61 = vsel %vm510_vm2, %v605_v54, 0.0  ;;  %v663_v4 = vsel %vm510_vm2, %v606_v57, 0.0 }
 0x10b   : > { %v564_v44 = vsel %vm510_vm2, %v1116_v39, 0.0  ;;  %v566_v6 = vsel %vm510_vm2, %v1145_v2, 0.0  ;;  %v665_v7 = vsel %vm510_vm2, %v607_v60, 0.0  ;;  %v667_v8 = vsel %vm510_vm2, %v608_v63, 0.0 }
 0x10c   : > { %v547_v50 = vadd.f32 %v546_v16, %v545_v18  ;;  %v646_v23 = vadd.f32 %v645_v20, %v644_v17  ;;  %v609_v12 = vmul.f32 %v1159_v11, %v1159_v11  ;;  %v610_v16 = vmul.f32 %v1140_v62, %v1140_v62 }
 0x10d   : > { %v568_v39 = vsel %vm510_vm2, %v1159_v11, 0.0  ;;  %v570_v2 = vsel %vm510_vm2, %v1140_v62, 0.0 }
 0x10e   : > { %v648_v26 = vadd.f32 %v647_v24, %v646_v23  ;;  %v549_v27 = vadd.f32 %v548_v37, %v547_v50  ;;  %v669_v19 = vsel %vm510_vm2, %v609_v12, 0.0  ;;  %v671_v50 = vsel %vm510_vm2, %v610_v16, 0.0 }
 0x110   : > { %v551_v32 = vadd.f32 %v550_v25, %v549_v27  ;;  %v650_v34 = vadd.f32 %v649_v28, %v648_v26 }
 0x112   : > { %v652_v36 = vadd.f32 %v651_v30, %v650_v34  ;;  %v553_v38 = vadd.f32 %v552_v46, %v551_v32 }
 0x114   : > { %v555_v45 = vadd.f32 %v554_v5, %v553_v38  ;;  %v654_v47 = vadd.f32 %v653_v42, %v652_v36 }
 0x116   : > { %v656_v51 = vadd.f32 %v655_v48, %v654_v47  ;;  %v557_v1 = vadd.f32 %v556_v14, %v555_v45 }
 0x118   : > { %v559_v55 = vadd.f32 %v558_v49, %v557_v1  ;;  %v658_v56 = vadd.f32 %v657_v52, %v656_v51 }
 0x11a   : > { %v660_v58 = vadd.f32 %v659_v53, %v658_v56  ;;  %v561_v59 = vadd.f32 %v560_v10, %v559_v55 }
 0x11c   : > { %v563_v0 = vadd.f32 %v562_v33, %v561_v59  ;;  %v662_v3 = vadd.f32 %v661_v61, %v660_v58 }
 0x11e   : > { %v664_v41 = vadd.f32 %v663_v4, %v662_v3  ;;  %v565_v29 = vadd.f32 %v564_v44, %v563_v0 }
 0x120   : > { %v567_v13 = vadd.f32 %v566_v6, %v565_v29  ;;  %v666_v15 = vadd.f32 %v665_v7, %v664_v41 }
 0x122   : > { %v668_v17 = vadd.f32 %v667_v8, %v666_v15  ;;  %v569_v18 = vadd.f32 %v568_v39, %v567_v13 }
 0x124   : > { %v571_v20 = vadd.f32 %v570_v2, %v569_v18  ;;  %v670_v21 = vadd.f32 %v669_v19, %v668_v17 }
 0x126   : > { %v573_v23 = vadd.f32 %v1155_v9, %v571_v20  ;;  %v672_v24 = vadd.f32 %v671_v50, %v670_v21 }
 0x128   : > { %v574_v37 = vrot.slane %v573_v23, 4  ;;  %v674_v25 = vadd.f32 %v1176_v22, %v672_v24 }
 0x12a   : > { %v575_v26 = vadd.f32 %v574_v37, %v573_v23  ;;  %v675_v11 = vrot.slane %v674_v25, 4 }
 0x12c   : > { %v576_v27 = vrot.slane %v575_v26, 2  ;;  %v676_v28 = vadd.f32 %v675_v11, %v674_v25 }
 0x12e   : > { %v577_v30 = vadd.f32 %v576_v27, %v575_v26  ;;  %v677_v31 = vrot.slane %v676_v28, 2 }
 0x130   : > { %v578_v62 = vrot.slane %v577_v30, 1  ;;  %v678_v32 = vadd.f32 %v677_v31, %v676_v28 }
 0x132   : > { %v679_v34 = vrot.slane %v678_v32, 1  ;;  %v579_v9 = vadd.f32 %v578_v62, %v577_v30 }
 0x134   : > { %v680_v35 = vadd.f32 %v679_v34, %v678_v32 }
 0x136   : > { %v714_v46 = vsel %vm713_vm3, %v579_v9, %v680_v35 }
 0x137   : > { %716 = vst.msk [vmem:[%s181_s27] sm:$0x3] %vm715_vm4, %v714_v46 }
 0x138 PF: > { %s14_s12 = sadd.s32 1, %s934_s12  }
 0x139   : > { %p11_p4 = scmp.ge.s32.totalorder %s14_s12, 4  }
 0x13b   :  { %13 = sbr.rel (!%p11_p4) target bundleno = 1 (0x1), region = 70 }

// kernel: _lambda_.11
= control target key start
LH: loop header
LB: loop body
LE: loop exit
PB: predicated region body
PF: predicated region fallthrough
CT: control target
= control target key end

     0   :  { %s771_s15 = smov 0   ;;  %s1197_s0 = inlined_call_operand.vmem [shape: f32[2,256,16], index: 0, kind: input, shape index: {}]   ;;  %s1198_s1 = inlined_call_operand.vmem [shape: f32[2,2,16], index: 1, kind: input, shape index: {}]   ;;  %s1199_s2 = inlined_call_operand.vmem [shape: f32[1,4], index: 2, kind: input, shape index: {}]   ;;  %s1200_s3 = inlined_call_operand.vmem [shape: f32[1,4], index: 3, kind: input, shape index: {}]   ;;  %s1201_s4 = inlined_call_operand.vmem [shape: f32[2,16,2,16,8], index: 4, kind: output, shape index: {}]  }
   0x1 LB: > { %s669_s16 = sadd.s32 4294967295, %s737_s15   ;;  %p673_p0 = scmp.ge.s32.totalorder %s737_s15, 1  ;;  %s737_s15 = sphi %s771_s15, %s14_s15  }
   0x2   : > { %p162_p1 = scmp.lt.s32.totalorder %s737_s15, 3 }
   0x4   : > { %p163_p2 = pnand %p673_p0, %p162_p1 }
   0x5   : > { %v198_v0 = vld [vmem:[%s1198_s1] sm:$0x3] (!%p163_p2)  ;;  %v199_v1 = vld [vmem:[%s1198_s1 + $0x2] sm:$0x3] (!%p163_p2)  ;;  %vm200_vm0 = vcmask (!%p163_p2), 123904   ;;  %s739_s21 = smov (!%p163_p2), 124   ;;  %v231_v19 = vlaneseq (!%p163_p2) }
   0x6   : > { %166 = sbr.rel (%p163_p2) target bundleno = 473 (0x1d9), region = 36  ;;  %v201_v2 = vsel (!%p163_p2), %vm200_vm0, %v198_v0, 0.0  ;;  %v202_v3 = vsel (!%p163_p2), %vm200_vm0, %v199_v1, 0.0  ;;  %s740_s22 = smov (!%p163_p2), 116   ;;  %v742_v17 = vmov (!%p163_p2), 1966171168  }
   0x7   : > { %v203_v4 = vadd.f32 (!%p163_p2), %v202_v3, %v201_v2  ;;  %s741_s23 = smov (!%p163_p2), 120   ;;  %v229_v18 = vunpack.c.l.s4 (!%p163_p2), %v742_v17  ;;  %v232_v21 = vshrl.u32 (!%p163_p2), %v231_v19, 7  ;;  %v226_v26 = vld [vmem:[%s1199_s2] sm:$0x1] (!%p163_p2)  ;;  %s743_s28 = smov (!%p163_p2), 8   ;;  %vm262_vm1 = vcmask (!%p163_p2), 31744  }
   0x8   : > { %v245_v30 = vld [vmem:[%s1200_s3] sm:$0x1] (!%p163_p2)  ;;  %s744_s29 = smov (!%p163_p2), 4   ;;  %s745_s30 = smov (!%p163_p2), 12   ;;  %vm264_vm2 = vcmask (!%p163_p2), 64512   ;;  %vm266_vm3 = vcmask (!%p163_p2), 97280  }
   0x9   : > { %205 = vrot.lane.b32.xlu0 (!%p163_p2), %v203_v4, %s739_s21  ;;  %213 = vrot.lane.b32.xlu1 (!%p163_p2), %v203_v4, %s740_s22  ;;  %v230_v20 = vunpack.c.0.s8 (!%p163_p2), %v229_v18  ;;  %v789_v28 = vsub.s32 (!%p163_p2), 0, %v232_v21  ;;  %p188_p3 = scmp.lt.s32.totalorder (!%p163_p2), %s669_s16, 1 }
   0xb   : > { %v233_v22 = vsub.s32 (!%p163_p2), %v230_v20, %v232_v21 }
   0xd   : > { %209 = vrot.lane.b32.xlu0 %v203_v4, %s741_s23  ;;  %s1203_s16 = smov (!%p188_p3, %s669_s16), 1 }
   0xe   : > { %s712_s5 = sshll.u32 %s1203_s16, 8  ;;  %s713_s9 = sshll.u32 %s1203_s16, 9 }
   0xf   : > { %s807_s8 = scalar_lea.vmem %s1197_s0, %s712_s5  ;;  %s862_s12 = scalar_lea.vmem %s1201_s4, %s713_s9 }
  0x10   : > { %v286_v41 = vld [vmem:[%s807_s8 + $0x8] sm:$0xff]  ;;  %v285_v42 = vld [vmem:[%s807_s8] sm:$0xff]  ;;  %v288_v44 = vld [vmem:[%s807_s8 + $0x18] sm:$0xff] }
  0x11   : > { %v287_v45 = vld [vmem:[%s807_s8 + $0x10] sm:$0xff]  ;;  %v290_v46 = vld [vmem:[%s807_s8 + $0x28] sm:$0xff]  ;;  %v289_v48 = vld [vmem:[%s807_s8 + $0x20] sm:$0xff] }
  0x12   : > { %v292_v49 = vld [vmem:[%s807_s8 + $0x38] sm:$0xff]  ;;  %v291_v50 = vld [vmem:[%s807_s8 + $0x30] sm:$0xff]  ;;  %v294_v52 = vld [vmem:[%s807_s8 + $0x48] sm:$0xff] }
  0x13   : > { %v293_v53 = vld [vmem:[%s807_s8 + $0x40] sm:$0xff]  ;;  %v296_v54 = vld [vmem:[%s807_s8 + $0x58] sm:$0xff]  ;;  %v295_v61 = vld [vmem:[%s807_s8 + $0x50] sm:$0xff] }
  0x14   : > { %v298_v62 = vld [vmem:[%s807_s8 + $0x68] sm:$0xff]  ;;  %v297_v63 = vld [vmem:[%s807_s8 + $0x60] sm:$0xff] }
  0x7b   : > { %v206_v5 = vpop.permute.xlu0 %205  ;;  %v214_v8 = vpop.permute.xlu1 %213 }
  0x7c   : > { %v208_v6 = vadd.f32 %v206_v5, %v203_v4  ;;  %v300_v4 = vld [vmem:[%s807_s8 + $0x78] sm:$0xff]  ;;  %v299_v5 = vld [vmem:[%s807_s8 + $0x70] sm:$0xff] }
  0x7f   : > { %v210_v7 = vpop.permute.xlu0 %209 }
  0x80   : > { %v212_v9 = vadd.f32 %v210_v7, %v208_v6  ;;  %v302_v6 = vld [vmem:[%s807_s8 + $0x88] sm:$0xff] }
  0x82   : > { %v216_v10 = vadd.f32 %v214_v8, %v212_v9 }
  0x84   : > { %v217_v11 = vmul.f32 0.00048828125, %v216_v10 }
  0x86   : > { %v218_v12 = vmul.f32 %v217_v11, %v217_v11 }
  0x88   : > { %v220_v13 = vrot.slane %v218_v12, 7 }
  0x8a   : > { %v222_v14 = vsub.f32 %v217_v11, %v220_v13 }
  0x8c   : > { %v223_v15 = vmax.f32 %v222_v14, 0.0 }
  0x8e   : > { %v224_v16 = vadd.f32 1e-05, %v223_v15 }
  0x90   : > { %729 = vrsqrt.f32 %v224_v16 }
  0x9a   : > { %v730_v23 = vpop.eup %729 }
  0x9b   : > { %v234_v24 = vrot.slane %v730_v23, %v233_v22 }
  0x9d   : > { %v235_v25 = vcombine.high %v234_v24, %v234_v24 }
  0x9f   : > { %v242_v27 = vrot.slane %v235_v25, %v233_v22 }
  0xa1   : > { %v244_v29 = vmul.f32 %v242_v27, %v226_v26 }
  0xa3   : > { %v246_v31 = vmul.f32 %v244_v29, %v217_v11  ;;  %v252_v32 = vrot.slane %v244_v29, %v789_v28 }
  0xa5   : > { %256 = vrot.lane.b32.xlu0 %v252_v32, %s743_s28  ;;  %253 = vrot.lane.b32.xlu1 %v252_v32, %s744_s29  ;;  %v247_v33 = vsub.f32 %v245_v30, %v246_v31 }
  0xa7   : > { %v272_v34 = vrot.slane %v247_v33, %v789_v28 }
  0xa9   : > { %259 = vrot.lane.b32.xlu1 %v252_v32, %s745_s30  ;;  %273 = vrot.lane.b32.xlu0 %v272_v34, %s744_s29 }
  0xad   : > { %276 = vrot.lane.b32.xlu1 %v272_v34, %s743_s28  ;;  %279 = vrot.lane.b32.xlu0 %v272_v34, %s745_s30 }
 0x117   : > { %v257_v35 = vpop.permute.xlu0 %256  ;;  %v254_v36 = vpop.permute.xlu1 %253 }
 0x118   : > { %v263_v37 = vsel %vm262_vm1, %v244_v29, %v254_v36 }
 0x119   : > { %v265_v38 = vsel %vm264_vm2, %v263_v37, %v257_v35 }
 0x11b   : > { %v260_v39 = vpop.permute.xlu1 %259  ;;  %v274_v40 = vpop.permute.xlu0 %273 }
 0x11c   : > { %v267_v43 = vsel %vm266_vm3, %v265_v38, %v260_v39  ;;  %v282_v51 = vsel %vm262_vm1, %v247_v33, %v274_v40 }
 0x11d   : > { %v817_v47 = vrot.slane %v267_v43, %v789_v28  ;;  %v304_v43 = vld [vmem:[%s807_s8 + $0x98] sm:$0xff] }
 0x11f   : > { %v277_v55 = vpop.permute.xlu1 %276  ;;  %v280_v56 = vpop.permute.xlu0 %279  ;;  %v322_v57 = vmul.f32 %v817_v47, %v286_v41  ;;  %v321_v58 = vmul.f32 %v817_v47, %v285_v42  ;;  %v324_v59 = vmul.f32 %v817_v47, %v288_v44  ;;  %v323_v60 = vmul.f32 %v817_v47, %v287_v45  ;;  %v301_v42 = vld [vmem:[%s807_s8 + $0x80] sm:$0xff]  ;;  %v303_v44 = vld [vmem:[%s807_s8 + $0x90] sm:$0xff] }
 0x120   : > { %v283_v0 = vsel %vm264_vm2, %v282_v51, %v277_v55  ;;  %v326_v1 = vmul.f32 %v817_v47, %v290_v46  ;;  %v325_v2 = vmul.f32 %v817_v47, %v289_v48  ;;  %v328_v3 = vmul.f32 %v817_v47, %v292_v49  ;;  %v305_v51 = vld [vmem:[%s807_s8 + $0xa0] sm:$0xff] }
 0x121   : > { %v284_v7 = vsel %vm266_vm3, %v283_v0, %v280_v56  ;;  %v327_v8 = vmul.f32 %v817_v47, %v291_v50  ;;  %v330_v9 = vmul.f32 %v817_v47, %v294_v52  ;;  %v329_v10 = vmul.f32 %v817_v47, %v293_v53  ;;  %v306_v50 = vld [vmem:[%s807_s8 + $0xa8] sm:$0xff]  ;;  %v308_v52 = vld [vmem:[%s807_s8 + $0xb8] sm:$0xff] }
 0x122   : > { %v845_v11 = vrot.slane %v284_v7, %v789_v28  ;;  %v332_v12 = vmul.f32 %v817_v47, %v296_v54  ;;  %v331_v13 = vmul.f32 %v817_v47, %v295_v61  ;;  %v334_v14 = vmul.f32 %v817_v47, %v298_v62  ;;  %v309_v7 = vld [vmem:[%s807_s8 + $0xc0] sm:$0xff] }
 0x123   : > { %v333_v15 = vmul.f32 %v817_v47, %v297_v63  ;;  %v336_v16 = vmul.f32 %v817_v47, %v300_v4  ;;  %v335_v17 = vmul.f32 %v817_v47, %v299_v5  ;;  %v338_v18 = vmul.f32 %v817_v47, %v302_v6 }
 0x124   : > { %v358_v19 = vadd.f32 %v845_v11, %v322_v57  ;;  %v357_v20 = vadd.f32 %v845_v11, %v321_v58  ;;  %v360_v21 = vadd.f32 %v845_v11, %v324_v59  ;;  %v359_v22 = vadd.f32 %v845_v11, %v323_v60  ;;  %v307_v57 = vld [vmem:[%s807_s8 + $0xb0] sm:$0xff] }
 0x125   : > { %v865_v23 = vadd.f32 %v845_v11, %v326_v1  ;;  %v868_v24 = vadd.f32 %v845_v11, %v325_v2  ;;  %v871_v25 = vadd.f32 %v845_v11, %v328_v3  ;;  %v874_v26 = vadd.f32 %v845_v11, %v327_v8  ;;  %v310_v2 = vld [vmem:[%s807_s8 + $0xc8] sm:$0xff] }
 0x126   : > { %v390_v27 = vmax.f32 %v358_v19, 0.0  ;;  %v389_v28 = vmax.f32 %v357_v20, 0.0  ;;  %v392_v29 = vmax.f32 %v360_v21, 0.0  ;;  %v391_v30 = vmax.f32 %v359_v22, 0.0  ;;  %v313_v20 = vld [vmem:[%s807_s8 + $0xe0] sm:$0xff]  ;;  %v316_v21 = vld [vmem:[%s807_s8 + $0xf8] sm:$0xff] }
 0x127   : > { %v394_v31 = vmax.f32 %v865_v23, 0.0  ;;  %v393_v32 = vmax.f32 %v868_v24, 0.0  ;;  %v396_v33 = vmax.f32 %v871_v25, 0.0  ;;  %v395_v34 = vmax.f32 %v874_v26, 0.0 }
 0x128   : > { %487 = vrot.lane.b32.xlu0 %v390_v27, %s741_s23  ;;  %422 = vst.msk [vmem:[%s862_s12 + $0x8] sm:$0xff] %vm264_vm2, %v390_v27  ;;  %485 = vrot.lane.b32.xlu1 %v389_v28, %s741_s23  ;;  %421 = vst.msk [vmem:[%s862_s12] sm:$0xff] %vm264_vm2, %v389_v28  ;;  %v891_v35 = vadd.f32 %v845_v11, %v330_v9  ;;  %v894_v36 = vadd.f32 %v845_v11, %v329_v10 }
 0x129   : > { %424 = vst.msk [vmem:[%s862_s12 + $0x28] sm:$0xff] %vm264_vm2, %v392_v29  ;;  %423 = vst.msk [vmem:[%s862_s12 + $0x20] sm:$0xff] %vm264_vm2, %v391_v30  ;;  %v897_v37 = vadd.f32 %v845_v11, %v332_v12  ;;  %v916_v38 = vadd.f32 %v845_v11, %v331_v13  ;;  %v919_v39 = vadd.f32 %v845_v11, %v334_v14  ;;  %v312_v13 = vld [vmem:[%s807_s8 + $0xd8] sm:$0xff]  ;;  %v311_v14 = vld [vmem:[%s807_s8 + $0xd0] sm:$0xff] }
 0x12a   : > { %426 = vst.msk [vmem:[%s862_s12 + $0x48] sm:$0xff] %vm264_vm2, %v394_v31  ;;  %425 = vst.msk [vmem:[%s862_s12 + $0x40] sm:$0xff] %vm264_vm2, %v393_v32  ;;  %v922_v40 = vadd.f32 %v845_v11, %v333_v15  ;;  %v925_v41 = vadd.f32 %v845_v11, %v336_v16  ;;  %v398_v45 = vmax.f32 %v891_v35, 0.0  ;;  %v397_v46 = vmax.f32 %v894_v36, 0.0  ;;  %v314_v15 = vld [vmem:[%s807_s8 + $0xe8] sm:$0xff]  ;;  %v315_v28 = vld [vmem:[%s807_s8 + $0xf0] sm:$0xff] }
 0x12b   : > { %428 = vst.msk [vmem:[%s862_s12 + $0x68] sm:$0xff] %vm264_vm2, %v396_v33  ;;  %427 = vst.msk [vmem:[%s862_s12 + $0x60] sm:$0xff] %vm264_vm2, %v395_v34  ;;  %v400_v48 = vmax.f32 %v897_v37, 0.0  ;;  %v934_v49 = vadd.f32 %v845_v11, %v335_v17  ;;  %v399_v53 = vmax.f32 %v916_v38, 0.0  ;;  %v402_v54 = vmax.f32 %v919_v39, 0.0 }
 0x12c   : > { %v401_v55 = vmax.f32 %v922_v40, 0.0  ;;  %v404_v56 = vmax.f32 %v925_v41, 0.0  ;;  %491 = vrot.lane.b32.xlu0 %v392_v29, %s741_s23  ;;  %489 = vrot.lane.b32.xlu1 %v391_v30, %s741_s23  ;;  %430 = vst.msk [vmem:[%s862_s12 + $0x88] sm:$0xff] %vm264_vm2, %v398_v45  ;;  %429 = vst.msk [vmem:[%s862_s12 + $0x80] sm:$0xff] %vm264_vm2, %v397_v46  ;;  %v960_v59 = vadd.f32 %v845_v11, %v338_v18 }
 0x12d   : > { %432 = vst.msk [vmem:[%s862_s12 + $0xa8] sm:$0xff] %vm264_vm2, %v400_v48  ;;  %v403_v58 = vmax.f32 %v934_v49, 0.0  ;;  %v337_v60 = vmul.f32 %v817_v47, %v301_v42  ;;  %v340_v61 = vmul.f32 %v817_v47, %v304_v43  ;;  %431 = vst.msk [vmem:[%s862_s12 + $0xa0] sm:$0xff] %vm264_vm2, %v399_v53  ;;  %v339_v62 = vmul.f32 %v817_v47, %v303_v44 }
 0x12e   : > { %434 = vst.msk [vmem:[%s862_s12 + $0xc8] sm:$0xff] %vm264_vm2, %v402_v54  ;;  %433 = vst.msk [vmem:[%s862_s12 + $0xc0] sm:$0xff] %vm264_vm2, %v401_v55  ;;  %v342_v63 = vmul.f32 %v817_v47, %v306_v50  ;;  %v341_v0 = vmul.f32 %v817_v47, %v305_v51  ;;  %v344_v1 = vmul.f32 %v817_v47, %v308_v52  ;;  %v406_v3 = vmax.f32 %v960_v59, 0.0 }
 0x12f   : > { %436 = vst.msk [vmem:[%s862_s12 + $0xe8] sm:$0xff] %vm264_vm2, %v404_v56  ;;  %435 = vst.msk [vmem:[%s862_s12 + $0xe0] sm:$0xff] %vm264_vm2, %v403_v58  ;;  %v991_v4 = vadd.f32 %v845_v11, %v337_v60  ;;  %v994_v5 = vadd.f32 %v845_v11, %v340_v61  ;;  %v343_v6 = vmul.f32 %v817_v47, %v307_v57 }
 0x130   : > { %v999_v8 = vadd.f32 %v845_v11, %v339_v62  ;;  %v1002_v9 = vadd.f32 %v845_v11, %v342_v63  ;;  %v1005_v10 = vadd.f32 %v845_v11, %v341_v0  ;;  %v1008_v12 = vadd.f32 %v845_v11, %v344_v1  ;;  %495 = vrot.lane.b32.xlu0 %v394_v31, %s741_s23 }
 0x131   : > { %493 = vrot.lane.b32.xlu1 %v393_v32, %s741_s23  ;;  %438 = vst.msk [vmem:[%s862_s12 + $0x108] sm:$0xff] %vm264_vm2, %v406_v3  ;;  %v405_v16 = vmax.f32 %v991_v4, 0.0  ;;  %v408_v17 = vmax.f32 %v994_v5, 0.0  ;;  %v1026_v18 = vadd.f32 %v845_v11, %v343_v6  ;;  %v346_v19 = vmul.f32 %v817_v47, %v310_v2 }
 0x132   : > { %v407_v22 = vmax.f32 %v999_v8, 0.0  ;;  %v410_v23 = vmax.f32 %v1002_v9, 0.0  ;;  %v409_v24 = vmax.f32 %v1005_v10, 0.0  ;;  %v412_v27 = vmax.f32 %v1008_v12, 0.0 }
 0x133   : > { %437 = vst.msk [vmem:[%s862_s12 + $0x100] sm:$0xff] %vm264_vm2, %v405_v16  ;;  %440 = vst.msk [vmem:[%s862_s12 + $0x128] sm:$0xff] %vm264_vm2, %v408_v17  ;;  %v411_v29 = vmax.f32 %v1026_v18, 0.0  ;;  %v382_v30 = vadd.f32 %v845_v11, %v346_v19  ;;  %v345_v31 = vmul.f32 %v817_v47, %v309_v7  ;;  %v348_v32 = vmul.f32 %v817_v47, %v312_v13 }
 0x134   : > { %439 = vst.msk [vmem:[%s862_s12 + $0x120] sm:$0xff] %vm264_vm2, %v407_v22  ;;  %442 = vst.msk [vmem:[%s862_s12 + $0x148] sm:$0xff] %vm264_vm2, %v410_v23  ;;  %v347_v42 = vmul.f32 %v817_v47, %v311_v14  ;;  %v350_v43 = vmul.f32 %v817_v47, %v314_v15  ;;  %v349_v44 = vmul.f32 %v817_v47, %v313_v20  ;;  %499 = vrot.lane.b32.xlu0 %v396_v33, %s741_s23 }
 0x135   : > { %441 = vst.msk [vmem:[%s862_s12 + $0x140] sm:$0xff] %vm264_vm2, %v409_v24  ;;  %444 = vst.msk [vmem:[%s862_s12 + $0x168] sm:$0xff] %vm264_vm2, %v412_v27  ;;  %v352_v50 = vmul.f32 %v817_v47, %v316_v21  ;;  %497 = vrot.lane.b32.xlu1 %v395_v34, %s741_s23  ;;  %v414_v51 = vmax.f32 %v382_v30, 0.0  ;;  %v381_v52 = vadd.f32 %v845_v11, %v345_v31 }
 0x136   : > { %443 = vst.msk [vmem:[%s862_s12 + $0x160] sm:$0xff] %vm264_vm2, %v411_v29  ;;  %v384_v57 = vadd.f32 %v845_v11, %v348_v32  ;;  %v351_v60 = vmul.f32 %v817_v47, %v315_v28  ;;  %v383_v61 = vadd.f32 %v845_v11, %v347_v42  ;;  %v386_v25 = vadd.f32 %v845_v11, %v350_v43 }
 0x137   : > { %v385_v33 = vadd.f32 %v845_v11, %v349_v44  ;;  %v388_v26 = vadd.f32 %v845_v11, %v352_v50  ;;  %446 = vst.msk [vmem:[%s862_s12 + $0x188] sm:$0xff] %vm264_vm2, %v414_v51  ;;  %v413_v34 = vmax.f32 %v381_v52, 0.0 }
 0x138   : > { %v416_v62 = vmax.f32 %v384_v57, 0.0  ;;  %v387_v47 = vadd.f32 %v845_v11, %v351_v60  ;;  %v415_v63 = vmax.f32 %v383_v61, 0.0  ;;  %v418_v0 = vmax.f32 %v386_v25, 0.0  ;;  %503 = vrot.lane.b32.xlu0 %v398_v45, %s741_s23 }
 0x139   : > { %v417_v1 = vmax.f32 %v385_v33, 0.0  ;;  %v420_v2 = vmax.f32 %v388_v26, 0.0  ;;  %501 = vrot.lane.b32.xlu1 %v397_v46, %s741_s23  ;;  %445 = vst.msk [vmem:[%s862_s12 + $0x180] sm:$0xff] %vm264_vm2, %v413_v34 }
 0x13a   : > { %448 = vst.msk [vmem:[%s862_s12 + $0x1a8] sm:$0xff] %vm264_vm2, %v416_v62  ;;  %v419_v4 = vmax.f32 %v387_v47, 0.0  ;;  %447 = vst.msk [vmem:[%s862_s12 + $0x1a0] sm:$0xff] %vm264_vm2, %v415_v63 }
 0x13b   : > { %450 = vst.msk [vmem:[%s862_s12 + $0x1c8] sm:$0xff] %vm264_vm2, %v418_v0  ;;  %449 = vst.msk [vmem:[%s862_s12 + $0x1c0] sm:$0xff] %vm264_vm2, %v417_v1 }
 0x13c   : > { %452 = vst.msk [vmem:[%s862_s12 + $0x1e8] sm:$0xff] %vm264_vm2, %v420_v2  ;;  %451 = vst.msk [vmem:[%s862_s12 + $0x1e0] sm:$0xff] %vm264_vm2, %v419_v4  ;;  %507 = vrot.lane.b32.xlu0 %v400_v48, %s741_s23 }
 0x13d   : > { %505 = vrot.lane.b32.xlu1 %v399_v53, %s741_s23 }
 0x140   : > { %511 = vrot.lane.b32.xlu0 %v402_v54, %s741_s23 }
 0x141   : > { %509 = vrot.lane.b32.xlu1 %v401_v55, %s741_s23 }
 0x144   : > { %515 = vrot.lane.b32.xlu0 %v404_v56, %s741_s23 }
 0x145   : > { %513 = vrot.lane.b32.xlu1 %v403_v58, %s741_s23 }
 0x148   : > { %519 = vrot.lane.b32.xlu0 %v406_v3, %s741_s23 }
 0x149   : > { %517 = vrot.lane.b32.xlu1 %v405_v16, %s741_s23 }
 0x14c   : > { %523 = vrot.lane.b32.xlu0 %v408_v17, %s741_s23 }
 0x14d   : > { %521 = vrot.lane.b32.xlu1 %v407_v22, %s741_s23 }
 0x150   : > { %527 = vrot.lane.b32.xlu0 %v410_v23, %s741_s23 }
 0x151   : > { %525 = vrot.lane.b32.xlu1 %v409_v24, %s741_s23 }
 0x154   : > { %531 = vrot.lane.b32.xlu0 %v412_v27, %s741_s23 }
 0x155   : > { %529 = vrot.lane.b32.xlu1 %v411_v29, %s741_s23 }
 0x158   : > { %535 = vrot.lane.b32.xlu0 %v414_v51, %s741_s23 }
 0x159   : > { %533 = vrot.lane.b32.xlu1 %v413_v34, %s741_s23 }
 0x15c   : > { %539 = vrot.lane.b32.xlu0 %v416_v62, %s741_s23 }
 0x15d   : > { %537 = vrot.lane.b32.xlu1 %v415_v63, %s741_s23 }
 0x160   : > { %543 = vrot.lane.b32.xlu0 %v418_v0, %s741_s23 }
 0x161   : > { %541 = vrot.lane.b32.xlu1 %v417_v1, %s741_s23 }
 0x164   : > { %547 = vrot.lane.b32.xlu0 %v420_v2, %s741_s23 }
 0x165   : > { %545 = vrot.lane.b32.xlu1 %v419_v4, %s741_s23 }
 0x19a   : > { %v488_v11 = vpop.permute.xlu0 %487  ;;  %v486_v35 = vpop.permute.xlu1 %485 }
 0x19b   : > { %679 = vst.msk [vmem:[%s862_s12 + $0x18] sm:$0xff] %vm264_vm2, %v488_v11  ;;  %678 = vst.msk [vmem:[%s862_s12 + $0x10] sm:$0xff] %vm264_vm2, %v486_v35 }
 0x19e   : > { %v492_v36 = vpop.permute.xlu0 %491  ;;  %v490_v37 = vpop.permute.xlu1 %489 }
 0x19f   : > { %681 = vst.msk [vmem:[%s862_s12 + $0x38] sm:$0xff] %vm264_vm2, %v492_v36  ;;  %680 = vst.msk [vmem:[%s862_s12 + $0x30] sm:$0xff] %vm264_vm2, %v490_v37 }
 0x1a2   : > { %v496_v38 = vpop.permute.xlu0 %495 }
 0x1a3   : > { %v494_v39 = vpop.permute.xlu1 %493  ;;  %683 = vst.msk [vmem:[%s862_s12 + $0x58] sm:$0xff] %vm264_vm2, %v496_v38 }
 0x1a4   : > { %682 = vst.msk [vmem:[%s862_s12 + $0x50] sm:$0xff] %vm264_vm2, %v494_v39 }
 0x1a6   : > { %v500_v40 = vpop.permute.xlu0 %499 }
 0x1a7   : > { %v498_v41 = vpop.permute.xlu1 %497  ;;  %685 = vst.msk [vmem:[%s862_s12 + $0x78] sm:$0xff] %vm264_vm2, %v500_v40 }
 0x1a8   : > { %684 = vst.msk [vmem:[%s862_s12 + $0x70] sm:$0xff] %vm264_vm2, %v498_v41 }
 0x1aa   : > { %v504_v45 = vpop.permute.xlu0 %503 }
 0x1ab   : > { %v502_v46 = vpop.permute.xlu1 %501  ;;  %687 = vst.msk [vmem:[%s862_s12 + $0x98] sm:$0xff] %vm264_vm2, %v504_v45 }
 0x1ac   : > { %686 = vst.msk [vmem:[%s862_s12 + $0x90] sm:$0xff] %vm264_vm2, %v502_v46 }
 0x1ae   : > { %v508_v48 = vpop.permute.xlu0 %507 }
 0x1af   : > { %v506_v49 = vpop.permute.xlu1 %505  ;;  %689 = vst.msk [vmem:[%s862_s12 + $0xb8] sm:$0xff] %vm264_vm2, %v508_v48 }
 0x1b0   : > { %688 = vst.msk [vmem:[%s862_s12 + $0xb0] sm:$0xff] %vm264_vm2, %v506_v49 }
 0x1b2   : > { %v512_v53 = vpop.permute.xlu0 %511 }
 0x1b3   : > { %v510_v54 = vpop.permute.xlu1 %509  ;;  %691 = vst.msk [vmem:[%s862_s12 + $0xd8] sm:$0xff] %vm264_vm2, %v512_v53 }
 0x1b4   : > { %690 = vst.msk [vmem:[%s862_s12 + $0xd0] sm:$0xff] %vm264_vm2, %v510_v54 }
 0x1b6   : > { %v516_v55 = vpop.permute.xlu0 %515 }
 0x1b7   : > { %v514_v56 = vpop.permute.xlu1 %513  ;;  %693 = vst.msk [vmem:[%s862_s12 + $0xf8] sm:$0xff] %vm264_vm2, %v516_v55 }
 0x1b8   : > { %692 = vst.msk [vmem:[%s862_s12 + $0xf0] sm:$0xff] %vm264_vm2, %v514_v56 }
 0x1ba   : > { %v520_v58 = vpop.permute.xlu0 %519 }
 0x1bb   : > { %v518_v59 = vpop.permute.xlu1 %517  ;;  %695 = vst.msk [vmem:[%s862_s12 + $0x118] sm:$0xff] %vm264_vm2, %v520_v58 }
 0x1bc   : > { %694 = vst.msk [vmem:[%s862_s12 + $0x110] sm:$0xff] %vm264_vm2, %v518_v59 }
 0x1be   : > { %v524_v3 = vpop.permute.xlu0 %523 }
 0x1bf   : > { %v522_v5 = vpop.permute.xlu1 %521  ;;  %697 = vst.msk [vmem:[%s862_s12 + $0x138] sm:$0xff] %vm264_vm2, %v524_v3 }
 0x1c0   : > { %696 = vst.msk [vmem:[%s862_s12 + $0x130] sm:$0xff] %vm264_vm2, %v522_v5 }
 0x1c2   : > { %v528_v6 = vpop.permute.xlu0 %527 }
 0x1c3   : > { %v526_v7 = vpop.permute.xlu1 %525  ;;  %699 = vst.msk [vmem:[%s862_s12 + $0x158] sm:$0xff] %vm264_vm2, %v528_v6 }
 0x1c4   : > { %698 = vst.msk [vmem:[%s862_s12 + $0x150] sm:$0xff] %vm264_vm2, %v526_v7 }
 0x1c6   : > { %v532_v8 = vpop.permute.xlu0 %531 }
 0x1c7   : > { %v530_v9 = vpop.permute.xlu1 %529  ;;  %701 = vst.msk [vmem:[%s862_s12 + $0x178] sm:$0xff] %vm264_vm2, %v532_v8 }
 0x1c8   : > { %700 = vst.msk [vmem:[%s862_s12 + $0x170] sm:$0xff] %vm264_vm2, %v530_v9 }
 0x1ca   : > { %v536_v10 = vpop.permute.xlu0 %535 }
 0x1cb   : > { %v534_v12 = vpop.permute.xlu1 %533  ;;  %703 = vst.msk [vmem:[%s862_s12 + $0x198] sm:$0xff] %vm264_vm2, %v536_v10 }
 0x1cc   : > { %702 = vst.msk [vmem:[%s862_s12 + $0x190] sm:$0xff] %vm264_vm2, %v534_v12 }
 0x1ce   : > { %v540_v13 = vpop.permute.xlu0 %539 }
 0x1cf   : > { %v538_v14 = vpop.permute.xlu1 %537  ;;  %705 = vst.msk [vmem:[%s862_s12 + $0x1b8] sm:$0xff] %vm264_vm2, %v540_v13 }
 0x1d0   : > { %704 = vst.msk [vmem:[%s862_s12 + $0x1b0] sm:$0xff] %vm264_vm2, %v538_v14 }
 0x1d2   : > { %v544_v15 = vpop.permute.xlu0 %543 }
 0x1d3   : > { %v542_v16 = vpop.permute.xlu1 %541  ;;  %707 = vst.msk [vmem:[%s862_s12 + $0x1d8] sm:$0xff] %vm264_vm2, %v544_v15 }
 0x1d4   : > { %706 = vst.msk [vmem:[%s862_s12 + $0x1d0] sm:$0xff] %vm264_vm2, %v542_v16 }
 0x1d6   : > { %v548_v17 = vpop.permute.xlu0 %547 }
 0x1d7   : > { %v546_v18 = vpop.permute.xlu1 %545  ;;  %709 = vst.msk [vmem:[%s862_s12 + $0x1f8] sm:$0xff] %vm264_vm2, %v548_v17 }
 0x1d8   : > { %708 = vst.msk [vmem:[%s862_s12 + $0x1f0] sm:$0xff] %vm264_vm2, %v546_v18 }
 0x1d9 PF: > { %s14_s15 = sadd.s32 1, %s737_s15  }
 0x1da   : > { %p11_p4 = scmp.ge.s32.totalorder %s14_s15, 4  }
 0x1dc   :  { %13 = sbr.rel (!%p11_p4) target bundleno = 1 (0x1), region = 67 }

// kernel: _lambda_.6
= control target key start
LH: loop header
LB: loop body
LE: loop exit
PB: predicated region body
PF: predicated region fallthrough
CT: control target
= control target key end

     0   :  { %s4472_s12 = smov 0   ;;  %s6260_s0 = inlined_call_operand.vmem [shape: bf16[2,16,16,4], index: 0, kind: input, shape index: {}]   ;;  %s6261_s1 = inlined_call_operand.vmem [shape: bf16[36,8], index: 1, kind: input, shape index: {}]   ;;  %s6262_s2 = inlined_call_operand.vmem [shape: f32[2,256,8], index: 2, kind: output, shape index: {0}]   ;;  %s6263_s3 = inlined_call_operand.vmem [shape: f32[2,2,8], index: 3, kind: output, shape index: {1}]  }
   0x1 LB: > { %s4069_s13 = sadd.s32 4294967295, %s4441_s12   ;;  %p4073_p0 = scmp.ge.s32.totalorder %s4441_s12, 1  ;;  %s4441_s12 = sphi %s4472_s12, %s14_s12  }
   0x2   : > { %p140_p1 = scmp.lt.s32.totalorder %s4441_s12, 3 }
   0x4   : > { %p141_p2 = pnand %p4073_p0, %p140_p1 }
   0x5   : > { %vm183_vm0 = vcmask (!%p141_p2), 27648   ;;  %vm186_vm1 = vcmask (!%p141_p2), 24576   ;;  %v4443_v0 = vmov (!%p141_p2), 0   ;;  %p168_p3 = scmp.lt.s32.totalorder (!%p141_p2), %s4069_s13, 1  ;;  %vm1211_vm2 = vcmask (!%p141_p2), 1042432   ;;  %s4444_s18 = smov (!%p141_p2), 8  }
   0x6   : > { %144 = sbr.rel (%p141_p2) target bundleno = 766 (0x2fe), region = 28  ;;  %184 = vst.msk [vmem:[#allocation2] sm:$0xf] (!%p141_p2), %vm183_vm0, %v4443_v0  ;;  %185 = vst.msk [vmem:[#allocation2 + $0x4] sm:$0xf] (!%p141_p2), %vm183_vm0, %v4443_v0  ;;  %vm1212_vm3 = vcmask (!%p141_p2), 1046532  }
   0x7   : > { %187 = vst.msk [vmem:[#allocation2 + $0x8] sm:$0x1] (!%p141_p2), %vm186_vm1, %v4443_v0  ;;  %190 = vst.msk [vmem:[#allocation2 + $0x14] sm:$0x1] (!%p141_p2), %vm186_vm1, %v4443_v0  ;;  %vm760_vm4 = vsmask.f32 (!%p141_p2), 3328 }
   0x8   : > { %188 = vst.msk [vmem:[#allocation2 + $0xc] sm:$0xf] (!%p141_p2), %vm183_vm0, %v4443_v0  ;;  %189 = vst.msk [vmem:[#allocation2 + $0x10] sm:$0xf] (!%p141_p2), %vm183_vm0, %v4443_v0  ;;  %vm761_vm5 = vsmask.f32 (!%p141_p2), 7440 }
   0x9   : > { %191 = vst.msk [vmem:[#allocation2 + $0x18] sm:$0xf] (!%p141_p2), %vm183_vm0, %v4443_v0  ;;  %192 = vst.msk [vmem:[#allocation2 + $0x1c] sm:$0xf] (!%p141_p2), %vm183_vm0, %v4443_v0  ;;  %vm271_vm6 = vsmask.f32 (!%p141_p2), 256 }
   0xa   : > { %193 = vst.msk [vmem:[#allocation2 + $0x20] sm:$0x1] (!%p141_p2), %vm186_vm1, %v4443_v0  ;;  %196 = vst.msk [vmem:[#allocation2 + $0x2c] sm:$0x1] (!%p141_p2), %vm186_vm1, %v4443_v0  ;;  %vm272_vm8 = vsmask.f32 (!%p141_p2), 4368 }
   0xb   : > { %194 = vst.msk [vmem:[#allocation2 + $0x24] sm:$0xf] (!%p141_p2), %vm183_vm0, %v4443_v0  ;;  %195 = vst.msk [vmem:[#allocation2 + $0x28] sm:$0xf] (!%p141_p2), %vm183_vm0, %v4443_v0  ;;  %vm596_vm9 = vsmask.f32 (!%p141_p2), 7938 }
   0xc   : > { %197 = vst.msk [vmem:[#allocation2 + $0x30] sm:$0xf] (!%p141_p2), %vm183_vm0, %v4443_v0  ;;  %198 = vst.msk [vmem:[#allocation2 + $0x34] sm:$0xf] (!%p141_p2), %vm183_vm0, %v4443_v0  ;;  %s4445_s19 = smov (!%p141_p2), 4   ;;  %s4446_s20 = smov (!%p141_p2), 12  }
   0xd   : > { %199 = vst.msk [vmem:[#allocation2 + $0x38] sm:$0x1] %vm186_vm1, %v4443_v0  ;;  %202 = vst.msk [vmem:[#allocation2 + $0x44] sm:$0x1] %vm186_vm1, %v4443_v0  ;;  %s6278_s13 = smov (!%p168_p3, %s4069_s13), 1  ;;  %s4447_s21 = smov 24  }
   0xe   : > { %200 = vst.msk [vmem:[#allocation2 + $0x3c] sm:$0xf] %vm183_vm0, %v4443_v0  ;;  %201 = vst.msk [vmem:[#allocation2 + $0x40] sm:$0xf] %vm183_vm0, %v4443_v0  ;;  %s4292_s14 = sshll.u32 %s6278_s13, 7  ;;  %s4448_s22 = smov 20  }
   0xf   : > { %203 = vst.msk [vmem:[#allocation2 + $0x48] sm:$0xf] %vm183_vm0, %v4443_v0  ;;  %204 = vst.msk [vmem:[#allocation2 + $0x4c] sm:$0xf] %vm183_vm0, %v4443_v0  ;;  %s4544_s17 = scalar_lea.vmem %s6260_s0, %s4292_s14  ;;  %v713_v3 = vld [vmem:[#allocation2 + $0x4] sm:$0xf] }
  0x10   : > { %205 = vst.msk [vmem:[#allocation2 + $0x50] sm:$0x1] %vm186_vm1, %v4443_v0  ;;  %208 = vst.msk [vmem:[#allocation2 + $0x5c] sm:$0x1] %vm186_vm1, %v4443_v0  ;;  %v241_v2 = vld [vmem:[%s4544_s17 + $0x8] sm:$0xf] }
  0x11   : > { %206 = vst.msk [vmem:[#allocation2 + $0x54] sm:$0xf] %vm183_vm0, %v4443_v0  ;;  %207 = vst.msk [vmem:[#allocation2 + $0x58] sm:$0xf] %vm183_vm0, %v4443_v0  ;;  %v744_v4 = vld [vmem:[#allocation2 + $0x8] sm:$0x1] }
  0x12   : > { %209 = vst.msk [vmem:[#allocation2 + $0x60] sm:$0xf] %vm183_vm0, %v4443_v0  ;;  %210 = vst.msk [vmem:[#allocation2 + $0x64] sm:$0xf] %vm183_vm0, %v4443_v0  ;;  %v1147_v5 = vld [vmem:[#allocation2] sm:$0xe] }
  0x13   : > { %211 = vst.msk [vmem:[#allocation2 + $0x68] sm:$0x1] %vm186_vm1, %v4443_v0  ;;  %214 = vst.msk [vmem:[#allocation2 + $0x74] sm:$0x1] %vm186_vm1, %v4443_v0  ;;  %v4079_v6 = vrot.slane %v1147_v5, 9  ;;  %v1216_v7 = vrot.slane %v713_v3, 5 }
  0x14   : > { %212 = vst.msk [vmem:[#allocation2 + $0x6c] sm:$0xf] %vm183_vm0, %v4443_v0  ;;  %213 = vst.msk [vmem:[#allocation2 + $0x70] sm:$0xf] %vm183_vm0, %v4443_v0  ;;  %v1219_v8 = vrot.slane %v744_v4, 5  ;;  %v773_v10 = vshll.u32 %v713_v3, 16 }
  0x15   : > { %215 = vst.msk [vmem:[#allocation2 + $0x78] sm:$0xf] %vm183_vm0, %v4443_v0  ;;  %216 = vst.msk [vmem:[#allocation2 + $0x7c] sm:$0xf] %vm183_vm0, %v4443_v0  ;;  %v712_v9 = vld [vmem:[#allocation2] sm:$0xf] }
  0x16   : > { %217 = vst.msk [vmem:[#allocation2 + $0x80] sm:$0x1] %vm186_vm1, %v4443_v0  ;;  %220 = vst.msk [vmem:[#allocation2 + $0x8c] sm:$0x1] %vm186_vm1, %v4443_v0  ;;  %v764_v11 = vshrl.u32 %v712_v9, 16  ;;  %v767_v12 = vshll.u32 %v712_v9, 16 }
  0x17   : > { %218 = vst.msk [vmem:[#allocation2 + $0x84] sm:$0xf] %vm183_vm0, %v4443_v0  ;;  %219 = vst.msk [vmem:[#allocation2 + $0x88] sm:$0xf] %vm183_vm0, %v4443_v0  ;;  %v777_v13 = vshrl.u32 %v713_v3, 16  ;;  %v783_v14 = vshll.u32 %v744_v4, 16 }
  0x18   : > { %221 = vst.msk [vmem:[#allocation2 + $0x90] sm:$0xf] %vm183_vm0, %v4443_v0  ;;  %222 = vst.msk [vmem:[#allocation2 + $0x94] sm:$0xf] %vm183_vm0, %v4443_v0  ;;  %v242_v15 = vld [vmem:[%s4544_s17 + $0xc] sm:$0xf] }
  0x19   : > { %223 = vst.msk [vmem:[#allocation2 + $0x98] sm:$0x1] %vm186_vm1, %v4443_v0  ;;  %226 = vst.msk [vmem:[#allocation2 + $0xa4] sm:$0x1] %vm186_vm1, %v4443_v0  ;;  %v1218_v17 = vrot.slane %v1216_v7, 4  ;;  %v775_v18 = vrot.slane %v773_v10, 5 }
  0x1a   : > { %224 = vst.msk [vmem:[#allocation2 + $0x9c] sm:$0xf] %vm183_vm0, %v4443_v0  ;;  %225 = vst.msk [vmem:[#allocation2 + $0xa0] sm:$0xf] %vm183_vm0, %v4443_v0  ;;  %v292_v19 = vshrl.u32 %v241_v2, 16  ;;  %v766_v20 = vrot.slane %v764_v11, 4 }
  0x1b   : > { %227 = vst.msk [vmem:[#allocation2 + $0xa8] sm:$0xf] %vm183_vm0, %v4443_v0  ;;  %228 = vst.msk [vmem:[#allocation2 + $0xac] sm:$0xf] %vm183_vm0, %v4443_v0  ;;  %v769_v21 = vrot.slane %v767_v12, 5  ;;  %v779_v22 = vrot.slane %v777_v13, 4 }
  0x1c   : > { %229 = vst.msk [vmem:[#allocation2 + $0xb0] sm:$0x1] %vm186_vm1, %v4443_v0  ;;  %232 = vst.msk [vmem:[#allocation2 + $0xbc] sm:$0x1] %vm186_vm1, %v4443_v0  ;;  %v785_v23 = vrot.slane %v783_v14, 5  ;;  %v294_v26 = vrot.slane %v292_v19, 7 }
  0x1d   : > { %230 = vst.msk [vmem:[#allocation2 + $0xb4] sm:$0xf] %vm183_vm0, %v4443_v0  ;;  %231 = vst.msk [vmem:[#allocation2 + $0xb8] sm:$0xf] %vm183_vm0, %v4443_v0  ;;  %v239_v24 = vld [vmem:[%s4544_s17] sm:$0xf]  ;;  %v770_v31 = vor.u32 %v769_v21, %v766_v20  ;;  %v780_v32 = vor.u32 %v779_v22, %v775_v18 }
  0x1e   : > { %233 = vst.msk [vmem:[#allocation2 + $0xc0] sm:$0xf] %vm183_vm0, %v4443_v0  ;;  %234 = vst.msk [vmem:[#allocation2 + $0xc4] sm:$0xf] %vm183_vm0, %v4443_v0  ;;  %v295_v27 = vshll.u32 %v241_v2, 16  ;;  %v300_v28 = vshrl.u32 %v242_v15, 16 }
  0x1f   : > { %235 = vst.msk [vmem:[#allocation2 + $0xc8] sm:$0x1] %vm186_vm1, %v4443_v0  ;;  %238 = vst.msk [vmem:[#allocation2 + $0xd4] sm:$0x1] %vm186_vm1, %v4443_v0  ;;  %v240_v29 = vld [vmem:[%s4544_s17 + $0x4] sm:$0xf] }
  0x20   : > { %236 = vst.msk [vmem:[#allocation2 + $0xcc] sm:$0xf] %vm183_vm0, %v4443_v0  ;;  %237 = vst.msk [vmem:[#allocation2 + $0xd0] sm:$0xf] %vm183_vm0, %v4443_v0  ;;  %v303_v33 = vshll.u32 %v242_v15, 16  ;;  %v297_v37 = vor.u32 %v295_v27, %v294_v26  ;;  %v298_v38 = vrot.slane %v294_v26, 4 }
  0x21   : > { %vm4546_vm7 = vmor %vm1211_vm2, %vm1212_vm3  ;;  %v607_v35 = vld [vmem:[#allocation2 + $0x18] sm:$0xf]  ;;  %v302_v39 = vrot.slane %v300_v28, 7  ;;  %v275_v40 = vshrl.u32 %v239_v24, 16  ;;  %v243_v41 = vld [vmem:[%s4544_s17 + $0x10] sm:$0xf] }
  0x22   : > { %v1217_v16 = vsel %vm4546_vm7, %v4079_v6, %v1216_v7  ;;  %v1220_v25 = vsel %vm4546_vm7, %v1218_v17, %v1219_v8  ;;  %vm4560_vm10 = vmand %vm183_vm0, %vm596_vm9  ;;  %v771_v42 = vrot.slane %v770_v31, 4  ;;  %v781_v43 = vrot.slane %v780_v32, 4  ;;  %v244_v51 = vld [vmem:[%s4544_s17 + $0x14] sm:$0xf]  ;;  %v598_v55 = vld [vmem:[#allocation2 + $0xc] sm:$0xf] }
  0x23   : > { %v4159_v30 = vcombine.low %v1217_v16, %v1220_v25  ;;  %vm4566_vm11 = vmor %vm760_vm4, %vm761_vm5  ;;  %v278_v45 = vshll.u32 %v239_v24, 16  ;;  %v283_v46 = vshrl.u32 %v240_v29, 16  ;;  %v305_v47 = vor.u32 %v303_v33, %v302_v39  ;;  %v604_v61 = vld [vmem:[#allocation2 + $0x14] sm:$0x1]  ;;  %v611_v62 = vld [vmem:[#allocation2 + $0x20] sm:$0x1] }
  0x24   : > { %vm4574_vm12 = vmor %vm271_vm6, %vm272_vm8  ;;  %v608_v48 = vsel %vm4560_vm10, %v297_v37, %v607_v35  ;;  %v277_v49 = vrot.slane %v275_v40, 7  ;;  %v286_v50 = vshll.u32 %v240_v29, 16  ;;  %v776_v52 = vsel %vm4566_vm11, %v771_v42, %v775_v18  ;;  %v4595_v5 = vld [vmem:[%s4544_s17 + $0x18] sm:$0xf]  ;;  %v614_v8 = vld [vmem:[#allocation2 + $0x24] sm:$0xf] }
  0x25   : > { %2735 = vrot.lane.b32.xlu1 %v4159_v30, %s4444_s18  ;;  %v786_v53 = vsel %vm4566_vm11, %v781_v43, %v785_v23  ;;  %609 = vst [vmem:[#allocation2 + $0x18] sm:$0xf] %v608_v48  ;;  %v285_v54 = vrot.slane %v283_v46, 7  ;;  %v309_v56 = vshrl.u32 %v243_v41, 16  ;;  %v306_v58 = vsel %vm4574_vm12, %v298_v38, %v305_v47  ;;  %vm4589_vm13 = vmand %vm186_vm1, %vm271_vm6  ;;  %v618_v21 = vld [vmem:[#allocation2 + $0x2c] sm:$0x1] }
  0x26   : > { %v4143_v57 = vcombine.low %v776_v52, %v786_v53  ;;  %v280_v59 = vor.u32 %v278_v45, %v277_v49  ;;  %v281_v60 = vrot.slane %v277_v49, 4  ;;  %610 = vst.msk [vmem:[#allocation2 + $0x1c] sm:$0xf] %vm183_vm0, %v306_v58  ;;  %v312_v3 = vshll.u32 %v243_v41, 16  ;;  %v4611_v22 = vld [vmem:[%s4544_s17 + $0x1c] sm:$0xf] }
  0x27   : > { %v288_v0 = vor.u32 %v286_v50, %v285_v54  ;;  %v311_v2 = vrot.slane %v309_v56, 7  ;;  %v317_v4 = vshrl.u32 %v244_v51, 16  ;;  %v320_v7 = vshll.u32 %v244_v51, 16  ;;  %s4449_s23 = smov 32   ;;  %s4450_s24 = smov 16  }
  0x28   : > { %2655 = vrot.lane.b32.xlu0 %v4143_v57, %s4445_s19  ;;  %v599_v6 = vsel %vm4560_vm10, %v280_v59, %v598_v55  ;;  %v290_v9 = vrot.slane %v285_v54, 4  ;;  %v307_v10 = vrot.slane %v302_v39, 4  ;;  %v326_v17 = vshrl.u32 %v4595_v5, 16  ;;  %s4451_s25 = smov 28   ;;  %s4293_s5 = sshll.u32 %s6278_s13, 8 }
  0x29   : > { %v289_v11 = vsel %vm4574_vm12, %v281_v60, %v288_v0  ;;  %600 = vst [vmem:[#allocation2 + $0xc] sm:$0xf] %v599_v6  ;;  %v314_v12 = vor.u32 %v312_v3, %v311_v2  ;;  %v315_v13 = vrot.slane %v311_v2, 4  ;;  %v319_v14 = vrot.slane %v317_v4, 7  ;;  %s6081_s8 = scalar_lea.vmem %s6262_s2, %s4293_s5  ;;  %s4078_s9 = sshll.u32 %s6278_s13, 1 }
  0x2a   : > { %601 = vst.msk [vmem:[#allocation2 + $0x10] sm:$0xf] %vm183_vm0, %v289_v11  ;;  %v605_v15 = vsel %vm4589_vm13, %v290_v9, %v604_v61  ;;  %v612_v16 = vsel %vm4589_vm13, %v307_v10, %v611_v62  ;;  %v329_v23 = vshll.u32 %v4595_v5, 16  ;;  %v334_v37 = vshrl.u32 %v4611_v22, 16  ;;  %s181_s14 = scalar_lea.vmem %s6263_s3, %s4078_s9 }
  0x2b   : > { %v322_v18 = vor.u32 %v320_v7, %v319_v14  ;;  %v615_v19 = vsel %vm4560_vm10, %v314_v12, %v614_v8  ;;  %606 = vst [vmem:[#allocation2 + $0x14] sm:$0x1] %v605_v15  ;;  %613 = vst [vmem:[#allocation2 + $0x20] sm:$0x1] %v612_v16  ;;  %v324_v20 = vrot.slane %v319_v14, 4  ;;  %vm3279_vm14 = vcmask 31744  }
  0x2c   : > { %v1328_v24 = vld [vmem:[#allocation2 + $0x18] sm:$0xf]  ;;  %616 = vst [vmem:[#allocation2 + $0x24] sm:$0xf] %v615_v19  ;;  %vm3328_vm15 = vcmask 64512   ;;  %vm3361_vm1 = vcmask 97280  }
  0x2d   : > { %v4614_v25 = vld [vmem:[#allocation2 + $0x18] sm:$0xf]  ;;  %v1399_v27 = vshrl.u32 %v1328_v24, 16  ;;  %v1402_v28 = vshll.u32 %v1328_v24, 16  ;;  %v323_v29 = vsel %vm4574_vm12, %v315_v13, %v322_v18  ;;  %v4619_v31 = vld [vmem:[#allocation2 + $0x1c] sm:$0xf]  ;;  %v619_v35 = vsel %vm4589_vm13, %v324_v20, %v618_v21 }
  0x2e   : > { %v2367_v26 = vld [vmem:[#allocation2 + $0x18] sm:$0xe]  ;;  %v1984_v30 = vshrl.u32 %v4614_v25, 16  ;;  %617 = vst.msk [vmem:[#allocation2 + $0x28] sm:$0xf] %vm183_vm0, %v323_v29  ;;  %v1987_v33 = vshll.u32 %v4614_v25, 16  ;;  %v4176_v38 = vcombine.low %v1328_v24, %v4619_v31 }
  0x2f   : > { %v4622_v32 = vld [vmem:[#allocation2 + $0x1c] sm:$0xf]  ;;  %v4629_v39 = vrot.slane %v1399_v27, 4  ;;  %v4631_v40 = vrot.slane %v1402_v28, 5  ;;  %v4111_v41 = vrot.slane %v2367_v26, 9  ;;  %v1412_v42 = vshrl.u32 %v4619_v31, 16 }
  0x30   : > { %620 = vst [vmem:[#allocation2 + $0x2c] sm:$0x1] %v619_v35  ;;  %v1326_v43 = vld [vmem:[#allocation2 + $0xc] sm:$0xf]  ;;  %v4634_v45 = vrot.slane %v1984_v30, 4  ;;  %v4636_v46 = vrot.slane %v1987_v33, 5  ;;  %2833 = vrot.lane.b32.xlu1 %v4176_v38, %s4446_s20  ;;  %v4223_v51 = vcombine.low %v4614_v25, %v4622_v32 }
  0x31   : > { %v1997_v47 = vshrl.u32 %v4622_v32, 16  ;;  %v4640_v48 = vld [vmem:[#allocation2 + $0x10] sm:$0xf]  ;;  %v1375_v49 = vshrl.u32 %v1326_v43, 16  ;;  %v1378_v50 = vshll.u32 %v1326_v43, 16  ;;  %v1405_v57 = vor.u32 %v4631_v40, %v4629_v39 }
  0x32   : > { %v1758_v52 = vld [vmem:[#allocation2 + $0xc] sm:$0xe]  ;;  %v4175_v53 = vcombine.low %v1326_v43, %v4640_v48  ;;  %v4645_v54 = vld [vmem:[#allocation2 + $0x14] sm:$0x1]  ;;  %v1824_v56 = vrot.slane %v4640_v48, 5  ;;  %v2433_v62 = vrot.slane %v4622_v32, 5  ;;  %v1990_v14 = vor.u32 %v4636_v46, %v4634_v45 }
  0x33   : > { %v4095_v55 = vrot.slane %v1758_v52, 9  ;;  %v4650_v58 = vrot.slane %v1375_v49, 4  ;;  %v4652_v59 = vrot.slane %v1378_v50, 5  ;;  %v1937_v60 = vld [vmem:[#allocation2 + $0x24] sm:$0xf]  ;;  %v1827_v61 = vrot.slane %v4645_v54, 5 }
  0x34   : > { %v1759_v0 = vld [vmem:[#allocation2 + $0x18] sm:$0xe]  ;;  %v1388_v2 = vshrl.u32 %v4640_v48, 16  ;;  %2831 = vrot.lane.b32.xlu0 %v4175_v53, %s4446_s20  ;;  %v2008_v3 = vshrl.u32 %v1937_v60, 16  ;;  %v2011_v4 = vshll.u32 %v1937_v60, 16  ;;  %v1826_v6 = vrot.slane %v1824_v56, 4 }
  0x35   : > { %v4658_v7 = vld [vmem:[#allocation2 + $0x10] sm:$0xf]  ;;  %v1938_v8 = vld [vmem:[#allocation2 + $0x28] sm:$0xf]  ;;  %v1825_v9 = vsel %vm4546_vm7, %v4095_v55, %v1824_v56  ;;  %v4662_v10 = vld [vmem:[#allocation2 + $0x14] sm:$0x1]  ;;  %v2434_v12 = vsel %vm4546_vm7, %v4111_v41, %v2433_v62  ;;  %v1381_v13 = vor.u32 %v4652_v59, %v4650_v58 }
  0x36   : > { %v1148_v11 = vld [vmem:[#allocation2 + $0xc] sm:$0xe]  ;;  %v2010_v15 = vrot.slane %v2008_v3, 4  ;;  %v2013_v16 = vrot.slane %v2011_v4, 5  ;;  %v2021_v18 = vshrl.u32 %v1938_v8, 16  ;;  %v4224_v19 = vcombine.low %v1937_v60, %v1938_v8 }
  0x37   : > { %v4670_v20 = vld [vmem:[#allocation2 + $0x20] sm:$0x1]  ;;  %v1828_v21 = vsel %vm4546_vm7, %v1826_v6, %v1827_v61  ;;  %v4080_v24 = vrot.slane %v1148_v11, 9  ;;  %v1223_v25 = vrot.slane %v4658_v7, 5  ;;  %v1226_v26 = vrot.slane %v4662_v10, 5 }
  0x38   : > { %v1359_v27 = vld [vmem:[#allocation2 + $0x20] sm:$0x1]  ;;  %3089 = vrot.lane.b32.xlu1 %v4224_v19, %s4447_s21  ;;  %3087 = vrot.lane.b32.xlu0 %v4223_v51, %s4447_s21  ;;  %v4207_v28 = vcombine.low %v1825_v9, %v1828_v21  ;;  %v2435_v29 = vrot.slane %v2433_v62, 4  ;;  %v2436_v30 = vrot.slane %v4670_v20, 5  ;;  %v4096_v33 = vrot.slane %v1759_v0, 9 }
  0x39   : > { %v1968_v35 = vld [vmem:[#allocation2 + $0x2c] sm:$0x1]  ;;  %v1224_v38 = vsel %vm4546_vm7, %v4080_v24, %v1223_v25  ;;  %v1225_v39 = vrot.slane %v1223_v25, 4  ;;  %v1831_v40 = vrot.slane %v4619_v31, 5  ;;  %v1834_v41 = vrot.slane %v1359_v27, 5 }
  0x3a   : > { %v2368_v43 = vld [vmem:[#allocation2 + $0x24] sm:$0xe]  ;;  %v2437_v49 = vsel %vm4546_vm7, %v2435_v29, %v2436_v30  ;;  %v2440_v52 = vrot.slane %v1938_v8, 5  ;;  %v2443_v51 = vrot.slane %v1968_v35, 5  ;;  %v1406_v3 = vrot.slane %v1405_v57, 4 }
  0x3b   : > { %v4112_v50 = vrot.slane %v2368_v43, 9  ;;  %v1227_v53 = vsel %vm4546_vm7, %v1225_v39, %v1226_v26  ;;  %v4255_v55 = vcombine.low %v2434_v12, %v2437_v49  ;;  %v1832_v56 = vsel %vm4546_vm7, %v4096_v33, %v1831_v40  ;;  %v714_v12 = vld [vmem:[#allocation2 + $0xc] sm:$0xf]  ;;  %v4706_v43 = vld [vmem:[#allocation2 + $0x1c] sm:$0xf] }
  0x3c   : > { %v1833_v60 = vrot.slane %v1831_v40, 4  ;;  %2991 = vrot.lane.b32.xlu0 %v4207_v28, %s4448_s22  ;;  %v4160_v61 = vcombine.low %v1224_v38, %v1227_v53  ;;  %v2442_v0 = vrot.slane %v2440_v52, 4  ;;  %v1408_v6 = vshll.u32 %v4619_v31, 16  ;;  %v1149_v46 = vld [vmem:[#allocation2 + $0x18] sm:$0xe] }
  0x3d   : > { %v2441_v62 = vsel %vm4546_vm7, %v4112_v50, %v2440_v52  ;;  %v1414_v9 = vrot.slane %v1412_v42, 4  ;;  %v1418_v11 = vshll.u32 %v1359_v27, 16  ;;  %v2014_v24 = vor.u32 %v2013_v16, %v2010_v15  ;;  %v716_v15 = vld [vmem:[#allocation2 + $0x18] sm:$0xf] }
  0x3e   : > { %v1835_v4 = vsel %vm4546_vm7, %v1833_v60, %v1834_v41  ;;  %2737 = vrot.lane.b32.xlu1 %v4160_v61, %s4444_s18  ;;  %v2444_v21 = vsel %vm4546_vm7, %v2442_v0, %v2443_v51  ;;  %v2017_v25 = vshll.u32 %v1938_v8, 16  ;;  %v1410_v57 = vrot.slane %v1408_v6, 5  ;;  %v4713_v0 = vld [vmem:[#allocation2 + $0x20] sm:$0x1] }
  0x3f   : > { %v4208_v19 = vcombine.low %v1832_v56, %v1835_v4  ;;  %v4256_v26 = vcombine.low %v2441_v62, %v2444_v21  ;;  %v1420_v28 = vrot.slane %v1418_v11, 5  ;;  %v2023_v29 = vrot.slane %v2021_v18, 4 }
  0x40   : > { %3247 = vrot.lane.b32.xlu0 %v4255_v55, %s4449_s23  ;;  %v2015_v30 = vrot.slane %v2014_v24, 4  ;;  %v2019_v31 = vrot.slane %v2017_v25, 5  ;;  %v2027_v42 = vshll.u32 %v1968_v35, 16  ;;  %v788_v27 = vshrl.u32 %v714_v12, 16 }
  0x41   : > { %v1411_v33 = vsel %vm4566_vm11, %v1406_v3, %v1410_v57  ;;  %v1415_v38 = vor.u32 %v1414_v9, %v1410_v57  ;;  %v791_v39 = vshll.u32 %v714_v12, 16  ;;  %v797_v40 = vshll.u32 %v4658_v7, 16  ;;  %v718_v57 = vld [vmem:[#allocation2 + $0x24] sm:$0xf] }
  0x42   : > { %2993 = vrot.lane.b32.xlu1 %v4208_v19, %s4448_s22  ;;  %v2020_v8 = vsel %vm4566_vm11, %v2015_v30, %v2019_v31  ;;  %v2024_v16 = vor.u32 %v2023_v29, %v2019_v31  ;;  %v2029_v18 = vrot.slane %v2027_v42, 5  ;;  %v790_v41 = vrot.slane %v788_v27, 4 }
  0x43   : > { %v1416_v35 = vrot.slane %v1415_v38, 4  ;;  %v793_v49 = vrot.slane %v791_v39, 5  ;;  %v799_v50 = vrot.slane %v797_v40, 5  ;;  %v801_v52 = vshrl.u32 %v4658_v7, 16 }
  0x44   : > { %3249 = vrot.lane.b32.xlu0 %v4256_v26, %s4449_s23  ;;  %v2025_v51 = vrot.slane %v2024_v16, 4  ;;  %v807_v53 = vshll.u32 %v4662_v10, 16  ;;  %v812_v55 = vshrl.u32 %v716_v15, 16  ;;  %v815_v56 = vshll.u32 %v716_v15, 16 }
  0x45   : > { %v1421_v60 = vsel %vm4566_vm11, %v1416_v35, %v1420_v28  ;;  %v794_v61 = vor.u32 %v793_v49, %v790_v41  ;;  %v803_v62 = vrot.slane %v801_v52, 4  ;;  %v821_v3 = vshll.u32 %v4706_v43, 16 }
  0x46   : > { %v4192_v4 = vcombine.low %v1411_v33, %v1421_v60  ;;  %v2030_v7 = vsel %vm4566_vm11, %v2025_v51, %v2029_v18  ;;  %v809_v6 = vrot.slane %v807_v53, 5  ;;  %v814_v9 = vrot.slane %v812_v55, 4  ;;  %v747_v18 = vld [vmem:[#allocation2 + $0x2c] sm:$0x1] }
  0x47   : > { %v4240_v11 = vcombine.low %v2020_v8, %v2030_v7  ;;  %v795_v12 = vrot.slane %v794_v61, 4  ;;  %v804_v10 = vor.u32 %v803_v62, %v799_v50  ;;  %v817_v19 = vrot.slane %v815_v56, 5  ;;  %v1150_v7 = vld [vmem:[#allocation2 + $0x24] sm:$0xe] }
  0x48   : > { %2913 = vrot.lane.b32.xlu1 %v4192_v4, %s4450_s24  ;;  %v823_v21 = vrot.slane %v821_v3, 5  ;;  %v825_v24 = vshrl.u32 %v4706_v43, 16  ;;  %v831_v25 = vshll.u32 %v4713_v0, 16  ;;  %v1382_v26 = vrot.slane %v1381_v13, 4  ;;  %v719_v13 = vld [vmem:[#allocation2 + $0x28] sm:$0xf] }
  0x49   : > { %v800_v28 = vsel %vm4566_vm11, %v795_v12, %v799_v50  ;;  %v805_v29 = vrot.slane %v804_v10, 4  ;;  %v818_v30 = vor.u32 %v817_v19, %v814_v9  ;;  %v1384_v31 = vshll.u32 %v4640_v48, 16 }
  0x4a   : > { %v827_v42 = vrot.slane %v825_v24, 4  ;;  %v833_v27 = vrot.slane %v831_v25, 5  ;;  %v1390_v33 = vrot.slane %v1388_v2, 4  ;;  %v1394_v38 = vshll.u32 %v4645_v54, 16 }
  0x4b   : > { %v810_v39 = vsel %vm4566_vm11, %v805_v29, %v809_v6  ;;  %v819_v58 = vrot.slane %v818_v30, 4  ;;  %v1386_v59 = vrot.slane %v1384_v31, 5  ;;  %v836_v40 = vshrl.u32 %v718_v57, 16 }
  0x4c   : > { %3169 = vrot.lane.b32.xlu1 %v4240_v11, %s4451_s25  ;;  %v4144_v15 = vcombine.low %v800_v28, %v810_v39  ;;  %v828_v8 = vor.u32 %v827_v42, %v823_v21  ;;  %v1396_v16 = vrot.slane %v1394_v38, 5  ;;  %v839_v41 = vshll.u32 %v718_v57, 16 }
  0x4d   : > { %v824_v48 = vsel %vm4566_vm11, %v819_v58, %v823_v21  ;;  %v1387_v54 = vsel %vm4566_vm11, %v1382_v26, %v1386_v59  ;;  %v1391_v2 = vor.u32 %v1390_v33, %v1386_v59  ;;  %v838_v35 = vrot.slane %v836_v40, 4  ;;  %v1330_v40 = vld [vmem:[#allocation2 + $0x24] sm:$0xf] }
  0x4e   : > { %2657 = vrot.lane.b32.xlu0 %v4144_v15, %s4445_s19  ;;  %v829_v49 = vrot.slane %v828_v8, 4  ;;  %v841_v50 = vrot.slane %v839_v41, 5  ;;  %v845_v52 = vshll.u32 %v719_v13, 16  ;;  %v849_v51 = vshrl.u32 %v719_v13, 16  ;;  %v1331_v15 = vld [vmem:[#allocation2 + $0x28] sm:$0xf] }
  0x4f   : > { %v1392_v53 = vrot.slane %v1391_v2, 4  ;;  %v855_v55 = vshll.u32 %v747_v18, 16  ;;  %v1991_v56 = vrot.slane %v1990_v14, 4  ;;  %v1993_v60 = vshll.u32 %v4622_v32, 16 }
  0x50   : > { %v834_v61 = vsel %vm4566_vm11, %v829_v49, %v833_v27  ;;  %v842_v62 = vor.u32 %v841_v50, %v838_v35  ;;  %v847_v3 = vrot.slane %v845_v52, 5  ;;  %v851_v4 = vrot.slane %v849_v51, 4  ;;  %v1760_v52 = vld [vmem:[#allocation2 + $0x24] sm:$0xe] }
  0x51   : > { %v4145_v6 = vcombine.low %v824_v48, %v834_v61  ;;  %v1397_v9 = vsel %vm4566_vm11, %v1392_v53, %v1396_v16  ;;  %v857_v11 = vrot.slane %v855_v55, 5  ;;  %v1995_v12 = vrot.slane %v1993_v60, 5  ;;  %v625_v55 = vld [vmem:[#allocation2 + $0x38] sm:$0x1] }
  0x52   : > { %v4191_v10 = vcombine.low %v1387_v54, %v1397_v9  ;;  %v843_v19 = vrot.slane %v842_v62, 4  ;;  %v852_v21 = vor.u32 %v851_v4, %v847_v3  ;;  %v1999_v45 = vrot.slane %v1997_v47, 4  ;;  %v1360_v54 = vld [vmem:[#allocation2 + $0x2c] sm:$0x1]  ;;  %v247_v62 = vld [vmem:[%s4544_s17 + $0x20] sm:$0xf] }
  0x53   : > { %2659 = vrot.lane.b32.xlu1 %v4145_v6, %s4445_s19  ;;  %v1996_v14 = vsel %vm4566_vm11, %v1991_v56, %v1995_v12  ;;  %v2003_v24 = vshll.u32 %v4670_v20, 16  ;;  %v4082_v25 = vrot.slane %v1150_v7, 9  ;;  %v1237_v26 = vrot.slane %v719_v13, 5 }
  0x54   : > { %2911 = vrot.lane.b32.xlu0 %v4191_v10, %s4450_s24  ;;  %v848_v57 = vsel %vm4566_vm11, %v843_v19, %v847_v3  ;;  %v853_v28 = vrot.slane %v852_v21, 4  ;;  %v2000_v29 = vor.u32 %v1999_v45, %v1995_v12  ;;  %v1240_v30 = vrot.slane %v747_v18, 5  ;;  %v621_v18 = vld [vmem:[#allocation2 + $0x30] sm:$0xf]  ;;  %v248_v19 = vld [vmem:[%s4544_s17 + $0x24] sm:$0xf] }
  0x55   : > { %v2005_v32 = vrot.slane %v2003_v24, 5  ;;  %v1238_v47 = vsel %vm4546_vm7, %v4082_v25, %v1237_v26  ;;  %v1239_v31 = vrot.slane %v1237_v26, 4  ;;  %v4081_v42 = vrot.slane %v1149_v46, 9  ;;  %v4789_v21 = vld [vmem:[%s4544_s17 + $0x28] sm:$0xf] }
  0x56   : > { %v858_v27 = vsel %vm4566_vm11, %v853_v28, %v857_v11  ;;  %v2001_v20 = vrot.slane %v2000_v29, 4  ;;  %v1230_v33 = vrot.slane %v4706_v43, 5  ;;  %v1233_v38 = vrot.slane %v4713_v0, 5 }
  0x57   : > { %v4146_v39 = vcombine.low %v848_v57, %v858_v27  ;;  %v1241_v58 = vsel %vm4546_vm7, %v1239_v31, %v1240_v30  ;;  %v328_v59 = vrot.slane %v326_v17, 7  ;;  %v336_v13 = vrot.slane %v334_v37, 7 }
  0x58   : > { %v2006_v8 = vsel %vm4566_vm11, %v2001_v20, %v2005_v32  ;;  %v4162_v16 = vcombine.low %v1238_v47, %v1241_v58  ;;  %v1231_v43 = vsel %vm4546_vm7, %v4081_v42, %v1230_v33  ;;  %v1232_v0 = vrot.slane %v1230_v33, 4  ;;  %v628_v20 = vld [vmem:[#allocation2 + $0x3c] sm:$0xf] }
  0x59   : > { %2661 = vrot.lane.b32.xlu1 %v4146_v39, %s4445_s19  ;;  %v4239_v41 = vcombine.low %v1996_v14, %v2006_v8  ;;  %v331_v17 = vor.u32 %v329_v23, %v328_v59  ;;  %v332_v48 = vrot.slane %v328_v59, 4  ;;  %v337_v37 = vshll.u32 %v4611_v22, 16 }
  0x5a   : > { %v1234_v2 = vsel %vm4546_vm7, %v1232_v0, %v1233_v38  ;;  %v1423_v35 = vshrl.u32 %v1330_v40, 16  ;;  %v1426_v49 = vshll.u32 %v1330_v40, 16  ;;  %v1436_v50 = vshrl.u32 %v1331_v15, 16 }
  0x5b   : > { %3167 = vrot.lane.b32.xlu0 %v4239_v41, %s4451_s25  ;;  %v4161_v51 = vcombine.low %v1231_v43, %v1234_v2  ;;  %v339_v53 = vor.u32 %v337_v37, %v336_v13  ;;  %v622_v5 = vsel %vm4560_vm10, %v331_v17, %v621_v18  ;;  %v4177_v23 = vcombine.low %v1330_v40, %v1331_v15 }
  0x5c   : > { %623 = vst [vmem:[#allocation2 + $0x30] sm:$0xf] %v622_v5  ;;  %v1425_v22 = vrot.slane %v1423_v35, 4  ;;  %v1428_v56 = vrot.slane %v1426_v49, 5  ;;  %v341_v60 = vrot.slane %v336_v13, 4  ;;  %v1432_v61 = vshll.u32 %v1331_v15, 16 }
  0x5d   : > { %2741 = vrot.lane.b32.xlu1 %v4162_v16, %s4444_s18  ;;  %v340_v3 = vsel %vm4574_vm12, %v332_v48, %v339_v53  ;;  %v1438_v4 = vrot.slane %v1436_v50, 4  ;;  %v1442_v7 = vshll.u32 %v1360_v54, 16  ;;  %v4097_v6 = vrot.slane %v1760_v52, 9 }
  0x5e   : > { %624 = vst.msk [vmem:[#allocation2 + $0x34] sm:$0xf] %vm183_vm0, %v340_v3  ;;  %v626_v9 = vsel %vm4589_vm13, %v341_v60, %v625_v55  ;;  %v1429_v11 = vor.u32 %v1428_v56, %v1425_v22  ;;  %v1434_v12 = vrot.slane %v1432_v61, 5  ;;  %v1838_v10 = vrot.slane %v1331_v15, 5 }
  0x5f   : > { %2739 = vrot.lane.b32.xlu0 %v4161_v51, %s4444_s18  ;;  %627 = vst [vmem:[#allocation2 + $0x38] sm:$0x1] %v626_v9  ;;  %v1444_v45 = vrot.slane %v1442_v7, 5  ;;  %v1841_v46 = vrot.slane %v1360_v54, 5  ;;  %v343_v14 = vshrl.u32 %v247_v62, 16  ;;  %v346_v24 = vshll.u32 %v247_v62, 16 }
  0x60   : > { %v1430_v25 = vrot.slane %v1429_v11, 4  ;;  %v1439_v26 = vor.u32 %v1438_v4, %v1434_v12  ;;  %v1839_v57 = vsel %vm4546_vm7, %v4097_v6, %v1838_v10  ;;  %v1840_v28 = vrot.slane %v1838_v10, 4  ;;  %v632_v7 = vld [vmem:[#allocation2 + $0x44] sm:$0x1] }
  0x61   : > { %v345_v29 = vrot.slane %v343_v14, 7  ;;  %v351_v30 = vshrl.u32 %v248_v19, 16  ;;  %v354_v32 = vshll.u32 %v248_v19, 16  ;;  %v360_v47 = vshrl.u32 %v4789_v21, 16 }
  0x62   : > { %v1435_v31 = vsel %vm4566_vm11, %v1430_v25, %v1434_v12  ;;  %v1440_v42 = vrot.slane %v1439_v26, 4  ;;  %v1842_v27 = vsel %vm4546_vm7, %v1840_v28, %v1841_v46  ;;  %v363_v33 = vshll.u32 %v4789_v21, 16 }
  0x63   : > { %v1332_v38 = vld [vmem:[#allocation2 + $0x30] sm:$0xf]  ;;  %2835 = vrot.lane.b32.xlu0 %v4177_v23, %s4446_s20  ;;  %v4209_v58 = vcombine.low %v1839_v57, %v1842_v27  ;;  %v348_v59 = vor.u32 %v346_v24, %v345_v29  ;;  %v349_v13 = vrot.slane %v345_v29, 4  ;;  %v353_v40 = vrot.slane %v351_v30, 7 }
  0x64   : > { %v1761_v39 = vld [vmem:[#allocation2 + $0x30] sm:$0xe]  ;;  %v1447_v15 = vshrl.u32 %v1332_v38, 16  ;;  %v1450_v8 = vshll.u32 %v1332_v38, 16  ;;  %v1445_v16 = vsel %vm4566_vm11, %v1440_v42, %v1444_v45  ;;  %vm3394_vm2 = vcmask 130048  }
  0x65   : > { %v4098_v43 = vrot.slane %v1761_v39, 9  ;;  %v1939_v0 = vld [vmem:[#allocation2 + $0x30] sm:$0xf]  ;;  %v1333_v18 = vld [vmem:[#allocation2 + $0x34] sm:$0xf]  ;;  %v4193_v41 = vcombine.low %v1435_v31, %v1445_v16  ;;  %v356_v17 = vor.u32 %v354_v32, %v353_v40  ;;  %v629_v48 = vsel %vm4560_vm10, %v348_v59, %v628_v20 }
  0x66   : > { %v2032_v37 = vshrl.u32 %v1939_v0, 16  ;;  %v1449_v54 = vrot.slane %v1447_v15, 4  ;;  %v1452_v2 = vrot.slane %v1450_v8, 5  ;;  %v1460_v35 = vshrl.u32 %v1333_v18, 16  ;;  %v1361_v50 = vld [vmem:[#allocation2 + $0x38] sm:$0x1] }
  0x67   : > { %v4178_v49 = vcombine.low %v1332_v38, %v1333_v18  ;;  %630 = vst [vmem:[#allocation2 + $0x3c] sm:$0xf] %v629_v48  ;;  %v1456_v52 = vshll.u32 %v1333_v18, 16  ;;  %v1466_v51 = vshll.u32 %v1361_v50, 16  ;;  %2915 = vrot.lane.b32.xlu0 %v4193_v41, %s4450_s24  ;;  %v1845_v53 = vrot.slane %v1333_v18, 5  ;;  %v4394_v41 = vld [vmem:[%s6261_s1] sm:$0xff]  }
  0x68   : > { %v1848_v5 = vrot.slane %v1361_v50, 5  ;;  %v4806_v23 = vld [vmem:[#allocation2 + $0x34] sm:$0xf]  ;;  %v1453_v55 = vor.u32 %v1452_v2, %v1449_v54  ;;  %v1462_v22 = vrot.slane %v1460_v35, 4  ;;  %v357_v56 = vsel %vm4574_vm12, %v349_v13, %v356_v17  ;;  %v4818_v10 = vld [vmem:[#allocation2 + $0x38] sm:$0x1]  ;;  %4313 = vmatprep.subr.bf16.mxu0 %v4394_v41  ;;  %4351 = vmatprep.subr.bf16.mxu1 %v4394_v41 }
  0x69   : > { %2837 = vrot.lane.b32.xlu1 %v4178_v49, %s4446_s20  ;;  %v2034_v60 = vrot.slane %v2032_v37, 4  ;;  %v1458_v61 = vrot.slane %v1456_v52, 5  ;;  %v1468_v62 = vrot.slane %v1466_v51, 5  ;;  %v4813_v3 = vsel %vm4546_vm7, %v4098_v43, %v1845_v53  ;;  %631 = vst.msk [vmem:[#allocation2 + $0x40] sm:$0xf] %vm183_vm0, %v357_v56  ;;  %4314 = vmatpush3.bf16.msra.mxu0 %v4394_v41 }
  0x6a   : > { %v1847_v4 = vrot.slane %v1845_v53, 4  ;;  %v1454_v6 = vrot.slane %v1453_v55, 4  ;;  %v2035_v9 = vshll.u32 %v1939_v0, 16  ;;  %v2045_v11 = vshrl.u32 %v4806_v23, 16  ;;  %v4824_v24 = vld [vmem:[#allocation2 + $0x30] sm:$0xf]  ;;  %4354 = vmatpush3.bf16.msra.mxu1 %v4394_v41 }
  0x6b   : > { %v4225_v12 = vcombine.low %v1939_v0, %v4806_v23  ;;  %v1463_v19 = vor.u32 %v1462_v22, %v1458_v61  ;;  %2995 = vrot.lane.b32.xlu0 %v4209_v58, %s4448_s22  ;;  %v358_v46 = vrot.slane %v353_v40, 4  ;;  %v2041_v14 = vshll.u32 %v4806_v23, 16  ;;  %v4840_v40 = vld [vmem:[#allocation2 + $0x34] sm:$0xf]  ;;  %v4855_v49 = vld [vmem:[#allocation2 + $0x38] sm:$0x1] }
  0x6c   : > { %v1849_v45 = vsel %vm4546_vm7, %v1847_v4, %v1848_v5  ;;  %v1459_v25 = vsel %vm4566_vm11, %v1454_v6, %v1458_v61  ;;  %v2037_v57 = vrot.slane %v2035_v9, 5  ;;  %v2047_v28 = vrot.slane %v2045_v11, 4  ;;  %v2369_v51 = vld [vmem:[#allocation2 + $0x30] sm:$0xe] }
  0x6d   : > { %v4210_v26 = vcombine.low %v4813_v3, %v1849_v45  ;;  %v1464_v29 = vrot.slane %v1463_v19, 4  ;;  %v633_v32 = vsel %vm4589_vm13, %v358_v46, %v632_v7  ;;  %v2043_v31 = vrot.slane %v2041_v14, 5 }
  0x6e   : > { %v4829_v30 = vld [vmem:[#allocation2 + $0x3c] sm:$0xf]  ;;  %v2051_v42 = vshll.u32 %v4818_v10, 16  ;;  %634 = vst [vmem:[#allocation2 + $0x44] sm:$0x1] %v633_v32  ;;  %v2038_v38 = vor.u32 %v2037_v57, %v2034_v60  ;;  %v860_v39 = vshrl.u32 %v4824_v24, 16 }
  0x6f   : > { %v2056_v27 = vshrl.u32 %v4829_v30, 16  ;;  %v2059_v20 = vshll.u32 %v4829_v30, 16  ;;  %v1469_v58 = vsel %vm4566_vm11, %v1464_v29, %v1468_v62  ;;  %3091 = vrot.lane.b32.xlu0 %v4225_v12, %s4447_s21  ;;  %v2048_v59 = vor.u32 %v2047_v28, %v2043_v31  ;;  %v4861_v3 = vld [vmem:[#allocation2 + $0x3c] sm:$0xf] }
  0x70   : > { %v2053_v13 = vrot.slane %v2051_v42, 5  ;;  %v863_v15 = vshll.u32 %v4824_v24, 16  ;;  %v4194_v8 = vcombine.low %v1459_v25, %v1469_v58  ;;  %v4843_v16 = vld [vmem:[#allocation2 + $0x40] sm:$0xf]  ;;  %v2039_v18 = vrot.slane %v2038_v38, 4 }
  0x71   : > { %v2058_v43 = vrot.slane %v2056_v27, 4  ;;  %v2061_v0 = vrot.slane %v2059_v20, 5  ;;  %v2069_v17 = vshrl.u32 %v4843_v16, 16  ;;  %v4226_v48 = vcombine.low %v4829_v30, %v4843_v16  ;;  %v4871_v14 = vld [vmem:[#allocation2 + $0x40] sm:$0xf] }
  0x72   : > { %v2065_v37 = vshll.u32 %v4843_v16, 16  ;;  %v2049_v54 = vrot.slane %v2048_v59, 4  ;;  %2917 = vrot.lane.b32.xlu1 %v4194_v8, %s4450_s24  ;;  %v2044_v35 = vsel %vm4566_vm11, %v2039_v18, %v2043_v31  ;;  %v862_v50 = vrot.slane %v860_v39, 4  ;;  %v1152_v41 = vld [vmem:[#allocation2 + $0x3c] sm:$0xe] }
  0x73   : > { %v2062_v2 = vor.u32 %v2061_v0, %v2058_v43  ;;  %v865_v52 = vrot.slane %v863_v15, 5  ;;  %v2071_v5 = vrot.slane %v2069_v17, 4  ;;  %v869_v22 = vshll.u32 %v4840_v40, 16  ;;  %v4395_v15 = vld [vmem:[%s6261_s1 + $0x8] sm:$0xff]   ;;  %v1762_v21 = vld [vmem:[#allocation2 + $0x3c] sm:$0xe] }
  0x74   : > { %v2067_v53 = vrot.slane %v2065_v37, 5  ;;  %v2054_v55 = vsel %vm4566_vm11, %v2049_v54, %v2053_v13  ;;  %v873_v62 = vshrl.u32 %v4840_v40, 16  ;;  %v879_v9 = vshll.u32 %v4855_v49, 16  ;;  %v2370_v13 = vld [vmem:[#allocation2 + $0x3c] sm:$0xe]  ;;  %4315 = vmatprep.subr.bf16.mxu0 %v4395_v15  ;;  %4352 = vmatprep.subr.bf16.mxu1 %v4395_v15 }
  0x75   : > { %v2063_v56 = vrot.slane %v2062_v2, 4  ;;  %v4241_v60 = vcombine.low %v2044_v35, %v2054_v55  ;;  %v866_v61 = vor.u32 %v865_v52, %v862_v50  ;;  %v4863_v4 = vld [vmem:[#allocation2 + $0x44] sm:$0x1]  ;;  %v871_v6 = vrot.slane %v869_v22, 5  ;;  %4316 = vmatpush3.bf16.msra.mxu0 %v4395_v15  ;;  %4355 = vmatpush3.bf16.msra.mxu1 %v4395_v15 }
  0x76   : > { %v2072_v7 = vor.u32 %v2071_v5, %v2067_v53  ;;  %v4113_v11 = vrot.slane %v2369_v51, 9  ;;  %2997 = vrot.lane.b32.xlu1 %v4210_v26, %s4448_s22  ;;  %v2075_v19 = vshll.u32 %v4863_v4, 16  ;;  %v875_v46 = vrot.slane %v873_v62, 4  ;;  %v749_v20 = vld [vmem:[#allocation2 + $0x44] sm:$0x1] }
  0x77   : > { %v2068_v12 = vsel %vm4566_vm11, %v2063_v56, %v2067_v53  ;;  %3171 = vrot.lane.b32.xlu0 %v4241_v60, %s4451_s25  ;;  %v867_v45 = vrot.slane %v866_v61, 4  ;;  %v881_v57 = vrot.slane %v879_v9, 5  ;;  %v2447_v28 = vrot.slane %v4806_v23, 5  ;;  %v1151_v51 = vld [vmem:[#allocation2 + $0x30] sm:$0xe] }
  0x78   : > { %v2073_v25 = vrot.slane %v2072_v7, 4  ;;  %v2450_v29 = vrot.slane %v4818_v10, 5  ;;  %v2077_v30 = vrot.slane %v2075_v19, 5  ;;  %v876_v32 = vor.u32 %v875_v46, %v871_v6  ;;  %v1334_v46 = vld [vmem:[#allocation2 + $0x3c] sm:$0xf] }
  0x79   : > { %v872_v26 = vsel %vm4566_vm11, %v867_v45, %v871_v6  ;;  %v884_v31 = vshrl.u32 %v4861_v3, 16  ;;  %v2448_v42 = vsel %vm4546_vm7, %v4113_v11, %v2447_v28  ;;  %v2449_v27 = vrot.slane %v2447_v28, 4  ;;  %v250_v45 = vld [vmem:[%s4544_s17 + $0x2c] sm:$0xf] }
  0x7a   : > { %v887_v38 = vshll.u32 %v4861_v3, 16  ;;  %v893_v39 = vshll.u32 %v4871_v14, 16  ;;  %3093 = vrot.lane.b32.xlu1 %v4226_v48, %s4447_s21  ;;  %v2078_v23 = vsel %vm4566_vm11, %v2073_v25, %v2077_v30  ;;  %v877_v10 = vrot.slane %v876_v32, 4 }
  0x7b   : > { %v886_v58 = vrot.slane %v884_v31, 4  ;;  %v897_v59 = vshrl.u32 %v4871_v14, 16  ;;  %v4242_v8 = vcombine.low %v2068_v12, %v2078_v23  ;;  %v2451_v43 = vsel %vm4546_vm7, %v2449_v27, %v2450_v29 }
  0x7c   : > { %v889_v0 = vrot.slane %v887_v38, 5  ;;  %v895_v18 = vrot.slane %v893_v39, 5  ;;  %v882_v17 = vsel %vm4566_vm11, %v877_v10, %v881_v57  ;;  %v4257_v48 = vcombine.low %v2448_v42, %v2451_v43  ;;  %v1335_v42 = vld [vmem:[#allocation2 + $0x40] sm:$0xf]  ;;  %v635_v39 = vld [vmem:[#allocation2 + $0x48] sm:$0xf] }
  0x7d   : > { %v899_v37 = vrot.slane %v897_v59, 4  ;;  %v903_v54 = vshll.u32 %v749_v20, 16  ;;  %v4147_v2 = vcombine.low %v872_v26, %v882_v17  ;;  %v4114_v50 = vrot.slane %v2370_v13, 9  ;;  %v639_v17 = vld [vmem:[#allocation2 + $0x50] sm:$0x1] }
  0x7e   : > { %v890_v35 = vor.u32 %v889_v0, %v886_v58  ;;  %v2454_v52 = vrot.slane %v4843_v16, 5  ;;  %3173 = vrot.lane.b32.xlu1 %v4242_v8, %s4451_s25  ;;  %3251 = vrot.lane.b32.xlu0 %v4257_v48, %s4449_s23  ;;  %v2457_v55 = vrot.slane %v4863_v4, 5  ;;  %v4084_v22 = vrot.slane %v1152_v41, 9 }
  0x7f   : > { %v900_v53 = vor.u32 %v899_v37, %v895_v18  ;;  %v905_v5 = vrot.slane %v903_v54, 5  ;;  %v1251_v16 = vrot.slane %v4871_v14, 5  ;;  %v1254_v7 = vrot.slane %v749_v20, 5 }
  0x80   : > { %v891_v56 = vrot.slane %v890_v35, 4  ;;  %v2455_v60 = vsel %vm4546_vm7, %v4114_v50, %v2454_v52  ;;  %v2456_v61 = vrot.slane %v2454_v52, 4  ;;  %v4083_v6 = vrot.slane %v1151_v51, 9  ;;  %v251_v51 = vld [vmem:[%s4544_s17 + $0x30] sm:$0xf] }
  0x81   : > { %v901_v62 = vrot.slane %v900_v53, 4  ;;  %v1244_v9 = vrot.slane %v4840_v40, 5  ;;  %v1252_v4 = vsel %vm4546_vm7, %v4084_v22, %v1251_v16  ;;  %v1253_v19 = vrot.slane %v1251_v16, 4  ;;  %v252_v53 = vld [vmem:[%s4544_s17 + $0x34] sm:$0xf] }
  0x82   : > { %v896_v11 = vsel %vm4566_vm11, %v891_v56, %v895_v18  ;;  %v2458_v12 = vsel %vm4546_vm7, %v2456_v61, %v2457_v55  ;;  %2663 = vrot.lane.b32.xlu1 %v4147_v2, %s4445_s19  ;;  %v1247_v32 = vrot.slane %v4855_v49, 5  ;;  %v362_v31 = vrot.slane %v360_v47, 7  ;;  %v1362_v49 = vld [vmem:[#allocation2 + $0x44] sm:$0x1] }
  0x83   : > { %v906_v25 = vsel %vm4566_vm11, %v901_v62, %v905_v5  ;;  %v4258_v57 = vcombine.low %v2455_v60, %v2458_v12  ;;  %v1245_v28 = vsel %vm4546_vm7, %v4083_v6, %v1244_v9  ;;  %v1246_v29 = vrot.slane %v1244_v9, 4 }
  0x84   : > { %v4148_v30 = vcombine.low %v896_v11, %v906_v25  ;;  %v1255_v26 = vsel %vm4546_vm7, %v1253_v19, %v1254_v7  ;;  %v368_v20 = vshrl.u32 %v250_v45, 16  ;;  %v371_v38 = vshll.u32 %v250_v45, 16  ;;  %v4936_v7 = vld [vmem:[%s4544_s17 + $0x38] sm:$0xf] }
  0x85   : > { %3253 = vrot.lane.b32.xlu0 %v4258_v57, %s4449_s23  ;;  %v4164_v27 = vcombine.low %v1252_v4, %v1255_v26  ;;  %v1471_v23 = vshrl.u32 %v1334_v46, 16  ;;  %v1248_v10 = vsel %vm4546_vm7, %v1246_v29, %v1247_v32  ;;  %v365_v58 = vor.u32 %v363_v33, %v362_v31 }
  0x86   : > { %v366_v59 = vrot.slane %v362_v31, 4  ;;  %v1474_v13 = vshll.u32 %v1334_v46, 16  ;;  %2665 = vrot.lane.b32.xlu1 %v4148_v30, %s4445_s19  ;;  %v4163_v47 = vcombine.low %v1245_v28, %v1248_v10  ;;  %v370_v15 = vrot.slane %v368_v20, 7 }
  0x87   : > { %v1473_v8 = vrot.slane %v1471_v23, 4  ;;  %v1484_v43 = vshrl.u32 %v1335_v42, 16  ;;  %v636_v0 = vsel %vm4560_vm10, %v365_v58, %v635_v39  ;;  %v4179_v41 = vcombine.low %v1334_v46, %v1335_v42  ;;  %v642_v58 = vld [vmem:[#allocation2 + $0x54] sm:$0xf] }
  0x88   : > { %v1476_v18 = vrot.slane %v1474_v13, 5  ;;  %v1480_v48 = vshll.u32 %v1335_v42, 16  ;;  %v373_v33 = vor.u32 %v371_v38, %v370_v15  ;;  %637 = vst [vmem:[#allocation2 + $0x48] sm:$0xf] %v636_v0  ;;  %v375_v37 = vrot.slane %v370_v15, 4 }
  0x89   : > { %2743 = vrot.lane.b32.xlu0 %v4163_v47, %s4444_s18  ;;  %v1486_v54 = vrot.slane %v1484_v43, 4  ;;  %v1490_v2 = vshll.u32 %v1362_v49, 16  ;;  %v1852_v52 = vrot.slane %v1335_v42, 5  ;;  %v4099_v56 = vrot.slane %v1762_v21, 9  ;;  %v4953_v43 = vld [vmem:[#allocation2 + $0x4] sm:$0xf] }
  0x8a   : > { %v1477_v35 = vor.u32 %v1476_v18, %v1473_v8  ;;  %v1482_v50 = vrot.slane %v1480_v48, 5  ;;  %2745 = vrot.lane.b32.xlu1 %v4164_v27, %s4444_s18  ;;  %v374_v5 = vsel %vm4574_vm12, %v366_v59, %v373_v33  ;;  %v640_v55 = vsel %vm4589_vm13, %v375_v37, %v639_v17  ;;  %v4955_v0 = vld [vmem:[#allocation2] sm:$0xf] }
  0x8b   : > { %v1492_v22 = vrot.slane %v1490_v2, 5  ;;  %638 = vst.msk [vmem:[#allocation2 + $0x4c] sm:$0xf] %vm183_vm0, %v374_v5  ;;  %641 = vst [vmem:[#allocation2 + $0x50] sm:$0x1] %v640_v55  ;;  %v1854_v16 = vrot.slane %v1852_v52, 4  ;;  %v1853_v26 = vsel %vm4546_vm7, %v4099_v56, %v1852_v52  ;;  %v4127_v18 = vcombine.low %v4955_v0, %v4953_v43 }
  0x8c   : > { %v1478_v60 = vrot.slane %v1477_v35, 4  ;;  %v1487_v61 = vor.u32 %v1486_v54, %v1482_v50  ;;  %v1855_v62 = vrot.slane %v1362_v49, 5  ;;  %v377_v6 = vshrl.u32 %v251_v51, 16 }
  0x8d   : > { %2839 = vrot.lane.b32.xlu0 %v4179_v41, %s4446_s20  ;;  %v385_v9 = vshrl.u32 %v252_v53, 16  ;;  %v380_v4 = vshll.u32 %v251_v51, 16  ;;  %v388_v19 = vshll.u32 %v252_v53, 16  ;;  %v394_v25 = vshrl.u32 %v4936_v7, 16 }
  0x8e   : > { %v1483_v11 = vsel %vm4566_vm11, %v1478_v60, %v1482_v50  ;;  %v1488_v12 = vrot.slane %v1487_v61, 4  ;;  %v379_v45 = vrot.slane %v377_v6, 7  ;;  %v397_v57 = vshll.u32 %v4936_v7, 16  ;;  %v646_v60 = vld [vmem:[#allocation2 + $0x5c] sm:$0x1] }
  0x8f   : > { %v4941_v46 = vrot.slane %v385_v9, 7  ;;  %v1336_v28 = vld [vmem:[#allocation2 + $0x48] sm:$0xf]  ;;  %v1856_v32 = vsel %vm4546_vm7, %v1854_v16, %v1855_v62  ;;  %vm3427_vm3 = vcmask 162816   ;;  %vm3612_vm4 = vcmask 1041408  }
  0x90   : > { %v1493_v29 = vsel %vm4566_vm11, %v1488_v12, %v1492_v22  ;;  %v1763_v30 = vld [vmem:[#allocation2 + $0x48] sm:$0xe]  ;;  %v1495_v42 = vshrl.u32 %v1336_v28, 16  ;;  %v1498_v27 = vshll.u32 %v1336_v28, 16  ;;  %v382_v39 = vor.u32 %v380_v4, %v379_v45 }
  0x91   : > { %v1943_v31 = vld [vmem:[#allocation2 + $0x48] sm:$0xf]  ;;  %v4195_v20 = vcombine.low %v1483_v11, %v1493_v29  ;;  %v4100_v38 = vrot.slane %v1763_v30, 9  ;;  %v383_v23 = vrot.slane %v379_v45, 4  ;;  %v390_v10 = vor.u32 %v388_v19, %v4941_v46 }
  0x92   : > { %v2080_v59 = vshrl.u32 %v1943_v31, 16  ;;  %v1337_v13 = vld [vmem:[#allocation2 + $0x4c] sm:$0xf]  ;;  %v1497_v49 = vrot.slane %v1495_v42, 4  ;;  %v1500_v47 = vrot.slane %v1498_v27, 5  ;;  %v4211_v8 = vcombine.low %v1853_v26, %v1856_v32 }
  0x93   : > { %v1363_v15 = vld [vmem:[#allocation2 + $0x50] sm:$0x1]  ;;  %2919 = vrot.lane.b32.xlu0 %v4195_v20, %s4450_s24  ;;  %v1508_v41 = vshrl.u32 %v1337_v13, 16  ;;  %v4180_v17 = vcombine.low %v1336_v28, %v1337_v13  ;;  %v1504_v48 = vshll.u32 %v1337_v13, 16  ;;  %v1859_v37 = vrot.slane %v1337_v13, 5 }
  0x94   : > { %v1514_v21 = vshll.u32 %v1363_v15, 16  ;;  %v1501_v33 = vor.u32 %v1500_v47, %v1497_v49  ;;  %v1862_v54 = vrot.slane %v1363_v15, 5  ;;  %v391_v2 = vsel %vm4574_vm12, %v383_v23, %v390_v10  ;;  %v4961_v35 = vld [vmem:[#allocation2 + $0x4c] sm:$0xf]  ;;  %v4972_v9 = vld [vmem:[#allocation2 + $0x50] sm:$0x1] }
  0x95   : > { %2841 = vrot.lane.b32.xlu1 %v4180_v17, %s4446_s20  ;;  %v1506_v50 = vrot.slane %v1504_v48, 5  ;;  %v1510_v52 = vrot.slane %v1508_v41, 4  ;;  %v643_v53 = vsel %vm4560_vm10, %v382_v39, %v642_v58  ;;  %645 = vst.msk [vmem:[#allocation2 + $0x58] sm:$0xf] %vm183_vm0, %v391_v2  ;;  %v1860_v55 = vsel %vm4546_vm7, %v4100_v38, %v1859_v37  ;;  %v724_v11 = vld [vmem:[#allocation2 + $0x48] sm:$0xf] }
  0x96   : > { %v1516_v51 = vrot.slane %v1514_v21, 5  ;;  %v1502_v5 = vrot.slane %v1501_v33, 4  ;;  %v1861_v22 = vrot.slane %v1859_v37, 4  ;;  %644 = vst [vmem:[#allocation2 + $0x54] sm:$0xf] %v643_v53  ;;  %v2082_v56 = vrot.slane %v2080_v59, 4 }
  0x97   : > { %2999 = vrot.lane.b32.xlu0 %v4211_v8, %s4448_s22  ;;  %v1511_v61 = vor.u32 %v1510_v52, %v1506_v50  ;;  %v2083_v16 = vshll.u32 %v1943_v31, 16  ;;  %v2093_v62 = vshrl.u32 %v4961_v35, 16  ;;  %v4227_v6 = vcombine.low %v1943_v31, %v4961_v35  ;;  %v4980_v28 = vld [vmem:[#allocation2 + $0x4c] sm:$0xf]  ;;  %v4997_v52 = vld [vmem:[#allocation2 + $0x50] sm:$0x1] }
  0x98   : > { %v1507_v12 = vsel %vm4566_vm11, %v1502_v5, %v1506_v50  ;;  %v1863_v4 = vsel %vm4546_vm7, %v1861_v22, %v1862_v54  ;;  %v392_v19 = vrot.slane %v4941_v46, 4  ;;  %v2089_v45 = vshll.u32 %v4961_v35, 16  ;;  %v2371_v53 = vld [vmem:[#allocation2 + $0x48] sm:$0xe] }
  0x99   : > { %v1512_v29 = vrot.slane %v1511_v61, 4  ;;  %v4212_v30 = vcombine.low %v1860_v55, %v1863_v4  ;;  %v2085_v26 = vrot.slane %v2083_v16, 5  ;;  %v2095_v32 = vrot.slane %v2093_v62, 4 }
  0x9a   : > { %v647_v31 = vsel %vm4589_vm13, %v392_v19, %v646_v60  ;;  %v2091_v42 = vrot.slane %v2089_v45, 5  ;;  %v2099_v27 = vshll.u32 %v4972_v9, 16  ;;  %v908_v20 = vshrl.u32 %v724_v11, 16  ;;  %v5001_v60 = vpop.permute.xlu0 %2655 }
  0x9b   : > { %3095 = vrot.lane.b32.xlu0 %v4227_v6, %s4447_s21  ;;  %v1517_v46 = vsel %vm4566_vm11, %v1512_v29, %v1516_v51  ;;  %648 = vst [vmem:[#allocation2 + $0x5c] sm:$0x1] %v647_v31  ;;  %v2086_v38 = vor.u32 %v2085_v26, %v2082_v56  ;;  %v911_v39 = vshll.u32 %v724_v11, 16  ;;  %v917_v23 = vshll.u32 %v4980_v28, 16  ;;  %v5009_v26 = vpop.permute.xlu1 %2735 }
  0x9c   : > { %v4196_v10 = vcombine.low %v1507_v12, %v1517_v46  ;;  %v4989_v58 = vld [vmem:[#allocation2 + $0x58] sm:$0xf]  ;;  %v2096_v59 = vor.u32 %v2095_v32, %v2091_v42  ;;  %v2101_v13 = vrot.slane %v2099_v27, 5  ;;  %v910_v49 = vrot.slane %v908_v20, 4 }
  0x9d   : > { %v1945_v47 = vld [vmem:[#allocation2 + $0x54] sm:$0xf]  ;;  %v2117_v15 = vshrl.u32 %v4989_v58, 16  ;;  %v2113_v8 = vshll.u32 %v4989_v58, 16  ;;  %v2087_v41 = vrot.slane %v2086_v38, 4  ;;  %v913_v17 = vrot.slane %v911_v39, 5 }
  0x9e   : > { %2921 = vrot.lane.b32.xlu1 %v4196_v10, %s4450_s24  ;;  %v2104_v48 = vshrl.u32 %v1945_v47, 16  ;;  %v2107_v21 = vshll.u32 %v1945_v47, 16  ;;  %v4228_v33 = vcombine.low %v1945_v47, %v4989_v58  ;;  %v2097_v37 = vrot.slane %v2096_v59, 4  ;;  %v726_v11 = vld [vmem:[#allocation2 + $0x54] sm:$0xf] }
  0x9f   : > { %v2115_v54 = vrot.slane %v2113_v8, 5  ;;  %v2119_v2 = vrot.slane %v2117_v15, 4  ;;  %v2092_v50 = vsel %vm4566_vm11, %v2087_v41, %v2091_v42  ;;  %v914_v51 = vor.u32 %v913_v17, %v910_v49 }
  0xa0   : > { %v2106_v5 = vrot.slane %v2104_v48, 4  ;;  %v2109_v55 = vrot.slane %v2107_v21, 5  ;;  %v2102_v22 = vsel %vm4566_vm11, %v2097_v37, %v2101_v13  ;;  %v919_v56 = vrot.slane %v917_v23, 5  ;;  %v2372_v13 = vld [vmem:[#allocation2 + $0x54] sm:$0xe] }
  0xa1   : > { %v2120_v61 = vor.u32 %v2119_v2, %v2115_v54  ;;  %v4243_v16 = vcombine.low %v2092_v50, %v2102_v22  ;;  %v915_v62 = vrot.slane %v914_v51, 4  ;;  %v921_v6 = vshrl.u32 %v4980_v28, 16 }
  0xa2   : > { %3001 = vrot.lane.b32.xlu1 %v4212_v30, %s4448_s22  ;;  %v5005_v12 = vld [vmem:[#allocation2 + $0x5c] sm:$0x1]  ;;  %v2110_v4 = vor.u32 %v2109_v55, %v2106_v5  ;;  %v927_v19 = vshll.u32 %v4997_v52, 16  ;;  %v4115_v45 = vrot.slane %v2371_v53, 9  ;;  %v2461_v29 = vrot.slane %v4961_v35, 5 }
  0xa3   : > { %v2121_v32 = vrot.slane %v2120_v61, 4  ;;  %v2123_v31 = vshll.u32 %v5005_v12, 16  ;;  %3175 = vrot.lane.b32.xlu0 %v4243_v16, %s4451_s25  ;;  %v920_v42 = vsel %vm4566_vm11, %v915_v62, %v919_v56  ;;  %v923_v27 = vrot.slane %v921_v6, 4  ;;  %v727_v30 = vld [vmem:[#allocation2 + $0x58] sm:$0xf] }
  0xa4   : > { %v2111_v20 = vrot.slane %v2110_v4, 4  ;;  %v929_v46 = vrot.slane %v927_v19, 5  ;;  %v2462_v38 = vsel %vm4546_vm7, %v4115_v45, %v2461_v29  ;;  %v2463_v39 = vrot.slane %v2461_v29, 4  ;;  %v751_v47 = vld [vmem:[#allocation2 + $0x5c] sm:$0x1] }
  0xa5   : > { %v2125_v23 = vrot.slane %v2123_v31, 5  ;;  %v924_v35 = vor.u32 %v923_v27, %v919_v56  ;;  %v2464_v10 = vrot.slane %v4972_v9, 5  ;;  %v932_v59 = vshrl.u32 %v726_v11, 16  ;;  %v1154_v53 = vld [vmem:[#allocation2 + $0x54] sm:$0xe] }
  0xa6   : > { %3097 = vrot.lane.b32.xlu1 %v4228_v33, %s4447_s21  ;;  %v2116_v49 = vsel %vm4566_vm11, %v2111_v20, %v2115_v54  ;;  %v935_v15 = vshll.u32 %v726_v11, 16  ;;  %v941_v8 = vshll.u32 %v727_v30, 16  ;;  %v945_v41 = vshrl.u32 %v727_v30, 16  ;;  %v5021_v17 = vpop.permute.xlu0 %2831  ;;  %v5027_v54 = vpop.permute.xlu1 %2833  ;;  %v1153_v11 = vld [vmem:[#allocation2 + $0x48] sm:$0xe] }
  0xa7   : > { %v2126_v48 = vsel %vm4566_vm11, %v2121_v32, %v2125_v23  ;;  %v925_v21 = vrot.slane %v924_v35, 4  ;;  %v2465_v9 = vsel %vm4546_vm7, %v2463_v39, %v2464_v10  ;;  %v934_v37 = vrot.slane %v932_v59, 4  ;;  %v254_v10 = vld [vmem:[%s4544_s17 + $0x3c] sm:$0xf] }
  0xa8   : > { %v4244_v2 = vcombine.low %v2116_v49, %v2126_v48  ;;  %v4259_v50 = vcombine.low %v2462_v38, %v2465_v9  ;;  %v937_v33 = vrot.slane %v935_v15, 5  ;;  %v943_v51 = vrot.slane %v941_v8, 5  ;;  %v1338_v8 = vld [vmem:[#allocation2 + $0x54] sm:$0xf]  ;;  %v649_v9 = vld [vmem:[#allocation2 + $0x60] sm:$0xf] }
  0xa9   : > { %v930_v5 = vsel %vm4566_vm11, %v925_v21, %v929_v46  ;;  %v947_v55 = vrot.slane %v945_v41, 4  ;;  %v951_v22 = vshll.u32 %v751_v47, 16  ;;  %v4116_v56 = vrot.slane %v2372_v13, 9  ;;  %v5057_v41 = vld [vmem:[#allocation2 + $0x58] sm:$0xf] }
  0xaa   : > { %3177 = vrot.lane.b32.xlu1 %v4244_v2, %s4451_s25  ;;  %v4149_v61 = vcombine.low %v920_v42, %v930_v5  ;;  %3255 = vrot.lane.b32.xlu0 %v4259_v50, %s4449_s23  ;;  %v938_v16 = vor.u32 %v937_v33, %v934_v37  ;;  %v2468_v62 = vrot.slane %v4989_v58, 5  ;;  %v2471_v6 = vrot.slane %v5005_v12, 5  ;;  %v5035_v4 = vpop.permute.xlu0 %3087  ;;  %v5049_v59 = vpop.permute.xlu1 %3089  ;;  %v5063_v37 = vld [vmem:[#allocation2 + $0x10] sm:$0xf]  ;;  %v5065_v2 = vld [vmem:[#allocation2 + $0xc] sm:$0xf] }
  0xab   : > { %v948_v19 = vor.u32 %v947_v55, %v943_v51  ;;  %v953_v45 = vrot.slane %v951_v22, 5  ;;  %v4086_v29 = vrot.slane %v1154_v53, 9  ;;  %v1265_v32 = vrot.slane %v727_v30, 5 }
  0xac   : > { %v939_v31 = vrot.slane %v938_v16, 4  ;;  %v2469_v27 = vsel %vm4546_vm7, %v4116_v56, %v2468_v62  ;;  %v2470_v42 = vrot.slane %v2468_v62, 4  ;;  %v1268_v20 = vrot.slane %v751_v47, 5 }
  0xad   : > { %v949_v46 = vrot.slane %v948_v19, 4  ;;  %v1266_v58 = vsel %vm4546_vm7, %v4086_v29, %v1265_v32  ;;  %v1267_v38 = vrot.slane %v1265_v32, 4  ;;  %v4085_v12 = vrot.slane %v1153_v11, 9 }
  0xae   : > { %2667 = vrot.lane.b32.xlu1 %v4149_v61, %s4445_s19  ;;  %v944_v39 = vsel %vm4566_vm11, %v939_v31, %v943_v51  ;;  %v2472_v30 = vsel %vm4546_vm7, %v2470_v42, %v2471_v6  ;;  %v1258_v23 = vrot.slane %v4980_v28, 5  ;;  %v1261_v35 = vrot.slane %v4997_v52, 5  ;;  %v5059_v48 = vpop.permute.xlu0 %2991  ;;  %v5076_v61 = vld [vmem:[#allocation2 + $0x5c] sm:$0x1] }
  0xaf   : > { %v954_v13 = vsel %vm4566_vm11, %v949_v46, %v953_v45  ;;  %v4260_v49 = vcombine.low %v2469_v27, %v2472_v30  ;;  %v1269_v47 = vsel %vm4546_vm7, %v1267_v38, %v1268_v20  ;;  %v396_v15 = vrot.slane %v394_v25, 7  ;;  %v653_v45 = vld [vmem:[#allocation2 + $0x68] sm:$0x1] }
  0xb0   : > { %v4150_v28 = vcombine.low %v944_v39, %v954_v13  ;;  %v1259_v52 = vsel %vm4546_vm7, %v4085_v12, %v1258_v23  ;;  %v1260_v21 = vrot.slane %v1258_v23, 4  ;;  %v4128_v50 = vcombine.low %v5065_v2, %v5063_v37  ;;  %v5081_v31 = vpop.permute.xlu1 %2737 }
  0xb1   : > { %3257 = vrot.lane.b32.xlu0 %v4260_v49, %s4449_s23  ;;  %v4166_v25 = vcombine.low %v1266_v58, %v1269_v47  ;;  %v399_v33 = vor.u32 %v397_v57, %v396_v15  ;;  %v402_v51 = vshrl.u32 %v254_v10, 16  ;;  %v405_v53 = vshll.u32 %v254_v10, 16  ;;  %v1764_v57 = vld [vmem:[#allocation2 + $0x54] sm:$0xe]  ;;  %v255_v58 = vld [vmem:[%s4544_s17 + $0x40] sm:$0xf] }
  0xb2   : > { %2669 = vrot.lane.b32.xlu1 %v4150_v28, %s4445_s19  ;;  %v1262_v5 = vsel %vm4546_vm7, %v1260_v21, %v1261_v35  ;;  %v1519_v55 = vshrl.u32 %v1338_v8, 16  ;;  %v1522_v22 = vshll.u32 %v1338_v8, 16  ;;  %v1532_v56 = vshrl.u32 %v5057_v41, 16  ;;  %v5087_v38 = vpop.permute.xlu0 %3247  ;;  %v256_v35 = vld [vmem:[%s4544_s17 + $0x44] sm:$0xf] }
  0xb3   : > { %v4165_v16 = vcombine.low %v1259_v52, %v1262_v5  ;;  %v400_v62 = vrot.slane %v396_v15, 4  ;;  %v404_v6 = vrot.slane %v402_v51, 7  ;;  %v650_v7 = vsel %vm4560_vm10, %v399_v33, %v649_v9  ;;  %v5099_v9 = vld [vmem:[#allocation2 + $0x18] sm:$0xf] }
  0xb4   : > { %651 = vst [vmem:[#allocation2 + $0x60] sm:$0xf] %v650_v7  ;;  %v1521_v11 = vrot.slane %v1519_v55, 4  ;;  %v1524_v19 = vrot.slane %v1522_v22, 5  ;;  %v1528_v29 = vshll.u32 %v5057_v41, 16  ;;  %v1534_v32 = vrot.slane %v1532_v56, 4  ;;  %v5107_v55 = vpop.permute.xlu1 %2993 }
  0xb5   : > { %2747 = vrot.lane.b32.xlu0 %v4165_v16, %s4444_s18  ;;  %v407_v27 = vor.u32 %v405_v53, %v404_v6  ;;  %v4181_v42 = vcombine.low %v1338_v8, %v5057_v41  ;;  %v409_v20 = vrot.slane %v404_v6, 4  ;;  %v1538_v46 = vshll.u32 %v5076_v61, 16  ;;  %v5109_v22 = vld [vmem:[#allocation2 + $0x24] sm:$0xf]  ;;  %v5111_v56 = vld [vmem:[#allocation2 + $0x28] sm:$0xf] }
  0xb6   : > { %2749 = vrot.lane.b32.xlu1 %v4166_v25, %s4444_s18  ;;  %v1525_v12 = vor.u32 %v1524_v19, %v1521_v11  ;;  %v1530_v39 = vrot.slane %v1528_v29, 5  ;;  %v4101_v30 = vrot.slane %v1764_v57, 9  ;;  %v1866_v23 = vrot.slane %v5057_v41, 5  ;;  %v5101_v25 = vld [vmem:[#allocation2 + $0x1c] sm:$0xf]  ;;  %v5124_v19 = vpop.permute.xlu0 %3249 }
  0xb7   : > { %v408_v10 = vsel %vm4574_vm12, %v400_v62, %v407_v27  ;;  %v654_v13 = vsel %vm4589_vm13, %v409_v20, %v653_v45  ;;  %v1540_v49 = vrot.slane %v1538_v46, 5  ;;  %v1869_v47 = vrot.slane %v5076_v61, 5  ;;  %v656_v11 = vld [vmem:[#allocation2 + $0x6c] sm:$0xf] }
  0xb8   : > { %652 = vst.msk [vmem:[#allocation2 + $0x64] sm:$0xf] %vm183_vm0, %v408_v10  ;;  %655 = vst [vmem:[#allocation2 + $0x68] sm:$0x1] %v654_v13  ;;  %v1526_v15 = vrot.slane %v1525_v12, 4  ;;  %v1535_v8 = vor.u32 %v1534_v32, %v1530_v39  ;;  %v1868_v28 = vrot.slane %v1866_v23, 4  ;;  %v4129_v33 = vcombine.low %v5099_v9, %v5101_v25 }
  0xb9   : > { %2843 = vrot.lane.b32.xlu0 %v4181_v42, %s4446_s20  ;;  %v411_v41 = vshrl.u32 %v255_v58, 16  ;;  %v414_v52 = vshll.u32 %v255_v58, 16  ;;  %v419_v21 = vshrl.u32 %v256_v35, 16  ;;  %v422_v5 = vshll.u32 %v256_v35, 16 }
  0xba   : > { %v1531_v51 = vsel %vm4566_vm11, %v1526_v15, %v1530_v39  ;;  %v1536_v53 = vrot.slane %v1535_v8, 4  ;;  %v1867_v62 = vsel %vm4546_vm7, %v4101_v30, %v1866_v23  ;;  %v3282_v6 = vsel %vm3279_vm14, %v4127_v18, %v5001_v60 }
  0xbb   : > { %v1340_v16 = vld [vmem:[#allocation2 + $0x60] sm:$0xf]  ;;  %v413_v7 = vrot.slane %v411_v41, 7  ;;  %v5122_v57 = vrot.slane %v419_v21, 7  ;;  %v1870_v42 = vsel %vm4546_vm7, %v1868_v28, %v1869_v47  ;;  %vm3460_vm5 = vcmask 195584  }
  0xbc   : > { %v1543_v45 = vshrl.u32 %v1340_v16, 16  ;;  %v1546_v29 = vshll.u32 %v1340_v16, 16  ;;  %v1541_v32 = vsel %vm4566_vm11, %v1536_v53, %v1540_v49  ;;  %v1765_v27 = vld [vmem:[#allocation2 + $0x60] sm:$0xe]  ;;  %v4213_v10 = vcombine.low %v1867_v62, %v1870_v42 }
  0xbd   : > { %v1947_v20 = vld [vmem:[#allocation2 + $0x60] sm:$0xf]  ;;  %v4197_v46 = vcombine.low %v1531_v51, %v1541_v32  ;;  %v416_v43 = vor.u32 %v414_v52, %v413_v7  ;;  %v417_v0 = vrot.slane %v413_v7, 4  ;;  %v424_v18 = vor.u32 %v422_v5, %v5122_v57  ;;  %v5139_v52 = vpop.permute.xlu1 %2913 }
  0xbe   : > { %v1545_v60 = vrot.slane %v1543_v45, 4  ;;  %v1548_v58 = vrot.slane %v1546_v29, 5  ;;  %v2128_v12 = vshrl.u32 %v1947_v20, 16  ;;  %v2131_v39 = vshll.u32 %v1947_v20, 16 }
  0xbf   : > { %v1341_v30 = vld [vmem:[#allocation2 + $0x64] sm:$0xf]  ;;  %v1365_v23 = vld [vmem:[#allocation2 + $0x68] sm:$0x1]  ;;  %2923 = vrot.lane.b32.xlu0 %v4197_v46, %s4450_s24  ;;  %v4102_v35 = vrot.slane %v1765_v27, 9  ;;  %v425_v13 = vsel %vm4574_vm12, %v417_v0, %v424_v18  ;;  %v657_v49 = vsel %vm4560_vm10, %v416_v43, %v656_v11  ;;  %vm3493_vm6 = vcmask 228352  }
  0xc0   : > { %v1556_v47 = vshrl.u32 %v1341_v30, 16  ;;  %v4182_v15 = vcombine.low %v1340_v16, %v1341_v30  ;;  %v1549_v8 = vor.u32 %v1548_v58, %v1545_v60  ;;  %v1552_v28 = vshll.u32 %v1341_v30, 16  ;;  %658 = vst [vmem:[#allocation2 + $0x6c] sm:$0xf] %v657_v49  ;;  %659 = vst.msk [vmem:[#allocation2 + $0x70] sm:$0xf] %vm183_vm0, %v425_v13  ;;  %v2658_v62 = vpop.permute.xlu0 %2657 }
  0xc1   : > { %v5137_v41 = vld [vmem:[#allocation2 + $0x64] sm:$0xf]  ;;  %v1562_v21 = vshll.u32 %v1365_v23, 16  ;;  %v1873_v51 = vrot.slane %v1341_v30, 5  ;;  %v1876_v53 = vrot.slane %v1365_v23, 5  ;;  %v2130_v5 = vrot.slane %v2128_v12, 4  ;;  %v5163_v13 = vpop.permute.xlu1 %3169 }
  0xc2   : > { %2845 = vrot.lane.b32.xlu1 %v4182_v15, %s4446_s20  ;;  %v1550_v7 = vrot.slane %v1549_v8, 4  ;;  %v1554_v11 = vrot.slane %v1552_v28, 5  ;;  %v1558_v45 = vrot.slane %v1556_v47, 4  ;;  %v2133_v16 = vrot.slane %v2131_v39, 5  ;;  %v660_v18 = vld [vmem:[#allocation2 + $0x74] sm:$0x1] }
  0xc3   : > { %v5144_v29 = vsel %vm4546_vm7, %v4102_v35, %v1873_v51  ;;  %v1875_v32 = vrot.slane %v1873_v51, 4  ;;  %3003 = vrot.lane.b32.xlu0 %v4213_v10, %s4448_s22  ;;  %v2141_v27 = vshrl.u32 %v5137_v41, 16  ;;  %v1564_v43 = vrot.slane %v1562_v21, 5  ;;  %v728_v10 = vld [vmem:[#allocation2 + $0x60] sm:$0xf] }
  0xc4   : > { %v1559_v46 = vor.u32 %v1558_v45, %v1554_v11  ;;  %v4229_v0 = vcombine.low %v1947_v20, %v5137_v41  ;;  %v1555_v60 = vsel %vm4566_vm11, %v1550_v7, %v1554_v11  ;;  %v426_v12 = vrot.slane %v5122_v57, 4 }
  0xc5   : > { %v1877_v58 = vsel %vm4546_vm7, %v1875_v32, %v1876_v53  ;;  %v5161_v35 = vsel %vm3328_vm15, %v3282_v6, %v5009_v26  ;;  %v2134_v20 = vor.u32 %v2133_v16, %v2130_v5  ;;  %v2137_v15 = vshll.u32 %v5137_v41, 16  ;;  %v5186_v5 = vld [vmem:[#allocation2 + $0x68] sm:$0x1] }
  0xc6   : > { %v1560_v30 = vrot.slane %v1559_v46, 4  ;;  %v4214_v23 = vcombine.low %v5144_v29, %v1877_v58  ;;  %v661_v57 = vsel %vm4589_vm13, %v426_v12, %v660_v18  ;;  %v2143_v8 = vrot.slane %v2141_v27, 4  ;;  %v5179_v6 = vpop.permute.xlu0 %2911  ;;  %v5197_v58 = vld [vmem:[#allocation2 + $0x68] sm:$0x1] }
  0xc7   : > { %v5165_v49 = vld [vmem:[#allocation2 + $0x6c] sm:$0xf]  ;;  %v5167_v47 = vld [vmem:[#allocation2 + $0x70] sm:$0xf]  ;;  %3099 = vrot.lane.b32.xlu0 %v4229_v0, %s4447_s21  ;;  %v5177_v26 = vsel %vm3279_vm14, %v4128_v50, %v2658_v62  ;;  %662 = vst [vmem:[#allocation2 + $0x74] sm:$0x1] %v661_v57 }
  0xc8   : > { %v1565_v28 = vsel %vm4566_vm11, %v1560_v30, %v1564_v43  ;;  %v2152_v21 = vshrl.u32 %v5165_v49, 16  ;;  %v2155_v51 = vshll.u32 %v5165_v49, 16  ;;  %v2165_v53 = vshrl.u32 %v5167_v47, 16  ;;  %v5191_v62 = vld [vmem:[#allocation2 + $0x64] sm:$0xf] }
  0xc9   : > { %v4198_v7 = vcombine.low %v1555_v60, %v1565_v28  ;;  %v4230_v37 = vcombine.low %v5165_v49, %v5167_v47  ;;  %v2161_v2 = vshll.u32 %v5167_v47, 16  ;;  %v2135_v50 = vrot.slane %v2134_v20, 4  ;;  %v2373_v30 = vld [vmem:[#allocation2 + $0x60] sm:$0xe]  ;;  %v5200_v20 = vpop.permute.xlu1 %2659  ;;  %v731_v42 = vld [vmem:[#allocation2 + $0x70] sm:$0xf] }
  0xca   : > { %v2154_v11 = vrot.slane %v2152_v21, 4  ;;  %v2157_v45 = vrot.slane %v2155_v51, 5  ;;  %v2167_v16 = vrot.slane %v2165_v53, 4  ;;  %v2139_v29 = vrot.slane %v2137_v15, 5 }
  0xcb   : > { %2925 = vrot.lane.b32.xlu1 %v4198_v7, %s4450_s24  ;;  %v2163_v32 = vrot.slane %v2161_v2, 5  ;;  %v2147_v27 = vshll.u32 %v5186_v5, 16  ;;  %v956_v46 = vshrl.u32 %v728_v10, 16  ;;  %v959_v43 = vshll.u32 %v728_v10, 16  ;;  %v730_v2 = vld [vmem:[#allocation2 + $0x6c] sm:$0xf] }
  0xcc   : > { %v2158_v0 = vor.u32 %v2157_v45, %v2154_v11  ;;  %v2140_v18 = vsel %vm4566_vm11, %v2135_v50, %v2139_v29  ;;  %v2144_v60 = vor.u32 %v2143_v8, %v2139_v29  ;;  %v965_v12 = vshll.u32 %v5191_v62, 16 }
  0xcd   : > { %v2168_v49 = vor.u32 %v2167_v16, %v2163_v32  ;;  %v2149_v57 = vrot.slane %v2147_v27, 5  ;;  %v958_v15 = vrot.slane %v956_v46, 4  ;;  %v961_v28 = vrot.slane %v959_v43, 5  ;;  %v5202_v21 = vpop.permute.xlu0 %3167 }
  0xce   : > { %v2159_v51 = vrot.slane %v2158_v0, 4  ;;  %v2145_v10 = vrot.slane %v2144_v60, 4  ;;  %v967_v53 = vrot.slane %v965_v12, 5  ;;  %v969_v7 = vshrl.u32 %v5191_v62, 16  ;;  %v5206_v8 = vld [vmem:[#allocation2 + $0x74] sm:$0x1] }
  0xcf   : > { %3005 = vrot.lane.b32.xlu1 %v4214_v23, %s4448_s22  ;;  %v2169_v50 = vrot.slane %v2168_v49, 4  ;;  %v962_v11 = vor.u32 %v961_v28, %v958_v15  ;;  %v975_v45 = vshll.u32 %v5197_v58, 16  ;;  %v4117_v16 = vrot.slane %v2373_v30, 9 }
  0xd0   : > { %v2164_v29 = vsel %vm4566_vm11, %v2159_v51, %v2163_v32  ;;  %v2171_v27 = vshll.u32 %v5206_v8, 16  ;;  %v2150_v46 = vsel %vm4566_vm11, %v2145_v10, %v2149_v57  ;;  %v971_v43 = vrot.slane %v969_v7, 4  ;;  %v5218_v32 = vpop.permute.xlu1 %2661  ;;  %v753_v51 = vld [vmem:[#allocation2 + $0x74] sm:$0x1] }
  0xd1   : > { %v4245_v0 = vcombine.low %v2140_v18, %v2150_v46  ;;  %v963_v60 = vrot.slane %v962_v11, 4  ;;  %v977_v12 = vrot.slane %v975_v45, 5  ;;  %v2475_v23 = vrot.slane %v5137_v41, 5  ;;  %v5215_v49 = vpop.permute.xlu0 %2739 }
  0xd2   : > { %v2173_v15 = vrot.slane %v2171_v27, 5  ;;  %v972_v28 = vor.u32 %v971_v43, %v967_v53  ;;  %v2478_v30 = vrot.slane %v5186_v5, 5  ;;  %v980_v39 = vshrl.u32 %v730_v2, 16  ;;  %v2374_v27 = vld [vmem:[#allocation2 + $0x6c] sm:$0xe] }
  0xd3   : > { %3101 = vrot.lane.b32.xlu1 %v4230_v37, %s4447_s21  ;;  %3179 = vrot.lane.b32.xlu0 %v4245_v0, %s4451_s25  ;;  %v968_v18 = vsel %vm4566_vm11, %v963_v60, %v967_v53  ;;  %v2476_v41 = vsel %vm4546_vm7, %v4117_v16, %v2475_v23  ;;  %v2477_v57 = vrot.slane %v2475_v23, 4  ;;  %v983_v10 = vshll.u32 %v730_v2, 16  ;;  %v1156_v53 = vld [vmem:[#allocation2 + $0x6c] sm:$0xe] }
  0xd4   : > { %v2174_v7 = vsel %vm4566_vm11, %v2169_v50, %v2173_v15  ;;  %v973_v5 = vrot.slane %v972_v28, 4  ;;  %v982_v11 = vrot.slane %v980_v39, 4  ;;  %v989_v45 = vshll.u32 %v731_v42, 16  ;;  %v1155_v28 = vld [vmem:[#allocation2 + $0x60] sm:$0xe] }
  0xd5   : > { %v4246_v46 = vcombine.low %v2164_v29, %v2174_v7  ;;  %v2479_v37 = vsel %vm4546_vm7, %v2477_v57, %v2478_v30  ;;  %v985_v43 = vrot.slane %v983_v10, 5  ;;  %v993_v0 = vshrl.u32 %v731_v42, 16  ;;  %v5230_v60 = vpop.permute.xlu0 %2835 }
  0xd6   : > { %v978_v16 = vsel %vm4566_vm11, %v973_v5, %v977_v12  ;;  %v4261_v2 = vcombine.low %v2476_v41, %v2479_v37  ;;  %v991_v23 = vrot.slane %v989_v45, 5  ;;  %v999_v61 = vshll.u32 %v753_v51, 16  ;;  %v5238_v12 = vpop.permute.xlu1 %2741  ;;  %v257_v37 = vld [vmem:[%s4544_s17 + $0x48] sm:$0xf] }
  0xd7   : > { %3181 = vrot.lane.b32.xlu1 %v4246_v46, %s4451_s25  ;;  %v4151_v39 = vcombine.low %v968_v18, %v978_v16  ;;  %v986_v50 = vor.u32 %v985_v43, %v982_v11  ;;  %v995_v15 = vrot.slane %v993_v0, 4  ;;  %v4118_v29 = vrot.slane %v2374_v27, 9 }
  0xd8   : > { %3259 = vrot.lane.b32.xlu0 %v4261_v2, %s4449_s23  ;;  %v1001_v30 = vrot.slane %v999_v61, 5  ;;  %v2482_v57 = vrot.slane %v5167_v47, 5  ;;  %v2485_v10 = vrot.slane %v5206_v8, 5  ;;  %v4088_v7 = vrot.slane %v1156_v53, 9  ;;  %v258_v2 = vld [vmem:[%s4544_s17 + $0x4c] sm:$0xf] }
  0xd9   : > { %v987_v41 = vrot.slane %v986_v50, 4  ;;  %v996_v5 = vor.u32 %v995_v15, %v991_v23  ;;  %v1279_v45 = vrot.slane %v731_v42, 5  ;;  %v1282_v18 = vrot.slane %v753_v51, 5  ;;  %v5240_v11 = vpop.permute.xlu0 %2915 }
  0xda   : > { %v2483_v27 = vsel %vm4546_vm7, %v4118_v29, %v2482_v57  ;;  %v2484_v46 = vrot.slane %v2482_v57, 4  ;;  %v4087_v61 = vrot.slane %v1155_v28, 9  ;;  %v1272_v47 = vrot.slane %v5191_v62, 5  ;;  %v1342_v29 = vld [vmem:[#allocation2 + $0x6c] sm:$0xf] }
  0xdb   : > { %2671 = vrot.lane.b32.xlu1 %v4151_v39, %s4445_s19  ;;  %v992_v8 = vsel %vm4566_vm11, %v987_v41, %v991_v23  ;;  %v997_v43 = vrot.slane %v996_v5, 4  ;;  %v1280_v42 = vsel %vm4546_vm7, %v4088_v7, %v1279_v45  ;;  %v1281_v51 = vrot.slane %v1279_v45, 4  ;;  %v5261_v28 = vld [vmem:[#allocation2 + $0x70] sm:$0xf]  ;;  %v5265_v5 = vpop.permute.xlu1 %2837 }
  0xdc   : > { %v2486_v0 = vsel %vm4546_vm7, %v2484_v46, %v2485_v10  ;;  %v1273_v53 = vsel %vm4546_vm7, %v4087_v61, %v1272_v47  ;;  %v1274_v16 = vrot.slane %v1272_v47, 4  ;;  %v1275_v62 = vrot.slane %v5197_v58, 5  ;;  %v663_v46 = vld [vmem:[#allocation2 + $0x78] sm:$0xf] }
  0xdd   : > { %v1002_v39 = vsel %vm4566_vm11, %v997_v43, %v1001_v30  ;;  %v4262_v50 = vcombine.low %v2483_v27, %v2486_v0  ;;  %v1283_v23 = vsel %vm4546_vm7, %v1281_v51, %v1282_v18  ;;  %v428_v15 = vshrl.u32 %v257_v37, 16  ;;  %v5267_v58 = vpop.permute.xlu0 %2995  ;;  %v667_v0 = vld [vmem:[#allocation2 + $0x80] sm:$0x1] }
  0xde   : > { %v4152_v57 = vcombine.low %v992_v8, %v1002_v39  ;;  %v4168_v10 = vcombine.low %v1280_v42, %v1283_v23  ;;  %v1276_v7 = vsel %vm4546_vm7, %v1274_v16, %v1275_v62  ;;  %v431_v41 = vshll.u32 %v257_v37, 16 }
  0xdf   : > { %3261 = vrot.lane.b32.xlu0 %v4262_v50, %s4449_s23  ;;  %v4167_v30 = vcombine.low %v1273_v53, %v1276_v7  ;;  %v430_v45 = vrot.slane %v428_v15, 7  ;;  %v436_v27 = vshrl.u32 %v258_v2, 16  ;;  %v439_v18 = vshll.u32 %v258_v2, 16  ;;  %v1366_v2 = vld [vmem:[#allocation2 + $0x74] sm:$0x1] }
  0xe0   : > { %2673 = vrot.lane.b32.xlu1 %v4152_v57, %s4445_s19  ;;  %v1567_v61 = vshrl.u32 %v1342_v29, 16  ;;  %v1570_v47 = vshll.u32 %v1342_v29, 16  ;;  %v1580_v8 = vshrl.u32 %v5261_v28, 16  ;;  %v4183_v43 = vcombine.low %v1342_v29, %v5261_v28 }
  0xe1   : > { %v433_v37 = vor.u32 %v431_v41, %v430_v45  ;;  %v434_v42 = vrot.slane %v430_v45, 4  ;;  %v438_v51 = vrot.slane %v436_v27, 7  ;;  %v3332_v53 = vsel %vm3328_vm15, %v5177_v26, %v5081_v31  ;;  %v1766_v41 = vld [vmem:[#allocation2 + $0x6c] sm:$0xe]  ;;  %v5288_v45 = vpop.permute.xlu0 %3091 }
  0xe2   : > { %v1569_v16 = vrot.slane %v1567_v61, 4  ;;  %v1572_v62 = vrot.slane %v1570_v47, 5  ;;  %v1576_v39 = vshll.u32 %v5261_v28, 16  ;;  %v3365_v15 = vsel %vm3361_vm1, %v3332_v53, %v5027_v54 }
  0xe3   : > { %2751 = vrot.lane.b32.xlu0 %v4167_v30, %s4444_s18  ;;  %v441_v50 = vor.u32 %v439_v18, %v438_v51  ;;  %v664_v23 = vsel %vm4560_vm10, %v433_v37, %v663_v46  ;;  %v443_v29 = vrot.slane %v438_v51, 4  ;;  %v3363_v57 = vsel %vm3361_vm1, %v5161_v35, %v5021_v17 }
  0xe4   : > { %2753 = vrot.lane.b32.xlu1 %v4168_v10, %s4444_s18  ;;  %665 = vst [vmem:[#allocation2 + $0x78] sm:$0xf] %v664_v23  ;;  %v1573_v31 = vor.u32 %v1572_v62, %v1569_v16  ;;  %v1578_v26 = vrot.slane %v1576_v39, 5  ;;  %v1582_v7 = vrot.slane %v1580_v8, 4  ;;  %v5286_v30 = vpop.permute.xlu1 %2917  ;;  %v3398_v54 = vsel %vm3394_vm2, %v3365_v15, %v5139_v52  ;;  %v259_v16 = vld [vmem:[%s4544_s17 + $0x50] sm:$0xf] }
  0xe5   : > { %v442_v27 = vsel %vm4574_vm12, %v434_v42, %v441_v50  ;;  %v668_v17 = vsel %vm4589_vm13, %v443_v29, %v667_v0  ;;  %v1586_v35 = vshll.u32 %v1366_v2, 16  ;;  %v4396_v10 = vld [vmem:[%s6261_s1 + $0x10] ss:$0 sps:$4 sm:$0x33]   ;;  %v3396_v61 = vsel %vm3394_vm2, %v3363_v57, %v5179_v6 }
  0xe6   : > { %666 = vst.msk [vmem:[#allocation2 + $0x7c] sm:$0xf] %vm183_vm0, %v442_v27  ;;  %669 = vst [vmem:[#allocation2 + $0x80] sm:$0x1] %v668_v17  ;;  %v1574_v18 = vrot.slane %v1573_v31, 4  ;;  %v1583_v46 = vor.u32 %v1582_v7, %v1578_v26  ;;  %v3429_v47 = vsel %vm3427_vm3, %v3396_v61, %v5059_v48  ;;  %v4103_v8 = vrot.slane %v1766_v41, 9  ;;  %4357 = vmatprep.subr.msk.bf16.mxu0 %vm3612_vm4, %v4396_v10 }
  0xe7   : > { %2847 = vrot.lane.b32.xlu0 %v4183_v43, %s4446_s20  ;;  %v1588_v52 = vrot.slane %v1586_v35, 5  ;;  %v1880_v37 = vrot.slane %v5261_v28, 5  ;;  %v1883_v0 = vrot.slane %v1366_v2, 5  ;;  %v5316_v6 = vsel %vm3279_vm14, %v4129_v33, %v5200_v20  ;;  %4358 = vmatprep.subr.msk.bf16.mxu1 %vm3612_vm4, %v4396_v10 }
  0xe8   : > { %v1579_v42 = vsel %vm4566_vm11, %v1574_v18, %v1578_v26  ;;  %v1584_v51 = vrot.slane %v1583_v46, 4  ;;  %v5309_v62 = vpop.permute.xlu1 %2997  ;;  %v6274_v53 = vcombine.low %v5109_v22, %v5111_v56  ;;  %v3462_v9 = vsel %vm3460_vm5, %v3429_v47, %v5035_v4  ;;  %v260_v46 = vld [vmem:[%s4544_s17 + $0x54] sm:$0xf]  ;;  %v670_v47 = vld [vmem:[#allocation2 + $0x84] sm:$0xf] }
  0xe9   : > { %v1881_v48 = vsel %vm4546_vm7, %v4103_v8, %v1880_v37  ;;  %v1882_v28 = vrot.slane %v1880_v37, 4  ;;  %v3614_v25 = vsel %vm3612_vm4, %v4396_v10, 0  ;;  %v5329_v33 = vpop.permute.xlu0 %3171  ;;  %v445_v15 = vshrl.u32 %v259_v16, 16 }
  0xea   : > { %v1589_v43 = vsel %vm4566_vm11, %v1584_v51, %v1588_v52  ;;  %v3291_v2 = vsel %vm3279_vm14, %v6274_v53, %v5218_v32  ;;  %4318 = vmatpush3.bf16.msra.mxu0 %v3614_v25  ;;  %4356 = vmatpush3.bf16.msra.mxu1 %v3614_v25  ;;  %v3495_v4 = vsel %vm3493_vm6, %v3462_v9, %v5202_v21  ;;  %v448_v41 = vshll.u32 %v259_v16, 16 }
  0xeb   : > { %v1344_v20 = vld [vmem:[#allocation2 + $0x78] sm:$0xf]  ;;  %v4199_v39 = vcombine.low %v1579_v42, %v1589_v43  ;;  %v1884_v23 = vsel %vm4546_vm7, %v1882_v28, %v1883_v0  ;;  %v447_v7 = vrot.slane %v445_v15, 7  ;;  %v5340_v27 = vsel %vm3328_vm15, %v3291_v2, %v5238_v12 }
  0xec   : > { %v1767_v50 = vld [vmem:[#allocation2 + $0x78] sm:$0xe]  ;;  %v1591_v29 = vshrl.u32 %v1344_v20, 16  ;;  %v1594_v22 = vshll.u32 %v1344_v20, 16  ;;  %v5335_v32 = vpop.permute.xlu1 %3093  ;;  %v4215_v26 = vcombine.low %v1881_v48, %v1884_v23  ;;  %v3431_v8 = vsel %vm3427_vm3, %v3398_v54, %v5107_v55 }
  0xed   : > { %v4104_v56 = vrot.slane %v1767_v50, 9  ;;  %v1345_v57 = vld [vmem:[#allocation2 + $0x7c] sm:$0xf]  ;;  %v1367_v31 = vld [vmem:[#allocation2 + $0x80] sm:$0x1]  ;;  %2927 = vrot.lane.b32.xlu0 %v4199_v39, %s4450_s24  ;;  %v450_v0 = vor.u32 %v448_v41, %v447_v7  ;;  %v451_v53 = vrot.slane %v447_v7, 4 }
  0xee   : > { %v1593_v17 = vrot.slane %v1591_v29, 4  ;;  %v1596_v35 = vrot.slane %v1594_v22, 5  ;;  %v1604_v10 = vshrl.u32 %v1345_v57, 16  ;;  %v4184_v18 = vcombine.low %v1344_v20, %v1345_v57  ;;  %v1951_v12 = vld [vmem:[#allocation2 + $0x78] sm:$0xf] }
  0xef   : > { %v1600_v61 = vshll.u32 %v1345_v57, 16  ;;  %v1610_v21 = vshll.u32 %v1367_v31, 16  ;;  %v1887_v52 = vrot.slane %v1345_v57, 5  ;;  %v1890_v51 = vrot.slane %v1367_v31, 5  ;;  %v5349_v2 = vld [vmem:[#allocation2 + $0x7c] sm:$0xf] }
  0xf0   : > { %2849 = vrot.lane.b32.xlu1 %v4184_v18, %s4446_s20  ;;  %v1597_v37 = vor.u32 %v1596_v35, %v1593_v17  ;;  %v1606_v42 = vrot.slane %v1604_v10, 4  ;;  %v5346_v16 = vpop.permute.xlu0 %3251  ;;  %v453_v25 = vshrl.u32 %v260_v46, 16  ;;  %v456_v55 = vshll.u32 %v260_v46, 16  ;;  %v5353_v20 = vpop.permute.xlu1 %3173  ;;  %v5365_v10 = vld [vmem:[#allocation2 + $0x80] sm:$0x1] }
  0xf1   : > { %v1602_v48 = vrot.slane %v1600_v61, 5  ;;  %v1612_v28 = vrot.slane %v1610_v21, 5  ;;  %v1889_v43 = vrot.slane %v1887_v52, 4  ;;  %3007 = vrot.lane.b32.xlu0 %v4215_v26, %s4448_s22  ;;  %v671_v54 = vsel %vm4560_vm10, %v450_v0, %v670_v47  ;;  %v674_v47 = vld [vmem:[#allocation2 + $0x8c] sm:$0x1] }
  0xf2   : > { %v1598_v9 = vrot.slane %v1597_v37, 4  ;;  %v1888_v50 = vsel %vm4546_vm7, %v4104_v56, %v1887_v52  ;;  %672 = vst [vmem:[#allocation2 + $0x84] sm:$0xf] %v671_v54  ;;  %v2176_v23 = vshrl.u32 %v1951_v12, 16  ;;  %v2179_v15 = vshll.u32 %v1951_v12, 16 }
  0xf3   : > { %v1607_v39 = vor.u32 %v1606_v42, %v1602_v48  ;;  %v1891_v22 = vsel %vm4546_vm7, %v1889_v43, %v1890_v51  ;;  %v455_v57 = vrot.slane %v453_v25, 7  ;;  %v2189_v31 = vshrl.u32 %v5349_v2, 16  ;;  %v732_v37 = vld [vmem:[#allocation2 + $0x78] sm:$0xf] }
  0xf4   : > { %v1603_v29 = vsel %vm4566_vm11, %v1598_v9, %v1602_v48  ;;  %v2178_v7 = vrot.slane %v2176_v23, 4  ;;  %v2181_v41 = vrot.slane %v2179_v15, 5  ;;  %v4231_v17 = vcombine.low %v1951_v12, %v5349_v2  ;;  %v5381_v0 = vpop.permute.xlu1 %2663  ;;  %v5387_v48 = vld [vmem:[#allocation2 + $0x7c] sm:$0xf]  ;;  %v5400_v23 = vld [vmem:[#allocation2 + $0x80] sm:$0x1] }
  0xf5   : > { %v1608_v26 = vrot.slane %v1607_v39, 4  ;;  %v458_v35 = vor.u32 %v456_v55, %v455_v57  ;;  %vm3526_vm8 = vcmask 261120   ;;  %vm3579_vm9 = vcmask 293888   ;;  %v4427_v1 = vld [vmem:[#allocation2 + $0x78] sm:$0xf] }
  0xf6   : > { %v3464_v56 = vsel %vm3460_vm5, %v3431_v8, %v5049_v59  ;;  %v4216_v61 = vcombine.low %v1888_v50, %v1891_v22  ;;  %3103 = vrot.lane.b32.xlu0 %v4231_v17, %s4447_s21  ;;  %v3528_v21 = vsel %vm3526_vm8, %v3495_v4, %v5087_v38  ;;  %v460_v51 = vrot.slane %v455_v57, 4  ;;  %v2375_v22 = vld [vmem:[#allocation2 + $0x78] sm:$0xe] }
  0xf7   : > { %v5367_v18 = vpop.permute.xlu0 %3253  ;;  %v1613_v46 = vsel %vm4566_vm11, %v1608_v26, %v1612_v28  ;;  %v3497_v52 = vsel %vm3493_vm6, %v3464_v56, %v5163_v13  ;;  %v459_v59 = vsel %vm4574_vm12, %v451_v53, %v458_v35  ;;  %4319 = vmatprep.mubr.msk.bf16.mxu0 %vm3579_vm9, %v3528_v21  ;;  %v2182_v38 = vor.u32 %v2181_v41, %v2178_v7 }
  0xf8   : > { %v4200_v42 = vcombine.low %v1603_v29, %v1613_v46  ;;  %v3530_v8 = vsel %vm3526_vm8, %v3497_v52, %v5124_v19  ;;  %673 = vst.msk [vmem:[#allocation2 + $0x88] sm:$0xf] %vm183_vm0, %v459_v59  ;;  %v2185_v13 = vshll.u32 %v5349_v2, 16  ;;  %v2191_v4 = vrot.slane %v2189_v31, 4  ;;  %v5410_v35 = vpop.permute.xlu1 %2665 }
  0xf9   : > { %4320 = vmatmul.mubr.msk.bf16.vlgmr.msra.gmra.mrb[0].mxu0 %vm3579_vm9, %v3530_v8  ;;  %v2195_v12 = vshll.u32 %v5365_v10, 16  ;;  %v1953_v28 = vld [vmem:[#allocation2 + $0x84] sm:$0xf]  ;;  %v3334_v19 = vsel %vm3328_vm15, %v5316_v6, %v5215_v49  ;;  %v675_v43 = vsel %vm4589_vm13, %v460_v51, %v674_v47  ;;  %v3369_v53 = vsel %vm3361_vm1, %v5340_v27, %v5265_v5 }
  0xfa   : > { %2929 = vrot.lane.b32.xlu1 %v4200_v42, %s4450_s24  ;;  %v1004_v9 = vshrl.u32 %v732_v37, 16  ;;  %v2200_v55 = vshrl.u32 %v1953_v28, 16  ;;  %v2203_v54 = vshll.u32 %v1953_v28, 16  ;;  %676 = vst [vmem:[#allocation2 + $0x8c] sm:$0x1] %v675_v43  ;;  %v2183_v39 = vrot.slane %v2182_v38, 4 }
  0xfb   : > { %v5398_v25 = vpop.permute.xlu0 %2743  ;;  %v2187_v50 = vrot.slane %v2185_v13, 5  ;;  %v3367_v49 = vsel %vm3361_vm1, %v3334_v19, %v5230_v60  ;;  %v1007_v15 = vshll.u32 %v732_v37, 16  ;;  %v1013_v29 = vshll.u32 %v5387_v48, 16 }
  0xfc   : > { %v1006_v6 = vrot.slane %v1004_v9, 4  ;;  %v2202_v57 = vrot.slane %v2200_v55, 4  ;;  %v2205_v5 = vrot.slane %v2203_v54, 5  ;;  %v2197_v31 = vrot.slane %v2195_v12, 5 }
  0xfd   : > { %v2192_v27 = vor.u32 %v2191_v4, %v2187_v50  ;;  %v1009_v26 = vrot.slane %v1007_v15, 5  ;;  %v5406_v7 = vrot.slane %v1013_v29, 5  ;;  %v1017_v41 = vshrl.u32 %v5387_v48, 16 }
  0xfe   : > { %3009 = vrot.lane.b32.xlu1 %v4216_v61, %s4448_s22  ;;  %v1023_v17 = vshll.u32 %v5400_v23, 16  ;;  %v2206_v60 = vor.u32 %v2205_v5, %v2202_v57  ;;  %v2188_v56 = vsel %vm4566_vm11, %v2183_v39, %v2187_v50  ;;  %v4119_v21 = vrot.slane %v2375_v22, 9  ;;  %v5427_v57 = vpop.permute.xlu1 %2745 }
  0xff   : > { %v2193_v46 = vrot.slane %v2192_v27, 4  ;;  %v5414_v52 = vpop.permute.xlu0 %2839  ;;  %v1954_v47 = vld [vmem:[#allocation2 + $0x88] sm:$0xf]  ;;  %v1010_v37 = vor.u32 %v1009_v26, %v1006_v6  ;;  %v1019_v61 = vrot.slane %v1017_v41, 4  ;;  %v2489_v59 = vrot.slane %v5349_v2, 5 }
 0x100   : > { %v1025_v42 = vrot.slane %v1023_v17, 5  ;;  %v2213_v8 = vshrl.u32 %v1954_v47, 16  ;;  %v4232_v51 = vcombine.low %v1953_v28, %v1954_v47  ;;  %v2207_v38 = vrot.slane %v2206_v60, 4  ;;  %v734_v2 = vld [vmem:[#allocation2 + $0x84] sm:$0xf] }
 0x101   : > { %v2209_v13 = vshll.u32 %v1954_v47, 16  ;;  %v1976_v4 = vld [vmem:[#allocation2 + $0x8c] sm:$0x1]  ;;  %v2198_v12 = vsel %vm4566_vm11, %v2193_v46, %v2197_v31  ;;  %v1011_v19 = vrot.slane %v1010_v37, 4  ;;  %v1020_v43 = vor.u32 %v1019_v61, %v5406_v7  ;;  %v735_v22 = vld [vmem:[#allocation2 + $0x88] sm:$0xf] }
 0x102   : > { %v2492_v9 = vrot.slane %v5365_v10, 5  ;;  %3105 = vrot.lane.b32.xlu1 %v4232_v51, %s4447_s21  ;;  %v2215_v54 = vrot.slane %v2213_v8, 4  ;;  %v2219_v39 = vshll.u32 %v1976_v4, 16  ;;  %v4247_v50 = vcombine.low %v2188_v56, %v2198_v12  ;;  %v755_v26 = vld [vmem:[#allocation2 + $0x8c] sm:$0x1] }
 0x103   : > { %v2211_v55 = vrot.slane %v2209_v13, 5  ;;  %v1016_v28 = vsel %vm4566_vm11, %v1011_v19, %v5406_v7  ;;  %v1021_v6 = vrot.slane %v1020_v43, 4  ;;  %v2490_v15 = vsel %vm4546_vm7, %v4119_v21, %v2489_v59  ;;  %v2376_v46 = vld [vmem:[#allocation2 + $0x84] sm:$0xe] }
 0x104   : > { %v2491_v29 = vrot.slane %v2489_v59, 4  ;;  %v2221_v27 = vrot.slane %v2219_v39, 5  ;;  %3183 = vrot.lane.b32.xlu0 %v4247_v50, %s4451_s25  ;;  %v3402_v31 = vsel %vm3394_vm2, %v3369_v53, %v5286_v30  ;;  %v3400_v17 = vsel %vm3394_vm2, %v3367_v49, %v5240_v11  ;;  %v1158_v12 = vld [vmem:[#allocation2 + $0x84] sm:$0xe] }
 0x105   : > { %v2212_v10 = vsel %vm4566_vm11, %v2207_v38, %v2211_v55  ;;  %v2216_v5 = vor.u32 %v2215_v54, %v2211_v55  ;;  %v5434_v7 = vpop.permute.xlu0 %2919  ;;  %v1028_v60 = vshrl.u32 %v734_v2, 16  ;;  %v1031_v56 = vshll.u32 %v734_v2, 16 }
 0x106   : > { %v2493_v41 = vsel %vm4546_vm7, %v2491_v29, %v2492_v9  ;;  %v1026_v37 = vsel %vm4566_vm11, %v1021_v6, %v1025_v42  ;;  %v1037_v59 = vshll.u32 %v735_v22, 16  ;;  %v1041_v53 = vshrl.u32 %v735_v22, 16  ;;  %v1157_v42 = vld [vmem:[#allocation2 + $0x78] sm:$0xe] }
 0x107   : > { %v2217_v21 = vrot.slane %v2216_v5, 4  ;;  %v4263_v61 = vcombine.low %v2490_v15, %v2493_v41  ;;  %v1030_v8 = vrot.slane %v1028_v60, 4  ;;  %v1033_v30 = vrot.slane %v1031_v56, 5  ;;  %v5445_v54 = vpop.permute.xlu1 %2841 }
 0x108   : > { %v1047_v51 = vshll.u32 %v755_v26, 16  ;;  %v1039_v13 = vrot.slane %v1037_v59, 5  ;;  %v4120_v11 = vrot.slane %v2376_v46, 9  ;;  %v2496_v49 = vrot.slane %v1954_v47, 5 }
 0x109   : > { %v2222_v38 = vsel %vm4566_vm11, %v2217_v21, %v2221_v27  ;;  %3263 = vrot.lane.b32.xlu0 %v4263_v61, %s4449_s23  ;;  %v4153_v43 = vcombine.low %v1016_v28, %v1026_v37  ;;  %v1034_v9 = vor.u32 %v1033_v30, %v1030_v8  ;;  %v1043_v55 = vrot.slane %v1041_v53, 4  ;;  %v5449_v15 = vpop.permute.xlu0 %2999  ;;  %v261_v37 = vld [vmem:[%s4544_s17 + $0x58] sm:$0xf] }
 0x10a   : > { %v4248_v19 = vcombine.low %v2212_v10, %v2222_v38  ;;  %v1049_v39 = vrot.slane %v1047_v51, 5  ;;  %v2497_v50 = vsel %vm4546_vm7, %v4120_v11, %v2496_v49  ;;  %v2498_v2 = vrot.slane %v2496_v49, 4 }
 0x10b   : > { %v2499_v6 = vrot.slane %v1976_v4, 5  ;;  %v1035_v47 = vrot.slane %v1034_v9, 4  ;;  %v1044_v29 = vor.u32 %v1043_v55, %v1039_v13  ;;  %v3435_v28 = vsel %vm3427_vm3, %v3402_v31, %v5309_v62 }
 0x10c   : > { %3185 = vrot.lane.b32.xlu1 %v4248_v19, %s4451_s25  ;;  %v4090_v10 = vrot.slane %v1158_v12, 9  ;;  %v1293_v27 = vrot.slane %v735_v22, 5  ;;  %v1296_v41 = vrot.slane %v755_v26, 5  ;;  %v4089_v60 = vrot.slane %v1157_v42, 9  ;;  %v262_v22 = vld [vmem:[%s4544_s17 + $0x5c] sm:$0xf] }
 0x10d   : > { %v2500_v5 = vsel %vm4546_vm7, %v2498_v2, %v2499_v6  ;;  %v1040_v4 = vsel %vm4566_vm11, %v1035_v47, %v1039_v13  ;;  %v1045_v56 = vrot.slane %v1044_v29, 4  ;;  %v1286_v21 = vrot.slane %v5387_v48, 5  ;;  %v1347_v13 = vld [vmem:[#allocation2 + $0x88] sm:$0xf]  ;;  %v5478_v11 = vpop.permute.xlu0 %3095  ;;  %v677_v2 = vld [vmem:[#allocation2 + $0x90] sm:$0xf] }
 0x10e   : > { %v4264_v46 = vcombine.low %v2497_v50, %v2500_v5  ;;  %v3433_v61 = vsel %vm3427_vm3, %v3400_v17, %v5267_v58  ;;  %v1294_v62 = vsel %vm4546_vm7, %v4090_v10, %v1293_v27  ;;  %v1295_v31 = vrot.slane %v1293_v27, 4  ;;  %v1346_v17 = vld [vmem:[#allocation2 + $0x84] sm:$0xf]  ;;  %v1368_v29 = vld [vmem:[#allocation2 + $0x8c] sm:$0x1] }
 0x10f   : > { %v1289_v59 = vrot.slane %v5400_v23, 5  ;;  %v1050_v26 = vsel %vm4566_vm11, %v1045_v56, %v1049_v39  ;;  %v1287_v48 = vsel %vm4546_vm7, %v4089_v60, %v1286_v21  ;;  %v1288_v8 = vrot.slane %v1286_v21, 4  ;;  %v1768_v21 = vld [vmem:[#allocation2 + $0x84] sm:$0xe] }
 0x110   : > { %2675 = vrot.lane.b32.xlu1 %v4153_v43, %s4445_s19  ;;  %3265 = vrot.lane.b32.xlu0 %v4264_v46, %s4449_s23  ;;  %v3468_v58 = vsel %vm3460_vm5, %v3435_v28, %v5335_v32  ;;  %v5474_v30 = vpop.permute.xlu1 %2921  ;;  %v4154_v53 = vcombine.low %v1040_v4, %v1050_v26  ;;  %v1297_v23 = vsel %vm4546_vm7, %v1295_v31, %v1296_v41  ;;  %v462_v51 = vshrl.u32 %v261_v37, 16  ;;  %v681_v41 = vld [vmem:[#allocation2 + $0x98] sm:$0x1] }
 0x111   : > { %v465_v38 = vshll.u32 %v261_v37, 16  ;;  %v1290_v49 = vsel %vm4546_vm7, %v1288_v8, %v1289_v59  ;;  %v3466_v12 = vsel %vm3460_vm5, %v3433_v61, %v5288_v45  ;;  %v470_v19 = vshrl.u32 %v262_v22, 16  ;;  %v263_v8 = vld [vmem:[%s4544_s17 + $0x60] sm:$0xf] }
 0x112   : > { %v473_v32 = vshll.u32 %v262_v22, 16  ;;  %v4169_v43 = vcombine.low %v1287_v48, %v1290_v49  ;;  %v464_v9 = vrot.slane %v462_v51, 7  ;;  %v1615_v55 = vshrl.u32 %v1346_v17, 16  ;;  %v264_v51 = vld [vmem:[%s4544_s17 + $0x64] sm:$0xf] }
 0x113   : > { %v1618_v42 = vshll.u32 %v1346_v17, 16  ;;  %v4170_v39 = vcombine.low %v1294_v62, %v1297_v23  ;;  %v472_v50 = vrot.slane %v470_v19, 7  ;;  %v1628_v6 = vshrl.u32 %v1347_v13, 16 }
 0x114   : > { %2677 = vrot.lane.b32.xlu1 %v4154_v53, %s4445_s19  ;;  %v4185_v47 = vcombine.low %v1346_v17, %v1347_v13  ;;  %v5485_v28 = vpop.permute.xlu1 %3001  ;;  %2755 = vrot.lane.b32.xlu0 %v4169_v43, %s4444_s18  ;;  %v467_v10 = vor.u32 %v465_v38, %v464_v9  ;;  %v468_v45 = vrot.slane %v464_v9, 4  ;;  %v1617_v5 = vrot.slane %v1615_v55, 4 }
 0x115   : > { %v1620_v27 = vrot.slane %v1618_v42, 5  ;;  %v475_v60 = vor.u32 %v473_v32, %v472_v50  ;;  %v3501_v4 = vsel %vm3493_vm6, %v3468_v58, %v5353_v20  ;;  %v477_v56 = vrot.slane %v472_v50, 4  ;;  %v5492_v59 = vpop.permute.xlu0 %3175 }
 0x116   : > { %v1624_v46 = vshll.u32 %v1347_v13, 16  ;;  %v678_v37 = vsel %vm4560_vm10, %v467_v10, %v677_v2  ;;  %v1630_v62 = vrot.slane %v1628_v6, 4  ;;  %v1634_v31 = vshll.u32 %v1368_v29, 16 }
 0x117   : > { %v1621_v61 = vor.u32 %v1620_v27, %v1617_v5  ;;  %v476_v22 = vsel %vm4574_vm12, %v468_v45, %v475_v60  ;;  %679 = vst [vmem:[#allocation2 + $0x90] sm:$0xf] %v678_v37  ;;  %v3499_v20 = vsel %vm3493_vm6, %v3466_v12, %v5329_v33  ;;  %v682_v26 = vsel %vm4589_vm13, %v477_v56, %v681_v41 }
 0x118   : > { %2757 = vrot.lane.b32.xlu1 %v4170_v39, %s4444_s18  ;;  %v1626_v48 = vrot.slane %v1624_v46, 5  ;;  %680 = vst.msk [vmem:[#allocation2 + $0x94] sm:$0xf] %vm183_vm0, %v476_v22  ;;  %2851 = vrot.lane.b32.xlu0 %v4185_v47, %s4446_s20  ;;  %683 = vst [vmem:[#allocation2 + $0x98] sm:$0x1] %v682_v26  ;;  %v1636_v17 = vrot.slane %v1634_v31, 5  ;;  %v3532_v53 = vsel %vm3526_vm8, %v3499_v20, %v5346_v16  ;;  %v5513_v32 = vpop.permute.xlu1 %3097 }
 0x119   : > { %v1622_v58 = vrot.slane %v1621_v61, 4  ;;  %v4105_v23 = vrot.slane %v1768_v21, 9  ;;  %v1894_v49 = vrot.slane %v1347_v13, 5  ;;  %v1897_v33 = vrot.slane %v1368_v29, 5  ;;  %4323 = vmatprep.mubr.msk.bf16.mxu0 %vm3579_vm9, %v3532_v53  ;;  %v684_v22 = vld [vmem:[#allocation2 + $0x9c] sm:$0xf] }
 0x11a   : > { %v1631_v38 = vor.u32 %v1630_v62, %v1626_v48  ;;  %v6275_v12 = vcombine.low %v4861_v3, %v4871_v14  ;;  %v3534_v16 = vsel %vm3526_vm8, %v3501_v4, %v5367_v18  ;;  %v479_v9 = vshrl.u32 %v263_v8, 16 }
 0x11b   : > { %v1627_v43 = vsel %vm4566_vm11, %v1622_v58, %v1626_v48  ;;  %v482_v55 = vshll.u32 %v263_v8, 16  ;;  %v1895_v42 = vsel %vm4546_vm7, %v4105_v23, %v1894_v49  ;;  %v1896_v39 = vrot.slane %v1894_v49, 4  ;;  %4324 = vmatmul.mubr.msk.bf16.gmra.mrb[4].mxu0 %vm3579_vm9, %v3534_v16 }
 0x11c   : > { %v3297_v19 = vsel %vm3279_vm14, %v6275_v12, %v5410_v35  ;;  %v1632_v13 = vrot.slane %v1631_v38, 4  ;;  %v487_v50 = vshrl.u32 %v264_v51, 16  ;;  %v6276_v3 = vcombine.low %v4824_v24, %v4840_v40  ;;  %v5529_v6 = vpop.permute.xlu0 %3255  ;;  %v5546_v37 = vpop.permute.xlu1 %3177 }
 0x11d   : > { %v481_v35 = vrot.slane %v479_v9, 7  ;;  %v490_v2 = vshll.u32 %v264_v51, 16  ;;  %v3340_v18 = vsel %vm3328_vm15, %v3297_v19, %v5427_v57  ;;  %v1898_v29 = vsel %vm4546_vm7, %v1896_v39, %v1897_v33 }
 0x11e   : > { %v3294_v14 = vsel %vm3279_vm14, %v6276_v3, %v5381_v0  ;;  %v1637_v47 = vsel %vm4566_vm11, %v1632_v13, %v1636_v17  ;;  %v5535_v10 = vrot.slane %v487_v50, 7  ;;  %v1348_v40 = vld [vmem:[#allocation2 + $0x90] sm:$0xf]  ;;  %v4217_v5 = vcombine.low %v1895_v42, %v1898_v29 }
 0x11f   : > { %v5539_v24 = vsel %vm3328_vm15, %v3294_v14, %v5398_v25  ;;  %v4201_v0 = vcombine.low %v1627_v43, %v1637_v47  ;;  %v1769_v45 = vld [vmem:[#allocation2 + $0x90] sm:$0xe]  ;;  %v485_v27 = vrot.slane %v481_v35, 4  ;;  %v5543_v57 = vsel %vm3361_vm1, %v3340_v18, %v5445_v54  ;;  %v1349_v41 = vld [vmem:[#allocation2 + $0x94] sm:$0xf] }
 0x120   : > { %v1639_v60 = vshrl.u32 %v1348_v40, 16  ;;  %v1642_v4 = vshll.u32 %v1348_v40, 16  ;;  %v1369_v56 = vld [vmem:[#allocation2 + $0x98] sm:$0x1]  ;;  %v484_v46 = vor.u32 %v482_v55, %v481_v35  ;;  %v492_v21 = vor.u32 %v490_v2, %v5535_v10  ;;  %v1955_v8 = vld [vmem:[#allocation2 + $0x90] sm:$0xf]  ;;  %v5570_v35 = vpop.permute.xlu1 %2667 }
 0x121   : > { %v1652_v25 = vshrl.u32 %v1349_v41, 16  ;;  %v4186_v61 = vcombine.low %v1348_v40, %v1349_v41  ;;  %v1648_v62 = vshll.u32 %v1349_v41, 16  ;;  %v1658_v31 = vshll.u32 %v1369_v56, 16  ;;  %2931 = vrot.lane.b32.xlu0 %v4201_v0, %s4450_s24  ;;  %v5550_v51 = vld [vmem:[#allocation2 + $0x94] sm:$0xf] }
 0x122   : > { %v1641_v20 = vrot.slane %v1639_v60, 4  ;;  %v1644_v26 = vrot.slane %v1642_v4, 5  ;;  %v4106_v54 = vrot.slane %v1769_v45, 9  ;;  %v1901_v48 = vrot.slane %v1349_v41, 5  ;;  %v5568_v3 = vld [vmem:[#allocation2 + $0x98] sm:$0x1] }
 0x123   : > { %2853 = vrot.lane.b32.xlu1 %v4186_v61, %s4446_s20  ;;  %v1650_v58 = vrot.slane %v1648_v62, 5  ;;  %v1654_v17 = vrot.slane %v1652_v25, 4  ;;  %v1660_v53 = vrot.slane %v1658_v31, 5  ;;  %v1904_v23 = vrot.slane %v1369_v56, 5  ;;  %v5552_v38 = vpop.permute.xlu0 %3257  ;;  %v736_v14 = vld [vmem:[#allocation2 + $0x90] sm:$0xf] }
 0x124   : > { %v1645_v49 = vor.u32 %v1644_v26, %v1641_v20  ;;  %v5556_v33 = vsel %vm4546_vm7, %v4106_v54, %v1901_v48  ;;  %v1903_v12 = vrot.slane %v1901_v48, 4  ;;  %v493_v19 = vsel %vm4574_vm12, %v485_v27, %v492_v21  ;;  %v688_v40 = vld [vmem:[#allocation2 + $0xa4] sm:$0x1]  ;;  %v5577_v41 = vld [vmem:[#allocation2 + $0x94] sm:$0xf] }
 0x125   : > { %v1655_v43 = vor.u32 %v1654_v17, %v1650_v58  ;;  %3011 = vrot.lane.b32.xlu0 %v4217_v5, %s4448_s22  ;;  %v685_v16 = vsel %vm4560_vm10, %v484_v46, %v684_v22  ;;  %687 = vst.msk [vmem:[#allocation2 + $0xa0] sm:$0xf] %vm183_vm0, %v493_v19  ;;  %v2224_v9 = vshrl.u32 %v1955_v8, 16  ;;  %v2227_v55 = vshll.u32 %v1955_v8, 16  ;;  %v5583_v46 = vld [vmem:[#allocation2 + $0x98] sm:$0x1] }
 0x126   : > { %v1646_v13 = vrot.slane %v1645_v49, 4  ;;  %v1905_v42 = vsel %vm4546_vm7, %v1903_v12, %v1904_v23  ;;  %686 = vst [vmem:[#allocation2 + $0x9c] sm:$0xf] %v685_v16  ;;  %v2237_v39 = vshrl.u32 %v5550_v51, 16  ;;  %v4233_v50 = vcombine.low %v1955_v8, %v5550_v51  ;;  %v5595_v23 = vpop.permute.xlu1 %2669 }
 0x127   : > { %v1656_v2 = vrot.slane %v1655_v43, 4  ;;  %v4218_v18 = vcombine.low %v5556_v33, %v1905_v42  ;;  %v2226_v47 = vrot.slane %v2224_v9, 4  ;;  %v2229_v29 = vrot.slane %v2227_v55, 5  ;;  %v5585_v25 = vpop.permute.xlu0 %2747 }
 0x128   : > { %v1651_v0 = vsel %vm4566_vm11, %v1646_v13, %v1650_v58  ;;  %v494_v45 = vrot.slane %v5535_v10, 4  ;;  %v2233_v5 = vshll.u32 %v5550_v51, 16  ;;  %v2239_v27 = vrot.slane %v2237_v39, 4 }
 0x129   : > { %v1661_v60 = vsel %vm4566_vm11, %v1656_v2, %v1660_v53  ;;  %3107 = vrot.lane.b32.xlu0 %v4233_v50, %s4447_s21  ;;  %v2230_v4 = vor.u32 %v2229_v29, %v2226_v47  ;;  %v2243_v56 = vshll.u32 %v5568_v3, 16  ;;  %v1052_v21 = vshrl.u32 %v736_v14, 16  ;;  %v2377_v2 = vld [vmem:[#allocation2 + $0x90] sm:$0xe] }
 0x12a   : > { %v4202_v61 = vcombine.low %v1651_v0, %v1661_v60  ;;  %v689_v10 = vsel %vm4589_vm13, %v494_v45, %v688_v40  ;;  %v2235_v62 = vrot.slane %v2233_v5, 5  ;;  %v1055_v31 = vshll.u32 %v736_v14, 16 }
 0x12b   : > { %690 = vst [vmem:[#allocation2 + $0xa4] sm:$0x1] %v689_v10  ;;  %v2231_v22 = vrot.slane %v2230_v4, 4  ;;  %v2245_v20 = vrot.slane %v2243_v56, 5  ;;  %v1054_v26 = vrot.slane %v1052_v21, 4  ;;  %v1061_v54 = vshll.u32 %v5577_v41, 16  ;;  %v5602_v47 = vpop.permute.xlu0 %2843 }
 0x12c   : > { %2933 = vrot.lane.b32.xlu1 %v4202_v61, %s4450_s24  ;;  %v5591_v48 = vld [vmem:[#allocation2 + $0xa0] sm:$0xf]  ;;  %v2240_v8 = vor.u32 %v2239_v27, %v2235_v62  ;;  %v1057_v58 = vrot.slane %v1055_v31, 5  ;;  %v1065_v17 = vshrl.u32 %v5577_v41, 16  ;;  %v1071_v53 = vshll.u32 %v5583_v46, 16 }
 0x12d   : > { %v1957_v49 = vld [vmem:[#allocation2 + $0x9c] sm:$0xf]  ;;  %v2261_v33 = vshrl.u32 %v5591_v48, 16  ;;  %v2257_v12 = vshll.u32 %v5591_v48, 16  ;;  %v2236_v19 = vsel %vm4566_vm11, %v2231_v22, %v2235_v62  ;;  %v1063_v43 = vrot.slane %v1061_v54, 5  ;;  %v5613_v62 = vpop.permute.xlu1 %2749 }
 0x12e   : > { %v2248_v16 = vshrl.u32 %v1957_v49, 16  ;;  %v2251_v9 = vshll.u32 %v1957_v49, 16  ;;  %v4234_v55 = vcombine.low %v1957_v49, %v5591_v48  ;;  %v2241_v13 = vrot.slane %v2240_v8, 4  ;;  %v738_v54 = vld [vmem:[#allocation2 + $0x9c] sm:$0xf] }
 0x12f   : > { %v2259_v42 = vrot.slane %v2257_v12, 5  ;;  %v2263_v39 = vrot.slane %v2261_v33, 4  ;;  %v1058_v50 = vor.u32 %v1057_v58, %v1054_v26  ;;  %v1067_v14 = vrot.slane %v1065_v17, 4  ;;  %v739_v58 = vld [vmem:[#allocation2 + $0xa0] sm:$0xf] }
 0x130   : > { %3013 = vrot.lane.b32.xlu1 %v4218_v18, %s4448_s22  ;;  %v2250_v29 = vrot.slane %v2248_v16, 4  ;;  %v2253_v40 = vrot.slane %v2251_v9, 5  ;;  %v2246_v0 = vsel %vm4566_vm11, %v2241_v13, %v2245_v20  ;;  %v1073_v45 = vrot.slane %v1071_v53, 5 }
 0x131   : > { %v2264_v5 = vor.u32 %v2263_v39, %v2259_v42  ;;  %v4249_v27 = vcombine.low %v2236_v19, %v2246_v0  ;;  %v1059_v60 = vrot.slane %v1058_v50, 4  ;;  %v1068_v4 = vor.u32 %v1067_v14, %v1063_v43  ;;  %v5629_v19 = vpop.permute.xlu0 %2923 }
 0x132   : > { %v5607_v56 = vld [vmem:[#allocation2 + $0xa4] sm:$0x1]  ;;  %v2254_v21 = vor.u32 %v2253_v40, %v2250_v29  ;;  %v3371_v61 = vsel %vm3361_vm1, %v5539_v24, %v5414_v52  ;;  %v4121_v10 = vrot.slane %v2377_v2, 9  ;;  %v2503_v18 = vrot.slane %v5550_v51, 5  ;;  %v1160_v40 = vld [vmem:[#allocation2 + $0x9c] sm:$0xe] }
 0x133   : > { %v2265_v31 = vrot.slane %v2264_v5, 4  ;;  %v2267_v22 = vshll.u32 %v5607_v56, 16  ;;  %3187 = vrot.lane.b32.xlu0 %v4249_v27, %s4451_s25  ;;  %v1069_v20 = vrot.slane %v1068_v4, 4  ;;  %v1303_v26 = vrot.slane %v5583_v46, 5  ;;  %v757_v12 = vld [vmem:[#allocation2 + $0xa4] sm:$0x1] }
 0x134   : > { %3109 = vrot.lane.b32.xlu1 %v4234_v55, %s4447_s21  ;;  %v2255_v8 = vrot.slane %v2254_v21, 4  ;;  %v2504_v52 = vsel %vm4546_vm7, %v4121_v10, %v2503_v18  ;;  %v2505_v24 = vrot.slane %v2503_v18, 4  ;;  %v2506_v51 = vrot.slane %v5568_v3, 5  ;;  %v2378_v55 = vld [vmem:[#allocation2 + $0x9c] sm:$0xe] }
 0x135   : > { %v2269_v17 = vrot.slane %v2267_v22, 5  ;;  %v1064_v53 = vsel %vm4566_vm11, %v1059_v60, %v1063_v43  ;;  %v1074_v49 = vsel %vm4566_vm11, %v1069_v20, %v1073_v45  ;;  %v3406_v33 = vsel %vm3394_vm2, %v5543_v57, %v5474_v30  ;;  %v5647_v20 = vpop.permute.xlu0 %3003 }
 0x136   : > { %v2260_v16 = vsel %vm4566_vm11, %v2255_v8, %v2259_v42  ;;  %v2507_v3 = vsel %vm4546_vm7, %v2505_v24, %v2506_v51  ;;  %v3404_v9 = vsel %vm3394_vm2, %v3371_v61, %v5434_v7  ;;  %v1076_v43 = vshrl.u32 %v738_v54, 16  ;;  %v5639_v42 = vpop.permute.xlu1 %2845  ;;  %v1159_v61 = vld [vmem:[#allocation2 + $0x90] sm:$0xe] }
 0x137   : > { %v2270_v13 = vsel %vm4566_vm11, %v2265_v31, %v2269_v17  ;;  %v4265_v39 = vcombine.low %v2504_v52, %v2507_v3  ;;  %v1079_v50 = vshll.u32 %v738_v54, 16  ;;  %v1085_v30 = vshll.u32 %v739_v58, 16 }
 0x138   : > { %v4250_v57 = vcombine.low %v2260_v16, %v2270_v13  ;;  %v1078_v14 = vrot.slane %v1076_v43, 4  ;;  %v1089_v2 = vshrl.u32 %v739_v58, 16  ;;  %v1095_v29 = vshll.u32 %v757_v12, 16 }
 0x139   : > { %v4155_v0 = vcombine.low %v1064_v53, %v1074_v49  ;;  %3267 = vrot.lane.b32.xlu0 %v4265_v39, %s4449_s23  ;;  %v1081_v45 = vrot.slane %v1079_v50, 5  ;;  %v1087_v7 = vrot.slane %v1085_v30, 5  ;;  %v4122_v5 = vrot.slane %v2378_v55, 9  ;;  %v265_v53 = vld [vmem:[%s4544_s17 + $0x68] sm:$0xf] }
 0x13a   : > { %3189 = vrot.lane.b32.xlu1 %v4250_v57, %s4451_s25  ;;  %v1091_v27 = vrot.slane %v1089_v2, 4  ;;  %v1310_v60 = vrot.slane %v757_v12, 5  ;;  %v2510_v4 = vrot.slane %v5591_v48, 5  ;;  %v2513_v21 = vrot.slane %v5607_v56, 5  ;;  %v1350_v39 = vld [vmem:[#allocation2 + $0x9c] sm:$0xf] }
 0x13b   : > { %v1082_v10 = vor.u32 %v1081_v45, %v1078_v14  ;;  %v1097_v18 = vrot.slane %v1095_v29, 5  ;;  %v3439_v31 = vsel %vm3427_vm3, %v3406_v33, %v5485_v28  ;;  %v4092_v22 = vrot.slane %v1160_v40, 9  ;;  %v5675_v50 = vld [vmem:[#allocation2 + $0xa0] sm:$0xf]  ;;  %v5684_v29 = vpop.permute.xlu0 %3099 }
 0x13c   : > { %v1092_v54 = vor.u32 %v1091_v27, %v1087_v7  ;;  %v2511_v8 = vsel %vm4546_vm7, %v4122_v5, %v2510_v4  ;;  %v2512_v52 = vrot.slane %v2510_v4, 4  ;;  %v1307_v24 = vrot.slane %v739_v58, 5  ;;  %v691_v27 = vld [vmem:[#allocation2 + $0xa8] sm:$0xf] }
 0x13d   : > { %v1083_v48 = vrot.slane %v1082_v10, 4  ;;  %v3437_v56 = vsel %vm3427_vm3, %v3404_v9, %v5449_v15  ;;  %v4091_v51 = vrot.slane %v1159_v61, 9  ;;  %v1300_v17 = vrot.slane %v5577_v41, 5  ;;  %v5662_v58 = vpop.permute.xlu1 %2925  ;;  %v266_v9 = vld [vmem:[%s4544_s17 + $0x6c] sm:$0xf] }
 0x13e   : > { %2679 = vrot.lane.b32.xlu1 %v4155_v0, %s4445_s19  ;;  %v1093_v28 = vrot.slane %v1092_v54, 4  ;;  %v2514_v49 = vsel %vm4546_vm7, %v2512_v52, %v2513_v21  ;;  %v1309_v33 = vrot.slane %v1307_v24, 4  ;;  %v5660_v12 = vsel %vm3460_vm5, %v3439_v31, %v5513_v32  ;;  %v695_v10 = vld [vmem:[#allocation2 + $0xb0] sm:$0x1] }
 0x13f   : > { %v1088_v15 = vsel %vm4566_vm11, %v1083_v48, %v1087_v7  ;;  %v4266_v16 = vcombine.low %v2511_v8, %v2514_v49  ;;  %v1301_v41 = vsel %vm4546_vm7, %v4091_v51, %v1300_v17  ;;  %v1302_v3 = vrot.slane %v1300_v17, 4 }
 0x140   : > { %v1098_v43 = vsel %vm4566_vm11, %v1093_v28, %v1097_v18  ;;  %v1308_v55 = vsel %vm4546_vm7, %v4092_v22, %v1307_v24  ;;  %v1311_v32 = vsel %vm4546_vm7, %v1309_v33, %v1310_v60  ;;  %v496_v13 = vshrl.u32 %v265_v53, 16  ;;  %v1370_v18 = vld [vmem:[#allocation2 + $0xa4] sm:$0x1]  ;;  %v1770_v24 = vld [vmem:[#allocation2 + $0x9c] sm:$0xe] }
 0x141   : > { %v4156_v30 = vcombine.low %v1088_v15, %v1098_v43  ;;  %3269 = vrot.lane.b32.xlu0 %v4266_v16, %s4449_s23  ;;  %v1304_v57 = vsel %vm4546_vm7, %v1302_v3, %v1303_v26  ;;  %v3470_v14 = vsel %vm3460_vm5, %v3437_v56, %v5478_v11  ;;  %v499_v2 = vshll.u32 %v265_v53, 16  ;;  %v5689_v31 = vpop.permute.xlu1 %3005  ;;  %v4419_v33 = vld [vmem:[#allocation2 + $0x48] sm:$0xf]  ;;  %v4420_v15 = vld [vmem:[#allocation2 + $0x4c] sm:$0xf] }
 0x142   : > { %v4171_v40 = vcombine.low %v1301_v41, %v1304_v57  ;;  %v498_v0 = vrot.slane %v496_v13, 7  ;;  %v504_v45 = vshrl.u32 %v266_v9, 16  ;;  %v507_v7 = vshll.u32 %v266_v9, 16  ;;  %v268_v57 = vld [vmem:[%s4544_s17 + $0x74] sm:$0xf] }
 0x143   : > { %2681 = vrot.lane.b32.xlu1 %v4156_v30, %s4445_s19  ;;  %v4172_v5 = vcombine.low %v1308_v55, %v1311_v32  ;;  %v1663_v60 = vshrl.u32 %v1350_v39, 16  ;;  %v1666_v4 = vshll.u32 %v1350_v39, 16  ;;  %v1676_v46 = vshrl.u32 %v5675_v50, 16  ;;  %v267_v55 = vld [vmem:[%s4544_s17 + $0x70] sm:$0xf] }
 0x144   : > { %v501_v21 = vor.u32 %v499_v2, %v498_v0  ;;  %v502_v26 = vrot.slane %v498_v0, 4  ;;  %v506_v61 = vrot.slane %v504_v45, 7  ;;  %v4187_v11 = vcombine.low %v1350_v39, %v5675_v50  ;;  %v4421_v2 = vld [vmem:[#allocation2 + $0x54] sm:$0xf] }
 0x145   : > { %2759 = vrot.lane.b32.xlu0 %v4171_v40, %s4444_s18  ;;  %v1665_v22 = vrot.slane %v1663_v60, 4  ;;  %v1668_v54 = vrot.slane %v1666_v4, 5  ;;  %v3503_v8 = vsel %vm3493_vm6, %v3470_v14, %v5492_v59  ;;  %v1672_v52 = vshll.u32 %v5675_v50, 16  ;;  %v5698_v16 = vpop.permute.xlu0 %3179  ;;  %v4422_v40 = vld [vmem:[#allocation2 + $0x58] sm:$0xf] }
 0x146   : > { %v509_v48 = vor.u32 %v507_v7, %v506_v61  ;;  %v692_v56 = vsel %vm4560_vm10, %v501_v21, %v691_v27  ;;  %v511_v51 = vrot.slane %v506_v61, 4  ;;  %v1678_v17 = vrot.slane %v1676_v46, 4  ;;  %v5717_v7 = vpop.permute.xlu1 %3101 }
 0x147   : > { %2761 = vrot.lane.b32.xlu1 %v4172_v5, %s4444_s18  ;;  %693 = vst [vmem:[#allocation2 + $0xa8] sm:$0xf] %v692_v56  ;;  %v1669_v53 = vor.u32 %v1668_v54, %v1665_v22  ;;  %v1674_v28 = vrot.slane %v1672_v52, 5  ;;  %v1682_v49 = vshll.u32 %v1370_v18, 16  ;;  %v4133_v59 = vcombine.low %v4419_v33, %v4420_v15 }
 0x148   : > { %v510_v41 = vsel %vm4574_vm12, %v502_v26, %v509_v48  ;;  %v696_v3 = vsel %vm4589_vm13, %v511_v51, %v695_v10  ;;  %v3536_v9 = vsel %vm3526_vm8, %v3503_v8, %v5529_v6  ;;  %v4107_v43 = vrot.slane %v1770_v24, 9  ;;  %v698_v8 = vld [vmem:[#allocation2 + $0xb4] sm:$0xf] }
 0x149   : > { %694 = vst.msk [vmem:[#allocation2 + $0xac] sm:$0xf] %vm183_vm0, %v510_v41  ;;  %2855 = vrot.lane.b32.xlu0 %v4187_v11, %s4446_s20  ;;  %v3505_v32 = vsel %vm3493_vm6, %v5660_v12, %v5546_v37  ;;  %697 = vst [vmem:[#allocation2 + $0xb0] sm:$0x1] %v696_v3  ;;  %v1670_v13 = vrot.slane %v1669_v53, 4  ;;  %v1679_v39 = vor.u32 %v1678_v17, %v1674_v28  ;;  %v1684_v30 = vrot.slane %v1682_v49, 5 }
 0x14a   : > { %4327 = vmatprep.mubr.msk.bf16.mxu0 %vm3579_vm9, %v3536_v9  ;;  %v1908_v14 = vrot.slane %v5675_v50, 5  ;;  %v1911_v6 = vrot.slane %v1370_v18, 5  ;;  %v4134_v0 = vcombine.low %v4421_v2, %v4422_v40  ;;  %v3538_v45 = vsel %vm3526_vm8, %v3505_v32, %v5552_v38  ;;  %v5732_v11 = vpop.permute.xlu0 %3259 }
 0x14b   : > { %v1675_v37 = vsel %vm4566_vm11, %v1670_v13, %v1674_v28  ;;  %v1680_v12 = vrot.slane %v1679_v39, 4  ;;  %v5723_v5 = vsel %vm3279_vm14, %v4133_v59, %v5570_v35  ;;  %v513_v27 = vshrl.u32 %v267_v55, 16  ;;  %4328 = vmatmul.mubr.msk.bf16.gmra.mrb[8].mxu0 %vm3579_vm9, %v3538_v45  ;;  %v5741_v59 = vpop.permute.xlu1 %3181 }
 0x14c   : > { %v1909_v50 = vsel %vm4546_vm7, %v4107_v43, %v1908_v14  ;;  %v1910_v60 = vrot.slane %v1908_v14, 4  ;;  %v516_v4 = vshll.u32 %v267_v55, 16  ;;  %v521_v46 = vshrl.u32 %v268_v57, 16 }
 0x14d   : > { %v1685_v38 = vsel %vm4566_vm11, %v1680_v12, %v1684_v30  ;;  %v3303_v21 = vsel %vm3279_vm14, %v4134_v0, %v5595_v23  ;;  %v515_v26 = vrot.slane %v513_v27, 7  ;;  %v524_v61 = vshll.u32 %v268_v57, 16  ;;  %v702_v12 = vld [vmem:[#allocation2 + $0xbc] sm:$0x1] }
 0x14e   : > { %v1352_v35 = vld [vmem:[#allocation2 + $0xa8] sm:$0xf]  ;;  %v4203_v10 = vcombine.low %v1675_v37, %v1685_v38  ;;  %v1912_v22 = vsel %vm4546_vm7, %v1910_v60, %v1911_v6  ;;  %v523_v54 = vrot.slane %v521_v46, 7  ;;  %v5738_v52 = vsel %vm3328_vm15, %v3303_v21, %v5613_v62 }
 0x14f   : > { %v1771_v18 = vld [vmem:[#allocation2 + $0xa8] sm:$0xe]  ;;  %v1687_v24 = vshrl.u32 %v1352_v35, 16  ;;  %v1690_v48 = vshll.u32 %v1352_v35, 16  ;;  %v4219_v23 = vcombine.low %v1909_v50, %v1912_v22  ;;  %v518_v28 = vor.u32 %v516_v4, %v515_v26 }
 0x150   : > { %v4108_v56 = vrot.slane %v1771_v18, 9  ;;  %v1959_v51 = vld [vmem:[#allocation2 + $0xa8] sm:$0xf]  ;;  %v1353_v17 = vld [vmem:[#allocation2 + $0xac] sm:$0xf]  ;;  %2935 = vrot.lane.b32.xlu0 %v4203_v10, %s4450_s24  ;;  %v519_v49 = vrot.slane %v515_v26, 4  ;;  %v526_v33 = vor.u32 %v524_v61, %v523_v54  ;;  %v5771_v22 = vsel %vm3328_vm15, %v5723_v5, %v5585_v25 }
 0x151   : > { %v1371_v53 = vld [vmem:[#allocation2 + $0xb0] sm:$0x1]  ;;  %v2272_v15 = vshrl.u32 %v1959_v51, 16  ;;  %v1689_v41 = vrot.slane %v1687_v24, 4  ;;  %v1692_v3 = vrot.slane %v1690_v48, 5  ;;  %v1700_v9 = vshrl.u32 %v1353_v17, 16  ;;  %v5750_v2 = vpop.permute.xlu0 %3261 }
 0x152   : > { %v4188_v62 = vcombine.low %v1352_v35, %v1353_v17  ;;  %v1696_v43 = vshll.u32 %v1353_v17, 16  ;;  %v1706_v55 = vshll.u32 %v1371_v53, 16  ;;  %v1915_v32 = vrot.slane %v1353_v17, 5  ;;  %v5743_v39 = vld [vmem:[#allocation2 + $0xac] sm:$0xf]  ;;  %v5764_v35 = vpop.permute.xlu1 %2671 }
 0x153   : > { %v1918_v13 = vrot.slane %v1371_v53, 5  ;;  %v1693_v30 = vor.u32 %v1692_v3, %v1689_v41  ;;  %v1702_v57 = vrot.slane %v1700_v9, 4  ;;  %v527_v14 = vsel %vm4574_vm12, %v519_v49, %v526_v33  ;;  %v5759_v46 = vld [vmem:[#allocation2 + $0xb0] sm:$0x1]  ;;  %v5774_v24 = vld [vmem:[#allocation2 + $0xa8] sm:$0xf] }
 0x154   : > { %2857 = vrot.lane.b32.xlu1 %v4188_v62, %s4446_s20  ;;  %v699_v6 = vsel %vm4560_vm10, %v518_v28, %v698_v8  ;;  %v1698_v40 = vrot.slane %v1696_v43, 5  ;;  %v1708_v0 = vrot.slane %v1706_v55, 5  ;;  %v5754_v45 = vsel %vm4546_vm7, %v4108_v56, %v1915_v32  ;;  %3015 = vrot.lane.b32.xlu0 %v4219_v23, %s4448_s22  ;;  %701 = vst.msk [vmem:[#allocation2 + $0xb8] sm:$0xf] %vm183_vm0, %v527_v14 }
 0x155   : > { %v1917_v37 = vrot.slane %v1915_v32, 4  ;;  %700 = vst [vmem:[#allocation2 + $0xb4] sm:$0xf] %v699_v6  ;;  %v1694_v27 = vrot.slane %v1693_v30, 4  ;;  %v2274_v50 = vrot.slane %v2272_v15, 4  ;;  %v2275_v60 = vshll.u32 %v1959_v51, 16  ;;  %v5788_v28 = vpop.permute.xlu0 %2751 }
 0x156   : > { %v2285_v4 = vshrl.u32 %v5743_v39, 16  ;;  %v1703_v38 = vor.u32 %v1702_v57, %v1698_v40  ;;  %v4235_v26 = vcombine.low %v1959_v51, %v5743_v39  ;;  %v528_v61 = vrot.slane %v523_v54, 4  ;;  %v5780_v51 = vld [vmem:[#allocation2 + $0xac] sm:$0xf]  ;;  %v5799_v57 = vpop.permute.xlu1 %2673 }
 0x157   : > { %v1919_v21 = vsel %vm4546_vm7, %v1917_v37, %v1918_v13  ;;  %v1699_v10 = vsel %vm4566_vm11, %v1694_v27, %v1698_v40  ;;  %v2277_v18 = vrot.slane %v2275_v60, 5  ;;  %v2281_v8 = vshll.u32 %v5743_v39, 16  ;;  %v2379_v60 = vld [vmem:[#allocation2 + $0xa8] sm:$0xe] }
 0x158   : > { %v1704_v48 = vrot.slane %v1703_v38, 4  ;;  %3111 = vrot.lane.b32.xlu0 %v4235_v26, %s4447_s21  ;;  %v703_v54 = vsel %vm4589_vm13, %v528_v61, %v702_v12  ;;  %v2287_v56 = vrot.slane %v2285_v4, 4  ;;  %v2291_v23 = vshll.u32 %v5759_v46, 16 }
 0x159   : > { %v4220_v17 = vcombine.low %v5754_v45, %v1919_v21  ;;  %704 = vst [vmem:[#allocation2 + $0xbc] sm:$0x1] %v703_v54  ;;  %v2278_v25 = vor.u32 %v2277_v18, %v2274_v50  ;;  %v2283_v5 = vrot.slane %v2281_v8, 5  ;;  %v5786_v53 = vsel %vm3361_vm1, %v5738_v52, %v5639_v42  ;;  %v5810_v61 = vpop.permute.xlu0 %2847 }
 0x15a   : > { %v1709_v49 = vsel %vm4566_vm11, %v1704_v48, %v1708_v0  ;;  %v2293_v33 = vrot.slane %v2291_v23, 5  ;;  %v1100_v15 = vshrl.u32 %v5774_v24, 16  ;;  %v1103_v41 = vshll.u32 %v5774_v24, 16  ;;  %v5805_v0 = vld [vmem:[#allocation2 + $0xb0] sm:$0x1] }
 0x15b   : > { %v4204_v3 = vcombine.low %v1699_v10, %v1709_v49  ;;  %v5794_v62 = vld [vmem:[#allocation2 + $0xb8] sm:$0xf]  ;;  %v2279_v43 = vrot.slane %v2278_v25, 4  ;;  %v2288_v55 = vor.u32 %v2287_v56, %v2283_v5  ;;  %v1109_v32 = vshll.u32 %v5780_v51, 16 }
 0x15c   : > { %v1961_v9 = vld [vmem:[#allocation2 + $0xb4] sm:$0xf]  ;;  %v2309_v13 = vshrl.u32 %v5794_v62, 16  ;;  %v2305_v14 = vshll.u32 %v5794_v62, 16  ;;  %v1102_v45 = vrot.slane %v1100_v15, 4  ;;  %v1105_v50 = vrot.slane %v1103_v41, 5 }
 0x15d   : > { %v2296_v42 = vshrl.u32 %v1961_v9, 16  ;;  %v2299_v52 = vshll.u32 %v1961_v9, 16  ;;  %v4236_v30 = vcombine.low %v1961_v9, %v5794_v62  ;;  %2937 = vrot.lane.b32.xlu1 %v4204_v3, %s4450_s24  ;;  %v2284_v6 = vsel %vm4566_vm11, %v2279_v43, %v2283_v5  ;;  %v5819_v3 = vpop.permute.xlu1 %2753 }
 0x15e   : > { %v2289_v40 = vrot.slane %v2288_v55, 4  ;;  %v2311_v27 = vrot.slane %v2309_v13, 4  ;;  %v2307_v4 = vrot.slane %v2305_v14, 5  ;;  %v1111_v21 = vrot.slane %v1109_v32, 5  ;;  %v5831_v14 = vld [vmem:[#allocation2 + $0xb8] sm:$0xf] }
 0x15f   : > { %v2298_v37 = vrot.slane %v2296_v42, 4  ;;  %v2301_v12 = vrot.slane %v2299_v52, 5  ;;  %v1113_v26 = vshrl.u32 %v5780_v51, 16  ;;  %v1106_v48 = vor.u32 %v1105_v50, %v1102_v45  ;;  %v2380_v50 = vld [vmem:[#allocation2 + $0xb4] sm:$0xe] }
 0x160   : > { %v2294_v38 = vsel %vm4566_vm11, %v2289_v40, %v2293_v33  ;;  %v5812_v10 = vld [vmem:[#allocation2 + $0xbc] sm:$0x1]  ;;  %v1119_v54 = vshll.u32 %v5805_v0, 16  ;;  %v2312_v56 = vor.u32 %v2311_v27, %v2307_v4  ;;  %v4123_v5 = vrot.slane %v2379_v60, 9 }
 0x161   : > { %v2302_v18 = vor.u32 %v2301_v12, %v2298_v37  ;;  %v4251_v8 = vcombine.low %v2284_v6, %v2294_v38  ;;  %3017 = vrot.lane.b32.xlu1 %v4220_v17, %s4448_s22  ;;  %v2315_v23 = vshll.u32 %v5812_v10, 16  ;;  %v1115_v25 = vrot.slane %v1113_v26, 4  ;;  %v5822_v17 = vld [vmem:[#allocation2 + $0xb4] sm:$0xf] }
 0x162   : > { %v1107_v33 = vrot.slane %v1106_v48, 4  ;;  %v1121_v15 = vrot.slane %v1119_v54, 5  ;;  %v2517_v41 = vrot.slane %v5743_v39, 5  ;;  %v2313_v9 = vrot.slane %v2312_v56, 4 }
 0x163   : > { %v2303_v49 = vrot.slane %v2302_v18, 4  ;;  %3191 = vrot.lane.b32.xlu0 %v4251_v8, %s4451_s25  ;;  %v2317_v43 = vrot.slane %v2315_v23, 5  ;;  %v1116_v55 = vor.u32 %v1115_v25, %v1111_v21  ;;  %v2520_v32 = vrot.slane %v5759_v46, 5  ;;  %v5851_v8 = vpop.permute.xlu1 %2849  ;;  %v1162_v25 = vld [vmem:[#allocation2 + $0xb4] sm:$0xe] }
 0x164   : > { %v3375_v52 = vsel %vm3361_vm1, %v5771_v22, %v5602_v47  ;;  %v2518_v13 = vsel %vm4546_vm7, %v4123_v5, %v2517_v41  ;;  %v2519_v39 = vrot.slane %v2517_v41, 4  ;;  %v1112_v6 = vsel %vm4566_vm11, %v1107_v33, %v1111_v21  ;;  %v759_v47 = vld [vmem:[#allocation2 + $0xbc] sm:$0x1]  ;;  %v5841_v22 = vpop.permute.xlu0 %2927  ;;  %v1161_v41 = vld [vmem:[#allocation2 + $0xa8] sm:$0xe] }
 0x165   : > { %v2308_v42 = vsel %vm4566_vm11, %v2303_v49, %v2307_v4  ;;  %3113 = vrot.lane.b32.xlu1 %v4236_v30, %s4447_s21  ;;  %v2318_v46 = vsel %vm4566_vm11, %v2313_v9, %v2317_v43  ;;  %v1117_v40 = vrot.slane %v1116_v55, 4  ;;  %v3410_v45 = vsel %vm3394_vm2, %v5786_v53, %v5662_v58 }
 0x166   : > { %v4252_v37 = vcombine.low %v2308_v42, %v2318_v46  ;;  %v2521_v12 = vsel %vm4546_vm7, %v2519_v39, %v2520_v32  ;;  %v1124_v30 = vshrl.u32 %v5822_v17, 16  ;;  %v1127_v27 = vshll.u32 %v5822_v17, 16 }
 0x167   : > { %v1122_v60 = vsel %vm4566_vm11, %v1117_v40, %v1121_v15  ;;  %v4267_v4 = vcombine.low %v2518_v13, %v2521_v12  ;;  %v1133_v38 = vshll.u32 %v5831_v14, 16  ;;  %v1137_v58 = vshrl.u32 %v5831_v14, 16  ;;  %v269_v12 = vld [vmem:[%s4544_s17 + $0x78] sm:$0xf] }
 0x168   : > { %v4157_v53 = vcombine.low %v1112_v6, %v1122_v60  ;;  %v1126_v21 = vrot.slane %v1124_v30, 4  ;;  %v1129_v26 = vrot.slane %v1127_v27, 5  ;;  %v1143_v18 = vshll.u32 %v759_v47, 16  ;;  %v5863_v42 = vpop.permute.xlu0 %3007 }
 0x169   : > { %3193 = vrot.lane.b32.xlu1 %v4252_v37, %s4451_s25  ;;  %3271 = vrot.lane.b32.xlu0 %v4267_v4, %s4449_s23  ;;  %v1135_v48 = vrot.slane %v1133_v38, 5  ;;  %v1139_v54 = vrot.slane %v1137_v58, 4  ;;  %v4124_v56 = vrot.slane %v2380_v50, 9  ;;  %v2524_v23 = vrot.slane %v5794_v62, 5  ;;  %v270_v4 = vld [vmem:[%s4544_s17 + $0x7c] sm:$0xf] }
 0x16a   : > { %v3408_v5 = vsel %vm3394_vm2, %v3375_v52, %v5629_v19  ;;  %v1130_v49 = vor.u32 %v1129_v26, %v1126_v21  ;;  %v1145_v33 = vrot.slane %v1143_v18, 5  ;;  %v2527_v15 = vrot.slane %v5812_v10, 5  ;;  %v1354_v38 = vld [vmem:[#allocation2 + $0xb4] sm:$0xf]  ;;  %v5890_v18 = vld [vmem:[#allocation2 + $0xb8] sm:$0xf] }
 0x16b   : > { %v1140_v9 = vor.u32 %v1139_v54, %v1135_v48  ;;  %v2525_v43 = vsel %vm4546_vm7, %v4124_v56, %v2524_v23  ;;  %v2526_v55 = vrot.slane %v2524_v23, 4  ;;  %v3443_v32 = vsel %vm3427_vm3, %v3410_v45, %v5689_v31 }
 0x16c   : > { %v1131_v62 = vrot.slane %v1130_v49, 4  ;;  %v4094_v13 = vrot.slane %v1162_v25, 9  ;;  %v1321_v19 = vrot.slane %v5831_v14, 5  ;;  %v1324_v52 = vrot.slane %v759_v47, 5  ;;  %v5875_v47 = vpop.permute.xlu1 %2929  ;;  %v5894_v23 = vpop.permute.xlu0 %3103 }
 0x16d   : > { %2683 = vrot.lane.b32.xlu1 %v4157_v53, %s4445_s19  ;;  %v1141_v10 = vrot.slane %v1140_v9, 4  ;;  %v2528_v39 = vsel %vm4546_vm7, %v2526_v55, %v2527_v15  ;;  %v4093_v46 = vrot.slane %v1161_v41, 9  ;;  %v1314_v6 = vrot.slane %v5780_v51, 5  ;;  %v5900_v9 = vld [vmem:[#allocation2 + $0xbc] sm:$0x1] }
 0x16e   : > { %v1136_v31 = vsel %vm4566_vm11, %v1131_v62, %v1135_v48  ;;  %v4268_v40 = vcombine.low %v2525_v43, %v2528_v39  ;;  %v1322_v45 = vsel %vm4546_vm7, %v4094_v13, %v1321_v19  ;;  %v1323_v37 = vrot.slane %v1321_v19, 4  ;;  %v705_v55 = vld [vmem:[#allocation2 + $0xc0] sm:$0xf]  ;;  %v709_v39 = vld [vmem:[#allocation2 + $0xc8] sm:$0x1] }
 0x16f   : > { %v1146_v30 = vsel %vm4566_vm11, %v1141_v10, %v1145_v33  ;;  %v1315_v27 = vsel %vm4546_vm7, %v4093_v46, %v1314_v6  ;;  %v1316_v50 = vrot.slane %v1314_v6, 4  ;;  %v1317_v60 = vrot.slane %v5805_v0, 5 }
 0x170   : > { %v4158_v58 = vcombine.low %v1136_v31, %v1146_v30  ;;  %3273 = vrot.lane.b32.xlu0 %v4268_v40, %s4449_s23  ;;  %v3441_v53 = vsel %vm3427_vm3, %v3408_v5, %v5647_v20  ;;  %v1325_v21 = vsel %vm4546_vm7, %v1323_v37, %v1324_v52  ;;  %v3476_v26 = vsel %vm3460_vm5, %v3443_v32, %v5717_v7  ;;  %v5906_v19 = vpop.permute.xlu1 %3009  ;;  %v1772_v37 = vld [vmem:[#allocation2 + $0xb4] sm:$0xe] }
 0x171   : > { %v4174_v48 = vcombine.low %v1322_v45, %v1325_v21  ;;  %v1318_v0 = vsel %vm4546_vm7, %v1316_v50, %v1317_v60  ;;  %v530_v54 = vshrl.u32 %v269_v12, 16  ;;  %v533_v56 = vshll.u32 %v269_v12, 16 }
 0x172   : > { %2685 = vrot.lane.b32.xlu1 %v4158_v58, %s4445_s19  ;;  %v4173_v25 = vcombine.low %v1315_v27, %v1318_v0  ;;  %v538_v20 = vshrl.u32 %v270_v4, 16  ;;  %v541_v5 = vshll.u32 %v270_v4, 16  ;;  %v1711_v49 = vshrl.u32 %v1354_v38, 16  ;;  %v4424_v58 = vld [vmem:[#allocation2 + $0x64] sm:$0xf] }
 0x173   : > { %v3474_v33 = vsel %vm3460_vm5, %v3441_v53, %v5684_v29  ;;  %v532_v7 = vrot.slane %v530_v54, 7  ;;  %v1714_v15 = vshll.u32 %v1354_v38, 16  ;;  %v1724_v41 = vshrl.u32 %v5890_v18, 16  ;;  %v4425_v54 = vld [vmem:[#allocation2 + $0x6c] sm:$0xf] }
 0x174   : > { %2763 = vrot.lane.b32.xlu0 %v4173_v25, %s4444_s18  ;;  %v540_v43 = vrot.slane %v538_v20, 7  ;;  %v1713_v32 = vrot.slane %v1711_v49, 4  ;;  %v4189_v62 = vcombine.low %v1354_v38, %v5890_v18  ;;  %v3509_v13 = vsel %vm3493_vm6, %v3476_v26, %v5741_v59  ;;  %v4423_v38 = vld [vmem:[#allocation2 + $0x60] sm:$0xf]  ;;  %v5932_v20 = vpop.permute.xlu1 %3105 }
 0x175   : > { %v535_v52 = vor.u32 %v533_v56, %v532_v7  ;;  %v536_v29 = vrot.slane %v532_v7, 4  ;;  %v1716_v10 = vrot.slane %v1714_v15, 5  ;;  %v1720_v46 = vshll.u32 %v5890_v18, 16  ;;  %v4426_v56 = vld [vmem:[#allocation2 + $0x70] sm:$0xf] }
 0x176   : > { %2765 = vrot.lane.b32.xlu1 %v4174_v48, %s4444_s18  ;;  %v543_v6 = vor.u32 %v541_v5, %v540_v43  ;;  %v545_v31 = vrot.slane %v540_v43, 4  ;;  %v1726_v40 = vrot.slane %v1724_v41, 4  ;;  %v1730_v45 = vshll.u32 %v5900_v9, 16  ;;  %v5915_v50 = vpop.permute.xlu0 %3183  ;;  %v5939_v15 = vld [vmem:[#allocation2 + $0xd0] sm:$0xf] }
 0x177   : > { %v706_v12 = vsel %vm4560_vm10, %v535_v52, %v705_v55  ;;  %v3507_v59 = vsel %vm3493_vm6, %v3474_v33, %v5698_v16  ;;  %v1717_v30 = vor.u32 %v1716_v10, %v1713_v32  ;;  %v1722_v27 = vrot.slane %v1720_v46, 5  ;;  %v5924_v16 = vld [vmem:[#allocation2 + $0xcc] sm:$0xf] }
 0x178   : > { %v544_v60 = vsel %vm4574_vm12, %v536_v29, %v543_v6  ;;  %707 = vst [vmem:[#allocation2 + $0xc0] sm:$0xf] %v706_v12  ;;  %2859 = vrot.lane.b32.xlu0 %v4189_v62, %s4446_s20  ;;  %v710_v4 = vsel %vm4589_vm13, %v545_v31, %v709_v39  ;;  %v4135_v34 = vcombine.low %v4423_v38, %v4424_v58  ;;  %v1732_v26 = vrot.slane %v1730_v45, 5 }
 0x179   : > { %v3540_v53 = vsel %vm3526_vm8, %v3507_v59, %v5732_v11  ;;  %708 = vst.msk [vmem:[#allocation2 + $0xc4] sm:$0xf] %vm183_vm0, %v544_v60  ;;  %711 = vst [vmem:[#allocation2 + $0xc8] sm:$0x1] %v710_v4  ;;  %v1718_v21 = vrot.slane %v1717_v30, 4  ;;  %v1727_v44 = vor.u32 %v1726_v40, %v1722_v27  ;;  %v4109_v48 = vrot.slane %v1772_v37, 9 }
 0x17a   : > { %4331 = vmatprep.mubr.msk.bf16.mxu0 %vm3579_vm9, %v3540_v53  ;;  %v1922_v63 = vrot.slane %v5890_v18, 5  ;;  %v1925_v0 = vrot.slane %v5900_v9, 5  ;;  %v4136_v25 = vcombine.low %v4425_v54, %v4426_v56  ;;  %v3542_v11 = vsel %vm3526_vm8, %v3509_v13, %v5750_v2 }
 0x17b   : > { %v1723_v5 = vsel %vm4566_vm11, %v1718_v21, %v1722_v27  ;;  %v1728_v49 = vrot.slane %v1727_v44, 4  ;;  %v2344_v33 = vshrl.u32 %v5924_v16, 16  ;;  %v2347_v7 = vshll.u32 %v5924_v16, 16  ;;  %4332 = vmatmul.mubr.msk.bf16.gmra.mrb[12].mxu0 %vm3579_vm9, %v3542_v11  ;;  %v5941_v41 = vpop.permute.xlu0 %3263 }
 0x17c   : > { %v1924_v18 = vrot.slane %v1922_v63, 4  ;;  %v1923_v9 = vsel %vm4546_vm7, %v4109_v48, %v1922_v63  ;;  %v3306_v62 = vsel %vm3279_vm14, %v4135_v34, %v5764_v35  ;;  %v3309_v52 = vsel %vm3279_vm14, %v4136_v25, %v5799_v57 }
 0x17d   : > { %v1733_v2 = vsel %vm4566_vm11, %v1728_v49, %v1732_v26  ;;  %v5947_v43 = vrot.slane %v2344_v33, 4  ;;  %v5949_v55 = vrot.slane %v2347_v7, 5  ;;  %v2357_v39 = vshrl.u32 %v5939_v15, 16  ;;  %v5979_v7 = vld [vmem:[#allocation2 + $0xd4] sm:$0x1] }
 0x17e   : > { %v4205_v32 = vcombine.low %v1723_v5, %v1733_v2  ;;  %v1926_v13 = vsel %vm4546_vm7, %v1924_v18, %v1925_v0  ;;  %v4238_v46 = vcombine.low %v5924_v16, %v5939_v15  ;;  %v3348_v6 = vsel %vm3328_vm15, %v3309_v52, %v5819_v3  ;;  %v5967_v59 = vpop.permute.xlu1 %3185 }
 0x17f   : > { %v1356_v29 = vld [vmem:[#allocation2 + $0xc0] sm:$0xf]  ;;  %v3346_v31 = vsel %vm3328_vm15, %v3306_v62, %v5788_v28  ;;  %v4221_v57 = vcombine.low %v1923_v9, %v1926_v13  ;;  %v2350_v12 = vor.u32 %v5949_v55, %v5947_v43  ;;  %v3381_v63 = vsel %vm3361_vm1, %v3348_v6, %v5851_v8 }
 0x180   : > { %v1773_v10 = vld [vmem:[#allocation2 + $0xc0] sm:$0xe]  ;;  %v1357_v35 = vld [vmem:[#allocation2 + $0xc4] sm:$0xf]  ;;  %v1735_v40 = vshrl.u32 %v1356_v29, 16  ;;  %v1738_v45 = vshll.u32 %v1356_v29, 16  ;;  %2939 = vrot.lane.b32.xlu0 %v4205_v32, %s4450_s24  ;;  %v3379_v8 = vsel %vm3361_vm1, %v3346_v31, %v5810_v61 }
 0x181   : > { %v1373_v37 = vld [vmem:[#allocation2 + $0xc8] sm:$0x1]  ;;  %v1748_v30 = vshrl.u32 %v1357_v35, 16  ;;  %v4190_v27 = vcombine.low %v1356_v29, %v1357_v35  ;;  %v1744_v60 = vshll.u32 %v1357_v35, 16  ;;  %v1963_v3 = vld [vmem:[#allocation2 + $0xc0] sm:$0xf] }
 0x182   : > { %v1754_v4 = vshll.u32 %v1373_v37, 16  ;;  %v1737_v38 = vrot.slane %v1735_v40, 4  ;;  %v1740_v58 = vrot.slane %v1738_v45, 5  ;;  %v4110_v28 = vrot.slane %v1773_v10, 9  ;;  %v5969_v53 = vld [vmem:[#allocation2 + $0xc4] sm:$0xf]  ;;  %v5971_v21 = vpop.permute.xlu0 %3265  ;;  %v5985_v43 = vpop.permute.xlu1 %2675 }
 0x183   : > { %v1929_v34 = vrot.slane %v1357_v35, 5  ;;  %2861 = vrot.lane.b32.xlu1 %v4190_v27, %s4446_s20  ;;  %v1746_v44 = vrot.slane %v1744_v60, 5  ;;  %v1750_v26 = vrot.slane %v1748_v30, 4  ;;  %v1932_v48 = vrot.slane %v1373_v37, 5  ;;  %v1981_v52 = vld [vmem:[#allocation2 + $0xc8] sm:$0x1] }
 0x184   : > { %v1741_v0 = vor.u32 %v1740_v58, %v1737_v38  ;;  %v1756_v54 = vrot.slane %v1754_v4, 5  ;;  %3019 = vrot.lane.b32.xlu0 %v4221_v57, %s4448_s22  ;;  %v2320_v25 = vshrl.u32 %v1963_v3, 16  ;;  %v2323_v5 = vshll.u32 %v1963_v3, 16  ;;  %v2381_v4 = vld [vmem:[#allocation2 + $0xc0] sm:$0xe] }
 0x185   : > { %v1931_v56 = vrot.slane %v1929_v34, 4  ;;  %v1751_v11 = vor.u32 %v1750_v26, %v1746_v44  ;;  %v2333_v49 = vshrl.u32 %v5969_v53, 16  ;;  %v4237_v33 = vcombine.low %v1963_v3, %v5969_v53  ;;  %v2382_v26 = vld [vmem:[#allocation2 + $0xcc] sm:$0xe] }
 0x186   : > { %v1742_v18 = vrot.slane %v1741_v0, 4  ;;  %v1930_v2 = vsel %vm4546_vm7, %v4110_v28, %v1929_v34  ;;  %v2322_v9 = vrot.slane %v2320_v25, 4  ;;  %v2325_v62 = vrot.slane %v2323_v5, 5  ;;  %v5990_v29 = vpop.permute.xlu0 %2755  ;;  %v6003_v0 = vpop.permute.xlu1 %2677 }
 0x187   : > { %v1752_v55 = vrot.slane %v1751_v11, 4  ;;  %v1933_v32 = vsel %vm4546_vm7, %v1931_v56, %v1932_v48  ;;  %v2353_v13 = vshll.u32 %v5939_v15, 16  ;;  %v2359_v6 = vrot.slane %v2357_v39, 4 }
 0x188   : > { %v1747_v10 = vsel %vm4566_vm11, %v1742_v18, %v1746_v44  ;;  %3115 = vrot.lane.b32.xlu0 %v4237_v33, %s4447_s21  ;;  %v2363_v61 = vshll.u32 %v5979_v7, 16  ;;  %v2329_v31 = vshll.u32 %v5969_v53, 16  ;;  %v2326_v45 = vor.u32 %v2325_v62, %v2322_v9 }
 0x189   : > { %v1757_v35 = vsel %vm4566_vm11, %v1752_v55, %v1756_v54  ;;  %v2355_v40 = vrot.slane %v2353_v13, 5  ;;  %v2335_v37 = vrot.slane %v2333_v49, 4  ;;  %v2351_v30 = vrot.slane %v2350_v12, 4 }
 0x18a   : > { %v4206_v57 = vcombine.low %v1747_v10, %v1757_v35  ;;  %v2331_v27 = vrot.slane %v2329_v31, 5  ;;  %v2339_v60 = vshll.u32 %v1981_v52, 16  ;;  %v4222_v3 = vcombine.low %v1930_v2, %v1933_v32  ;;  %v2852_v11 = vpop.permute.xlu0 %2851  ;;  %v2758_v10 = vpop.permute.xlu1 %2757 }
 0x18b   : > { %v2360_v38 = vor.u32 %v2359_v6, %v2355_v40  ;;  %v2327_v58 = vrot.slane %v2326_v45, 4  ;;  %v3414_v39 = vsel %vm3394_vm2, %v3381_v63, %v5875_v47  ;;  %v2365_v28 = vrot.slane %v2363_v61, 5 }
 0x18c   : > { %2941 = vrot.lane.b32.xlu1 %v4206_v57, %s4450_s24  ;;  %v2336_v34 = vor.u32 %v2335_v37, %v2331_v27  ;;  %v2341_v44 = vrot.slane %v2339_v60, 5  ;;  %v2538_v48 = vrot.slane %v5939_v15, 5  ;;  %v4125_v54 = vrot.slane %v2381_v4, 9 }
 0x18d   : > { %v2361_v12 = vrot.slane %v2360_v38, 4  ;;  %v2531_v56 = vrot.slane %v5969_v53, 5  ;;  %v3412_v25 = vsel %vm3394_vm2, %v3379_v8, %v5841_v22  ;;  %v2356_v47 = vsel %vm4566_vm11, %v2351_v30, %v2355_v40  ;;  %v4428_v40 = vld [vmem:[#allocation2 + $0x7c] sm:$0xf]  ;;  %v4430_v38 = vld [vmem:[#allocation2 + $0x88] sm:$0xf] }
 0x18e   : > { %v2332_v63 = vsel %vm4566_vm11, %v2327_v58, %v2331_v27  ;;  %v2337_v5 = vrot.slane %v2336_v34, 4  ;;  %v2534_v49 = vrot.slane %v1981_v52, 5  ;;  %v4126_v33 = vrot.slane %v2382_v26, 9 }
 0x18f   : > { %v2540_v18 = vrot.slane %v2538_v48, 4  ;;  %v2541_v2 = vrot.slane %v5979_v7, 5  ;;  %v2533_v9 = vrot.slane %v2531_v56, 4  ;;  %v2366_v53 = vsel %vm4566_vm11, %v2361_v12, %v2365_v28 }
 0x190   : > { %3021 = vrot.lane.b32.xlu1 %v4222_v3, %s4448_s22  ;;  %v2342_v22 = vsel %vm4566_vm11, %v2337_v5, %v2341_v44  ;;  %v2532_v8 = vsel %vm4546_vm7, %v4125_v54, %v2531_v56  ;;  %v3447_v55 = vsel %vm3427_vm3, %v3414_v39, %v5906_v19  ;;  %v3445_v7 = vsel %vm3427_vm3, %v3412_v25, %v5863_v42  ;;  %v4429_v3 = vld [vmem:[#allocation2 + $0x84] sm:$0xf] }
 0x191   : > { %v4253_v32 = vcombine.low %v2332_v63, %v2342_v22  ;;  %v2535_v62 = vsel %vm4546_vm7, %v2533_v9, %v2534_v49  ;;  %v3480_v13 = vsel %vm3460_vm5, %v3447_v55, %v5932_v20  ;;  %v3478_v36 = vsel %vm3460_vm5, %v3445_v7, %v5894_v23 }
 0x192   : > { %v3513_v52 = vsel %vm3493_vm6, %v3480_v13, %v5967_v59  ;;  %v4269_v19 = vcombine.low %v2532_v8, %v2535_v62  ;;  %v3511_v6 = vsel %vm3493_vm6, %v3478_v36, %v5915_v50  ;;  %v4254_v23 = vcombine.low %v2356_v47, %v2366_v53 }
 0x193   : > { %3195 = vrot.lane.b32.xlu0 %v4253_v32, %s4451_s25  ;;  %v3546_v61 = vsel %vm3526_vm8, %v3513_v52, %v5971_v21  ;;  %v2932_v42 = vpop.permute.xlu0 %2931  ;;  %v3544_v20 = vsel %vm3526_vm8, %v3511_v6, %v5941_v41  ;;  %v4141_v59 = vcombine.low %v5774_v24, %v5780_v51  ;;  %v2539_v31 = vsel %vm4546_vm7, %v4126_v33, %v2538_v48 }
 0x194   : > { %3117 = vrot.lane.b32.xlu1 %v4238_v46, %s4447_s21  ;;  %v2542_v50 = vsel %vm4546_vm7, %v2540_v18, %v2541_v2  ;;  %4335 = vmatprep.mubr.msk.bf16.mxu1 %vm3579_vm9, %v3544_v20  ;;  %v4142_v21 = vcombine.low %v5822_v17, %v5831_v14  ;;  %v4137_v45 = vcombine.low %v4427_v1, %v4428_v40  ;;  %vm3979_vm0 = vcmask 1040384  }
 0x195   : > { %4336 = vmatmul.mubr.msk.bf16.vlgmr.msra.gmra.mrb[0].mxu1 %vm3579_vm9, %v3546_v61  ;;  %v4270_v16 = vcombine.low %v2539_v31, %v2542_v50  ;;  %v2854_v15 = vpop.permute.xlu1 %2853  ;;  %v4138_v58 = vcombine.low %v4429_v3, %v4430_v38  ;;  %v4431_v61 = vld [vmem:[#allocation2 + $0x90] sm:$0xf]  ;;  %v4433_v38 = vld [vmem:[#allocation2 + $0x9c] sm:$0xf]  ;;  %vm3981_vm7 = vcmask 58368  }
 0x196   : > { %v3312_v57 = vsel %vm3279_vm14, %v4137_v45, %v5985_v43 }
 0x197   : > { %3275 = vrot.lane.b32.xlu0 %v4269_v19, %s4449_s23  ;;  %v3012_v41 = vpop.permute.xlu0 %3011  ;;  %v3350_v27 = vsel %vm3328_vm15, %v3312_v57, %v5990_v29  ;;  %v3315_v29 = vsel %vm3279_vm14, %v4138_v58, %v6003_v0  ;;  %v4434_v58 = vld [vmem:[#allocation2 + $0xa0] sm:$0xf] }
 0x198   : > { %3197 = vrot.lane.b32.xlu1 %v4254_v23, %s4451_s25  ;;  %v3383_v60 = vsel %vm3361_vm1, %v3350_v27, %v2852_v11  ;;  %v3352_v48 = vsel %vm3328_vm15, %v3315_v29, %v2758_v10 }
 0x199   : > { %v3416_v4 = vsel %vm3394_vm2, %v3383_v60, %v2932_v42  ;;  %v3385_v12 = vsel %vm3361_vm1, %v3352_v48, %v2854_v15  ;;  %v4432_v42 = vld [vmem:[#allocation2 + $0x94] sm:$0xf] }
 0x19a   : > { %v3449_v39 = vsel %vm3427_vm3, %v3416_v4, %v3012_v41  ;;  %v4139_v23 = vcombine.low %v4431_v61, %v4432_v42 }
 0x19b   : > { %v3108_v35 = vpop.permute.xlu0 %3107 }
 0x19c   : > { %3277 = vrot.lane.b32.xlu1 %v4270_v16, %s4449_s23  ;;  %v3482_v34 = vsel %vm3460_vm5, %v3449_v39, %v3108_v35  ;;  %v4140_v39 = vcombine.low %v4433_v38, %v4434_v58 }
 0x19e   : > { %v2934_v46 = vpop.permute.xlu1 %2933 }
 0x19f   : > { %v3418_v54 = vsel %vm3394_vm2, %v3385_v12, %v2934_v46 }
 0x1a2   : > { %v3014_v37 = vpop.permute.xlu1 %3013 }
 0x1a3   : > { %v3451_v25 = vsel %vm3427_vm3, %v3418_v54, %v3014_v37 }
 0x1a5   : > { %v3188_v30 = vpop.permute.xlu0 %3187 }
 0x1a6   : > { %v3110_v28 = vpop.permute.xlu1 %3109  ;;  %v3515_v44 = vsel %vm3493_vm6, %v3482_v34, %v3188_v30 }
 0x1a7   : > { %v3484_v11 = vsel %vm3460_vm5, %v3451_v25, %v3110_v28 }
 0x1ab   : > { %v3268_v26 = vpop.permute.xlu0 %3267 }
 0x1ac   : > { %v3548_v43 = vsel %vm3526_vm8, %v3515_v44, %v3268_v26  ;;  %v3190_v56 = vpop.permute.xlu1 %3189 }
 0x1ad   : > { %4339 = vmatprep.mubr.msk.bf16.mxu1 %vm3579_vm9, %v3548_v43  ;;  %v3517_v47 = vsel %vm3493_vm6, %v3484_v11, %v3190_v56 }
 0x1b0   : > { %v2680_v0 = vpop.permute.xlu1 %2679 }
 0x1b1   : > { %v3318_v45 = vsel %vm3279_vm14, %v4139_v23, %v2680_v0 }
 0x1b3   : > { %v3270_v63 = vpop.permute.xlu0 %3269 }
 0x1b4   : > { %v3550_v5 = vsel %vm3526_vm8, %v3517_v47, %v3270_v63 }
 0x1b5   : > { %4340 = vmatmul.mubr.msk.bf16.gmra.mrb[4].mxu1 %vm3579_vm9, %v3550_v5  ;;  %v2682_v18 = vpop.permute.xlu1 %2681 }
 0x1b6   : > { %v3321_v48 = vsel %vm3279_vm14, %v4140_v39, %v2682_v18 }
 0x1b7   : > { %v2760_v49 = vpop.permute.xlu0 %2759 }
 0x1b8   : > { %v3354_v27 = vsel %vm3328_vm15, %v3318_v45, %v2760_v49 }
 0x1b9   : > { %v2762_v9 = vpop.permute.xlu1 %2761 }
 0x1ba   : > { %v3356_v54 = vsel %vm3328_vm15, %v3321_v48, %v2762_v9 }
 0x1bb   : > { %v2856_v33 = vpop.permute.xlu0 %2855 }
 0x1bc   : > { %v3387_v4 = vsel %vm3361_vm1, %v3354_v27, %v2856_v33 }
 0x1c2   : > { %v2936_v2 = vpop.permute.xlu0 %2935 }
 0x1c3   : > { %v3420_v28 = vsel %vm3394_vm2, %v3387_v4, %v2936_v2 }
 0x1c6   : > { %v3016_v53 = vpop.permute.xlu0 %3015  ;;  %v2858_v22 = vpop.permute.xlu1 %2857 }
 0x1c7   : > { %v3453_v34 = vsel %vm3427_vm3, %v3420_v28, %v3016_v53  ;;  %v3389_v56 = vsel %vm3361_vm1, %v3356_v54, %v2858_v22 }
 0x1ca   : > { %v3112_v32 = vpop.permute.xlu0 %3111 }
 0x1cb   : > { %v3486_v26 = vsel %vm3460_vm5, %v3453_v34, %v3112_v32 }
 0x1cc   : > { %v4321_v8 = vpop.f32.mrb[0].mxu0 }
 0x1cd   : > { %3949 = vst.msk [vmem:[%s6081_s8 + $0x10] sm:$0xff] %vm3328_vm15, %v4321_v8  ;;  %v3650_v55 = vpop.f32.mrb[1].mxu0  ;;  %v3848_v52 = vmul.f32 %v4321_v8, %v4321_v8  ;;  %v3780_v31 = vsel %vm3328_vm15, %v4321_v8, 0.0 }
 0x1ce   : > { %v3846_v62 = vmul.f32 %v3650_v55, %v3650_v55  ;;  %3947 = vst.msk [vmem:[%s6081_s8] sm:$0xff] %vm3328_vm15, %v3650_v55  ;;  %v4322_v7 = vpop.f32.mrb[2].mxu0  ;;  %v3777_v10 = vsel %vm3328_vm15, %v3650_v55, 0.0 }
 0x1cf   : > { %v2938_v13 = vpop.permute.xlu1 %2937  ;;  %3950 = vst.msk [vmem:[%s6081_s8 + $0x18] sm:$0xff] %vm3328_vm15, %v4322_v7  ;;  %v3653_v36 = vpop.f32.mrb[3].mxu0  ;;  %v3849_v16 = vmul.f32 %v4322_v7, %v4322_v7  ;;  %v3881_v1 = vsel %vm3328_vm15, %v3848_v52, 0.0  ;;  %v3782_v40 = vsel %vm3328_vm15, %v4322_v7, 0.0 }
 0x1d0   : > { %v3778_v19 = vsel %vm3328_vm15, %v3653_v36, 0.0  ;;  %v3847_v6 = vmul.f32 %v3653_v36, %v3653_v36  ;;  %3948 = vst.msk [vmem:[%s6081_s8 + $0x8] sm:$0xff] %vm3328_vm15, %v3653_v36  ;;  %v3878_v50 = vsel %vm3328_vm15, %v3846_v62, 0.0  ;;  %v3422_v25 = vsel %vm3394_vm2, %v3389_v56, %v2938_v13 }
 0x1d1   : > { %v3779_v20 = vadd.f32 %v3778_v19, %v3777_v10  ;;  %v3883_v60 = vsel %vm3328_vm15, %v3849_v16, 0.0 }
 0x1d2   : > { %v3879_v15 = vsel %vm3328_vm15, %v3847_v6, 0.0 }
 0x1d3   : > { %v3018_v41 = vpop.permute.xlu1 %3017  ;;  %v3781_v46 = vadd.f32 %v3780_v31, %v3779_v20  ;;  %v3880_v35 = vadd.f32 %v3879_v15, %v3878_v50 }
 0x1d4   : > { %v3455_v47 = vsel %vm3427_vm3, %v3422_v25, %v3018_v41 }
 0x1d5   : > { %v3192_v37 = vpop.permute.xlu0 %3191  ;;  %v3882_v57 = vadd.f32 %v3881_v1, %v3880_v35  ;;  %v3783_v30 = vadd.f32 %v3782_v40, %v3781_v46 }
 0x1d6   : > { %v3519_v43 = vsel %vm3493_vm6, %v3486_v26, %v3192_v37 }
 0x1d7   : > { %v3884_v3 = vadd.f32 %v3883_v60, %v3882_v57  ;;  %v3114_v44 = vpop.permute.xlu1 %3113 }
 0x1d8   : > { %v3488_v63 = vsel %vm3460_vm5, %v3455_v47, %v3114_v44 }
 0x1db   : > { %v3272_v29 = vpop.permute.xlu0 %3271  ;;  %v3194_v11 = vpop.permute.xlu1 %3193 }
 0x1dc   : > { %v3552_v12 = vsel %vm3526_vm8, %v3519_v43, %v3272_v29  ;;  %v3521_v5 = vsel %vm3493_vm6, %v3488_v63, %v3194_v11 }
 0x1dd   : > { %4343 = vmatprep.mubr.msk.bf16.mxu1 %vm3579_vm9, %v3552_v12 }
 0x1df   : > { %v2684_v33 = vpop.permute.xlu1 %2683 }
 0x1e0   : > { %v3324_v60 = vsel %vm3279_vm14, %v4141_v59, %v2684_v33 }
 0x1e2   : > { %v3274_v0 = vpop.permute.xlu0 %3273 }
 0x1e3   : > { %v3554_v49 = vsel %vm3526_vm8, %v3521_v5, %v3274_v0 }
 0x1e4   : > { %4344 = vmatmul.mubr.msk.bf16.gmra.mrb[8].mxu1 %vm3579_vm9, %v3554_v49  ;;  %v2686_v2 = vpop.permute.xlu1 %2685 }
 0x1e5   : > { %v3327_v34 = vsel %vm3279_vm14, %v4142_v21, %v2686_v2 }
 0x1e6   : > { %v2764_v18 = vpop.permute.xlu0 %2763 }
 0x1e7   : > { %v3358_v4 = vsel %vm3328_vm15, %v3324_v60, %v2764_v18 }
 0x1e8   : > { %v2766_v62 = vpop.permute.xlu1 %2765 }
 0x1e9   : > { %v3360_v24 = vsel %vm3328_vm15, %v3327_v34, %v2766_v62 }
 0x1ea   : > { %v2860_v9 = vpop.permute.xlu0 %2859 }
 0x1ee   : > { %v4325_v53 = vpop.f32.mrb[4].mxu0 }
 0x1ef   : > { %3953 = vst.msk [vmem:[%s6081_s8 + $0x30] sm:$0xff] %vm3328_vm15, %v4325_v53  ;;  %v3666_v22 = vpop.f32.mrb[5].mxu0  ;;  %v3852_v52 = vmul.f32 %v4325_v53, %v4325_v53  ;;  %v3788_v23 = vsel %vm3328_vm15, %v4325_v53, 0.0 }
 0x1f0   : > { %v3784_v8 = vsel %vm3328_vm15, %v3666_v22, 0.0  ;;  %v3850_v55 = vmul.f32 %v3666_v22, %v3666_v22  ;;  %3951 = vst.msk [vmem:[%s6081_s8 + $0x20] sm:$0xff] %vm3328_vm15, %v3666_v22  ;;  %v4326_v32 = vpop.f32.mrb[6].mxu0 }
 0x1f1   : > { %v3785_v7 = vadd.f32 %v3784_v8, %v3783_v30  ;;  %3954 = vst.msk [vmem:[%s6081_s8 + $0x38] sm:$0xff] %vm3328_vm15, %v4326_v32  ;;  %v3669_v13 = vpop.f32.mrb[7].mxu0  ;;  %v3853_v20 = vmul.f32 %v4326_v32, %v4326_v32  ;;  %v3889_v15 = vsel %vm3328_vm15, %v3852_v52, 0.0  ;;  %v3790_v41 = vsel %vm3328_vm15, %v4326_v32, 0.0 }
 0x1f2   : > { %v2940_v36 = vpop.permute.xlu0 %2939  ;;  %v3885_v10 = vsel %vm3328_vm15, %v3850_v55, 0.0  ;;  %v3786_v19 = vsel %vm3328_vm15, %v3669_v13, 0.0  ;;  %v3851_v6 = vmul.f32 %v3669_v13, %v3669_v13  ;;  %3952 = vst.msk [vmem:[%s6081_s8 + $0x28] sm:$0xff] %vm3328_vm15, %v3669_v13 }
 0x1f3   : > { %v3886_v61 = vadd.f32 %v3885_v10, %v3884_v3  ;;  %v3787_v42 = vadd.f32 %v3786_v19, %v3785_v7  ;;  %v3891_v45 = vsel %vm3328_vm15, %v3853_v20, 0.0  ;;  %v3391_v3 = vsel %vm3361_vm1, %v3358_v4, %v2860_v9 }
 0x1f4   : > { %v3887_v31 = vsel %vm3328_vm15, %v3851_v6, 0.0  ;;  %v3424_v58 = vsel %vm3394_vm2, %v3391_v3, %v2940_v36 }
 0x1f5   : > { %v3789_v50 = vadd.f32 %v3788_v23, %v3787_v42  ;;  %v3888_v16 = vadd.f32 %v3887_v31, %v3886_v61  ;;  %v2862_v46 = vpop.permute.xlu1 %2861 }
 0x1f6   : > { %v3020_v40 = vpop.permute.xlu0 %3019  ;;  %v3393_v26 = vsel %vm3361_vm1, %v3360_v24, %v2862_v46 }
 0x1f7   : > { %v3890_v35 = vadd.f32 %v3889_v15, %v3888_v16  ;;  %v3791_v1 = vadd.f32 %v3790_v41, %v3789_v50  ;;  %v3457_v28 = vsel %vm3427_vm3, %v3424_v58, %v3020_v40 }
 0x1f9   : > { %v3892_v37 = vadd.f32 %v3891_v45, %v3890_v35 }
 0x1fa   : > { %v3116_v30 = vpop.permute.xlu0 %3115 }
 0x1fb   : > { %v3490_v44 = vsel %vm3460_vm5, %v3457_v28, %v3116_v30 }
 0x1fe   : > { %v2942_v57 = vpop.permute.xlu1 %2941 }
 0x1ff   : > { %v3426_v48 = vsel %vm3394_vm2, %v3393_v26, %v2942_v57 }
 0x202   : > { %v3022_v27 = vpop.permute.xlu1 %3021 }
 0x203   : > { %v3459_v17 = vsel %vm3427_vm3, %v3426_v48, %v3022_v27 }
 0x205   : > { %v3196_v38 = vpop.permute.xlu0 %3195 }
 0x206   : > { %v3118_v39 = vpop.permute.xlu1 %3117  ;;  %v3523_v51 = vsel %vm3493_vm6, %v3490_v44, %v3196_v38 }
 0x207   : > { %v3492_v14 = vsel %vm3460_vm5, %v3459_v17, %v3118_v39 }
 0x209   : > { %v3276_v59 = vpop.permute.xlu0 %3275 }
 0x20a   : > { %v3198_v43 = vpop.permute.xlu1 %3197  ;;  %v3556_v29 = vsel %vm3526_vm8, %v3523_v51, %v3276_v59 }
 0x20b   : > { %4347 = vmatprep.mubr.msk.bf16.mxu1 %vm3579_vm9, %v3556_v29  ;;  %v3525_v21 = vsel %vm3493_vm6, %v3492_v14, %v3198_v43 }
 0x20e   : > { %v3278_v12 = vpop.permute.xlu1 %3277 }
 0x20f   : > { %v3558_v54 = vsel %vm3526_vm8, %v3525_v21, %v3278_v12 }
 0x210   : > { %4348 = vmatmul.mubr.msk.bf16.gmra.mrb[12].mxu1 %vm3579_vm9, %v3558_v54 }
 0x21e   : > { %v4329_v56 = vpop.f32.mrb[8].mxu0 }
 0x21f   : > { %3957 = vst.msk [vmem:[%s6081_s8 + $0x50] sm:$0xff] %vm3328_vm15, %v4329_v56  ;;  %v3682_v25 = vpop.f32.mrb[9].mxu0  ;;  %v3856_v49 = vmul.f32 %v4329_v56, %v4329_v56  ;;  %v3796_v22 = vsel %vm3328_vm15, %v4329_v56, 0.0 }
 0x220   : > { %v3792_v11 = vsel %vm3328_vm15, %v3682_v25, 0.0  ;;  %v3854_v47 = vmul.f32 %v3682_v25, %v3682_v25  ;;  %3955 = vst.msk [vmem:[%s6081_s8 + $0x40] sm:$0xff] %vm3328_vm15, %v3682_v25  ;;  %v4330_v63 = vpop.f32.mrb[10].mxu0 }
 0x221   : > { %v3793_v5 = vadd.f32 %v3792_v11, %v3791_v1  ;;  %3958 = vst.msk [vmem:[%s6081_s8 + $0x58] sm:$0xff] %vm3328_vm15, %v4330_v63  ;;  %v3685_v0 = vpop.f32.mrb[11].mxu0  ;;  %v3857_v8 = vmul.f32 %v4330_v63, %v4330_v63  ;;  %v3897_v7 = vsel %vm3328_vm15, %v3856_v49, 0.0  ;;  %v3798_v13 = vsel %vm3328_vm15, %v4330_v63, 0.0 }
 0x222   : > { %v3893_v33 = vsel %vm3328_vm15, %v3854_v47, 0.0  ;;  %v3794_v18 = vsel %vm3328_vm15, %v3685_v0, 0.0  ;;  %v3855_v2 = vmul.f32 %v3685_v0, %v3685_v0  ;;  %3956 = vst.msk [vmem:[%s6081_s8 + $0x48] sm:$0xff] %vm3328_vm15, %v3685_v0 }
 0x223   : > { %v3894_v9 = vadd.f32 %v3893_v33, %v3892_v37  ;;  %v3795_v53 = vadd.f32 %v3794_v18, %v3793_v5  ;;  %v3899_v10 = vsel %vm3328_vm15, %v3857_v8, 0.0 }
 0x224   : > { %v3895_v55 = vsel %vm3328_vm15, %v3855_v2, 0.0 }
 0x225   : > { %v3797_v32 = vadd.f32 %v3796_v22, %v3795_v53  ;;  %v3896_v62 = vadd.f32 %v3895_v55, %v3894_v9 }
 0x227   : > { %v3898_v36 = vadd.f32 %v3897_v7, %v3896_v62  ;;  %v3799_v52 = vadd.f32 %v3798_v13, %v3797_v32 }
 0x229   : > { %v3900_v19 = vadd.f32 %v3899_v10, %v3898_v36 }
 0x24e   : > { %v4333_v6 = vpop.f32.mrb[12].mxu0 }
 0x24f   : > { %3961 = vst.msk [vmem:[%s6081_s8 + $0x70] sm:$0xff] %vm3328_vm15, %v4333_v6  ;;  %v3698_v61 = vpop.f32.mrb[13].mxu0  ;;  %v3860_v16 = vmul.f32 %v4333_v6, %v4333_v6  ;;  %v3804_v40 = vsel %vm3328_vm15, %v4333_v6, 0.0 }
 0x250   : > { %v3800_v42 = vsel %vm3328_vm15, %v3698_v61, 0.0  ;;  %v3858_v23 = vmul.f32 %v3698_v61, %v3698_v61  ;;  %3959 = vst.msk [vmem:[%s6081_s8 + $0x60] sm:$0xff] %vm3328_vm15, %v3698_v61  ;;  %v4334_v20 = vpop.f32.mrb[14].mxu0 }
 0x251   : > { %v3801_v31 = vadd.f32 %v3800_v42, %v3799_v52  ;;  %3962 = vst.msk [vmem:[%s6081_s8 + $0x78] sm:$0xff] %vm3328_vm15, %v4334_v20  ;;  %v3701_v50 = vpop.f32.mrb[15].mxu0  ;;  %v3861_v45 = vmul.f32 %v4334_v20, %v4334_v20  ;;  %v3905_v27 = vsel %vm3328_vm15, %v3860_v16, 0.0  ;;  %v3806_v60 = vsel %vm3328_vm15, %v4334_v20, 0.0 }
 0x252   : > { %v3901_v15 = vsel %vm3328_vm15, %v3858_v23, 0.0  ;;  %v3802_v41 = vsel %vm3328_vm15, %v3701_v50, 0.0  ;;  %v3859_v46 = vmul.f32 %v3701_v50, %v3701_v50  ;;  %3960 = vst.msk [vmem:[%s6081_s8 + $0x68] sm:$0xff] %vm3328_vm15, %v3701_v50 }
 0x253   : > { %v3902_v35 = vadd.f32 %v3901_v15, %v3900_v19  ;;  %v3803_v1 = vadd.f32 %v3802_v41, %v3801_v31  ;;  %v3907_v38 = vsel %vm3328_vm15, %v3861_v45, 0.0 }
 0x254   : > { %v3903_v37 = vsel %vm3328_vm15, %v3859_v46, 0.0 }
 0x255   : > { %v3805_v57 = vadd.f32 %v3804_v40, %v3803_v1  ;;  %v3904_v30 = vadd.f32 %v3903_v37, %v3902_v35 }
 0x257   : > { %v3906_v4 = vadd.f32 %v3905_v27, %v3904_v30  ;;  %v3807_v3 = vadd.f32 %v3806_v60, %v3805_v57 }
 0x259   : > { %v3908_v58 = vadd.f32 %v3907_v38, %v3906_v4 }
 0x268   : > { %v4337_v39 = vpop.f32.mrb[0].mxu1 }
 0x269   : > { %3965 = vst.msk [vmem:[%s6081_s8 + $0x90] sm:$0xff] %vm3328_vm15, %v4337_v39  ;;  %v3714_v28 = vpop.f32.mrb[1].mxu1  ;;  %v3864_v26 = vmul.f32 %v4337_v39, %v4337_v39  ;;  %v3812_v21 = vsel %vm3328_vm15, %v4337_v39, 0.0 }
 0x26a   : > { %v3808_v34 = vsel %vm3328_vm15, %v3714_v28, 0.0  ;;  %v3862_v44 = vmul.f32 %v3714_v28, %v3714_v28  ;;  %3963 = vst.msk [vmem:[%s6081_s8 + $0x80] sm:$0xff] %vm3328_vm15, %v3714_v28  ;;  %v4338_v24 = vpop.f32.mrb[2].mxu1 }
 0x26b   : > { %v3809_v51 = vadd.f32 %v3808_v34, %v3807_v3  ;;  %3966 = vst.msk [vmem:[%s6081_s8 + $0x98] sm:$0xff] %vm3328_vm15, %v4338_v24  ;;  %v3717_v59 = vpop.f32.mrb[3].mxu1  ;;  %v3865_v12 = vmul.f32 %v4338_v24, %v4338_v24  ;;  %v3913_v11 = vsel %vm3328_vm15, %v3864_v26, 0.0  ;;  %v3814_v47 = vsel %vm3328_vm15, %v4338_v24, 0.0 }
 0x26c   : > { %v3909_v43 = vsel %vm3328_vm15, %v3862_v44, 0.0  ;;  %v3810_v29 = vsel %vm3328_vm15, %v3717_v59, 0.0  ;;  %v3863_v48 = vmul.f32 %v3717_v59, %v3717_v59  ;;  %3964 = vst.msk [vmem:[%s6081_s8 + $0x88] sm:$0xff] %vm3328_vm15, %v3717_v59 }
 0x26d   : > { %v3910_v17 = vadd.f32 %v3909_v43, %v3908_v58  ;;  %v3811_v14 = vadd.f32 %v3810_v29, %v3809_v51  ;;  %v3915_v0 = vsel %vm3328_vm15, %v3865_v12, 0.0 }
 0x26e   : > { %v3911_v54 = vsel %vm3328_vm15, %v3863_v48, 0.0 }
 0x26f   : > { %v3813_v56 = vadd.f32 %v3812_v21, %v3811_v14  ;;  %v3912_v25 = vadd.f32 %v3911_v54, %v3910_v17 }
 0x271   : > { %v3914_v63 = vadd.f32 %v3913_v11, %v3912_v25  ;;  %v3815_v5 = vadd.f32 %v3814_v47, %v3813_v56 }
 0x273   : > { %v3916_v49 = vadd.f32 %v3915_v0, %v3914_v63 }
 0x288   : > { %v4341_v33 = vpop.f32.mrb[4].mxu1 }
 0x289   : > { %3969 = vst.msk [vmem:[%s6081_s8 + $0xb0] sm:$0xff] %vm3328_vm15, %v4341_v33  ;;  %v3730_v18 = vpop.f32.mrb[5].mxu1  ;;  %v3868_v55 = vmul.f32 %v4341_v33, %v4341_v33  ;;  %v3820_v52 = vsel %vm3328_vm15, %v4341_v33, 0.0 }
 0x28a   : > { %v3816_v2 = vsel %vm3328_vm15, %v3730_v18, 0.0  ;;  %v3866_v9 = vmul.f32 %v3730_v18, %v3730_v18  ;;  %3967 = vst.msk [vmem:[%s6081_s8 + $0xa0] sm:$0xff] %vm3328_vm15, %v3730_v18  ;;  %v4342_v53 = vpop.f32.mrb[6].mxu1 }
 0x28b   : > { %v3817_v22 = vadd.f32 %v3816_v2, %v3815_v5  ;;  %3970 = vst.msk [vmem:[%s6081_s8 + $0xb8] sm:$0xff] %vm3328_vm15, %v4342_v53  ;;  %v3733_v8 = vpop.f32.mrb[7].mxu1  ;;  %v3869_v10 = vmul.f32 %v4342_v53, %v4342_v53  ;;  %v3921_v42 = vsel %vm3328_vm15, %v3868_v55, 0.0  ;;  %v3822_v23 = vsel %vm3328_vm15, %v4342_v53, 0.0 }
 0x28c   : > { %v3917_v32 = vsel %vm3328_vm15, %v3866_v9, 0.0  ;;  %v3818_v62 = vsel %vm3328_vm15, %v3733_v8, 0.0  ;;  %v3867_v7 = vmul.f32 %v3733_v8, %v3733_v8  ;;  %3968 = vst.msk [vmem:[%s6081_s8 + $0xa8] sm:$0xff] %vm3328_vm15, %v3733_v8 }
 0x28d   : > { %v3918_v13 = vadd.f32 %v3917_v32, %v3916_v49  ;;  %v3819_v36 = vadd.f32 %v3818_v62, %v3817_v22  ;;  %v3923_v50 = vsel %vm3328_vm15, %v3869_v10, 0.0 }
 0x28e   : > { %v3919_v19 = vsel %vm3328_vm15, %v3867_v7, 0.0 }
 0x28f   : > { %v3821_v6 = vadd.f32 %v3820_v52, %v3819_v36  ;;  %v3920_v61 = vadd.f32 %v3919_v19, %v3918_v13 }
 0x291   : > { %v3922_v20 = vadd.f32 %v3921_v42, %v3920_v61  ;;  %v3823_v31 = vadd.f32 %v3822_v23, %v3821_v6 }
 0x293   : > { %v3924_v16 = vadd.f32 %v3923_v50, %v3922_v20 }
 0x2b7   : > { %v4345_v15 = vpop.f32.mrb[8].mxu1 }
 0x2b8   : > { %3973 = vst.msk [vmem:[%s6081_s8 + $0xd0] sm:$0xff] %vm3328_vm15, %v4345_v15  ;;  %v3746_v41 = vpop.f32.mrb[9].mxu1  ;;  %v3872_v37 = vmul.f32 %v4345_v15, %v4345_v15  ;;  %v3828_v3 = vsel %vm3328_vm15, %v4345_v15, 0.0 }
 0x2b9   : > { %v3824_v46 = vsel %vm3328_vm15, %v3746_v41, 0.0  ;;  %v3870_v35 = vmul.f32 %v3746_v41, %v3746_v41  ;;  %3971 = vst.msk [vmem:[%s6081_s8 + $0xc0] sm:$0xff] %vm3328_vm15, %v3746_v41  ;;  %v4346_v1 = vpop.f32.mrb[10].mxu1 }
 0x2ba   : > { %v3825_v40 = vadd.f32 %v3824_v46, %v3823_v31  ;;  %3974 = vst.msk [vmem:[%s6081_s8 + $0xd8] sm:$0xff] %vm3328_vm15, %v4346_v1  ;;  %v3749_v45 = vpop.f32.mrb[11].mxu1  ;;  %v3873_v38 = vmul.f32 %v4346_v1, %v4346_v1  ;;  %v3929_v34 = vsel %vm3328_vm15, %v3872_v37, 0.0  ;;  %v3830_v44 = vsel %vm3328_vm15, %v4346_v1, 0.0 }
 0x2bb   : > { %v3925_v57 = vsel %vm3328_vm15, %v3870_v35, 0.0  ;;  %v3826_v30 = vsel %vm3328_vm15, %v3749_v45, 0.0  ;;  %v3871_v27 = vmul.f32 %v3749_v45, %v3749_v45  ;;  %3972 = vst.msk [vmem:[%s6081_s8 + $0xc8] sm:$0xff] %vm3328_vm15, %v3749_v45 }
 0x2bc   : > { %v3926_v60 = vadd.f32 %v3925_v57, %v3924_v16  ;;  %v3827_v4 = vadd.f32 %v3826_v30, %v3825_v40  ;;  %v3931_v59 = vsel %vm3328_vm15, %v3873_v38, 0.0 }
 0x2bd   : > { %v3927_v58 = vsel %vm3328_vm15, %v3871_v27, 0.0 }
 0x2be   : > { %v3829_v39 = vadd.f32 %v3828_v3, %v3827_v4  ;;  %v3928_v28 = vadd.f32 %v3927_v58, %v3926_v60 }
 0x2c0   : > { %v3930_v24 = vadd.f32 %v3929_v34, %v3928_v28  ;;  %v3831_v51 = vadd.f32 %v3830_v44, %v3829_v39 }
 0x2c2   : > { %v3932_v26 = vadd.f32 %v3931_v59, %v3930_v24 }
 0x2e3   : > { %v4349_v43 = vpop.f32.mrb[12].mxu1 }
 0x2e4   : > { %3977 = vst.msk [vmem:[%s6081_s8 + $0xf0] sm:$0xff] %vm3328_vm15, %v4349_v43  ;;  %v3762_v29 = vpop.f32.mrb[13].mxu1  ;;  %v3876_v54 = vmul.f32 %v4349_v43, %v4349_v43  ;;  %v3836_v5 = vsel %vm3328_vm15, %v4349_v43, 0.0 }
 0x2e5   : > { %v3832_v48 = vsel %vm3328_vm15, %v3762_v29, 0.0  ;;  %v3874_v17 = vmul.f32 %v3762_v29, %v3762_v29  ;;  %3975 = vst.msk [vmem:[%s6081_s8 + $0xe0] sm:$0xff] %vm3328_vm15, %v3762_v29  ;;  %v4350_v14 = vpop.f32.mrb[14].mxu1 }
 0x2e6   : > { %v3833_v21 = vadd.f32 %v3832_v48, %v3831_v51  ;;  %3978 = vst.msk [vmem:[%s6081_s8 + $0xf8] sm:$0xff] %vm3328_vm15, %v4350_v14  ;;  %v3765_v12 = vpop.f32.mrb[15].mxu1  ;;  %v3877_v0 = vmul.f32 %v4350_v14, %v4350_v14  ;;  %v3937_v2 = vsel %vm3328_vm15, %v3876_v54, 0.0  ;;  %v3838_v9 = vsel %vm3328_vm15, %v4350_v14, 0.0 }
 0x2e7   : > { %v3933_v56 = vsel %vm3328_vm15, %v3874_v17, 0.0  ;;  %v3834_v25 = vsel %vm3328_vm15, %v3765_v12, 0.0  ;;  %v3875_v11 = vmul.f32 %v3765_v12, %v3765_v12  ;;  %3976 = vst.msk [vmem:[%s6081_s8 + $0xe8] sm:$0xff] %vm3328_vm15, %v3765_v12 }
 0x2e8   : > { %v3934_v47 = vadd.f32 %v3933_v56, %v3932_v26  ;;  %v3835_v63 = vadd.f32 %v3834_v25, %v3833_v21  ;;  %v3939_v8 = vsel %vm3328_vm15, %v3877_v0, 0.0 }
 0x2e9   : > { %v3935_v49 = vsel %vm3328_vm15, %v3875_v11, 0.0 }
 0x2ea   : > { %v3837_v33 = vadd.f32 %v3836_v5, %v3835_v63  ;;  %v3936_v18 = vadd.f32 %v3935_v49, %v3934_v47 }
 0x2ec   : > { %v3839_v53 = vadd.f32 %v3838_v9, %v3837_v33  ;;  %v3938_v22 = vadd.f32 %v3937_v2, %v3936_v18 }
 0x2ee   : > { %v3840_v55 = vrot.slane %v3839_v53, 4  ;;  %v3940_v32 = vadd.f32 %v3939_v8, %v3938_v22 }
 0x2f0   : > { %v3841_v62 = vadd.f32 %v3840_v55, %v3839_v53  ;;  %v3941_v7 = vrot.slane %v3940_v32, 4 }
 0x2f2   : > { %v3842_v13 = vrot.slane %v3841_v62, 2  ;;  %v3942_v36 = vadd.f32 %v3941_v7, %v3940_v32 }
 0x2f4   : > { %v3843_v52 = vadd.f32 %v3842_v13, %v3841_v62  ;;  %v3943_v10 = vrot.slane %v3942_v36, 2 }
 0x2f6   : > { %v3844_v19 = vrot.slane %v3843_v52, 1  ;;  %v3944_v6 = vadd.f32 %v3943_v10, %v3942_v36 }
 0x2f8   : > { %v3945_v61 = vrot.slane %v3944_v6, 1  ;;  %v3845_v42 = vadd.f32 %v3844_v19, %v3843_v52 }
 0x2fa   : > { %v3946_v23 = vadd.f32 %v3945_v61, %v3944_v6 }
 0x2fc   : > { %v3980_v20 = vsel %vm3979_vm0, %v3845_v42, %v3946_v23 }
 0x2fd   : > { %3982 = vst.msk [vmem:[%s181_s14] sm:$0x3] %vm3981_vm7, %v3980_v20 }
 0x2fe PF: > { %s14_s12 = sadd.s32 1, %s4441_s12  }
 0x2ff   : > { %p11_p4 = scmp.ge.s32.totalorder %s14_s12, 4  }
 0x301   :  { %13 = sbr.rel (!%p11_p4) target bundleno = 1 (0x1), region = 72 }

// kernel: _lambda_.8
= control target key start
LH: loop header
LB: loop body
LE: loop exit
PB: predicated region body
PF: predicated region fallthrough
CT: control target
= control target key end

     0   :  { %s4502_s12 = smov 0   ;;  %s6310_s0 = inlined_call_operand.vmem [shape: bf16[2,16,16,8], index: 0, kind: input, shape index: {}]   ;;  %s6311_s1 = inlined_call_operand.vmem [shape: bf16[72,8], index: 1, kind: input, shape index: {}]   ;;  %s6312_s2 = inlined_call_operand.vmem [shape: f32[2,256,8], index: 2, kind: output, shape index: {0}]   ;;  %s6313_s3 = inlined_call_operand.vmem [shape: f32[2,2,8], index: 3, kind: output, shape index: {1}]  }
   0x1 LB: > { %s4085_s13 = sadd.s32 4294967295, %s4471_s12   ;;  %p4089_p0 = scmp.ge.s32.totalorder %s4471_s12, 1  ;;  %s4471_s12 = sphi %s4502_s12, %s14_s12  }
   0x2   : > { %p140_p1 = scmp.lt.s32.totalorder %s4471_s12, 3 }
   0x4   : > { %p141_p2 = pnand %p4089_p0, %p140_p1 }
   0x5   : > { %vm183_vm0 = vcmask (!%p141_p2), 60416   ;;  %vm186_vm1 = vcmask (!%p141_p2), 57344   ;;  %v4473_v0 = vmov (!%p141_p2), 0   ;;  %p168_p3 = scmp.lt.s32.totalorder (!%p141_p2), %s4085_s13, 1  ;;  %vm1211_vm2 = vcmask (!%p141_p2), 1042432   ;;  %s4474_s18 = smov (!%p141_p2), 16  }
   0x6   : > { %144 = sbr.rel (%p141_p2) target bundleno = 766 (0x2fe), region = 28  ;;  %184 = vst.msk [vmem:[#allocation2] sm:$0xf] (!%p141_p2), %vm183_vm0, %v4473_v0  ;;  %185 = vst.msk [vmem:[#allocation2 + $0x4] sm:$0xf] (!%p141_p2), %vm183_vm0, %v4473_v0  ;;  %vm1212_vm3 = vcmask (!%p141_p2), 1046532  }
   0x7   : > { %187 = vst.msk [vmem:[#allocation2 + $0x8] sm:$0x1] (!%p141_p2), %vm186_vm1, %v4473_v0  ;;  %190 = vst.msk [vmem:[#allocation2 + $0x14] sm:$0x1] (!%p141_p2), %vm186_vm1, %v4473_v0  ;;  %vm760_vm4 = vsmask.f32 (!%p141_p2), 3328 }
   0x8   : > { %188 = vst.msk [vmem:[#allocation2 + $0xc] sm:$0xf] (!%p141_p2), %vm183_vm0, %v4473_v0  ;;  %189 = vst.msk [vmem:[#allocation2 + $0x10] sm:$0xf] (!%p141_p2), %vm183_vm0, %v4473_v0  ;;  %vm761_vm5 = vsmask.f32 (!%p141_p2), 7440 }
   0x9   : > { %191 = vst.msk [vmem:[#allocation2 + $0x18] sm:$0xf] (!%p141_p2), %vm183_vm0, %v4473_v0  ;;  %192 = vst.msk [vmem:[#allocation2 + $0x1c] sm:$0xf] (!%p141_p2), %vm183_vm0, %v4473_v0  ;;  %vm271_vm6 = vsmask.f32 (!%p141_p2), 256 }
   0xa   : > { %193 = vst.msk [vmem:[#allocation2 + $0x20] sm:$0x1] (!%p141_p2), %vm186_vm1, %v4473_v0  ;;  %196 = vst.msk [vmem:[#allocation2 + $0x2c] sm:$0x1] (!%p141_p2), %vm186_vm1, %v4473_v0  ;;  %vm272_vm8 = vsmask.f32 (!%p141_p2), 4368 }
   0xb   : > { %194 = vst.msk [vmem:[#allocation2 + $0x24] sm:$0xf] (!%p141_p2), %vm183_vm0, %v4473_v0  ;;  %195 = vst.msk [vmem:[#allocation2 + $0x28] sm:$0xf] (!%p141_p2), %vm183_vm0, %v4473_v0  ;;  %vm596_vm9 = vsmask.f32 (!%p141_p2), 7938 }
   0xc   : > { %197 = vst.msk [vmem:[#allocation2 + $0x30] sm:$0xf] (!%p141_p2), %vm183_vm0, %v4473_v0  ;;  %198 = vst.msk [vmem:[#allocation2 + $0x34] sm:$0xf] (!%p141_p2), %vm183_vm0, %v4473_v0  ;;  %s4475_s19 = smov (!%p141_p2), 8   ;;  %s4476_s20 = smov (!%p141_p2), 24  }
   0xd   : > { %199 = vst.msk [vmem:[#allocation2 + $0x38] sm:$0x1] %vm186_vm1, %v4473_v0  ;;  %202 = vst.msk [vmem:[#allocation2 + $0x44] sm:$0x1] %vm186_vm1, %v4473_v0  ;;  %s6328_s13 = smov (!%p168_p3, %s4085_s13), 1  ;;  %s4477_s21 = smov 48  }
   0xe   : > { %200 = vst.msk [vmem:[#allocation2 + $0x3c] sm:$0xf] %vm183_vm0, %v4473_v0  ;;  %201 = vst.msk [vmem:[#allocation2 + $0x40] sm:$0xf] %vm183_vm0, %v4473_v0  ;;  %s4310_s14 = sshll.u32 %s6328_s13, 7  ;;  %s4478_s22 = smov 40  }
   0xf   : > { %203 = vst.msk [vmem:[#allocation2 + $0x48] sm:$0xf] %vm183_vm0, %v4473_v0  ;;  %204 = vst.msk [vmem:[#allocation2 + $0x4c] sm:$0xf] %vm183_vm0, %v4473_v0  ;;  %s4574_s17 = scalar_lea.vmem %s6310_s0, %s4310_s14  ;;  %v713_v3 = vld [vmem:[#allocation2 + $0x4] sm:$0xf] }
  0x10   : > { %205 = vst.msk [vmem:[#allocation2 + $0x50] sm:$0x1] %vm186_vm1, %v4473_v0  ;;  %208 = vst.msk [vmem:[#allocation2 + $0x5c] sm:$0x1] %vm186_vm1, %v4473_v0  ;;  %v241_v2 = vld [vmem:[%s4574_s17 + $0x8] sm:$0xf] }
  0x11   : > { %206 = vst.msk [vmem:[#allocation2 + $0x54] sm:$0xf] %vm183_vm0, %v4473_v0  ;;  %207 = vst.msk [vmem:[#allocation2 + $0x58] sm:$0xf] %vm183_vm0, %v4473_v0  ;;  %v744_v4 = vld [vmem:[#allocation2 + $0x8] sm:$0x1] }
  0x12   : > { %209 = vst.msk [vmem:[#allocation2 + $0x60] sm:$0xf] %vm183_vm0, %v4473_v0  ;;  %210 = vst.msk [vmem:[#allocation2 + $0x64] sm:$0xf] %vm183_vm0, %v4473_v0  ;;  %v1147_v5 = vld [vmem:[#allocation2] sm:$0xe] }
  0x13   : > { %211 = vst.msk [vmem:[#allocation2 + $0x68] sm:$0x1] %vm186_vm1, %v4473_v0  ;;  %214 = vst.msk [vmem:[#allocation2 + $0x74] sm:$0x1] %vm186_vm1, %v4473_v0  ;;  %v4095_v6 = vrot.slane %v1147_v5, 9  ;;  %v1216_v7 = vrot.slane %v713_v3, 5 }
  0x14   : > { %212 = vst.msk [vmem:[#allocation2 + $0x6c] sm:$0xf] %vm183_vm0, %v4473_v0  ;;  %213 = vst.msk [vmem:[#allocation2 + $0x70] sm:$0xf] %vm183_vm0, %v4473_v0  ;;  %v1219_v8 = vrot.slane %v744_v4, 5  ;;  %v773_v10 = vshll.u32 %v713_v3, 16 }
  0x15   : > { %215 = vst.msk [vmem:[#allocation2 + $0x78] sm:$0xf] %vm183_vm0, %v4473_v0  ;;  %216 = vst.msk [vmem:[#allocation2 + $0x7c] sm:$0xf] %vm183_vm0, %v4473_v0  ;;  %v712_v9 = vld [vmem:[#allocation2] sm:$0xf] }
  0x16   : > { %217 = vst.msk [vmem:[#allocation2 + $0x80] sm:$0x1] %vm186_vm1, %v4473_v0  ;;  %220 = vst.msk [vmem:[#allocation2 + $0x8c] sm:$0x1] %vm186_vm1, %v4473_v0  ;;  %v764_v11 = vshrl.u32 %v712_v9, 16  ;;  %v767_v12 = vshll.u32 %v712_v9, 16 }
  0x17   : > { %218 = vst.msk [vmem:[#allocation2 + $0x84] sm:$0xf] %vm183_vm0, %v4473_v0  ;;  %219 = vst.msk [vmem:[#allocation2 + $0x88] sm:$0xf] %vm183_vm0, %v4473_v0  ;;  %v777_v13 = vshrl.u32 %v713_v3, 16  ;;  %v783_v14 = vshll.u32 %v744_v4, 16 }
  0x18   : > { %221 = vst.msk [vmem:[#allocation2 + $0x90] sm:$0xf] %vm183_vm0, %v4473_v0  ;;  %222 = vst.msk [vmem:[#allocation2 + $0x94] sm:$0xf] %vm183_vm0, %v4473_v0  ;;  %v242_v15 = vld [vmem:[%s4574_s17 + $0xc] sm:$0xf] }
  0x19   : > { %223 = vst.msk [vmem:[#allocation2 + $0x98] sm:$0x1] %vm186_vm1, %v4473_v0  ;;  %226 = vst.msk [vmem:[#allocation2 + $0xa4] sm:$0x1] %vm186_vm1, %v4473_v0  ;;  %v1218_v17 = vrot.slane %v1216_v7, 4  ;;  %v775_v18 = vrot.slane %v773_v10, 5 }
  0x1a   : > { %224 = vst.msk [vmem:[#allocation2 + $0x9c] sm:$0xf] %vm183_vm0, %v4473_v0  ;;  %225 = vst.msk [vmem:[#allocation2 + $0xa0] sm:$0xf] %vm183_vm0, %v4473_v0  ;;  %v292_v19 = vshrl.u32 %v241_v2, 16  ;;  %v766_v20 = vrot.slane %v764_v11, 4 }
  0x1b   : > { %227 = vst.msk [vmem:[#allocation2 + $0xa8] sm:$0xf] %vm183_vm0, %v4473_v0  ;;  %228 = vst.msk [vmem:[#allocation2 + $0xac] sm:$0xf] %vm183_vm0, %v4473_v0  ;;  %v769_v21 = vrot.slane %v767_v12, 5  ;;  %v779_v22 = vrot.slane %v777_v13, 4 }
  0x1c   : > { %229 = vst.msk [vmem:[#allocation2 + $0xb0] sm:$0x1] %vm186_vm1, %v4473_v0  ;;  %232 = vst.msk [vmem:[#allocation2 + $0xbc] sm:$0x1] %vm186_vm1, %v4473_v0  ;;  %v785_v23 = vrot.slane %v783_v14, 5  ;;  %v294_v26 = vrot.slane %v292_v19, 7 }
  0x1d   : > { %230 = vst.msk [vmem:[#allocation2 + $0xb4] sm:$0xf] %vm183_vm0, %v4473_v0  ;;  %231 = vst.msk [vmem:[#allocation2 + $0xb8] sm:$0xf] %vm183_vm0, %v4473_v0  ;;  %v239_v24 = vld [vmem:[%s4574_s17] sm:$0xf]  ;;  %v770_v31 = vor.u32 %v769_v21, %v766_v20  ;;  %v780_v32 = vor.u32 %v779_v22, %v775_v18 }
  0x1e   : > { %233 = vst.msk [vmem:[#allocation2 + $0xc0] sm:$0xf] %vm183_vm0, %v4473_v0  ;;  %234 = vst.msk [vmem:[#allocation2 + $0xc4] sm:$0xf] %vm183_vm0, %v4473_v0  ;;  %v295_v27 = vshll.u32 %v241_v2, 16  ;;  %v300_v28 = vshrl.u32 %v242_v15, 16 }
  0x1f   : > { %235 = vst.msk [vmem:[#allocation2 + $0xc8] sm:$0x1] %vm186_vm1, %v4473_v0  ;;  %238 = vst.msk [vmem:[#allocation2 + $0xd4] sm:$0x1] %vm186_vm1, %v4473_v0  ;;  %v240_v29 = vld [vmem:[%s4574_s17 + $0x4] sm:$0xf] }
  0x20   : > { %236 = vst.msk [vmem:[#allocation2 + $0xcc] sm:$0xf] %vm183_vm0, %v4473_v0  ;;  %237 = vst.msk [vmem:[#allocation2 + $0xd0] sm:$0xf] %vm183_vm0, %v4473_v0  ;;  %v303_v33 = vshll.u32 %v242_v15, 16  ;;  %v297_v37 = vor.u32 %v295_v27, %v294_v26  ;;  %v298_v38 = vrot.slane %v294_v26, 4 }
  0x21   : > { %vm4576_vm7 = vmor %vm1211_vm2, %vm1212_vm3  ;;  %v607_v35 = vld [vmem:[#allocation2 + $0x18] sm:$0xf]  ;;  %v302_v39 = vrot.slane %v300_v28, 7  ;;  %v275_v40 = vshrl.u32 %v239_v24, 16  ;;  %v243_v41 = vld [vmem:[%s4574_s17 + $0x10] sm:$0xf] }
  0x22   : > { %v1217_v16 = vsel %vm4576_vm7, %v4095_v6, %v1216_v7  ;;  %v1220_v25 = vsel %vm4576_vm7, %v1218_v17, %v1219_v8  ;;  %vm4590_vm10 = vmand %vm183_vm0, %vm596_vm9  ;;  %v771_v42 = vrot.slane %v770_v31, 4  ;;  %v781_v43 = vrot.slane %v780_v32, 4  ;;  %v244_v51 = vld [vmem:[%s4574_s17 + $0x14] sm:$0xf]  ;;  %v598_v55 = vld [vmem:[#allocation2 + $0xc] sm:$0xf] }
  0x23   : > { %v4175_v30 = vcombine.low %v1217_v16, %v1220_v25  ;;  %vm4596_vm11 = vmor %vm760_vm4, %vm761_vm5  ;;  %v278_v45 = vshll.u32 %v239_v24, 16  ;;  %v283_v46 = vshrl.u32 %v240_v29, 16  ;;  %v305_v47 = vor.u32 %v303_v33, %v302_v39  ;;  %v604_v61 = vld [vmem:[#allocation2 + $0x14] sm:$0x1]  ;;  %v611_v62 = vld [vmem:[#allocation2 + $0x20] sm:$0x1] }
  0x24   : > { %vm4604_vm12 = vmor %vm271_vm6, %vm272_vm8  ;;  %v608_v48 = vsel %vm4590_vm10, %v297_v37, %v607_v35  ;;  %v277_v49 = vrot.slane %v275_v40, 7  ;;  %v286_v50 = vshll.u32 %v240_v29, 16  ;;  %v776_v52 = vsel %vm4596_vm11, %v771_v42, %v775_v18  ;;  %v4625_v5 = vld [vmem:[%s4574_s17 + $0x18] sm:$0xf]  ;;  %v614_v8 = vld [vmem:[#allocation2 + $0x24] sm:$0xf] }
  0x25   : > { %2735 = vrot.lane.b32.xlu1 %v4175_v30, %s4474_s18  ;;  %v786_v53 = vsel %vm4596_vm11, %v781_v43, %v785_v23  ;;  %609 = vst [vmem:[#allocation2 + $0x18] sm:$0xf] %v608_v48  ;;  %v285_v54 = vrot.slane %v283_v46, 7  ;;  %v309_v56 = vshrl.u32 %v243_v41, 16  ;;  %v306_v58 = vsel %vm4604_vm12, %v298_v38, %v305_v47  ;;  %vm4619_vm13 = vmand %vm186_vm1, %vm271_vm6  ;;  %v618_v21 = vld [vmem:[#allocation2 + $0x2c] sm:$0x1] }
  0x26   : > { %v4159_v57 = vcombine.low %v776_v52, %v786_v53  ;;  %v280_v59 = vor.u32 %v278_v45, %v277_v49  ;;  %v281_v60 = vrot.slane %v277_v49, 4  ;;  %610 = vst.msk [vmem:[#allocation2 + $0x1c] sm:$0xf] %vm183_vm0, %v306_v58  ;;  %v312_v3 = vshll.u32 %v243_v41, 16  ;;  %v4641_v22 = vld [vmem:[%s4574_s17 + $0x1c] sm:$0xf] }
  0x27   : > { %v288_v0 = vor.u32 %v286_v50, %v285_v54  ;;  %v311_v2 = vrot.slane %v309_v56, 7  ;;  %v317_v4 = vshrl.u32 %v244_v51, 16  ;;  %v320_v7 = vshll.u32 %v244_v51, 16  ;;  %s4479_s23 = smov 64   ;;  %s4480_s24 = smov 32  }
  0x28   : > { %2655 = vrot.lane.b32.xlu0 %v4159_v57, %s4475_s19  ;;  %v599_v6 = vsel %vm4590_vm10, %v280_v59, %v598_v55  ;;  %v290_v9 = vrot.slane %v285_v54, 4  ;;  %v307_v10 = vrot.slane %v302_v39, 4  ;;  %v326_v17 = vshrl.u32 %v4625_v5, 16  ;;  %s4481_s25 = smov 56   ;;  %s4311_s9 = sshll.u32 %s6328_s13, 8 }
  0x29   : > { %v289_v11 = vsel %vm4604_vm12, %v281_v60, %v288_v0  ;;  %600 = vst [vmem:[#allocation2 + $0xc] sm:$0xf] %v599_v6  ;;  %v314_v12 = vor.u32 %v312_v3, %v311_v2  ;;  %v315_v13 = vrot.slane %v311_v2, 4  ;;  %v319_v14 = vrot.slane %v317_v4, 7  ;;  %s6131_s14 = scalar_lea.vmem %s6312_s2, %s4311_s9  ;;  %s4094_s15 = sshll.u32 %s6328_s13, 1 }
  0x2a   : > { %601 = vst.msk [vmem:[#allocation2 + $0x10] sm:$0xf] %vm183_vm0, %v289_v11  ;;  %v605_v15 = vsel %vm4619_vm13, %v290_v9, %v604_v61  ;;  %v612_v16 = vsel %vm4619_vm13, %v307_v10, %v611_v62  ;;  %v329_v23 = vshll.u32 %v4625_v5, 16  ;;  %v334_v37 = vshrl.u32 %v4641_v22, 16 }
  0x2b   : > { %v322_v18 = vor.u32 %v320_v7, %v319_v14  ;;  %v615_v19 = vsel %vm4590_vm10, %v314_v12, %v614_v8  ;;  %606 = vst [vmem:[#allocation2 + $0x14] sm:$0x1] %v605_v15  ;;  %613 = vst [vmem:[#allocation2 + $0x20] sm:$0x1] %v612_v16  ;;  %v324_v20 = vrot.slane %v319_v14, 4  ;;  %vm3279_vm14 = vcmask 64512  }
  0x2c   : > { %v1328_v24 = vld [vmem:[#allocation2 + $0x18] sm:$0xf]  ;;  %616 = vst [vmem:[#allocation2 + $0x24] sm:$0xf] %v615_v19  ;;  %vm3328_vm15 = vcmask 130048   ;;  %vm3361_vm1 = vcmask 195584  }
  0x2d   : > { %v4644_v25 = vld [vmem:[#allocation2 + $0x18] sm:$0xf]  ;;  %v1399_v27 = vshrl.u32 %v1328_v24, 16  ;;  %v1402_v28 = vshll.u32 %v1328_v24, 16  ;;  %v323_v29 = vsel %vm4604_vm12, %v315_v13, %v322_v18  ;;  %v4649_v31 = vld [vmem:[#allocation2 + $0x1c] sm:$0xf]  ;;  %v619_v35 = vsel %vm4619_vm13, %v324_v20, %v618_v21 }
  0x2e   : > { %v2367_v26 = vld [vmem:[#allocation2 + $0x18] sm:$0xe]  ;;  %v1984_v30 = vshrl.u32 %v4644_v25, 16  ;;  %617 = vst.msk [vmem:[#allocation2 + $0x28] sm:$0xf] %vm183_vm0, %v323_v29  ;;  %v1987_v33 = vshll.u32 %v4644_v25, 16  ;;  %v4192_v38 = vcombine.low %v1328_v24, %v4649_v31 }
  0x2f   : > { %v4652_v32 = vld [vmem:[#allocation2 + $0x1c] sm:$0xf]  ;;  %v4659_v39 = vrot.slane %v1399_v27, 4  ;;  %v4661_v40 = vrot.slane %v1402_v28, 5  ;;  %v4127_v41 = vrot.slane %v2367_v26, 9  ;;  %v1412_v42 = vshrl.u32 %v4649_v31, 16 }
  0x30   : > { %620 = vst [vmem:[#allocation2 + $0x2c] sm:$0x1] %v619_v35  ;;  %v1326_v43 = vld [vmem:[#allocation2 + $0xc] sm:$0xf]  ;;  %v4664_v45 = vrot.slane %v1984_v30, 4  ;;  %v4666_v46 = vrot.slane %v1987_v33, 5  ;;  %2833 = vrot.lane.b32.xlu1 %v4192_v38, %s4476_s20  ;;  %v4239_v51 = vcombine.low %v4644_v25, %v4652_v32 }
  0x31   : > { %v1997_v47 = vshrl.u32 %v4652_v32, 16  ;;  %v4670_v48 = vld [vmem:[#allocation2 + $0x10] sm:$0xf]  ;;  %v1375_v49 = vshrl.u32 %v1326_v43, 16  ;;  %v1378_v50 = vshll.u32 %v1326_v43, 16  ;;  %v1405_v57 = vor.u32 %v4661_v40, %v4659_v39 }
  0x32   : > { %v1758_v52 = vld [vmem:[#allocation2 + $0xc] sm:$0xe]  ;;  %v4191_v53 = vcombine.low %v1326_v43, %v4670_v48  ;;  %v4675_v54 = vld [vmem:[#allocation2 + $0x14] sm:$0x1]  ;;  %v1824_v56 = vrot.slane %v4670_v48, 5  ;;  %v2433_v62 = vrot.slane %v4652_v32, 5  ;;  %v1990_v14 = vor.u32 %v4666_v46, %v4664_v45 }
  0x33   : > { %v4111_v55 = vrot.slane %v1758_v52, 9  ;;  %v4680_v58 = vrot.slane %v1375_v49, 4  ;;  %v4682_v59 = vrot.slane %v1378_v50, 5  ;;  %v1937_v60 = vld [vmem:[#allocation2 + $0x24] sm:$0xf]  ;;  %v1827_v61 = vrot.slane %v4675_v54, 5 }
  0x34   : > { %v1759_v0 = vld [vmem:[#allocation2 + $0x18] sm:$0xe]  ;;  %v1388_v2 = vshrl.u32 %v4670_v48, 16  ;;  %2831 = vrot.lane.b32.xlu0 %v4191_v53, %s4476_s20  ;;  %v2008_v3 = vshrl.u32 %v1937_v60, 16  ;;  %v2011_v4 = vshll.u32 %v1937_v60, 16  ;;  %v1826_v6 = vrot.slane %v1824_v56, 4 }
  0x35   : > { %v4688_v7 = vld [vmem:[#allocation2 + $0x10] sm:$0xf]  ;;  %v1938_v8 = vld [vmem:[#allocation2 + $0x28] sm:$0xf]  ;;  %v1825_v9 = vsel %vm4576_vm7, %v4111_v55, %v1824_v56  ;;  %v4692_v10 = vld [vmem:[#allocation2 + $0x14] sm:$0x1]  ;;  %v2434_v12 = vsel %vm4576_vm7, %v4127_v41, %v2433_v62  ;;  %v1381_v13 = vor.u32 %v4682_v59, %v4680_v58 }
  0x36   : > { %v1148_v11 = vld [vmem:[#allocation2 + $0xc] sm:$0xe]  ;;  %v2010_v15 = vrot.slane %v2008_v3, 4  ;;  %v2013_v16 = vrot.slane %v2011_v4, 5  ;;  %v2021_v18 = vshrl.u32 %v1938_v8, 16  ;;  %v4240_v19 = vcombine.low %v1937_v60, %v1938_v8 }
  0x37   : > { %v4700_v20 = vld [vmem:[#allocation2 + $0x20] sm:$0x1]  ;;  %v1828_v21 = vsel %vm4576_vm7, %v1826_v6, %v1827_v61  ;;  %v4096_v24 = vrot.slane %v1148_v11, 9  ;;  %v1223_v25 = vrot.slane %v4688_v7, 5  ;;  %v1226_v26 = vrot.slane %v4692_v10, 5 }
  0x38   : > { %v1359_v27 = vld [vmem:[#allocation2 + $0x20] sm:$0x1]  ;;  %3089 = vrot.lane.b32.xlu1 %v4240_v19, %s4477_s21  ;;  %3087 = vrot.lane.b32.xlu0 %v4239_v51, %s4477_s21  ;;  %v4223_v28 = vcombine.low %v1825_v9, %v1828_v21  ;;  %v2435_v29 = vrot.slane %v2433_v62, 4  ;;  %v2436_v30 = vrot.slane %v4700_v20, 5  ;;  %v4112_v33 = vrot.slane %v1759_v0, 9 }
  0x39   : > { %v1968_v35 = vld [vmem:[#allocation2 + $0x2c] sm:$0x1]  ;;  %v1224_v38 = vsel %vm4576_vm7, %v4096_v24, %v1223_v25  ;;  %v1225_v39 = vrot.slane %v1223_v25, 4  ;;  %v1831_v40 = vrot.slane %v4649_v31, 5  ;;  %v1834_v41 = vrot.slane %v1359_v27, 5 }
  0x3a   : > { %v2368_v43 = vld [vmem:[#allocation2 + $0x24] sm:$0xe]  ;;  %v2437_v49 = vsel %vm4576_vm7, %v2435_v29, %v2436_v30  ;;  %v2440_v52 = vrot.slane %v1938_v8, 5  ;;  %v2443_v51 = vrot.slane %v1968_v35, 5  ;;  %v1406_v3 = vrot.slane %v1405_v57, 4 }
  0x3b   : > { %v4128_v50 = vrot.slane %v2368_v43, 9  ;;  %v1227_v53 = vsel %vm4576_vm7, %v1225_v39, %v1226_v26  ;;  %v4271_v55 = vcombine.low %v2434_v12, %v2437_v49  ;;  %v1832_v56 = vsel %vm4576_vm7, %v4112_v33, %v1831_v40  ;;  %v714_v12 = vld [vmem:[#allocation2 + $0xc] sm:$0xf]  ;;  %v4736_v43 = vld [vmem:[#allocation2 + $0x1c] sm:$0xf] }
  0x3c   : > { %v1833_v60 = vrot.slane %v1831_v40, 4  ;;  %2991 = vrot.lane.b32.xlu0 %v4223_v28, %s4478_s22  ;;  %v4176_v61 = vcombine.low %v1224_v38, %v1227_v53  ;;  %v2442_v0 = vrot.slane %v2440_v52, 4  ;;  %v1408_v6 = vshll.u32 %v4649_v31, 16  ;;  %v1149_v46 = vld [vmem:[#allocation2 + $0x18] sm:$0xe] }
  0x3d   : > { %v2441_v62 = vsel %vm4576_vm7, %v4128_v50, %v2440_v52  ;;  %v1414_v9 = vrot.slane %v1412_v42, 4  ;;  %v1418_v11 = vshll.u32 %v1359_v27, 16  ;;  %v2014_v24 = vor.u32 %v2013_v16, %v2010_v15  ;;  %v716_v15 = vld [vmem:[#allocation2 + $0x18] sm:$0xf] }
  0x3e   : > { %v1835_v4 = vsel %vm4576_vm7, %v1833_v60, %v1834_v41  ;;  %2737 = vrot.lane.b32.xlu1 %v4176_v61, %s4474_s18  ;;  %v2444_v21 = vsel %vm4576_vm7, %v2442_v0, %v2443_v51  ;;  %v2017_v25 = vshll.u32 %v1938_v8, 16  ;;  %v1410_v57 = vrot.slane %v1408_v6, 5  ;;  %v4743_v0 = vld [vmem:[#allocation2 + $0x20] sm:$0x1] }
  0x3f   : > { %v4224_v19 = vcombine.low %v1832_v56, %v1835_v4  ;;  %v4272_v26 = vcombine.low %v2441_v62, %v2444_v21  ;;  %v1420_v28 = vrot.slane %v1418_v11, 5  ;;  %v2023_v29 = vrot.slane %v2021_v18, 4 }
  0x40   : > { %3247 = vrot.lane.b32.xlu0 %v4271_v55, %s4479_s23  ;;  %v2015_v30 = vrot.slane %v2014_v24, 4  ;;  %v2019_v31 = vrot.slane %v2017_v25, 5  ;;  %v2027_v42 = vshll.u32 %v1968_v35, 16  ;;  %v788_v27 = vshrl.u32 %v714_v12, 16 }
  0x41   : > { %v1411_v33 = vsel %vm4596_vm11, %v1406_v3, %v1410_v57  ;;  %v1415_v38 = vor.u32 %v1414_v9, %v1410_v57  ;;  %v791_v39 = vshll.u32 %v714_v12, 16  ;;  %v797_v40 = vshll.u32 %v4688_v7, 16  ;;  %v718_v57 = vld [vmem:[#allocation2 + $0x24] sm:$0xf] }
  0x42   : > { %2993 = vrot.lane.b32.xlu1 %v4224_v19, %s4478_s22  ;;  %v2020_v8 = vsel %vm4596_vm11, %v2015_v30, %v2019_v31  ;;  %v2024_v16 = vor.u32 %v2023_v29, %v2019_v31  ;;  %v2029_v18 = vrot.slane %v2027_v42, 5  ;;  %v790_v41 = vrot.slane %v788_v27, 4 }
  0x43   : > { %v1416_v35 = vrot.slane %v1415_v38, 4  ;;  %v793_v49 = vrot.slane %v791_v39, 5  ;;  %v799_v50 = vrot.slane %v797_v40, 5  ;;  %v801_v52 = vshrl.u32 %v4688_v7, 16 }
  0x44   : > { %3249 = vrot.lane.b32.xlu0 %v4272_v26, %s4479_s23  ;;  %v2025_v51 = vrot.slane %v2024_v16, 4  ;;  %v807_v53 = vshll.u32 %v4692_v10, 16  ;;  %v812_v55 = vshrl.u32 %v716_v15, 16  ;;  %v815_v56 = vshll.u32 %v716_v15, 16 }
  0x45   : > { %v1421_v60 = vsel %vm4596_vm11, %v1416_v35, %v1420_v28  ;;  %v794_v61 = vor.u32 %v793_v49, %v790_v41  ;;  %v803_v62 = vrot.slane %v801_v52, 4  ;;  %v821_v3 = vshll.u32 %v4736_v43, 16 }
  0x46   : > { %v4208_v4 = vcombine.low %v1411_v33, %v1421_v60  ;;  %v2030_v7 = vsel %vm4596_vm11, %v2025_v51, %v2029_v18  ;;  %v809_v6 = vrot.slane %v807_v53, 5  ;;  %v814_v9 = vrot.slane %v812_v55, 4  ;;  %v747_v18 = vld [vmem:[#allocation2 + $0x2c] sm:$0x1] }
  0x47   : > { %v4256_v11 = vcombine.low %v2020_v8, %v2030_v7  ;;  %v795_v12 = vrot.slane %v794_v61, 4  ;;  %v804_v10 = vor.u32 %v803_v62, %v799_v50  ;;  %v817_v19 = vrot.slane %v815_v56, 5  ;;  %v1150_v7 = vld [vmem:[#allocation2 + $0x24] sm:$0xe] }
  0x48   : > { %2913 = vrot.lane.b32.xlu1 %v4208_v4, %s4480_s24  ;;  %v823_v21 = vrot.slane %v821_v3, 5  ;;  %v825_v24 = vshrl.u32 %v4736_v43, 16  ;;  %v831_v25 = vshll.u32 %v4743_v0, 16  ;;  %v1382_v26 = vrot.slane %v1381_v13, 4  ;;  %v719_v13 = vld [vmem:[#allocation2 + $0x28] sm:$0xf] }
  0x49   : > { %v800_v28 = vsel %vm4596_vm11, %v795_v12, %v799_v50  ;;  %v805_v29 = vrot.slane %v804_v10, 4  ;;  %v818_v30 = vor.u32 %v817_v19, %v814_v9  ;;  %v1384_v31 = vshll.u32 %v4670_v48, 16 }
  0x4a   : > { %v827_v42 = vrot.slane %v825_v24, 4  ;;  %v833_v27 = vrot.slane %v831_v25, 5  ;;  %v1390_v33 = vrot.slane %v1388_v2, 4  ;;  %v1394_v38 = vshll.u32 %v4675_v54, 16 }
  0x4b   : > { %v810_v39 = vsel %vm4596_vm11, %v805_v29, %v809_v6  ;;  %v819_v58 = vrot.slane %v818_v30, 4  ;;  %v1386_v59 = vrot.slane %v1384_v31, 5  ;;  %v836_v40 = vshrl.u32 %v718_v57, 16 }
  0x4c   : > { %3169 = vrot.lane.b32.xlu1 %v4256_v11, %s4481_s25  ;;  %v4160_v15 = vcombine.low %v800_v28, %v810_v39  ;;  %v828_v8 = vor.u32 %v827_v42, %v823_v21  ;;  %v1396_v16 = vrot.slane %v1394_v38, 5  ;;  %v839_v41 = vshll.u32 %v718_v57, 16 }
  0x4d   : > { %v824_v48 = vsel %vm4596_vm11, %v819_v58, %v823_v21  ;;  %v1387_v54 = vsel %vm4596_vm11, %v1382_v26, %v1386_v59  ;;  %v1391_v2 = vor.u32 %v1390_v33, %v1386_v59  ;;  %v838_v35 = vrot.slane %v836_v40, 4  ;;  %v4797_v40 = vld [vmem:[#allocation2 + $0x24] sm:$0xf] }
  0x4e   : > { %2657 = vrot.lane.b32.xlu0 %v4160_v15, %s4475_s19  ;;  %v829_v49 = vrot.slane %v828_v8, 4  ;;  %v841_v50 = vrot.slane %v839_v41, 5  ;;  %v845_v52 = vshll.u32 %v719_v13, 16  ;;  %v849_v51 = vshrl.u32 %v719_v13, 16  ;;  %v4799_v15 = vld [vmem:[#allocation2 + $0x28] sm:$0xf] }
  0x4f   : > { %v1392_v53 = vrot.slane %v1391_v2, 4  ;;  %v855_v55 = vshll.u32 %v747_v18, 16  ;;  %v1991_v56 = vrot.slane %v1990_v14, 4  ;;  %v1993_v60 = vshll.u32 %v4652_v32, 16 }
  0x50   : > { %v834_v61 = vsel %vm4596_vm11, %v829_v49, %v833_v27  ;;  %v842_v62 = vor.u32 %v841_v50, %v838_v35  ;;  %v847_v3 = vrot.slane %v845_v52, 5  ;;  %v851_v4 = vrot.slane %v849_v51, 4  ;;  %v1760_v52 = vld [vmem:[#allocation2 + $0x24] sm:$0xe] }
  0x51   : > { %v4161_v6 = vcombine.low %v824_v48, %v834_v61  ;;  %v1397_v9 = vsel %vm4596_vm11, %v1392_v53, %v1396_v16  ;;  %v857_v11 = vrot.slane %v855_v55, 5  ;;  %v1995_v12 = vrot.slane %v1993_v60, 5  ;;  %v625_v53 = vld [vmem:[#allocation2 + $0x38] sm:$0x1] }
  0x52   : > { %v4207_v10 = vcombine.low %v1387_v54, %v1397_v9  ;;  %v843_v19 = vrot.slane %v842_v62, 4  ;;  %v852_v21 = vor.u32 %v851_v4, %v847_v3  ;;  %v1999_v45 = vrot.slane %v1997_v47, 4  ;;  %v1360_v54 = vld [vmem:[#allocation2 + $0x2c] sm:$0x1]  ;;  %v247_v62 = vld [vmem:[%s4574_s17 + $0x20] sm:$0xf] }
  0x53   : > { %2659 = vrot.lane.b32.xlu1 %v4161_v6, %s4475_s19  ;;  %v1996_v14 = vsel %vm4596_vm11, %v1991_v56, %v1995_v12  ;;  %v2003_v24 = vshll.u32 %v4700_v20, 16  ;;  %v4098_v25 = vrot.slane %v1150_v7, 9  ;;  %v1237_v26 = vrot.slane %v719_v13, 5 }
  0x54   : > { %2911 = vrot.lane.b32.xlu0 %v4207_v10, %s4480_s24  ;;  %v848_v57 = vsel %vm4596_vm11, %v843_v19, %v847_v3  ;;  %v853_v28 = vrot.slane %v852_v21, 4  ;;  %v2000_v29 = vor.u32 %v1999_v45, %v1995_v12  ;;  %v1240_v30 = vrot.slane %v747_v18, 5  ;;  %v621_v18 = vld [vmem:[#allocation2 + $0x30] sm:$0xf]  ;;  %v248_v19 = vld [vmem:[%s4574_s17 + $0x24] sm:$0xf] }
  0x55   : > { %v2005_v32 = vrot.slane %v2003_v24, 5  ;;  %v1238_v47 = vsel %vm4576_vm7, %v4098_v25, %v1237_v26  ;;  %v1239_v31 = vrot.slane %v1237_v26, 4  ;;  %v4097_v42 = vrot.slane %v1149_v46, 9  ;;  %v4830_v21 = vld [vmem:[%s4574_s17 + $0x28] sm:$0xf] }
  0x56   : > { %v858_v27 = vsel %vm4596_vm11, %v853_v28, %v857_v11  ;;  %v2001_v20 = vrot.slane %v2000_v29, 4  ;;  %v1230_v33 = vrot.slane %v4736_v43, 5  ;;  %v1233_v38 = vrot.slane %v4743_v0, 5  ;;  %v4420_v29 = vld [vmem:[%s6311_s1] sm:$0xff]  }
  0x57   : > { %v4162_v39 = vcombine.low %v848_v57, %v858_v27  ;;  %v1241_v58 = vsel %vm4576_vm7, %v1239_v31, %v1240_v30  ;;  %v328_v59 = vrot.slane %v326_v17, 7  ;;  %v336_v13 = vrot.slane %v334_v37, 7  ;;  %4333 = vmatprep.subr.bf16.mxu0 %v4420_v29  ;;  %4375 = vmatprep.subr.bf16.mxu1 %v4420_v29 }
  0x58   : > { %v2006_v8 = vsel %vm4596_vm11, %v2001_v20, %v2005_v32  ;;  %v4178_v43 = vcombine.low %v1238_v47, %v1241_v58  ;;  %v1231_v0 = vsel %vm4576_vm7, %v4097_v42, %v1230_v33  ;;  %v1232_v16 = vrot.slane %v1230_v33, 4  ;;  %v628_v33 = vld [vmem:[#allocation2 + $0x3c] sm:$0xf]  ;;  %4334 = vmatpush3.bf16.msra.mxu0 %v4420_v29  ;;  %4380 = vmatpush3.bf16.msra.mxu1 %v4420_v29 }
  0x59   : > { %2661 = vrot.lane.b32.xlu1 %v4162_v39, %s4475_s19  ;;  %v4255_v41 = vcombine.low %v1996_v14, %v2006_v8  ;;  %v331_v17 = vor.u32 %v329_v23, %v328_v59  ;;  %v332_v37 = vrot.slane %v328_v59, 4  ;;  %v337_v48 = vshll.u32 %v4641_v22, 16 }
  0x5a   : > { %v1234_v2 = vsel %vm4576_vm7, %v1232_v16, %v1233_v38  ;;  %v1423_v35 = vshrl.u32 %v4797_v40, 16  ;;  %v1426_v49 = vshll.u32 %v4797_v40, 16  ;;  %v1436_v50 = vshrl.u32 %v4799_v15, 16 }
  0x5b   : > { %3167 = vrot.lane.b32.xlu0 %v4255_v41, %s4481_s25  ;;  %v4177_v51 = vcombine.low %v1231_v0, %v1234_v2  ;;  %v339_v5 = vor.u32 %v337_v48, %v336_v13  ;;  %v622_v23 = vsel %vm4590_vm10, %v331_v17, %v621_v18  ;;  %v4193_v22 = vcombine.low %v4797_v40, %v4799_v15  ;;  %v4421_v41 = vld [vmem:[%s6311_s1 + $0x8] sm:$0xff]  }
  0x5c   : > { %623 = vst [vmem:[#allocation2 + $0x30] sm:$0xf] %v622_v23  ;;  %v1425_v55 = vrot.slane %v1423_v35, 4  ;;  %v1428_v56 = vrot.slane %v1426_v49, 5  ;;  %v341_v60 = vrot.slane %v336_v13, 4  ;;  %v1432_v61 = vshll.u32 %v4799_v15, 16  ;;  %4335 = vmatprep.subr.bf16.mxu0 %v4421_v41  ;;  %4376 = vmatprep.subr.bf16.mxu1 %v4421_v41 }
  0x5d   : > { %2741 = vrot.lane.b32.xlu1 %v4178_v43, %s4474_s18  ;;  %v340_v3 = vsel %vm4604_vm12, %v332_v37, %v339_v5  ;;  %v1438_v4 = vrot.slane %v1436_v50, 4  ;;  %v1442_v7 = vshll.u32 %v1360_v54, 16  ;;  %v4113_v6 = vrot.slane %v1760_v52, 9  ;;  %4336 = vmatpush3.bf16.msra.mxu0 %v4421_v41 }
  0x5e   : > { %624 = vst.msk [vmem:[#allocation2 + $0x34] sm:$0xf] %vm183_vm0, %v340_v3  ;;  %v626_v9 = vsel %vm4619_vm13, %v341_v60, %v625_v53  ;;  %v1429_v11 = vor.u32 %v1428_v56, %v1425_v55  ;;  %v1434_v12 = vrot.slane %v1432_v61, 5  ;;  %v1838_v10 = vrot.slane %v4799_v15, 5  ;;  %4381 = vmatpush3.bf16.msra.mxu1 %v4421_v41 }
  0x5f   : > { %2739 = vrot.lane.b32.xlu0 %v4177_v51, %s4474_s18  ;;  %627 = vst [vmem:[#allocation2 + $0x38] sm:$0x1] %v626_v9  ;;  %v1444_v45 = vrot.slane %v1442_v7, 5  ;;  %v1841_v46 = vrot.slane %v1360_v54, 5  ;;  %v343_v14 = vshrl.u32 %v247_v62, 16  ;;  %v346_v24 = vshll.u32 %v247_v62, 16 }
  0x60   : > { %v1430_v25 = vrot.slane %v1429_v11, 4  ;;  %v1439_v26 = vor.u32 %v1438_v4, %v1434_v12  ;;  %v4835_v57 = vsel %vm4576_vm7, %v4113_v6, %v1838_v10  ;;  %v1840_v28 = vrot.slane %v1838_v10, 4  ;;  %v632_v9 = vld [vmem:[#allocation2 + $0x44] sm:$0x1] }
  0x61   : > { %v345_v30 = vrot.slane %v343_v14, 7  ;;  %v351_v32 = vshrl.u32 %v248_v19, 16  ;;  %v354_v47 = vshll.u32 %v248_v19, 16  ;;  %v360_v31 = vshrl.u32 %v4830_v21, 16 }
  0x62   : > { %v1435_v42 = vsel %vm4596_vm11, %v1430_v25, %v1434_v12  ;;  %v1440_v27 = vrot.slane %v1439_v26, 4  ;;  %v1842_v20 = vsel %vm4576_vm7, %v1840_v28, %v1841_v46  ;;  %v363_v38 = vshll.u32 %v4830_v21, 16 }
  0x63   : > { %v1332_v39 = vld [vmem:[#allocation2 + $0x30] sm:$0xf]  ;;  %2835 = vrot.lane.b32.xlu0 %v4193_v22, %s4476_s20  ;;  %v4225_v59 = vcombine.low %v4835_v57, %v1842_v20  ;;  %v348_v13 = vor.u32 %v346_v24, %v345_v30  ;;  %v349_v40 = vrot.slane %v345_v30, 4  ;;  %v353_v15 = vrot.slane %v351_v32, 7 }
  0x64   : > { %v1761_v58 = vld [vmem:[#allocation2 + $0x30] sm:$0xe]  ;;  %v1447_v8 = vshrl.u32 %v1332_v39, 16  ;;  %v1450_v43 = vshll.u32 %v1332_v39, 16  ;;  %v1445_v0 = vsel %vm4596_vm11, %v1440_v27, %v1444_v45  ;;  %vm3394_vm2 = vcmask 261120  }
  0x65   : > { %v4114_v16 = vrot.slane %v1761_v58, 9  ;;  %v1939_v18 = vld [vmem:[#allocation2 + $0x30] sm:$0xf]  ;;  %v1333_v17 = vld [vmem:[#allocation2 + $0x34] sm:$0xf]  ;;  %v4209_v37 = vcombine.low %v1435_v42, %v1445_v0  ;;  %v356_v48 = vor.u32 %v354_v47, %v353_v15  ;;  %v629_v54 = vsel %vm4590_vm10, %v348_v13, %v628_v33 }
  0x66   : > { %v2032_v2 = vshrl.u32 %v1939_v18, 16  ;;  %v1449_v35 = vrot.slane %v1447_v8, 4  ;;  %v1452_v49 = vrot.slane %v1450_v43, 5  ;;  %v1460_v50 = vshrl.u32 %v1333_v17, 16  ;;  %v1361_v51 = vld [vmem:[#allocation2 + $0x38] sm:$0x1] }
  0x67   : > { %v4194_v52 = vcombine.low %v1332_v39, %v1333_v17  ;;  %630 = vst [vmem:[#allocation2 + $0x3c] sm:$0xf] %v629_v54  ;;  %v1456_v5 = vshll.u32 %v1333_v17, 16  ;;  %v1466_v23 = vshll.u32 %v1361_v51, 16  ;;  %2915 = vrot.lane.b32.xlu0 %v4209_v37, %s4480_s24  ;;  %v1845_v22 = vrot.slane %v1333_v17, 5  ;;  %v4424_v37 = vld [vmem:[%s6311_s1 + $0x10] sm:$0xff]  }
  0x68   : > { %v1848_v53 = vrot.slane %v1361_v51, 5  ;;  %v4856_v55 = vld [vmem:[#allocation2 + $0x34] sm:$0xf]  ;;  %v1453_v56 = vor.u32 %v1452_v49, %v1449_v35  ;;  %v1462_v60 = vrot.slane %v1460_v50, 4  ;;  %v357_v61 = vsel %vm4604_vm12, %v349_v40, %v356_v48  ;;  %v4868_v45 = vld [vmem:[#allocation2 + $0x38] sm:$0x1]  ;;  %4337 = vmatprep.subr.bf16.mxu0 %v4424_v37  ;;  %4377 = vmatprep.subr.bf16.mxu1 %v4424_v37 }
  0x69   : > { %2837 = vrot.lane.b32.xlu1 %v4194_v52, %s4476_s20  ;;  %v2034_v62 = vrot.slane %v2032_v2, 4  ;;  %v1458_v3 = vrot.slane %v1456_v5, 5  ;;  %v1468_v4 = vrot.slane %v1466_v23, 5  ;;  %v4863_v7 = vsel %vm4576_vm7, %v4114_v16, %v1845_v22  ;;  %631 = vst.msk [vmem:[#allocation2 + $0x40] sm:$0xf] %vm183_vm0, %v357_v61  ;;  %4338 = vmatpush3.bf16.msra.mxu0 %v4424_v37 }
  0x6a   : > { %v1847_v6 = vrot.slane %v1845_v22, 4  ;;  %v1454_v11 = vrot.slane %v1453_v56, 4  ;;  %v2035_v12 = vshll.u32 %v1939_v18, 16  ;;  %v2045_v10 = vshrl.u32 %v4856_v55, 16  ;;  %v4874_v26 = vld [vmem:[#allocation2 + $0x30] sm:$0xf]  ;;  %4382 = vmatpush3.bf16.msra.mxu1 %v4424_v37 }
  0x6b   : > { %v4241_v19 = vcombine.low %v1939_v18, %v4856_v55  ;;  %v1463_v46 = vor.u32 %v1462_v60, %v1458_v3  ;;  %2995 = vrot.lane.b32.xlu0 %v4225_v59, %s4478_s22  ;;  %v358_v24 = vrot.slane %v353_v15, 4  ;;  %v2041_v25 = vshll.u32 %v4856_v55, 16  ;;  %v4890_v8 = vld [vmem:[#allocation2 + $0x34] sm:$0xf]  ;;  %v4905_v52 = vld [vmem:[#allocation2 + $0x38] sm:$0x1] }
  0x6c   : > { %v1849_v14 = vsel %vm4576_vm7, %v1847_v6, %v1848_v53  ;;  %v1459_v57 = vsel %vm4596_vm11, %v1454_v11, %v1458_v3  ;;  %v2037_v29 = vrot.slane %v2035_v12, 5  ;;  %v2047_v30 = vrot.slane %v2045_v10, 4  ;;  %v2369_v23 = vld [vmem:[#allocation2 + $0x30] sm:$0xe] }
  0x6d   : > { %v4226_v28 = vcombine.low %v4863_v7, %v1849_v14  ;;  %v1464_v32 = vrot.slane %v1463_v46, 4  ;;  %v633_v42 = vsel %vm4619_vm13, %v358_v24, %v632_v9  ;;  %v2043_v27 = vrot.slane %v2041_v25, 5 }
  0x6e   : > { %v4879_v47 = vld [vmem:[#allocation2 + $0x3c] sm:$0xf]  ;;  %v2051_v20 = vshll.u32 %v4868_v45, 16  ;;  %634 = vst [vmem:[#allocation2 + $0x44] sm:$0x1] %v633_v42  ;;  %v2038_v58 = vor.u32 %v2037_v29, %v2034_v62  ;;  %v860_v59 = vshrl.u32 %v4874_v26, 16 }
  0x6f   : > { %v2056_v33 = vshrl.u32 %v4879_v47, 16  ;;  %v2059_v39 = vshll.u32 %v4879_v47, 16  ;;  %v1469_v13 = vsel %vm4596_vm11, %v1464_v32, %v1468_v4  ;;  %3091 = vrot.lane.b32.xlu0 %v4241_v19, %s4477_s21  ;;  %v2048_v40 = vor.u32 %v2047_v30, %v2043_v27  ;;  %v4911_v7 = vld [vmem:[#allocation2 + $0x3c] sm:$0xf] }
  0x70   : > { %v2053_v15 = vrot.slane %v2051_v20, 5  ;;  %v863_v43 = vshll.u32 %v4874_v26, 16  ;;  %v4210_v0 = vcombine.low %v1459_v57, %v1469_v13  ;;  %v4893_v16 = vld [vmem:[#allocation2 + $0x40] sm:$0xf]  ;;  %v2039_v17 = vrot.slane %v2038_v58, 4 }
  0x71   : > { %v2058_v18 = vrot.slane %v2056_v33, 4  ;;  %v2061_v41 = vrot.slane %v2059_v39, 5  ;;  %v2069_v48 = vshrl.u32 %v4893_v16, 16  ;;  %v4242_v54 = vcombine.low %v4879_v47, %v4893_v16  ;;  %v4921_v25 = vld [vmem:[#allocation2 + $0x40] sm:$0xf] }
  0x72   : > { %v2065_v2 = vshll.u32 %v4893_v16, 16  ;;  %v2049_v35 = vrot.slane %v2048_v40, 4  ;;  %2917 = vrot.lane.b32.xlu1 %v4210_v0, %s4480_s24  ;;  %v2044_v50 = vsel %vm4596_vm11, %v2039_v17, %v2043_v27  ;;  %v862_v51 = vrot.slane %v860_v59, 4  ;;  %v1152_v37 = vld [vmem:[#allocation2 + $0x3c] sm:$0xe] }
  0x73   : > { %v2062_v49 = vor.u32 %v2061_v41, %v2058_v18  ;;  %v865_v5 = vrot.slane %v863_v43, 5  ;;  %v2071_v53 = vrot.slane %v2069_v48, 4  ;;  %v869_v60 = vshll.u32 %v4890_v8, 16  ;;  %v4425_v43 = vld [vmem:[%s6311_s1 + $0x18] sm:$0xff]  }
  0x74   : > { %v2067_v22 = vrot.slane %v2065_v2, 5  ;;  %v2054_v56 = vsel %vm4596_vm11, %v2049_v35, %v2053_v15  ;;  %v873_v4 = vshrl.u32 %v4890_v8, 16  ;;  %v879_v12 = vshll.u32 %v4905_v52, 16  ;;  %v2370_v15 = vld [vmem:[#allocation2 + $0x3c] sm:$0xe]  ;;  %4339 = vmatprep.subr.bf16.mxu0 %v4425_v43  ;;  %4378 = vmatprep.subr.bf16.mxu1 %v4425_v43 }
  0x75   : > { %v2063_v61 = vrot.slane %v2062_v49, 4  ;;  %v4257_v62 = vcombine.low %v2044_v50, %v2054_v56  ;;  %v866_v3 = vor.u32 %v865_v5, %v862_v51  ;;  %v4913_v6 = vld [vmem:[#allocation2 + $0x44] sm:$0x1]  ;;  %v871_v11 = vrot.slane %v869_v60, 5  ;;  %4340 = vmatpush3.bf16.msra.mxu0 %v4425_v43  ;;  %4383 = vmatpush3.bf16.msra.mxu1 %v4425_v43  ;;  %v1762_v21 = vld [vmem:[#allocation2 + $0x3c] sm:$0xe] }
  0x76   : > { %v2072_v9 = vor.u32 %v2071_v53, %v2067_v22  ;;  %v4129_v10 = vrot.slane %v2369_v23, 9  ;;  %2997 = vrot.lane.b32.xlu1 %v4226_v28, %s4478_s22  ;;  %v2075_v46 = vshll.u32 %v4913_v6, 16  ;;  %v875_v24 = vrot.slane %v873_v4, 4  ;;  %v749_v39 = vld [vmem:[#allocation2 + $0x44] sm:$0x1] }
  0x77   : > { %v2068_v19 = vsel %vm4596_vm11, %v2063_v61, %v2067_v22  ;;  %3171 = vrot.lane.b32.xlu0 %v4257_v62, %s4481_s25  ;;  %v867_v14 = vrot.slane %v866_v3, 4  ;;  %v881_v29 = vrot.slane %v879_v12, 5  ;;  %v2447_v30 = vrot.slane %v4856_v55, 5  ;;  %v1151_v23 = vld [vmem:[#allocation2 + $0x30] sm:$0xe] }
  0x78   : > { %v2073_v57 = vrot.slane %v2072_v9, 4  ;;  %v2450_v32 = vrot.slane %v4868_v45, 5  ;;  %v2077_v47 = vrot.slane %v2075_v46, 5  ;;  %v876_v42 = vor.u32 %v875_v24, %v871_v11  ;;  %v1334_v24 = vld [vmem:[#allocation2 + $0x3c] sm:$0xf] }
  0x79   : > { %v872_v28 = vsel %vm4596_vm11, %v867_v14, %v871_v11  ;;  %v884_v27 = vshrl.u32 %v4911_v7, 16  ;;  %v2448_v20 = vsel %vm4576_vm7, %v4129_v10, %v2447_v30  ;;  %v2449_v33 = vrot.slane %v2447_v30, 4  ;;  %v250_v14 = vld [vmem:[%s4574_s17 + $0x2c] sm:$0xf] }
  0x7a   : > { %v887_v58 = vshll.u32 %v4911_v7, 16  ;;  %v893_v59 = vshll.u32 %v4921_v25, 16  ;;  %3093 = vrot.lane.b32.xlu1 %v4242_v54, %s4477_s21  ;;  %v2078_v55 = vsel %vm4596_vm11, %v2073_v57, %v2077_v47  ;;  %v877_v45 = vrot.slane %v876_v42, 4 }
  0x7b   : > { %v886_v13 = vrot.slane %v884_v27, 4  ;;  %v897_v40 = vshrl.u32 %v4921_v25, 16  ;;  %v4258_v0 = vcombine.low %v2068_v19, %v2078_v55  ;;  %v2451_v18 = vsel %vm4576_vm7, %v2449_v33, %v2450_v32 }
  0x7c   : > { %v889_v41 = vrot.slane %v887_v58, 5  ;;  %v895_v17 = vrot.slane %v893_v59, 5  ;;  %v882_v48 = vsel %vm4596_vm11, %v877_v45, %v881_v29  ;;  %v4273_v54 = vcombine.low %v2448_v20, %v2451_v18  ;;  %v1335_v20 = vld [vmem:[#allocation2 + $0x40] sm:$0xf]  ;;  %v635_v59 = vld [vmem:[#allocation2 + $0x48] sm:$0xf] }
  0x7d   : > { %v899_v2 = vrot.slane %v897_v40, 4  ;;  %v903_v35 = vshll.u32 %v749_v39, 16  ;;  %v4163_v49 = vcombine.low %v872_v28, %v882_v48  ;;  %v4130_v51 = vrot.slane %v2370_v15, 9  ;;  %v639_v48 = vld [vmem:[#allocation2 + $0x50] sm:$0x1] }
  0x7e   : > { %v890_v50 = vor.u32 %v889_v41, %v886_v13  ;;  %v2454_v5 = vrot.slane %v4893_v16, 5  ;;  %3173 = vrot.lane.b32.xlu1 %v4258_v0, %s4481_s25  ;;  %3251 = vrot.lane.b32.xlu0 %v4273_v54, %s4479_s23  ;;  %v2457_v56 = vrot.slane %v4913_v6, 5  ;;  %v4100_v60 = vrot.slane %v1152_v37, 9 }
  0x7f   : > { %v900_v22 = vor.u32 %v899_v2, %v895_v17  ;;  %v905_v53 = vrot.slane %v903_v35, 5  ;;  %v1251_v16 = vrot.slane %v4921_v25, 5  ;;  %v1254_v9 = vrot.slane %v749_v39, 5 }
  0x80   : > { %v891_v61 = vrot.slane %v890_v50, 4  ;;  %v2455_v62 = vsel %vm4576_vm7, %v4130_v51, %v2454_v5  ;;  %v2456_v3 = vrot.slane %v2454_v5, 4  ;;  %v4099_v11 = vrot.slane %v1151_v23, 9  ;;  %v251_v23 = vld [vmem:[%s4574_s17 + $0x30] sm:$0xf] }
  0x81   : > { %v901_v4 = vrot.slane %v900_v22, 4  ;;  %v1244_v12 = vrot.slane %v4890_v8, 5  ;;  %v1252_v6 = vsel %vm4576_vm7, %v4100_v60, %v1251_v16  ;;  %v1253_v46 = vrot.slane %v1251_v16, 4  ;;  %v252_v22 = vld [vmem:[%s4574_s17 + $0x34] sm:$0xf] }
  0x82   : > { %v896_v10 = vsel %vm4596_vm11, %v891_v61, %v895_v17  ;;  %v2458_v19 = vsel %vm4576_vm7, %v2456_v3, %v2457_v56  ;;  %2663 = vrot.lane.b32.xlu1 %v4163_v49, %s4475_s19  ;;  %v1247_v42 = vrot.slane %v4905_v52, 5  ;;  %v362_v27 = vrot.slane %v360_v31, 7  ;;  %v1362_v52 = vld [vmem:[#allocation2 + $0x44] sm:$0x1] }
  0x83   : > { %v906_v57 = vsel %vm4596_vm11, %v901_v4, %v905_v53  ;;  %v4274_v29 = vcombine.low %v2455_v62, %v2458_v19  ;;  %v1245_v30 = vsel %vm4576_vm7, %v4099_v11, %v1244_v12  ;;  %v1246_v32 = vrot.slane %v1244_v12, 4 }
  0x84   : > { %v4164_v47 = vcombine.low %v896_v10, %v906_v57  ;;  %v1255_v28 = vsel %vm4576_vm7, %v1253_v46, %v1254_v9  ;;  %v368_v39 = vshrl.u32 %v250_v14, 16  ;;  %v371_v58 = vshll.u32 %v250_v14, 16  ;;  %v4986_v9 = vld [vmem:[%s4574_s17 + $0x38] sm:$0xf] }
  0x85   : > { %3253 = vrot.lane.b32.xlu0 %v4274_v29, %s4479_s23  ;;  %v4180_v33 = vcombine.low %v1252_v6, %v1255_v28  ;;  %v1471_v55 = vshrl.u32 %v1334_v24, 16  ;;  %v1248_v45 = vsel %vm4576_vm7, %v1246_v32, %v1247_v42  ;;  %v365_v13 = vor.u32 %v363_v38, %v362_v27 }
  0x86   : > { %v366_v40 = vrot.slane %v362_v27, 4  ;;  %v1474_v15 = vshll.u32 %v1334_v24, 16  ;;  %2665 = vrot.lane.b32.xlu1 %v4164_v47, %s4475_s19  ;;  %v4179_v31 = vcombine.low %v1245_v30, %v1248_v45  ;;  %v370_v43 = vrot.slane %v368_v39, 7 }
  0x87   : > { %v1473_v0 = vrot.slane %v1471_v55, 4  ;;  %v1484_v18 = vshrl.u32 %v1335_v20, 16  ;;  %v636_v41 = vsel %vm4590_vm10, %v365_v13, %v635_v59  ;;  %v4195_v37 = vcombine.low %v1334_v24, %v1335_v20  ;;  %v642_v13 = vld [vmem:[#allocation2 + $0x54] sm:$0xf] }
  0x88   : > { %v1476_v17 = vrot.slane %v1474_v15, 5  ;;  %v1480_v54 = vshll.u32 %v1335_v20, 16  ;;  %v373_v38 = vor.u32 %v371_v58, %v370_v43  ;;  %637 = vst [vmem:[#allocation2 + $0x48] sm:$0xf] %v636_v41  ;;  %v375_v2 = vrot.slane %v370_v43, 4 }
  0x89   : > { %2743 = vrot.lane.b32.xlu0 %v4179_v31, %s4474_s18  ;;  %v1486_v35 = vrot.slane %v1484_v18, 4  ;;  %v1490_v49 = vshll.u32 %v1362_v52, 16  ;;  %v1852_v5 = vrot.slane %v1335_v20, 5  ;;  %v4115_v61 = vrot.slane %v1762_v21, 9  ;;  %v5003_v18 = vld [vmem:[#allocation2 + $0x4] sm:$0xf] }
  0x8a   : > { %v1477_v50 = vor.u32 %v1476_v17, %v1473_v0  ;;  %v1482_v51 = vrot.slane %v1480_v54, 5  ;;  %2745 = vrot.lane.b32.xlu1 %v4180_v33, %s4474_s18  ;;  %v374_v53 = vsel %vm4604_vm12, %v366_v40, %v373_v38  ;;  %v640_v56 = vsel %vm4619_vm13, %v375_v2, %v639_v48  ;;  %v5005_v41 = vld [vmem:[#allocation2] sm:$0xf] }
  0x8b   : > { %v1492_v60 = vrot.slane %v1490_v49, 5  ;;  %638 = vst.msk [vmem:[#allocation2 + $0x4c] sm:$0xf] %vm183_vm0, %v374_v53  ;;  %641 = vst [vmem:[#allocation2 + $0x50] sm:$0x1] %v640_v56  ;;  %v1854_v16 = vrot.slane %v1852_v5, 4  ;;  %v1853_v28 = vsel %vm4576_vm7, %v4115_v61, %v1852_v5  ;;  %v4143_v17 = vcombine.low %v5005_v41, %v5003_v18 }
  0x8c   : > { %v1478_v62 = vrot.slane %v1477_v50, 4  ;;  %v1487_v3 = vor.u32 %v1486_v35, %v1482_v51  ;;  %v1855_v4 = vrot.slane %v1362_v52, 5  ;;  %v377_v11 = vshrl.u32 %v251_v23, 16 }
  0x8d   : > { %2839 = vrot.lane.b32.xlu0 %v4195_v37, %s4476_s20  ;;  %v385_v12 = vshrl.u32 %v252_v22, 16  ;;  %v380_v6 = vshll.u32 %v251_v23, 16  ;;  %v388_v46 = vshll.u32 %v252_v22, 16  ;;  %v394_v57 = vshrl.u32 %v4986_v9, 16 }
  0x8e   : > { %v1483_v10 = vsel %vm4596_vm11, %v1478_v62, %v1482_v51  ;;  %v1488_v19 = vrot.slane %v1487_v3, 4  ;;  %v379_v14 = vrot.slane %v377_v11, 7  ;;  %v397_v29 = vshll.u32 %v4986_v9, 16  ;;  %v646_v62 = vld [vmem:[#allocation2 + $0x5c] sm:$0x1] }
  0x8f   : > { %v4991_v24 = vrot.slane %v385_v12, 7  ;;  %v1336_v30 = vld [vmem:[#allocation2 + $0x48] sm:$0xf]  ;;  %v1856_v42 = vsel %vm4576_vm7, %v1854_v16, %v1855_v4  ;;  %vm3427_vm3 = vcmask 326656   ;;  %vm3628_vm4 = vcmask 1043456  }
  0x90   : > { %v1493_v32 = vsel %vm4596_vm11, %v1488_v19, %v1492_v60  ;;  %v1763_v47 = vld [vmem:[#allocation2 + $0x48] sm:$0xe]  ;;  %v1495_v20 = vshrl.u32 %v1336_v30, 16  ;;  %v1498_v33 = vshll.u32 %v1336_v30, 16  ;;  %v382_v59 = vor.u32 %v380_v6, %v379_v14 }
  0x91   : > { %v1943_v27 = vld [vmem:[#allocation2 + $0x48] sm:$0xf]  ;;  %v4211_v39 = vcombine.low %v1483_v10, %v1493_v32  ;;  %v4116_v58 = vrot.slane %v1763_v47, 9  ;;  %v383_v55 = vrot.slane %v379_v14, 4  ;;  %v390_v45 = vor.u32 %v388_v46, %v4991_v24 }
  0x92   : > { %v2080_v40 = vshrl.u32 %v1943_v27, 16  ;;  %v1337_v15 = vld [vmem:[#allocation2 + $0x4c] sm:$0xf]  ;;  %v1497_v52 = vrot.slane %v1495_v20, 4  ;;  %v1500_v31 = vrot.slane %v1498_v33, 5  ;;  %v4227_v0 = vcombine.low %v1853_v28, %v1856_v42 }
  0x93   : > { %v1363_v43 = vld [vmem:[#allocation2 + $0x50] sm:$0x1]  ;;  %2919 = vrot.lane.b32.xlu0 %v4211_v39, %s4480_s24  ;;  %v1508_v37 = vshrl.u32 %v1337_v15, 16  ;;  %v4196_v48 = vcombine.low %v1336_v30, %v1337_v15  ;;  %v1504_v54 = vshll.u32 %v1337_v15, 16  ;;  %v1859_v2 = vrot.slane %v1337_v15, 5 }
  0x94   : > { %v1514_v21 = vshll.u32 %v1363_v43, 16  ;;  %v1501_v38 = vor.u32 %v1500_v31, %v1497_v52  ;;  %v1862_v35 = vrot.slane %v1363_v43, 5  ;;  %v391_v49 = vsel %vm4604_vm12, %v383_v55, %v390_v45  ;;  %v5011_v50 = vld [vmem:[#allocation2 + $0x4c] sm:$0xf]  ;;  %v5022_v12 = vld [vmem:[#allocation2 + $0x50] sm:$0x1] }
  0x95   : > { %2841 = vrot.lane.b32.xlu1 %v4196_v48, %s4476_s20  ;;  %v1506_v51 = vrot.slane %v1504_v54, 5  ;;  %v1510_v5 = vrot.slane %v1508_v37, 4  ;;  %v643_v22 = vsel %vm4590_vm10, %v382_v59, %v642_v13  ;;  %645 = vst.msk [vmem:[#allocation2 + $0x58] sm:$0xf] %vm183_vm0, %v391_v49  ;;  %v1860_v56 = vsel %vm4576_vm7, %v4116_v58, %v1859_v2  ;;  %v724_v10 = vld [vmem:[#allocation2 + $0x48] sm:$0xf] }
  0x96   : > { %v1516_v23 = vrot.slane %v1514_v21, 5  ;;  %v1502_v53 = vrot.slane %v1501_v38, 4  ;;  %v1861_v60 = vrot.slane %v1859_v2, 4  ;;  %644 = vst [vmem:[#allocation2 + $0x54] sm:$0xf] %v643_v22  ;;  %v2082_v61 = vrot.slane %v2080_v40, 4 }
  0x97   : > { %2999 = vrot.lane.b32.xlu0 %v4227_v0, %s4478_s22  ;;  %v1511_v3 = vor.u32 %v1510_v5, %v1506_v51  ;;  %v2083_v16 = vshll.u32 %v1943_v27, 16  ;;  %v2093_v4 = vshrl.u32 %v5011_v50, 16  ;;  %v4243_v11 = vcombine.low %v1943_v27, %v5011_v50  ;;  %v5030_v30 = vld [vmem:[#allocation2 + $0x4c] sm:$0xf]  ;;  %v5047_v5 = vld [vmem:[#allocation2 + $0x50] sm:$0x1] }
  0x98   : > { %v1507_v19 = vsel %vm4596_vm11, %v1502_v53, %v1506_v51  ;;  %v1863_v6 = vsel %vm4576_vm7, %v1861_v60, %v1862_v35  ;;  %v392_v46 = vrot.slane %v4991_v24, 4  ;;  %v2089_v14 = vshll.u32 %v5011_v50, 16  ;;  %v2371_v22 = vld [vmem:[#allocation2 + $0x48] sm:$0xe] }
  0x99   : > { %v1512_v32 = vrot.slane %v1511_v3, 4  ;;  %v4228_v47 = vcombine.low %v1860_v56, %v1863_v6  ;;  %v2085_v28 = vrot.slane %v2083_v16, 5  ;;  %v2095_v42 = vrot.slane %v2093_v4, 4 }
  0x9a   : > { %v647_v27 = vsel %vm4619_vm13, %v392_v46, %v646_v62  ;;  %v2091_v20 = vrot.slane %v2089_v14, 5  ;;  %v2099_v33 = vshll.u32 %v5022_v12, 16  ;;  %v908_v39 = vshrl.u32 %v724_v10, 16  ;;  %v5051_v62 = vpop.permute.xlu0 %2655 }
  0x9b   : > { %3095 = vrot.lane.b32.xlu0 %v4243_v11, %s4477_s21  ;;  %v1517_v24 = vsel %vm4596_vm11, %v1512_v32, %v1516_v23  ;;  %648 = vst [vmem:[#allocation2 + $0x5c] sm:$0x1] %v647_v27  ;;  %v2086_v58 = vor.u32 %v2085_v28, %v2082_v61  ;;  %v911_v59 = vshll.u32 %v724_v10, 16  ;;  %v917_v55 = vshll.u32 %v5030_v30, 16  ;;  %v5059_v28 = vpop.permute.xlu1 %2735 }
  0x9c   : > { %v4212_v45 = vcombine.low %v1507_v19, %v1517_v24  ;;  %v5039_v13 = vld [vmem:[#allocation2 + $0x58] sm:$0xf]  ;;  %v2096_v40 = vor.u32 %v2095_v42, %v2091_v20  ;;  %v2101_v15 = vrot.slane %v2099_v33, 5  ;;  %v910_v52 = vrot.slane %v908_v39, 4 }
  0x9d   : > { %v1945_v31 = vld [vmem:[#allocation2 + $0x54] sm:$0xf]  ;;  %v2117_v43 = vshrl.u32 %v5039_v13, 16  ;;  %v2113_v0 = vshll.u32 %v5039_v13, 16  ;;  %v2087_v37 = vrot.slane %v2086_v58, 4  ;;  %v913_v48 = vrot.slane %v911_v59, 5 }
  0x9e   : > { %2921 = vrot.lane.b32.xlu1 %v4212_v45, %s4480_s24  ;;  %v2104_v54 = vshrl.u32 %v1945_v31, 16  ;;  %v2107_v21 = vshll.u32 %v1945_v31, 16  ;;  %v4244_v38 = vcombine.low %v1945_v31, %v5039_v13  ;;  %v2097_v2 = vrot.slane %v2096_v40, 4  ;;  %v726_v10 = vld [vmem:[#allocation2 + $0x54] sm:$0xf] }
  0x9f   : > { %v2115_v35 = vrot.slane %v2113_v0, 5  ;;  %v2119_v49 = vrot.slane %v2117_v43, 4  ;;  %v2092_v51 = vsel %vm4596_vm11, %v2087_v37, %v2091_v20  ;;  %v914_v23 = vor.u32 %v913_v48, %v910_v52 }
  0xa0   : > { %v2106_v53 = vrot.slane %v2104_v54, 4  ;;  %v2109_v56 = vrot.slane %v2107_v21, 5  ;;  %v2102_v60 = vsel %vm4596_vm11, %v2097_v2, %v2101_v15  ;;  %v919_v61 = vrot.slane %v917_v55, 5  ;;  %v2372_v15 = vld [vmem:[#allocation2 + $0x54] sm:$0xe] }
  0xa1   : > { %v2120_v3 = vor.u32 %v2119_v49, %v2115_v35  ;;  %v4259_v16 = vcombine.low %v2092_v51, %v2102_v60  ;;  %v915_v4 = vrot.slane %v914_v23, 4  ;;  %v921_v11 = vshrl.u32 %v5030_v30, 16 }
  0xa2   : > { %3001 = vrot.lane.b32.xlu1 %v4228_v47, %s4478_s22  ;;  %v5055_v19 = vld [vmem:[#allocation2 + $0x5c] sm:$0x1]  ;;  %v2110_v6 = vor.u32 %v2109_v56, %v2106_v53  ;;  %v927_v46 = vshll.u32 %v5047_v5, 16  ;;  %v4131_v14 = vrot.slane %v2371_v22, 9  ;;  %v2461_v32 = vrot.slane %v5011_v50, 5 }
  0xa3   : > { %v2121_v42 = vrot.slane %v2120_v3, 4  ;;  %v2123_v27 = vshll.u32 %v5055_v19, 16  ;;  %3175 = vrot.lane.b32.xlu0 %v4259_v16, %s4481_s25  ;;  %v920_v20 = vsel %vm4596_vm11, %v915_v4, %v919_v61  ;;  %v923_v33 = vrot.slane %v921_v11, 4  ;;  %v727_v47 = vld [vmem:[#allocation2 + $0x58] sm:$0xf] }
  0xa4   : > { %v2111_v39 = vrot.slane %v2110_v6, 4  ;;  %v929_v24 = vrot.slane %v927_v46, 5  ;;  %v2462_v58 = vsel %vm4576_vm7, %v4131_v14, %v2461_v32  ;;  %v2463_v59 = vrot.slane %v2461_v32, 4  ;;  %v751_v31 = vld [vmem:[#allocation2 + $0x5c] sm:$0x1] }
  0xa5   : > { %v2125_v55 = vrot.slane %v2123_v27, 5  ;;  %v924_v50 = vor.u32 %v923_v33, %v919_v61  ;;  %v2464_v45 = vrot.slane %v5022_v12, 5  ;;  %v932_v40 = vshrl.u32 %v726_v10, 16  ;;  %v1154_v22 = vld [vmem:[#allocation2 + $0x54] sm:$0xe] }
  0xa6   : > { %3097 = vrot.lane.b32.xlu1 %v4244_v38, %s4477_s21  ;;  %v2116_v52 = vsel %vm4596_vm11, %v2111_v39, %v2115_v35  ;;  %v935_v43 = vshll.u32 %v726_v10, 16  ;;  %v941_v0 = vshll.u32 %v727_v47, 16  ;;  %v945_v37 = vshrl.u32 %v727_v47, 16  ;;  %v5071_v48 = vpop.permute.xlu0 %2831  ;;  %v5077_v35 = vpop.permute.xlu1 %2833  ;;  %v1153_v10 = vld [vmem:[#allocation2 + $0x48] sm:$0xe] }
  0xa7   : > { %v2126_v54 = vsel %vm4596_vm11, %v2121_v42, %v2125_v55  ;;  %v925_v21 = vrot.slane %v924_v50, 4  ;;  %v2465_v12 = vsel %vm4576_vm7, %v2463_v59, %v2464_v45  ;;  %v934_v2 = vrot.slane %v932_v40, 4  ;;  %v254_v45 = vld [vmem:[%s4574_s17 + $0x3c] sm:$0xf] }
  0xa8   : > { %v4260_v49 = vcombine.low %v2116_v52, %v2126_v54  ;;  %v4275_v51 = vcombine.low %v2462_v58, %v2465_v12  ;;  %v937_v38 = vrot.slane %v935_v43, 5  ;;  %v943_v23 = vrot.slane %v941_v0, 5  ;;  %v1338_v0 = vld [vmem:[#allocation2 + $0x54] sm:$0xf]  ;;  %v649_v12 = vld [vmem:[#allocation2 + $0x60] sm:$0xf] }
  0xa9   : > { %v930_v53 = vsel %vm4596_vm11, %v925_v21, %v929_v24  ;;  %v947_v56 = vrot.slane %v945_v37, 4  ;;  %v951_v60 = vshll.u32 %v751_v31, 16  ;;  %v4132_v61 = vrot.slane %v2372_v15, 9  ;;  %v5107_v37 = vld [vmem:[#allocation2 + $0x58] sm:$0xf] }
  0xaa   : > { %3177 = vrot.lane.b32.xlu1 %v4260_v49, %s4481_s25  ;;  %v4165_v3 = vcombine.low %v920_v20, %v930_v53  ;;  %3255 = vrot.lane.b32.xlu0 %v4275_v51, %s4479_s23  ;;  %v938_v16 = vor.u32 %v937_v38, %v934_v2  ;;  %v2468_v4 = vrot.slane %v5039_v13, 5  ;;  %v2471_v11 = vrot.slane %v5055_v19, 5  ;;  %v5085_v6 = vpop.permute.xlu0 %3087  ;;  %v5099_v40 = vpop.permute.xlu1 %3089  ;;  %v5113_v2 = vld [vmem:[#allocation2 + $0x10] sm:$0xf]  ;;  %v5115_v49 = vld [vmem:[#allocation2 + $0xc] sm:$0xf] }
  0xab   : > { %v948_v46 = vor.u32 %v947_v56, %v943_v23  ;;  %v953_v14 = vrot.slane %v951_v60, 5  ;;  %v4102_v32 = vrot.slane %v1154_v22, 9  ;;  %v1265_v42 = vrot.slane %v727_v47, 5 }
  0xac   : > { %v939_v27 = vrot.slane %v938_v16, 4  ;;  %v2469_v33 = vsel %vm4576_vm7, %v4132_v61, %v2468_v4  ;;  %v2470_v20 = vrot.slane %v2468_v4, 4  ;;  %v1268_v39 = vrot.slane %v751_v31, 5 }
  0xad   : > { %v949_v24 = vrot.slane %v948_v46, 4  ;;  %v1266_v13 = vsel %vm4576_vm7, %v4102_v32, %v1265_v42  ;;  %v1267_v58 = vrot.slane %v1265_v42, 4  ;;  %v4101_v19 = vrot.slane %v1153_v10, 9 }
  0xae   : > { %2667 = vrot.lane.b32.xlu1 %v4165_v3, %s4475_s19  ;;  %v944_v59 = vsel %vm4596_vm11, %v939_v27, %v943_v23  ;;  %v2472_v47 = vsel %vm4576_vm7, %v2470_v20, %v2471_v11  ;;  %v1258_v55 = vrot.slane %v5030_v30, 5  ;;  %v1261_v50 = vrot.slane %v5047_v5, 5  ;;  %v5109_v54 = vpop.permute.xlu0 %2991  ;;  %v5126_v3 = vld [vmem:[#allocation2 + $0x5c] sm:$0x1] }
  0xaf   : > { %v954_v15 = vsel %vm4596_vm11, %v949_v24, %v953_v14  ;;  %v4276_v52 = vcombine.low %v2469_v33, %v2472_v47  ;;  %v1269_v31 = vsel %vm4576_vm7, %v1267_v58, %v1268_v39  ;;  %v396_v43 = vrot.slane %v394_v57, 7  ;;  %v653_v14 = vld [vmem:[#allocation2 + $0x68] sm:$0x1] }
  0xb0   : > { %v4166_v30 = vcombine.low %v944_v59, %v954_v15  ;;  %v1259_v5 = vsel %vm4576_vm7, %v4101_v19, %v1258_v55  ;;  %v1260_v21 = vrot.slane %v1258_v55, 4  ;;  %v4144_v51 = vcombine.low %v5115_v49, %v5113_v2  ;;  %v5131_v27 = vpop.permute.xlu1 %2737 }
  0xb1   : > { %3257 = vrot.lane.b32.xlu0 %v4276_v52, %s4479_s23  ;;  %v4182_v57 = vcombine.low %v1266_v13, %v1269_v31  ;;  %v399_v38 = vor.u32 %v397_v29, %v396_v43  ;;  %v402_v23 = vshrl.u32 %v254_v45, 16  ;;  %v405_v22 = vshll.u32 %v254_v45, 16  ;;  %v1764_v29 = vld [vmem:[#allocation2 + $0x54] sm:$0xe]  ;;  %v255_v13 = vld [vmem:[%s4574_s17 + $0x40] sm:$0xf] }
  0xb2   : > { %2669 = vrot.lane.b32.xlu1 %v4166_v30, %s4475_s19  ;;  %v1262_v53 = vsel %vm4576_vm7, %v1260_v21, %v1261_v50  ;;  %v1519_v56 = vshrl.u32 %v1338_v0, 16  ;;  %v1522_v60 = vshll.u32 %v1338_v0, 16  ;;  %v1532_v61 = vshrl.u32 %v5107_v37, 16  ;;  %v5137_v58 = vpop.permute.xlu0 %3247  ;;  %v256_v50 = vld [vmem:[%s4574_s17 + $0x44] sm:$0xf] }
  0xb3   : > { %v4181_v16 = vcombine.low %v1259_v5, %v1262_v53  ;;  %v400_v4 = vrot.slane %v396_v43, 4  ;;  %v404_v11 = vrot.slane %v402_v23, 7  ;;  %v650_v9 = vsel %vm4590_vm10, %v399_v38, %v649_v12  ;;  %v5149_v12 = vld [vmem:[#allocation2 + $0x18] sm:$0xf] }
  0xb4   : > { %651 = vst [vmem:[#allocation2 + $0x60] sm:$0xf] %v650_v9  ;;  %v1521_v10 = vrot.slane %v1519_v56, 4  ;;  %v1524_v46 = vrot.slane %v1522_v60, 5  ;;  %v1528_v32 = vshll.u32 %v5107_v37, 16  ;;  %v1534_v42 = vrot.slane %v1532_v61, 4  ;;  %v5157_v56 = vpop.permute.xlu1 %2993 }
  0xb5   : > { %2747 = vrot.lane.b32.xlu0 %v4181_v16, %s4474_s18  ;;  %v407_v33 = vor.u32 %v405_v22, %v404_v11  ;;  %v4197_v20 = vcombine.low %v1338_v0, %v5107_v37  ;;  %v409_v39 = vrot.slane %v404_v11, 4  ;;  %v1538_v24 = vshll.u32 %v5126_v3, 16  ;;  %v5159_v60 = vld [vmem:[#allocation2 + $0x24] sm:$0xf]  ;;  %v5161_v61 = vld [vmem:[#allocation2 + $0x28] sm:$0xf] }
  0xb6   : > { %2749 = vrot.lane.b32.xlu1 %v4182_v57, %s4474_s18  ;;  %v1525_v19 = vor.u32 %v1524_v46, %v1521_v10  ;;  %v1530_v59 = vrot.slane %v1528_v32, 5  ;;  %v4117_v47 = vrot.slane %v1764_v29, 9  ;;  %v1866_v55 = vrot.slane %v5107_v37, 5  ;;  %v5151_v57 = vld [vmem:[#allocation2 + $0x1c] sm:$0xf]  ;;  %v5174_v46 = vpop.permute.xlu0 %3249 }
  0xb7   : > { %v408_v45 = vsel %vm4604_vm12, %v400_v4, %v407_v33  ;;  %v654_v15 = vsel %vm4619_vm13, %v409_v39, %v653_v14  ;;  %v1540_v52 = vrot.slane %v1538_v24, 5  ;;  %v1869_v31 = vrot.slane %v5126_v3, 5  ;;  %v656_v10 = vld [vmem:[#allocation2 + $0x6c] sm:$0xf] }
  0xb8   : > { %652 = vst.msk [vmem:[#allocation2 + $0x64] sm:$0xf] %vm183_vm0, %v408_v45  ;;  %655 = vst [vmem:[#allocation2 + $0x68] sm:$0x1] %v654_v15  ;;  %v1526_v43 = vrot.slane %v1525_v19, 4  ;;  %v1535_v0 = vor.u32 %v1534_v42, %v1530_v59  ;;  %v1868_v30 = vrot.slane %v1866_v55, 4  ;;  %v4145_v38 = vcombine.low %v5149_v12, %v5151_v57 }
  0xb9   : > { %2843 = vrot.lane.b32.xlu0 %v4197_v20, %s4476_s20  ;;  %v411_v37 = vshrl.u32 %v255_v13, 16  ;;  %v414_v5 = vshll.u32 %v255_v13, 16  ;;  %v419_v21 = vshrl.u32 %v256_v50, 16  ;;  %v422_v53 = vshll.u32 %v256_v50, 16 }
  0xba   : > { %v1531_v23 = vsel %vm4596_vm11, %v1526_v43, %v1530_v59  ;;  %v1536_v22 = vrot.slane %v1535_v0, 4  ;;  %v1867_v4 = vsel %vm4576_vm7, %v4117_v47, %v1866_v55  ;;  %v3282_v11 = vsel %vm3279_vm14, %v4143_v17, %v5051_v62 }
  0xbb   : > { %v1340_v16 = vld [vmem:[#allocation2 + $0x60] sm:$0xf]  ;;  %v413_v9 = vrot.slane %v411_v37, 7  ;;  %v5172_v29 = vrot.slane %v419_v21, 7  ;;  %v1870_v20 = vsel %vm4576_vm7, %v1868_v30, %v1869_v31  ;;  %vm3460_vm5 = vcmask 392192  }
  0xbc   : > { %v1543_v14 = vshrl.u32 %v1340_v16, 16  ;;  %v1546_v32 = vshll.u32 %v1340_v16, 16  ;;  %v1541_v42 = vsel %vm4596_vm11, %v1536_v22, %v1540_v52  ;;  %v1765_v33 = vld [vmem:[#allocation2 + $0x60] sm:$0xe]  ;;  %v4229_v45 = vcombine.low %v1867_v4, %v1870_v20 }
  0xbd   : > { %v1947_v39 = vld [vmem:[#allocation2 + $0x60] sm:$0xf]  ;;  %v4213_v24 = vcombine.low %v1531_v23, %v1541_v42  ;;  %v416_v18 = vor.u32 %v414_v5, %v413_v9  ;;  %v417_v41 = vrot.slane %v413_v9, 4  ;;  %v424_v17 = vor.u32 %v422_v53, %v5172_v29  ;;  %v5189_v5 = vpop.permute.xlu1 %2913 }
  0xbe   : > { %v1545_v62 = vrot.slane %v1543_v14, 4  ;;  %v1548_v13 = vrot.slane %v1546_v32, 5  ;;  %v2128_v19 = vshrl.u32 %v1947_v39, 16  ;;  %v2131_v59 = vshll.u32 %v1947_v39, 16 }
  0xbf   : > { %v1341_v47 = vld [vmem:[#allocation2 + $0x64] sm:$0xf]  ;;  %v1365_v55 = vld [vmem:[#allocation2 + $0x68] sm:$0x1]  ;;  %2923 = vrot.lane.b32.xlu0 %v4213_v24, %s4480_s24  ;;  %v4118_v50 = vrot.slane %v1765_v33, 9  ;;  %v425_v15 = vsel %vm4604_vm12, %v417_v41, %v424_v17  ;;  %v657_v52 = vsel %vm4590_vm10, %v416_v18, %v656_v10  ;;  %vm3493_vm6 = vcmask 457728  }
  0xc0   : > { %v1556_v31 = vshrl.u32 %v1341_v47, 16  ;;  %v4198_v43 = vcombine.low %v1340_v16, %v1341_v47  ;;  %v1549_v0 = vor.u32 %v1548_v13, %v1545_v62  ;;  %v1552_v30 = vshll.u32 %v1341_v47, 16  ;;  %658 = vst [vmem:[#allocation2 + $0x6c] sm:$0xf] %v657_v52  ;;  %659 = vst.msk [vmem:[#allocation2 + $0x70] sm:$0xf] %vm183_vm0, %v425_v15  ;;  %v2658_v4 = vpop.permute.xlu0 %2657 }
  0xc1   : > { %v5187_v37 = vld [vmem:[#allocation2 + $0x64] sm:$0xf]  ;;  %v1562_v21 = vshll.u32 %v1365_v55, 16  ;;  %v1873_v23 = vrot.slane %v1341_v47, 5  ;;  %v1876_v22 = vrot.slane %v1365_v55, 5  ;;  %v2130_v53 = vrot.slane %v2128_v19, 4  ;;  %v5213_v15 = vpop.permute.xlu1 %3169 }
  0xc2   : > { %2845 = vrot.lane.b32.xlu1 %v4198_v43, %s4476_s20  ;;  %v1550_v9 = vrot.slane %v1549_v0, 4  ;;  %v1554_v10 = vrot.slane %v1552_v30, 5  ;;  %v1558_v14 = vrot.slane %v1556_v31, 4  ;;  %v2133_v16 = vrot.slane %v2131_v59, 5  ;;  %v660_v17 = vld [vmem:[#allocation2 + $0x74] sm:$0x1] }
  0xc3   : > { %v5194_v32 = vsel %vm4576_vm7, %v4118_v50, %v1873_v23  ;;  %v1875_v42 = vrot.slane %v1873_v23, 4  ;;  %3003 = vrot.lane.b32.xlu0 %v4229_v45, %s4478_s22  ;;  %v2141_v33 = vshrl.u32 %v5187_v37, 16  ;;  %v1564_v18 = vrot.slane %v1562_v21, 5  ;;  %v728_v45 = vld [vmem:[#allocation2 + $0x60] sm:$0xf] }
  0xc4   : > { %v1559_v24 = vor.u32 %v1558_v14, %v1554_v10  ;;  %v4245_v41 = vcombine.low %v1947_v39, %v5187_v37  ;;  %v1555_v62 = vsel %vm4596_vm11, %v1550_v9, %v1554_v10  ;;  %v426_v19 = vrot.slane %v5172_v29, 4 }
  0xc5   : > { %v1877_v13 = vsel %vm4576_vm7, %v1875_v42, %v1876_v22  ;;  %v5211_v50 = vsel %vm3328_vm15, %v3282_v11, %v5059_v28  ;;  %v2134_v39 = vor.u32 %v2133_v16, %v2130_v53  ;;  %v2137_v43 = vshll.u32 %v5187_v37, 16  ;;  %v5236_v53 = vld [vmem:[#allocation2 + $0x68] sm:$0x1] }
  0xc6   : > { %v1560_v47 = vrot.slane %v1559_v24, 4  ;;  %v4230_v55 = vcombine.low %v5194_v32, %v1877_v13  ;;  %v661_v29 = vsel %vm4619_vm13, %v426_v19, %v660_v17  ;;  %v2143_v0 = vrot.slane %v2141_v33, 4  ;;  %v5229_v11 = vpop.permute.xlu0 %2911  ;;  %v5247_v13 = vld [vmem:[#allocation2 + $0x68] sm:$0x1] }
  0xc7   : > { %v5215_v52 = vld [vmem:[#allocation2 + $0x6c] sm:$0xf]  ;;  %v5217_v31 = vld [vmem:[#allocation2 + $0x70] sm:$0xf]  ;;  %3099 = vrot.lane.b32.xlu0 %v4245_v41, %s4477_s21  ;;  %v5227_v28 = vsel %vm3279_vm14, %v4144_v51, %v2658_v4  ;;  %662 = vst [vmem:[#allocation2 + $0x74] sm:$0x1] %v661_v29 }
  0xc8   : > { %v1565_v30 = vsel %vm4596_vm11, %v1560_v47, %v1564_v18  ;;  %v2152_v21 = vshrl.u32 %v5215_v52, 16  ;;  %v2155_v23 = vshll.u32 %v5215_v52, 16  ;;  %v2165_v22 = vshrl.u32 %v5217_v31, 16  ;;  %v5241_v4 = vld [vmem:[#allocation2 + $0x64] sm:$0xf] }
  0xc9   : > { %v4214_v9 = vcombine.low %v1555_v62, %v1565_v30  ;;  %v4246_v2 = vcombine.low %v5215_v52, %v5217_v31  ;;  %v2161_v49 = vshll.u32 %v5217_v31, 16  ;;  %v2135_v51 = vrot.slane %v2134_v39, 4  ;;  %v2373_v47 = vld [vmem:[#allocation2 + $0x60] sm:$0xe]  ;;  %v5250_v39 = vpop.permute.xlu1 %2659  ;;  %v731_v20 = vld [vmem:[#allocation2 + $0x70] sm:$0xf] }
  0xca   : > { %v2154_v10 = vrot.slane %v2152_v21, 4  ;;  %v2157_v14 = vrot.slane %v2155_v23, 5  ;;  %v2167_v16 = vrot.slane %v2165_v22, 4  ;;  %v2139_v32 = vrot.slane %v2137_v43, 5 }
  0xcb   : > { %2925 = vrot.lane.b32.xlu1 %v4214_v9, %s4480_s24  ;;  %v2163_v42 = vrot.slane %v2161_v49, 5  ;;  %v2147_v33 = vshll.u32 %v5236_v53, 16  ;;  %v956_v24 = vshrl.u32 %v728_v45, 16  ;;  %v959_v18 = vshll.u32 %v728_v45, 16  ;;  %v730_v49 = vld [vmem:[#allocation2 + $0x6c] sm:$0xf] }
  0xcc   : > { %v2158_v41 = vor.u32 %v2157_v14, %v2154_v10  ;;  %v2140_v17 = vsel %vm4596_vm11, %v2135_v51, %v2139_v32  ;;  %v2144_v62 = vor.u32 %v2143_v0, %v2139_v32  ;;  %v965_v19 = vshll.u32 %v5241_v4, 16 }
  0xcd   : > { %v2168_v52 = vor.u32 %v2167_v16, %v2163_v42  ;;  %v2149_v29 = vrot.slane %v2147_v33, 5  ;;  %v958_v43 = vrot.slane %v956_v24, 4  ;;  %v961_v30 = vrot.slane %v959_v18, 5  ;;  %v5252_v21 = vpop.permute.xlu0 %3167 }
  0xce   : > { %v2159_v23 = vrot.slane %v2158_v41, 4  ;;  %v2145_v45 = vrot.slane %v2144_v62, 4  ;;  %v967_v22 = vrot.slane %v965_v19, 5  ;;  %v969_v9 = vshrl.u32 %v5241_v4, 16  ;;  %v5256_v0 = vld [vmem:[#allocation2 + $0x74] sm:$0x1] }
  0xcf   : > { %3005 = vrot.lane.b32.xlu1 %v4230_v55, %s4478_s22  ;;  %v2169_v51 = vrot.slane %v2168_v52, 4  ;;  %v962_v10 = vor.u32 %v961_v30, %v958_v43  ;;  %v975_v14 = vshll.u32 %v5247_v13, 16  ;;  %v4133_v16 = vrot.slane %v2373_v47, 9 }
  0xd0   : > { %v2164_v32 = vsel %vm4596_vm11, %v2159_v23, %v2163_v42  ;;  %v2171_v33 = vshll.u32 %v5256_v0, 16  ;;  %v2150_v24 = vsel %vm4596_vm11, %v2145_v45, %v2149_v29  ;;  %v971_v18 = vrot.slane %v969_v9, 4  ;;  %v5268_v42 = vpop.permute.xlu1 %2661  ;;  %v753_v23 = vld [vmem:[#allocation2 + $0x74] sm:$0x1] }
  0xd1   : > { %v4261_v41 = vcombine.low %v2140_v17, %v2150_v24  ;;  %v963_v62 = vrot.slane %v962_v10, 4  ;;  %v977_v19 = vrot.slane %v975_v14, 5  ;;  %v2475_v55 = vrot.slane %v5187_v37, 5  ;;  %v5265_v52 = vpop.permute.xlu0 %2739 }
  0xd2   : > { %v2173_v43 = vrot.slane %v2171_v33, 5  ;;  %v972_v30 = vor.u32 %v971_v18, %v967_v22  ;;  %v2478_v47 = vrot.slane %v5236_v53, 5  ;;  %v980_v59 = vshrl.u32 %v730_v49, 16  ;;  %v2374_v33 = vld [vmem:[#allocation2 + $0x6c] sm:$0xe] }
  0xd3   : > { %3101 = vrot.lane.b32.xlu1 %v4246_v2, %s4477_s21  ;;  %3179 = vrot.lane.b32.xlu0 %v4261_v41, %s4481_s25  ;;  %v968_v17 = vsel %vm4596_vm11, %v963_v62, %v967_v22  ;;  %v2476_v37 = vsel %vm4576_vm7, %v4133_v16, %v2475_v55  ;;  %v2477_v29 = vrot.slane %v2475_v55, 4  ;;  %v983_v45 = vshll.u32 %v730_v49, 16  ;;  %v1156_v22 = vld [vmem:[#allocation2 + $0x6c] sm:$0xe] }
  0xd4   : > { %v2174_v9 = vsel %vm4596_vm11, %v2169_v51, %v2173_v43  ;;  %v973_v53 = vrot.slane %v972_v30, 4  ;;  %v982_v10 = vrot.slane %v980_v59, 4  ;;  %v989_v14 = vshll.u32 %v731_v20, 16  ;;  %v1155_v30 = vld [vmem:[#allocation2 + $0x60] sm:$0xe] }
  0xd5   : > { %v4262_v24 = vcombine.low %v2164_v32, %v2174_v9  ;;  %v2479_v2 = vsel %vm4576_vm7, %v2477_v29, %v2478_v47  ;;  %v985_v18 = vrot.slane %v983_v45, 5  ;;  %v993_v41 = vshrl.u32 %v731_v20, 16  ;;  %v5280_v62 = vpop.permute.xlu0 %2835 }
  0xd6   : > { %v978_v16 = vsel %vm4596_vm11, %v973_v53, %v977_v19  ;;  %v4277_v49 = vcombine.low %v2476_v37, %v2479_v2  ;;  %v991_v55 = vrot.slane %v989_v14, 5  ;;  %v999_v3 = vshll.u32 %v753_v23, 16  ;;  %v5288_v19 = vpop.permute.xlu1 %2741  ;;  %v257_v2 = vld [vmem:[%s4574_s17 + $0x48] sm:$0xf] }
  0xd7   : > { %3181 = vrot.lane.b32.xlu1 %v4262_v24, %s4481_s25  ;;  %v4167_v59 = vcombine.low %v968_v17, %v978_v16  ;;  %v986_v51 = vor.u32 %v985_v18, %v982_v10  ;;  %v995_v43 = vrot.slane %v993_v41, 4  ;;  %v4134_v32 = vrot.slane %v2374_v33, 9 }
  0xd8   : > { %3259 = vrot.lane.b32.xlu0 %v4277_v49, %s4479_s23  ;;  %v1001_v47 = vrot.slane %v999_v3, 5  ;;  %v2482_v29 = vrot.slane %v5217_v31, 5  ;;  %v2485_v45 = vrot.slane %v5256_v0, 5  ;;  %v4104_v9 = vrot.slane %v1156_v22, 9  ;;  %v258_v49 = vld [vmem:[%s4574_s17 + $0x4c] sm:$0xf] }
  0xd9   : > { %v987_v37 = vrot.slane %v986_v51, 4  ;;  %v996_v53 = vor.u32 %v995_v43, %v991_v55  ;;  %v1279_v14 = vrot.slane %v731_v20, 5  ;;  %v1282_v17 = vrot.slane %v753_v23, 5  ;;  %v5290_v10 = vpop.permute.xlu0 %2915 }
  0xda   : > { %v2483_v33 = vsel %vm4576_vm7, %v4134_v32, %v2482_v29  ;;  %v2484_v24 = vrot.slane %v2482_v29, 4  ;;  %v4103_v3 = vrot.slane %v1155_v30, 9  ;;  %v1272_v31 = vrot.slane %v5241_v4, 5  ;;  %v1342_v32 = vld [vmem:[#allocation2 + $0x6c] sm:$0xf] }
  0xdb   : > { %2671 = vrot.lane.b32.xlu1 %v4167_v59, %s4475_s19  ;;  %v992_v0 = vsel %vm4596_vm11, %v987_v37, %v991_v55  ;;  %v997_v18 = vrot.slane %v996_v53, 4  ;;  %v1280_v20 = vsel %vm4576_vm7, %v4104_v9, %v1279_v14  ;;  %v1281_v23 = vrot.slane %v1279_v14, 4  ;;  %v5311_v30 = vld [vmem:[#allocation2 + $0x70] sm:$0xf]  ;;  %v5315_v53 = vpop.permute.xlu1 %2837 }
  0xdc   : > { %v2486_v41 = vsel %vm4576_vm7, %v2484_v24, %v2485_v45  ;;  %v1273_v22 = vsel %vm4576_vm7, %v4103_v3, %v1272_v31  ;;  %v1274_v16 = vrot.slane %v1272_v31, 4  ;;  %v1275_v4 = vrot.slane %v5247_v13, 5  ;;  %v663_v24 = vld [vmem:[#allocation2 + $0x78] sm:$0xf] }
  0xdd   : > { %v1002_v59 = vsel %vm4596_vm11, %v997_v18, %v1001_v47  ;;  %v4278_v51 = vcombine.low %v2483_v33, %v2486_v41  ;;  %v1283_v55 = vsel %vm4576_vm7, %v1281_v23, %v1282_v17  ;;  %v428_v43 = vshrl.u32 %v257_v2, 16  ;;  %v5317_v13 = vpop.permute.xlu0 %2995  ;;  %v667_v41 = vld [vmem:[#allocation2 + $0x80] sm:$0x1] }
  0xde   : > { %v4168_v29 = vcombine.low %v992_v0, %v1002_v59  ;;  %v4184_v45 = vcombine.low %v1280_v20, %v1283_v55  ;;  %v1276_v9 = vsel %vm4576_vm7, %v1274_v16, %v1275_v4  ;;  %v431_v37 = vshll.u32 %v257_v2, 16 }
  0xdf   : > { %3261 = vrot.lane.b32.xlu0 %v4278_v51, %s4479_s23  ;;  %v4183_v47 = vcombine.low %v1273_v22, %v1276_v9  ;;  %v430_v14 = vrot.slane %v428_v43, 7  ;;  %v436_v33 = vshrl.u32 %v258_v49, 16  ;;  %v439_v17 = vshll.u32 %v258_v49, 16  ;;  %v1366_v49 = vld [vmem:[#allocation2 + $0x74] sm:$0x1] }
  0xe0   : > { %2673 = vrot.lane.b32.xlu1 %v4168_v29, %s4475_s19  ;;  %v1567_v3 = vshrl.u32 %v1342_v32, 16  ;;  %v1570_v31 = vshll.u32 %v1342_v32, 16  ;;  %v1580_v0 = vshrl.u32 %v5311_v30, 16  ;;  %v4199_v18 = vcombine.low %v1342_v32, %v5311_v30 }
  0xe1   : > { %v433_v2 = vor.u32 %v431_v37, %v430_v14  ;;  %v434_v20 = vrot.slane %v430_v14, 4  ;;  %v438_v23 = vrot.slane %v436_v33, 7  ;;  %v3332_v22 = vsel %vm3328_vm15, %v5227_v28, %v5131_v27  ;;  %v1766_v37 = vld [vmem:[#allocation2 + $0x6c] sm:$0xe]  ;;  %v5338_v14 = vpop.permute.xlu0 %3091 }
  0xe2   : > { %v1569_v16 = vrot.slane %v1567_v3, 4  ;;  %v1572_v4 = vrot.slane %v1570_v31, 5  ;;  %v1576_v59 = vshll.u32 %v5311_v30, 16  ;;  %v3365_v43 = vsel %vm3361_vm1, %v3332_v22, %v5077_v35 }
  0xe3   : > { %2751 = vrot.lane.b32.xlu0 %v4183_v47, %s4474_s18  ;;  %v441_v51 = vor.u32 %v439_v17, %v438_v23  ;;  %v664_v55 = vsel %vm4590_vm10, %v433_v2, %v663_v24  ;;  %v443_v32 = vrot.slane %v438_v23, 4  ;;  %v3363_v29 = vsel %vm3361_vm1, %v5211_v50, %v5071_v48 }
  0xe4   : > { %2753 = vrot.lane.b32.xlu1 %v4184_v45, %s4474_s18  ;;  %665 = vst [vmem:[#allocation2 + $0x78] sm:$0xf] %v664_v55  ;;  %v1573_v27 = vor.u32 %v1572_v4, %v1569_v16  ;;  %v1578_v28 = vrot.slane %v1576_v59, 5  ;;  %v1582_v9 = vrot.slane %v1580_v0, 4  ;;  %v5336_v47 = vpop.permute.xlu1 %2917  ;;  %v3398_v35 = vsel %vm3394_vm2, %v3365_v43, %v5189_v5  ;;  %v4426_v45 = vld [vmem:[%s6311_s1 + $0x20] ss:$0 sps:$4 sm:$0xff]  }
  0xe5   : > { %v442_v33 = vsel %vm4604_vm12, %v434_v20, %v441_v51  ;;  %v668_v48 = vsel %vm4619_vm13, %v443_v32, %v667_v41  ;;  %v1586_v50 = vshll.u32 %v1366_v49, 16  ;;  %v3396_v3 = vsel %vm3394_vm2, %v3363_v29, %v5229_v11  ;;  %v259_v16 = vld [vmem:[%s4574_s17 + $0x50] sm:$0xf]  ;;  %4385 = vmatprep.subr.msk.bf16.mxu0 %vm3628_vm4, %v4426_v45  ;;  %4386 = vmatprep.subr.msk.bf16.mxu1 %vm3628_vm4, %v4426_v45 }
  0xe6   : > { %666 = vst.msk [vmem:[#allocation2 + $0x7c] sm:$0xf] %vm183_vm0, %v442_v33  ;;  %669 = vst [vmem:[#allocation2 + $0x80] sm:$0x1] %v668_v48  ;;  %v1574_v17 = vrot.slane %v1573_v27, 4  ;;  %v1583_v24 = vor.u32 %v1582_v9, %v1578_v28  ;;  %v3429_v31 = vsel %vm3427_vm3, %v3396_v3, %v5109_v54  ;;  %v4119_v0 = vrot.slane %v1766_v37, 9 }
  0xe7   : > { %2847 = vrot.lane.b32.xlu0 %v4199_v18, %s4476_s20  ;;  %v1588_v5 = vrot.slane %v1586_v50, 5  ;;  %v1880_v2 = vrot.slane %v5311_v30, 5  ;;  %v1883_v41 = vrot.slane %v1366_v49, 5  ;;  %v5366_v11 = vsel %vm3279_vm14, %v4145_v38, %v5250_v39 }
  0xe8   : > { %v1579_v20 = vsel %vm4596_vm11, %v1574_v17, %v1578_v28  ;;  %v1584_v23 = vrot.slane %v1583_v24, 4  ;;  %v5359_v4 = vpop.permute.xlu1 %2997  ;;  %v6324_v22 = vcombine.low %v5159_v60, %v5161_v61  ;;  %v3462_v12 = vsel %vm3460_vm5, %v3429_v31, %v5085_v6  ;;  %v260_v24 = vld [vmem:[%s4574_s17 + $0x54] sm:$0xf]  ;;  %v670_v31 = vld [vmem:[#allocation2 + $0x84] sm:$0xf] }
  0xe9   : > { %v1881_v54 = vsel %vm4576_vm7, %v4119_v0, %v1880_v2  ;;  %v1882_v30 = vrot.slane %v1880_v2, 4  ;;  %v3630_v57 = vsel %vm3628_vm4, %v4426_v45, 0  ;;  %v5379_v38 = vpop.permute.xlu0 %3171  ;;  %v445_v43 = vshrl.u32 %v259_v16, 16 }
  0xea   : > { %v1589_v18 = vsel %vm4596_vm11, %v1584_v23, %v1588_v5  ;;  %v3291_v49 = vsel %vm3279_vm14, %v6324_v22, %v5268_v42  ;;  %4342 = vmatpush3.bf16.msra.mxu0 %v3630_v57  ;;  %4384 = vmatpush3.bf16.msra.mxu1 %v3630_v57  ;;  %v3495_v6 = vsel %vm3493_vm6, %v3462_v12, %v5252_v21  ;;  %v448_v37 = vshll.u32 %v259_v16, 16 }
  0xeb   : > { %v1344_v39 = vld [vmem:[#allocation2 + $0x78] sm:$0xf]  ;;  %v4215_v59 = vcombine.low %v1579_v20, %v1589_v18  ;;  %v1884_v55 = vsel %vm4576_vm7, %v1882_v30, %v1883_v41  ;;  %v447_v9 = vrot.slane %v445_v43, 7  ;;  %v5390_v33 = vsel %vm3328_vm15, %v3291_v49, %v5288_v19 }
  0xec   : > { %v1767_v51 = vld [vmem:[#allocation2 + $0x78] sm:$0xe]  ;;  %v1591_v32 = vshrl.u32 %v1344_v39, 16  ;;  %v1594_v60 = vshll.u32 %v1344_v39, 16  ;;  %v5385_v42 = vpop.permute.xlu1 %3093  ;;  %v4231_v28 = vcombine.low %v1881_v54, %v1884_v55  ;;  %v3431_v0 = vsel %vm3427_vm3, %v3398_v35, %v5157_v56 }
  0xed   : > { %v4120_v61 = vrot.slane %v1767_v51, 9  ;;  %v1345_v29 = vld [vmem:[#allocation2 + $0x7c] sm:$0xf]  ;;  %v1367_v27 = vld [vmem:[#allocation2 + $0x80] sm:$0x1]  ;;  %2927 = vrot.lane.b32.xlu0 %v4215_v59, %s4480_s24  ;;  %v450_v41 = vor.u32 %v448_v37, %v447_v9  ;;  %v451_v22 = vrot.slane %v447_v9, 4 }
  0xee   : > { %v1593_v48 = vrot.slane %v1591_v32, 4  ;;  %v1596_v50 = vrot.slane %v1594_v60, 5  ;;  %v1604_v45 = vshrl.u32 %v1345_v29, 16  ;;  %v4200_v17 = vcombine.low %v1344_v39, %v1345_v29  ;;  %v1951_v19 = vld [vmem:[#allocation2 + $0x78] sm:$0xf] }
  0xef   : > { %v1600_v3 = vshll.u32 %v1345_v29, 16  ;;  %v1610_v21 = vshll.u32 %v1367_v27, 16  ;;  %v1887_v5 = vrot.slane %v1345_v29, 5  ;;  %v1890_v23 = vrot.slane %v1367_v27, 5  ;;  %v5399_v49 = vld [vmem:[#allocation2 + $0x7c] sm:$0xf] }
  0xf0   : > { %2849 = vrot.lane.b32.xlu1 %v4200_v17, %s4476_s20  ;;  %v1597_v2 = vor.u32 %v1596_v50, %v1593_v48  ;;  %v1606_v20 = vrot.slane %v1604_v45, 4  ;;  %v5396_v16 = vpop.permute.xlu0 %3251  ;;  %v453_v57 = vshrl.u32 %v260_v24, 16  ;;  %v456_v56 = vshll.u32 %v260_v24, 16  ;;  %v5403_v39 = vpop.permute.xlu1 %3173  ;;  %v5415_v45 = vld [vmem:[#allocation2 + $0x80] sm:$0x1] }
  0xf1   : > { %v1602_v54 = vrot.slane %v1600_v3, 5  ;;  %v1612_v30 = vrot.slane %v1610_v21, 5  ;;  %v1889_v18 = vrot.slane %v1887_v5, 4  ;;  %3007 = vrot.lane.b32.xlu0 %v4231_v28, %s4478_s22  ;;  %v671_v35 = vsel %vm4590_vm10, %v450_v41, %v670_v31  ;;  %v674_v31 = vld [vmem:[#allocation2 + $0x8c] sm:$0x1] }
  0xf2   : > { %v1598_v12 = vrot.slane %v1597_v2, 4  ;;  %v1888_v51 = vsel %vm4576_vm7, %v4120_v61, %v1887_v5  ;;  %672 = vst [vmem:[#allocation2 + $0x84] sm:$0xf] %v671_v35  ;;  %v2176_v55 = vshrl.u32 %v1951_v19, 16  ;;  %v2179_v43 = vshll.u32 %v1951_v19, 16 }
  0xf3   : > { %v1607_v59 = vor.u32 %v1606_v20, %v1602_v54  ;;  %v1891_v60 = vsel %vm4576_vm7, %v1889_v18, %v1890_v23  ;;  %v455_v29 = vrot.slane %v453_v57, 7  ;;  %v2189_v27 = vshrl.u32 %v5399_v49, 16  ;;  %v732_v2 = vld [vmem:[#allocation2 + $0x78] sm:$0xf] }
  0xf4   : > { %v1603_v32 = vsel %vm4596_vm11, %v1598_v12, %v1602_v54  ;;  %v2178_v9 = vrot.slane %v2176_v55, 4  ;;  %v2181_v37 = vrot.slane %v2179_v43, 5  ;;  %v4247_v48 = vcombine.low %v1951_v19, %v5399_v49  ;;  %v5431_v41 = vpop.permute.xlu1 %2663  ;;  %v5437_v54 = vld [vmem:[#allocation2 + $0x7c] sm:$0xf]  ;;  %v5450_v55 = vld [vmem:[#allocation2 + $0x80] sm:$0x1] }
  0xf5   : > { %v1608_v28 = vrot.slane %v1607_v59, 4  ;;  %v458_v50 = vor.u32 %v456_v56, %v455_v29  ;;  %vm3526_vm8 = vcmask 523264   ;;  %vm3595_vm9 = vcmask 588800   ;;  %v4457_v1 = vld [vmem:[#allocation2 + $0x78] sm:$0xf] }
  0xf6   : > { %v3464_v61 = vsel %vm3460_vm5, %v3431_v0, %v5099_v40  ;;  %v4232_v3 = vcombine.low %v1888_v51, %v1891_v60  ;;  %3103 = vrot.lane.b32.xlu0 %v4247_v48, %s4477_s21  ;;  %v3528_v21 = vsel %vm3526_vm8, %v3495_v6, %v5137_v58  ;;  %v460_v23 = vrot.slane %v455_v29, 4  ;;  %v2375_v60 = vld [vmem:[#allocation2 + $0x78] sm:$0xe] }
  0xf7   : > { %v5417_v17 = vpop.permute.xlu0 %3253  ;;  %v1613_v24 = vsel %vm4596_vm11, %v1608_v28, %v1612_v30  ;;  %v3497_v5 = vsel %vm3493_vm6, %v3464_v61, %v5213_v15  ;;  %v459_v40 = vsel %vm4604_vm12, %v451_v22, %v458_v50  ;;  %4343 = vmatprep.mubr.msk.bf16.mxu0 %vm3595_vm9, %v3528_v21  ;;  %v2182_v58 = vor.u32 %v2181_v37, %v2178_v9 }
  0xf8   : > { %v4216_v20 = vcombine.low %v1603_v32, %v1613_v24  ;;  %v3530_v0 = vsel %vm3526_vm8, %v3497_v5, %v5174_v46  ;;  %673 = vst.msk [vmem:[#allocation2 + $0x88] sm:$0xf] %vm183_vm0, %v459_v40  ;;  %v2185_v15 = vshll.u32 %v5399_v49, 16  ;;  %v2191_v6 = vrot.slane %v2189_v27, 4  ;;  %v5460_v50 = vpop.permute.xlu1 %2665 }
  0xf9   : > { %4344 = vmatmul.mubr.msk.bf16.vlgmr.msra.gmra.mrb[0].mxu0 %vm3595_vm9, %v3530_v0  ;;  %v2195_v19 = vshll.u32 %v5415_v45, 16  ;;  %v1953_v30 = vld [vmem:[#allocation2 + $0x84] sm:$0xf]  ;;  %v3334_v46 = vsel %vm3328_vm15, %v5366_v11, %v5265_v52  ;;  %v675_v18 = vsel %vm4619_vm13, %v460_v23, %v674_v31  ;;  %v3369_v22 = vsel %vm3361_vm1, %v5390_v33, %v5315_v53 }
  0xfa   : > { %2929 = vrot.lane.b32.xlu1 %v4216_v20, %s4480_s24  ;;  %v1004_v12 = vshrl.u32 %v732_v2, 16  ;;  %v2200_v56 = vshrl.u32 %v1953_v30, 16  ;;  %v2203_v35 = vshll.u32 %v1953_v30, 16  ;;  %676 = vst [vmem:[#allocation2 + $0x8c] sm:$0x1] %v675_v18  ;;  %v2183_v59 = vrot.slane %v2182_v58, 4 }
  0xfb   : > { %v5448_v57 = vpop.permute.xlu0 %2743  ;;  %v2187_v51 = vrot.slane %v2185_v15, 5  ;;  %v3367_v52 = vsel %vm3361_vm1, %v3334_v46, %v5280_v62  ;;  %v1007_v43 = vshll.u32 %v732_v2, 16  ;;  %v1013_v32 = vshll.u32 %v5437_v54, 16 }
  0xfc   : > { %v1006_v11 = vrot.slane %v1004_v12, 4  ;;  %v2202_v29 = vrot.slane %v2200_v56, 4  ;;  %v2205_v53 = vrot.slane %v2203_v35, 5  ;;  %v2197_v27 = vrot.slane %v2195_v19, 5 }
  0xfd   : > { %v2192_v33 = vor.u32 %v2191_v6, %v2187_v51  ;;  %v1009_v28 = vrot.slane %v1007_v43, 5  ;;  %v5456_v9 = vrot.slane %v1013_v32, 5  ;;  %v1017_v37 = vshrl.u32 %v5437_v54, 16 }
  0xfe   : > { %3009 = vrot.lane.b32.xlu1 %v4232_v3, %s4478_s22  ;;  %v1023_v48 = vshll.u32 %v5450_v55, 16  ;;  %v2206_v62 = vor.u32 %v2205_v53, %v2202_v29  ;;  %v2188_v61 = vsel %vm4596_vm11, %v2183_v59, %v2187_v51  ;;  %v4135_v21 = vrot.slane %v2375_v60, 9  ;;  %v5477_v29 = vpop.permute.xlu1 %2745 }
  0xff   : > { %v2193_v24 = vrot.slane %v2192_v33, 4  ;;  %v5464_v5 = vpop.permute.xlu0 %2839  ;;  %v1954_v31 = vld [vmem:[#allocation2 + $0x88] sm:$0xf]  ;;  %v1010_v2 = vor.u32 %v1009_v28, %v1006_v11  ;;  %v1019_v3 = vrot.slane %v1017_v37, 4  ;;  %v2489_v40 = vrot.slane %v5399_v49, 5 }
 0x100   : > { %v1025_v20 = vrot.slane %v1023_v48, 5  ;;  %v2213_v0 = vshrl.u32 %v1954_v31, 16  ;;  %v4248_v23 = vcombine.low %v1953_v30, %v1954_v31  ;;  %v2207_v58 = vrot.slane %v2206_v62, 4  ;;  %v734_v49 = vld [vmem:[#allocation2 + $0x84] sm:$0xf] }
 0x101   : > { %v2209_v15 = vshll.u32 %v1954_v31, 16  ;;  %v1976_v6 = vld [vmem:[#allocation2 + $0x8c] sm:$0x1]  ;;  %v2198_v19 = vsel %vm4596_vm11, %v2193_v24, %v2197_v27  ;;  %v1011_v46 = vrot.slane %v1010_v2, 4  ;;  %v1020_v18 = vor.u32 %v1019_v3, %v5456_v9  ;;  %v735_v60 = vld [vmem:[#allocation2 + $0x88] sm:$0xf] }
 0x102   : > { %v2492_v12 = vrot.slane %v5415_v45, 5  ;;  %3105 = vrot.lane.b32.xlu1 %v4248_v23, %s4477_s21  ;;  %v2215_v35 = vrot.slane %v2213_v0, 4  ;;  %v2219_v59 = vshll.u32 %v1976_v6, 16  ;;  %v4263_v51 = vcombine.low %v2188_v61, %v2198_v19  ;;  %v755_v28 = vld [vmem:[#allocation2 + $0x8c] sm:$0x1] }
 0x103   : > { %v2211_v56 = vrot.slane %v2209_v15, 5  ;;  %v1016_v30 = vsel %vm4596_vm11, %v1011_v46, %v5456_v9  ;;  %v1021_v11 = vrot.slane %v1020_v18, 4  ;;  %v2490_v43 = vsel %vm4576_vm7, %v4135_v21, %v2489_v40  ;;  %v2376_v24 = vld [vmem:[#allocation2 + $0x84] sm:$0xe] }
 0x104   : > { %v2491_v32 = vrot.slane %v2489_v40, 4  ;;  %v2221_v33 = vrot.slane %v2219_v59, 5  ;;  %3183 = vrot.lane.b32.xlu0 %v4263_v51, %s4481_s25  ;;  %v3402_v27 = vsel %vm3394_vm2, %v3369_v22, %v5336_v47  ;;  %v3400_v48 = vsel %vm3394_vm2, %v3367_v52, %v5290_v10  ;;  %v1158_v19 = vld [vmem:[#allocation2 + $0x84] sm:$0xe] }
 0x105   : > { %v2212_v45 = vsel %vm4596_vm11, %v2207_v58, %v2211_v56  ;;  %v2216_v53 = vor.u32 %v2215_v35, %v2211_v56  ;;  %v5484_v9 = vpop.permute.xlu0 %2919  ;;  %v1028_v62 = vshrl.u32 %v734_v49, 16  ;;  %v1031_v61 = vshll.u32 %v734_v49, 16 }
 0x106   : > { %v2493_v37 = vsel %vm4576_vm7, %v2491_v32, %v2492_v12  ;;  %v1026_v2 = vsel %vm4596_vm11, %v1021_v11, %v1025_v20  ;;  %v1037_v40 = vshll.u32 %v735_v60, 16  ;;  %v1041_v22 = vshrl.u32 %v735_v60, 16  ;;  %v1157_v20 = vld [vmem:[#allocation2 + $0x78] sm:$0xe] }
 0x107   : > { %v2217_v21 = vrot.slane %v2216_v53, 4  ;;  %v4279_v3 = vcombine.low %v2490_v43, %v2493_v37  ;;  %v1030_v0 = vrot.slane %v1028_v62, 4  ;;  %v1033_v47 = vrot.slane %v1031_v61, 5  ;;  %v5495_v35 = vpop.permute.xlu1 %2841 }
 0x108   : > { %v1047_v23 = vshll.u32 %v755_v28, 16  ;;  %v1039_v15 = vrot.slane %v1037_v40, 5  ;;  %v4136_v10 = vrot.slane %v2376_v24, 9  ;;  %v2496_v52 = vrot.slane %v1954_v31, 5 }
 0x109   : > { %v2222_v58 = vsel %vm4596_vm11, %v2217_v21, %v2221_v33  ;;  %3263 = vrot.lane.b32.xlu0 %v4279_v3, %s4479_s23  ;;  %v4169_v18 = vcombine.low %v1016_v30, %v1026_v2  ;;  %v1034_v12 = vor.u32 %v1033_v47, %v1030_v0  ;;  %v1043_v56 = vrot.slane %v1041_v22, 4  ;;  %v5499_v43 = vpop.permute.xlu0 %2999  ;;  %v261_v2 = vld [vmem:[%s4574_s17 + $0x58] sm:$0xf] }
 0x10a   : > { %v4264_v46 = vcombine.low %v2212_v45, %v2222_v58  ;;  %v1049_v59 = vrot.slane %v1047_v23, 5  ;;  %v2497_v51 = vsel %vm4576_vm7, %v4136_v10, %v2496_v52  ;;  %v2498_v49 = vrot.slane %v2496_v52, 4 }
 0x10b   : > { %v2499_v11 = vrot.slane %v1976_v6, 5  ;;  %v1035_v31 = vrot.slane %v1034_v12, 4  ;;  %v1044_v32 = vor.u32 %v1043_v56, %v1039_v15  ;;  %v3435_v30 = vsel %vm3427_vm3, %v3402_v27, %v5359_v4 }
 0x10c   : > { %3185 = vrot.lane.b32.xlu1 %v4264_v46, %s4481_s25  ;;  %v4106_v45 = vrot.slane %v1158_v19, 9  ;;  %v1293_v33 = vrot.slane %v735_v60, 5  ;;  %v1296_v37 = vrot.slane %v755_v28, 5  ;;  %v4105_v62 = vrot.slane %v1157_v20, 9  ;;  %v262_v60 = vld [vmem:[%s4574_s17 + $0x5c] sm:$0xf] }
 0x10d   : > { %v2500_v53 = vsel %vm4576_vm7, %v2498_v49, %v2499_v11  ;;  %v1040_v6 = vsel %vm4596_vm11, %v1035_v31, %v1039_v15  ;;  %v1045_v61 = vrot.slane %v1044_v32, 4  ;;  %v1286_v21 = vrot.slane %v5437_v54, 5  ;;  %v1347_v15 = vld [vmem:[#allocation2 + $0x88] sm:$0xf]  ;;  %v5528_v10 = vpop.permute.xlu0 %3095  ;;  %v677_v49 = vld [vmem:[#allocation2 + $0x90] sm:$0xf] }
 0x10e   : > { %v4280_v24 = vcombine.low %v2497_v51, %v2500_v53  ;;  %v3433_v3 = vsel %vm3427_vm3, %v3400_v48, %v5317_v13  ;;  %v1294_v4 = vsel %vm4576_vm7, %v4106_v45, %v1293_v33  ;;  %v1295_v27 = vrot.slane %v1293_v33, 4  ;;  %v1346_v48 = vld [vmem:[#allocation2 + $0x84] sm:$0xf]  ;;  %v1368_v32 = vld [vmem:[#allocation2 + $0x8c] sm:$0x1] }
 0x10f   : > { %v1289_v40 = vrot.slane %v5450_v55, 5  ;;  %v1050_v28 = vsel %vm4596_vm11, %v1045_v61, %v1049_v59  ;;  %v1287_v54 = vsel %vm4576_vm7, %v4105_v62, %v1286_v21  ;;  %v1288_v0 = vrot.slane %v1286_v21, 4  ;;  %v1768_v21 = vld [vmem:[#allocation2 + $0x84] sm:$0xe] }
 0x110   : > { %2675 = vrot.lane.b32.xlu1 %v4169_v18, %s4475_s19  ;;  %3265 = vrot.lane.b32.xlu0 %v4280_v24, %s4479_s23  ;;  %v3468_v13 = vsel %vm3460_vm5, %v3435_v30, %v5385_v42  ;;  %v5524_v47 = vpop.permute.xlu1 %2921  ;;  %v4170_v22 = vcombine.low %v1040_v6, %v1050_v28  ;;  %v1297_v55 = vsel %vm4576_vm7, %v1295_v27, %v1296_v37  ;;  %v462_v23 = vshrl.u32 %v261_v2, 16  ;;  %v681_v37 = vld [vmem:[#allocation2 + $0x98] sm:$0x1] }
 0x111   : > { %v465_v58 = vshll.u32 %v261_v2, 16  ;;  %v1290_v52 = vsel %vm4576_vm7, %v1288_v0, %v1289_v40  ;;  %v3466_v19 = vsel %vm3460_vm5, %v3433_v3, %v5338_v14  ;;  %v470_v46 = vshrl.u32 %v262_v60, 16  ;;  %v263_v0 = vld [vmem:[%s4574_s17 + $0x60] sm:$0xf] }
 0x112   : > { %v473_v42 = vshll.u32 %v262_v60, 16  ;;  %v4185_v18 = vcombine.low %v1287_v54, %v1290_v52  ;;  %v464_v12 = vrot.slane %v462_v23, 7  ;;  %v1615_v56 = vshrl.u32 %v1346_v48, 16  ;;  %v264_v23 = vld [vmem:[%s4574_s17 + $0x64] sm:$0xf] }
 0x113   : > { %v1618_v20 = vshll.u32 %v1346_v48, 16  ;;  %v4186_v59 = vcombine.low %v1294_v4, %v1297_v55  ;;  %v472_v51 = vrot.slane %v470_v46, 7  ;;  %v1628_v11 = vshrl.u32 %v1347_v15, 16 }
 0x114   : > { %2677 = vrot.lane.b32.xlu1 %v4170_v22, %s4475_s19  ;;  %v4201_v31 = vcombine.low %v1346_v48, %v1347_v15  ;;  %v5535_v30 = vpop.permute.xlu1 %3001  ;;  %2755 = vrot.lane.b32.xlu0 %v4185_v18, %s4474_s18  ;;  %v467_v45 = vor.u32 %v465_v58, %v464_v12  ;;  %v468_v14 = vrot.slane %v464_v12, 4  ;;  %v1617_v53 = vrot.slane %v1615_v56, 4 }
 0x115   : > { %v1620_v33 = vrot.slane %v1618_v20, 5  ;;  %v475_v62 = vor.u32 %v473_v42, %v472_v51  ;;  %v3501_v6 = vsel %vm3493_vm6, %v3468_v13, %v5403_v39  ;;  %v477_v61 = vrot.slane %v472_v51, 4  ;;  %v5542_v40 = vpop.permute.xlu0 %3175 }
 0x116   : > { %v1624_v24 = vshll.u32 %v1347_v15, 16  ;;  %v678_v2 = vsel %vm4590_vm10, %v467_v45, %v677_v49  ;;  %v1630_v4 = vrot.slane %v1628_v11, 4  ;;  %v1634_v27 = vshll.u32 %v1368_v32, 16 }
 0x117   : > { %v1621_v3 = vor.u32 %v1620_v33, %v1617_v53  ;;  %v476_v60 = vsel %vm4604_vm12, %v468_v14, %v475_v62  ;;  %679 = vst [vmem:[#allocation2 + $0x90] sm:$0xf] %v678_v2  ;;  %v3499_v39 = vsel %vm3493_vm6, %v3466_v19, %v5379_v38  ;;  %v682_v28 = vsel %vm4619_vm13, %v477_v61, %v681_v37 }
 0x118   : > { %2757 = vrot.lane.b32.xlu1 %v4186_v59, %s4474_s18  ;;  %v1626_v54 = vrot.slane %v1624_v24, 5  ;;  %680 = vst.msk [vmem:[#allocation2 + $0x94] sm:$0xf] %vm183_vm0, %v476_v60  ;;  %2851 = vrot.lane.b32.xlu0 %v4201_v31, %s4476_s20  ;;  %683 = vst [vmem:[#allocation2 + $0x98] sm:$0x1] %v682_v28  ;;  %v1636_v48 = vrot.slane %v1634_v27, 5  ;;  %v3532_v22 = vsel %vm3526_vm8, %v3499_v39, %v5396_v16  ;;  %v5563_v42 = vpop.permute.xlu1 %3097 }
 0x119   : > { %v1622_v13 = vrot.slane %v1621_v3, 4  ;;  %v4121_v55 = vrot.slane %v1768_v21, 9  ;;  %v1894_v52 = vrot.slane %v1347_v15, 5  ;;  %v1897_v38 = vrot.slane %v1368_v32, 5  ;;  %4347 = vmatprep.mubr.msk.bf16.mxu0 %vm3595_vm9, %v3532_v22  ;;  %v684_v60 = vld [vmem:[#allocation2 + $0x9c] sm:$0xf] }
 0x11a   : > { %v1631_v58 = vor.u32 %v1630_v4, %v1626_v54  ;;  %v6325_v19 = vcombine.low %v4911_v7, %v4921_v25  ;;  %v3534_v16 = vsel %vm3526_vm8, %v3501_v6, %v5417_v17  ;;  %v479_v12 = vshrl.u32 %v263_v0, 16 }
 0x11b   : > { %v1627_v18 = vsel %vm4596_vm11, %v1622_v13, %v1626_v54  ;;  %v482_v56 = vshll.u32 %v263_v0, 16  ;;  %v1895_v20 = vsel %vm4576_vm7, %v4121_v55, %v1894_v52  ;;  %v1896_v59 = vrot.slane %v1894_v52, 4  ;;  %4348 = vmatmul.mubr.msk.bf16.gmra.mrb[4].mxu0 %vm3595_vm9, %v3534_v16 }
 0x11c   : > { %v3297_v46 = vsel %vm3279_vm14, %v6325_v19, %v5460_v50  ;;  %v1632_v15 = vrot.slane %v1631_v58, 4  ;;  %v487_v51 = vshrl.u32 %v264_v23, 16  ;;  %v6326_v7 = vcombine.low %v4874_v26, %v4890_v8  ;;  %v5579_v11 = vpop.permute.xlu0 %3255  ;;  %v5596_v2 = vpop.permute.xlu1 %3177 }
 0x11d   : > { %v481_v50 = vrot.slane %v479_v12, 7  ;;  %v490_v49 = vshll.u32 %v264_v23, 16  ;;  %v3340_v17 = vsel %vm3328_vm15, %v3297_v46, %v5477_v29  ;;  %v1898_v32 = vsel %vm4576_vm7, %v1896_v59, %v1897_v38 }
 0x11e   : > { %v3294_v25 = vsel %vm3279_vm14, %v6326_v7, %v5431_v41  ;;  %v1637_v31 = vsel %vm4596_vm11, %v1632_v15, %v1636_v48  ;;  %v5585_v45 = vrot.slane %v487_v51, 7  ;;  %v1348_v8 = vld [vmem:[#allocation2 + $0x90] sm:$0xf]  ;;  %v4233_v53 = vcombine.low %v1895_v20, %v1898_v32 }
 0x11f   : > { %v5589_v26 = vsel %vm3328_vm15, %v3294_v25, %v5448_v57  ;;  %v4217_v41 = vcombine.low %v1627_v18, %v1637_v31  ;;  %v1769_v14 = vld [vmem:[#allocation2 + $0x90] sm:$0xe]  ;;  %v485_v33 = vrot.slane %v481_v50, 4  ;;  %v5593_v29 = vsel %vm3361_vm1, %v3340_v17, %v5495_v35  ;;  %v1349_v37 = vld [vmem:[#allocation2 + $0x94] sm:$0xf] }
 0x120   : > { %v1639_v62 = vshrl.u32 %v1348_v8, 16  ;;  %v1642_v6 = vshll.u32 %v1348_v8, 16  ;;  %v1369_v61 = vld [vmem:[#allocation2 + $0x98] sm:$0x1]  ;;  %v484_v24 = vor.u32 %v482_v56, %v481_v50  ;;  %v492_v21 = vor.u32 %v490_v49, %v5585_v45  ;;  %v1955_v0 = vld [vmem:[#allocation2 + $0x90] sm:$0xf]  ;;  %v5620_v50 = vpop.permute.xlu1 %2667 }
 0x121   : > { %v1652_v57 = vshrl.u32 %v1349_v37, 16  ;;  %v4202_v3 = vcombine.low %v1348_v8, %v1349_v37  ;;  %v1648_v4 = vshll.u32 %v1349_v37, 16  ;;  %v1658_v27 = vshll.u32 %v1369_v61, 16  ;;  %2931 = vrot.lane.b32.xlu0 %v4217_v41, %s4480_s24  ;;  %v5600_v23 = vld [vmem:[#allocation2 + $0x94] sm:$0xf] }
 0x122   : > { %v1641_v39 = vrot.slane %v1639_v62, 4  ;;  %v1644_v28 = vrot.slane %v1642_v6, 5  ;;  %v4122_v35 = vrot.slane %v1769_v14, 9  ;;  %v1901_v54 = vrot.slane %v1349_v37, 5  ;;  %v5618_v7 = vld [vmem:[#allocation2 + $0x98] sm:$0x1] }
 0x123   : > { %2853 = vrot.lane.b32.xlu1 %v4202_v3, %s4476_s20  ;;  %v1650_v13 = vrot.slane %v1648_v4, 5  ;;  %v1654_v48 = vrot.slane %v1652_v57, 4  ;;  %v1660_v22 = vrot.slane %v1658_v27, 5  ;;  %v1904_v55 = vrot.slane %v1369_v61, 5  ;;  %v5602_v58 = vpop.permute.xlu0 %3257  ;;  %v736_v25 = vld [vmem:[#allocation2 + $0x90] sm:$0xf] }
 0x124   : > { %v1645_v52 = vor.u32 %v1644_v28, %v1641_v39  ;;  %v5606_v38 = vsel %vm4576_vm7, %v4122_v35, %v1901_v54  ;;  %v1903_v19 = vrot.slane %v1901_v54, 4  ;;  %v493_v46 = vsel %vm4604_vm12, %v485_v33, %v492_v21  ;;  %v688_v8 = vld [vmem:[#allocation2 + $0xa4] sm:$0x1]  ;;  %v5627_v37 = vld [vmem:[#allocation2 + $0x94] sm:$0xf] }
 0x125   : > { %v1655_v18 = vor.u32 %v1654_v48, %v1650_v13  ;;  %3011 = vrot.lane.b32.xlu0 %v4233_v53, %s4478_s22  ;;  %v685_v16 = vsel %vm4590_vm10, %v484_v24, %v684_v60  ;;  %687 = vst.msk [vmem:[#allocation2 + $0xa0] sm:$0xf] %vm183_vm0, %v493_v46  ;;  %v2224_v12 = vshrl.u32 %v1955_v0, 16  ;;  %v2227_v56 = vshll.u32 %v1955_v0, 16  ;;  %v5633_v24 = vld [vmem:[#allocation2 + $0x98] sm:$0x1] }
 0x126   : > { %v1646_v15 = vrot.slane %v1645_v52, 4  ;;  %v1905_v20 = vsel %vm4576_vm7, %v1903_v19, %v1904_v55  ;;  %686 = vst [vmem:[#allocation2 + $0x9c] sm:$0xf] %v685_v16  ;;  %v2237_v59 = vshrl.u32 %v5600_v23, 16  ;;  %v4249_v51 = vcombine.low %v1955_v0, %v5600_v23  ;;  %v5645_v55 = vpop.permute.xlu1 %2669 }
 0x127   : > { %v1656_v49 = vrot.slane %v1655_v18, 4  ;;  %v4234_v17 = vcombine.low %v5606_v38, %v1905_v20  ;;  %v2226_v31 = vrot.slane %v2224_v12, 4  ;;  %v2229_v32 = vrot.slane %v2227_v56, 5  ;;  %v5635_v57 = vpop.permute.xlu0 %2747 }
 0x128   : > { %v1651_v41 = vsel %vm4596_vm11, %v1646_v15, %v1650_v13  ;;  %v494_v14 = vrot.slane %v5585_v45, 4  ;;  %v2233_v53 = vshll.u32 %v5600_v23, 16  ;;  %v2239_v33 = vrot.slane %v2237_v59, 4 }
 0x129   : > { %v1661_v62 = vsel %vm4596_vm11, %v1656_v49, %v1660_v22  ;;  %3107 = vrot.lane.b32.xlu0 %v4249_v51, %s4477_s21  ;;  %v2230_v6 = vor.u32 %v2229_v32, %v2226_v31  ;;  %v2243_v61 = vshll.u32 %v5618_v7, 16  ;;  %v1052_v21 = vshrl.u32 %v736_v25, 16  ;;  %v2377_v49 = vld [vmem:[#allocation2 + $0x90] sm:$0xe] }
 0x12a   : > { %v4218_v3 = vcombine.low %v1651_v41, %v1661_v62  ;;  %v689_v45 = vsel %vm4619_vm13, %v494_v14, %v688_v8  ;;  %v2235_v4 = vrot.slane %v2233_v53, 5  ;;  %v1055_v27 = vshll.u32 %v736_v25, 16 }
 0x12b   : > { %690 = vst [vmem:[#allocation2 + $0xa4] sm:$0x1] %v689_v45  ;;  %v2231_v60 = vrot.slane %v2230_v6, 4  ;;  %v2245_v39 = vrot.slane %v2243_v61, 5  ;;  %v1054_v28 = vrot.slane %v1052_v21, 4  ;;  %v1061_v35 = vshll.u32 %v5627_v37, 16  ;;  %v5652_v31 = vpop.permute.xlu0 %2843 }
 0x12c   : > { %2933 = vrot.lane.b32.xlu1 %v4218_v3, %s4480_s24  ;;  %v5641_v54 = vld [vmem:[#allocation2 + $0xa0] sm:$0xf]  ;;  %v2240_v0 = vor.u32 %v2239_v33, %v2235_v4  ;;  %v1057_v13 = vrot.slane %v1055_v27, 5  ;;  %v1065_v48 = vshrl.u32 %v5627_v37, 16  ;;  %v1071_v22 = vshll.u32 %v5633_v24, 16 }
 0x12d   : > { %v1957_v52 = vld [vmem:[#allocation2 + $0x9c] sm:$0xf]  ;;  %v2261_v38 = vshrl.u32 %v5641_v54, 16  ;;  %v2257_v19 = vshll.u32 %v5641_v54, 16  ;;  %v2236_v46 = vsel %vm4596_vm11, %v2231_v60, %v2235_v4  ;;  %v1063_v18 = vrot.slane %v1061_v35, 5  ;;  %v5663_v4 = vpop.permute.xlu1 %2749 }
 0x12e   : > { %v2248_v16 = vshrl.u32 %v1957_v52, 16  ;;  %v2251_v12 = vshll.u32 %v1957_v52, 16  ;;  %v4250_v56 = vcombine.low %v1957_v52, %v5641_v54  ;;  %v2241_v15 = vrot.slane %v2240_v0, 4  ;;  %v738_v35 = vld [vmem:[#allocation2 + $0x9c] sm:$0xf] }
 0x12f   : > { %v2259_v20 = vrot.slane %v2257_v19, 5  ;;  %v2263_v59 = vrot.slane %v2261_v38, 4  ;;  %v1058_v51 = vor.u32 %v1057_v13, %v1054_v28  ;;  %v1067_v25 = vrot.slane %v1065_v48, 4  ;;  %v739_v13 = vld [vmem:[#allocation2 + $0xa0] sm:$0xf] }
 0x130   : > { %3013 = vrot.lane.b32.xlu1 %v4234_v17, %s4478_s22  ;;  %v2250_v32 = vrot.slane %v2248_v16, 4  ;;  %v2253_v8 = vrot.slane %v2251_v12, 5  ;;  %v2246_v41 = vsel %vm4596_vm11, %v2241_v15, %v2245_v39  ;;  %v1073_v14 = vrot.slane %v1071_v22, 5 }
 0x131   : > { %v2264_v53 = vor.u32 %v2263_v59, %v2259_v20  ;;  %v4265_v33 = vcombine.low %v2236_v46, %v2246_v41  ;;  %v1059_v62 = vrot.slane %v1058_v51, 4  ;;  %v1068_v6 = vor.u32 %v1067_v25, %v1063_v18  ;;  %v5679_v46 = vpop.permute.xlu0 %2923 }
 0x132   : > { %v5657_v61 = vld [vmem:[#allocation2 + $0xa4] sm:$0x1]  ;;  %v2254_v21 = vor.u32 %v2253_v8, %v2250_v32  ;;  %v3371_v3 = vsel %vm3361_vm1, %v5589_v26, %v5464_v5  ;;  %v4137_v45 = vrot.slane %v2377_v49, 9  ;;  %v2503_v17 = vrot.slane %v5600_v23, 5  ;;  %v1160_v8 = vld [vmem:[#allocation2 + $0x9c] sm:$0xe] }
 0x133   : > { %v2265_v27 = vrot.slane %v2264_v53, 4  ;;  %v2267_v60 = vshll.u32 %v5657_v61, 16  ;;  %3187 = vrot.lane.b32.xlu0 %v4265_v33, %s4481_s25  ;;  %v1069_v39 = vrot.slane %v1068_v6, 4  ;;  %v1303_v28 = vrot.slane %v5633_v24, 5  ;;  %v757_v19 = vld [vmem:[#allocation2 + $0xa4] sm:$0x1] }
 0x134   : > { %3109 = vrot.lane.b32.xlu1 %v4250_v56, %s4477_s21  ;;  %v2255_v0 = vrot.slane %v2254_v21, 4  ;;  %v2504_v5 = vsel %vm4576_vm7, %v4137_v45, %v2503_v17  ;;  %v2505_v26 = vrot.slane %v2503_v17, 4  ;;  %v2506_v23 = vrot.slane %v5618_v7, 5  ;;  %v2378_v56 = vld [vmem:[#allocation2 + $0x9c] sm:$0xe] }
 0x135   : > { %v2269_v48 = vrot.slane %v2267_v60, 5  ;;  %v1064_v22 = vsel %vm4596_vm11, %v1059_v62, %v1063_v18  ;;  %v1074_v52 = vsel %vm4596_vm11, %v1069_v39, %v1073_v14  ;;  %v3406_v38 = vsel %vm3394_vm2, %v5593_v29, %v5524_v47  ;;  %v5697_v39 = vpop.permute.xlu0 %3003 }
 0x136   : > { %v2260_v16 = vsel %vm4596_vm11, %v2255_v0, %v2259_v20  ;;  %v2507_v7 = vsel %vm4576_vm7, %v2505_v26, %v2506_v23  ;;  %v3404_v12 = vsel %vm3394_vm2, %v3371_v3, %v5484_v9  ;;  %v1076_v18 = vshrl.u32 %v738_v35, 16  ;;  %v5689_v20 = vpop.permute.xlu1 %2845  ;;  %v1159_v3 = vld [vmem:[#allocation2 + $0x90] sm:$0xe] }
 0x137   : > { %v2270_v15 = vsel %vm4596_vm11, %v2265_v27, %v2269_v48  ;;  %v4281_v59 = vcombine.low %v2504_v5, %v2507_v7  ;;  %v1079_v51 = vshll.u32 %v738_v35, 16  ;;  %v1085_v47 = vshll.u32 %v739_v13, 16 }
 0x138   : > { %v4266_v29 = vcombine.low %v2260_v16, %v2270_v15  ;;  %v1078_v25 = vrot.slane %v1076_v18, 4  ;;  %v1089_v49 = vshrl.u32 %v739_v13, 16  ;;  %v1095_v32 = vshll.u32 %v757_v19, 16 }
 0x139   : > { %v4171_v41 = vcombine.low %v1064_v22, %v1074_v52  ;;  %3267 = vrot.lane.b32.xlu0 %v4281_v59, %s4479_s23  ;;  %v1081_v14 = vrot.slane %v1079_v51, 5  ;;  %v1087_v9 = vrot.slane %v1085_v47, 5  ;;  %v4138_v53 = vrot.slane %v2378_v56, 9  ;;  %v265_v22 = vld [vmem:[%s4574_s17 + $0x68] sm:$0xf] }
 0x13a   : > { %3189 = vrot.lane.b32.xlu1 %v4266_v29, %s4481_s25  ;;  %v1091_v33 = vrot.slane %v1089_v49, 4  ;;  %v1310_v62 = vrot.slane %v757_v19, 5  ;;  %v2510_v6 = vrot.slane %v5641_v54, 5  ;;  %v2513_v21 = vrot.slane %v5657_v61, 5  ;;  %v1350_v59 = vld [vmem:[#allocation2 + $0x9c] sm:$0xf] }
 0x13b   : > { %v1082_v45 = vor.u32 %v1081_v14, %v1078_v25  ;;  %v1097_v17 = vrot.slane %v1095_v32, 5  ;;  %v3439_v27 = vsel %vm3427_vm3, %v3406_v38, %v5535_v30  ;;  %v4108_v60 = vrot.slane %v1160_v8, 9  ;;  %v5725_v51 = vld [vmem:[#allocation2 + $0xa0] sm:$0xf]  ;;  %v5734_v32 = vpop.permute.xlu0 %3099 }
 0x13c   : > { %v1092_v35 = vor.u32 %v1091_v33, %v1087_v9  ;;  %v2511_v0 = vsel %vm4576_vm7, %v4138_v53, %v2510_v6  ;;  %v2512_v5 = vrot.slane %v2510_v6, 4  ;;  %v1307_v26 = vrot.slane %v739_v13, 5  ;;  %v691_v33 = vld [vmem:[#allocation2 + $0xa8] sm:$0xf] }
 0x13d   : > { %v1083_v54 = vrot.slane %v1082_v45, 4  ;;  %v3437_v61 = vsel %vm3427_vm3, %v3404_v12, %v5499_v43  ;;  %v4107_v23 = vrot.slane %v1159_v3, 9  ;;  %v1300_v48 = vrot.slane %v5627_v37, 5  ;;  %v5712_v13 = vpop.permute.xlu1 %2925  ;;  %v266_v12 = vld [vmem:[%s4574_s17 + $0x6c] sm:$0xf] }
 0x13e   : > { %2679 = vrot.lane.b32.xlu1 %v4171_v41, %s4475_s19  ;;  %v1093_v30 = vrot.slane %v1092_v35, 4  ;;  %v2514_v52 = vsel %vm4576_vm7, %v2512_v5, %v2513_v21  ;;  %v1309_v38 = vrot.slane %v1307_v26, 4  ;;  %v5710_v19 = vsel %vm3460_vm5, %v3439_v27, %v5563_v42  ;;  %v695_v45 = vld [vmem:[#allocation2 + $0xb0] sm:$0x1] }
 0x13f   : > { %v1088_v43 = vsel %vm4596_vm11, %v1083_v54, %v1087_v9  ;;  %v4282_v16 = vcombine.low %v2511_v0, %v2514_v52  ;;  %v1301_v37 = vsel %vm4576_vm7, %v4107_v23, %v1300_v48  ;;  %v1302_v7 = vrot.slane %v1300_v48, 4 }
 0x140   : > { %v1098_v18 = vsel %vm4596_vm11, %v1093_v30, %v1097_v17  ;;  %v1308_v56 = vsel %vm4576_vm7, %v4108_v60, %v1307_v26  ;;  %v1311_v42 = vsel %vm4576_vm7, %v1309_v38, %v1310_v62  ;;  %v496_v15 = vshrl.u32 %v265_v22, 16  ;;  %v1370_v17 = vld [vmem:[#allocation2 + $0xa4] sm:$0x1]  ;;  %v1770_v26 = vld [vmem:[#allocation2 + $0x9c] sm:$0xe] }
 0x141   : > { %v4172_v47 = vcombine.low %v1088_v43, %v1098_v18  ;;  %3269 = vrot.lane.b32.xlu0 %v4282_v16, %s4479_s23  ;;  %v1304_v29 = vsel %vm4576_vm7, %v1302_v7, %v1303_v28  ;;  %v3470_v25 = vsel %vm3460_vm5, %v3437_v61, %v5528_v10  ;;  %v499_v49 = vshll.u32 %v265_v22, 16  ;;  %v5739_v27 = vpop.permute.xlu1 %3005  ;;  %v4449_v38 = vld [vmem:[#allocation2 + $0x48] sm:$0xf]  ;;  %v4450_v43 = vld [vmem:[#allocation2 + $0x4c] sm:$0xf] }
 0x142   : > { %v4187_v8 = vcombine.low %v1301_v37, %v1304_v29  ;;  %v498_v41 = vrot.slane %v496_v15, 7  ;;  %v504_v14 = vshrl.u32 %v266_v12, 16  ;;  %v507_v9 = vshll.u32 %v266_v12, 16  ;;  %v268_v29 = vld [vmem:[%s4574_s17 + $0x74] sm:$0xf] }
 0x143   : > { %2681 = vrot.lane.b32.xlu1 %v4172_v47, %s4475_s19  ;;  %v4188_v53 = vcombine.low %v1308_v56, %v1311_v42  ;;  %v1663_v62 = vshrl.u32 %v1350_v59, 16  ;;  %v1666_v6 = vshll.u32 %v1350_v59, 16  ;;  %v1676_v24 = vshrl.u32 %v5725_v51, 16  ;;  %v267_v56 = vld [vmem:[%s4574_s17 + $0x70] sm:$0xf] }
 0x144   : > { %v501_v21 = vor.u32 %v499_v49, %v498_v41  ;;  %v502_v28 = vrot.slane %v498_v41, 4  ;;  %v506_v3 = vrot.slane %v504_v14, 7  ;;  %v4203_v10 = vcombine.low %v1350_v59, %v5725_v51  ;;  %v4451_v49 = vld [vmem:[#allocation2 + $0x54] sm:$0xf] }
 0x145   : > { %2759 = vrot.lane.b32.xlu0 %v4187_v8, %s4474_s18  ;;  %v1665_v60 = vrot.slane %v1663_v62, 4  ;;  %v1668_v35 = vrot.slane %v1666_v6, 5  ;;  %v3503_v0 = vsel %vm3493_vm6, %v3470_v25, %v5542_v40  ;;  %v1672_v5 = vshll.u32 %v5725_v51, 16  ;;  %v5748_v16 = vpop.permute.xlu0 %3179  ;;  %v4452_v8 = vld [vmem:[#allocation2 + $0x58] sm:$0xf] }
 0x146   : > { %v509_v54 = vor.u32 %v507_v9, %v506_v3  ;;  %v692_v61 = vsel %vm4590_vm10, %v501_v21, %v691_v33  ;;  %v511_v23 = vrot.slane %v506_v3, 4  ;;  %v1678_v48 = vrot.slane %v1676_v24, 4  ;;  %v5767_v9 = vpop.permute.xlu1 %3101 }
 0x147   : > { %2761 = vrot.lane.b32.xlu1 %v4188_v53, %s4474_s18  ;;  %693 = vst [vmem:[#allocation2 + $0xa8] sm:$0xf] %v692_v61  ;;  %v1669_v22 = vor.u32 %v1668_v35, %v1665_v60  ;;  %v1674_v30 = vrot.slane %v1672_v5, 5  ;;  %v1682_v52 = vshll.u32 %v1370_v17, 16  ;;  %v4149_v40 = vcombine.low %v4449_v38, %v4450_v43 }
 0x148   : > { %v510_v37 = vsel %vm4604_vm12, %v502_v28, %v509_v54  ;;  %v696_v7 = vsel %vm4619_vm13, %v511_v23, %v695_v45  ;;  %v3536_v12 = vsel %vm3526_vm8, %v3503_v0, %v5579_v11  ;;  %v4123_v18 = vrot.slane %v1770_v26, 9  ;;  %v698_v0 = vld [vmem:[#allocation2 + $0xb4] sm:$0xf] }
 0x149   : > { %694 = vst.msk [vmem:[#allocation2 + $0xac] sm:$0xf] %vm183_vm0, %v510_v37  ;;  %2855 = vrot.lane.b32.xlu0 %v4203_v10, %s4476_s20  ;;  %v3505_v42 = vsel %vm3493_vm6, %v5710_v19, %v5596_v2  ;;  %697 = vst [vmem:[#allocation2 + $0xb0] sm:$0x1] %v696_v7  ;;  %v1670_v15 = vrot.slane %v1669_v22, 4  ;;  %v1679_v59 = vor.u32 %v1678_v48, %v1674_v30  ;;  %v1684_v47 = vrot.slane %v1682_v52, 5 }
 0x14a   : > { %4351 = vmatprep.mubr.msk.bf16.mxu0 %vm3595_vm9, %v3536_v12  ;;  %v1908_v25 = vrot.slane %v5725_v51, 5  ;;  %v1911_v11 = vrot.slane %v1370_v17, 5  ;;  %v4150_v41 = vcombine.low %v4451_v49, %v4452_v8  ;;  %v3538_v14 = vsel %vm3526_vm8, %v3505_v42, %v5602_v58  ;;  %v5782_v10 = vpop.permute.xlu0 %3259 }
 0x14b   : > { %v1675_v2 = vsel %vm4596_vm11, %v1670_v15, %v1674_v30  ;;  %v1680_v19 = vrot.slane %v1679_v59, 4  ;;  %v5773_v53 = vsel %vm3279_vm14, %v4149_v40, %v5620_v50  ;;  %v513_v33 = vshrl.u32 %v267_v56, 16  ;;  %4352 = vmatmul.mubr.msk.bf16.gmra.mrb[8].mxu0 %vm3595_vm9, %v3538_v14  ;;  %v5791_v40 = vpop.permute.xlu1 %3181 }
 0x14c   : > { %v1909_v51 = vsel %vm4576_vm7, %v4123_v18, %v1908_v25  ;;  %v1910_v62 = vrot.slane %v1908_v25, 4  ;;  %v516_v6 = vshll.u32 %v267_v56, 16  ;;  %v521_v24 = vshrl.u32 %v268_v29, 16 }
 0x14d   : > { %v1685_v58 = vsel %vm4596_vm11, %v1680_v19, %v1684_v47  ;;  %v3303_v21 = vsel %vm3279_vm14, %v4150_v41, %v5645_v55  ;;  %v515_v28 = vrot.slane %v513_v33, 7  ;;  %v524_v3 = vshll.u32 %v268_v29, 16  ;;  %v702_v19 = vld [vmem:[#allocation2 + $0xbc] sm:$0x1] }
 0x14e   : > { %v1352_v50 = vld [vmem:[#allocation2 + $0xa8] sm:$0xf]  ;;  %v4219_v45 = vcombine.low %v1675_v2, %v1685_v58  ;;  %v1912_v60 = vsel %vm4576_vm7, %v1910_v62, %v1911_v11  ;;  %v523_v35 = vrot.slane %v521_v24, 7  ;;  %v5788_v5 = vsel %vm3328_vm15, %v3303_v21, %v5663_v4 }
 0x14f   : > { %v1771_v17 = vld [vmem:[#allocation2 + $0xa8] sm:$0xe]  ;;  %v1687_v26 = vshrl.u32 %v1352_v50, 16  ;;  %v1690_v54 = vshll.u32 %v1352_v50, 16  ;;  %v4235_v55 = vcombine.low %v1909_v51, %v1912_v60  ;;  %v518_v30 = vor.u32 %v516_v6, %v515_v28 }
 0x150   : > { %v4124_v61 = vrot.slane %v1771_v17, 9  ;;  %v1959_v23 = vld [vmem:[#allocation2 + $0xa8] sm:$0xf]  ;;  %v1353_v48 = vld [vmem:[#allocation2 + $0xac] sm:$0xf]  ;;  %2935 = vrot.lane.b32.xlu0 %v4219_v45, %s4480_s24  ;;  %v519_v52 = vrot.slane %v515_v28, 4  ;;  %v526_v38 = vor.u32 %v524_v3, %v523_v35  ;;  %v5821_v60 = vsel %vm3328_vm15, %v5773_v53, %v5635_v57 }
 0x151   : > { %v1371_v22 = vld [vmem:[#allocation2 + $0xb0] sm:$0x1]  ;;  %v2272_v43 = vshrl.u32 %v1959_v23, 16  ;;  %v1689_v37 = vrot.slane %v1687_v26, 4  ;;  %v1692_v7 = vrot.slane %v1690_v54, 5  ;;  %v1700_v12 = vshrl.u32 %v1353_v48, 16  ;;  %v5800_v49 = vpop.permute.xlu0 %3261 }
 0x152   : > { %v4204_v4 = vcombine.low %v1352_v50, %v1353_v48  ;;  %v1696_v18 = vshll.u32 %v1353_v48, 16  ;;  %v1706_v56 = vshll.u32 %v1371_v22, 16  ;;  %v1915_v42 = vrot.slane %v1353_v48, 5  ;;  %v5793_v59 = vld [vmem:[#allocation2 + $0xac] sm:$0xf]  ;;  %v5814_v50 = vpop.permute.xlu1 %2671 }
 0x153   : > { %v1918_v15 = vrot.slane %v1371_v22, 5  ;;  %v1693_v47 = vor.u32 %v1692_v7, %v1689_v37  ;;  %v1702_v29 = vrot.slane %v1700_v12, 4  ;;  %v527_v25 = vsel %vm4604_vm12, %v519_v52, %v526_v38  ;;  %v5809_v24 = vld [vmem:[#allocation2 + $0xb0] sm:$0x1]  ;;  %v5824_v26 = vld [vmem:[#allocation2 + $0xa8] sm:$0xf] }
 0x154   : > { %2857 = vrot.lane.b32.xlu1 %v4204_v4, %s4476_s20  ;;  %v699_v11 = vsel %vm4590_vm10, %v518_v30, %v698_v0  ;;  %v1698_v8 = vrot.slane %v1696_v18, 5  ;;  %v1708_v41 = vrot.slane %v1706_v56, 5  ;;  %v5804_v14 = vsel %vm4576_vm7, %v4124_v61, %v1915_v42  ;;  %3015 = vrot.lane.b32.xlu0 %v4235_v55, %s4478_s22  ;;  %701 = vst.msk [vmem:[#allocation2 + $0xb8] sm:$0xf] %vm183_vm0, %v527_v25 }
 0x155   : > { %v1917_v2 = vrot.slane %v1915_v42, 4  ;;  %700 = vst [vmem:[#allocation2 + $0xb4] sm:$0xf] %v699_v11  ;;  %v1694_v33 = vrot.slane %v1693_v47, 4  ;;  %v2274_v51 = vrot.slane %v2272_v43, 4  ;;  %v2275_v62 = vshll.u32 %v1959_v23, 16  ;;  %v5838_v30 = vpop.permute.xlu0 %2751 }
 0x156   : > { %v2285_v6 = vshrl.u32 %v5793_v59, 16  ;;  %v1703_v58 = vor.u32 %v1702_v29, %v1698_v8  ;;  %v4251_v28 = vcombine.low %v1959_v23, %v5793_v59  ;;  %v528_v3 = vrot.slane %v523_v35, 4  ;;  %v5830_v23 = vld [vmem:[#allocation2 + $0xac] sm:$0xf]  ;;  %v5849_v29 = vpop.permute.xlu1 %2673 }
 0x157   : > { %v1919_v21 = vsel %vm4576_vm7, %v1917_v2, %v1918_v15  ;;  %v1699_v45 = vsel %vm4596_vm11, %v1694_v33, %v1698_v8  ;;  %v2277_v17 = vrot.slane %v2275_v62, 5  ;;  %v2281_v0 = vshll.u32 %v5793_v59, 16  ;;  %v2379_v62 = vld [vmem:[#allocation2 + $0xa8] sm:$0xe] }
 0x158   : > { %v1704_v54 = vrot.slane %v1703_v58, 4  ;;  %3111 = vrot.lane.b32.xlu0 %v4251_v28, %s4477_s21  ;;  %v703_v35 = vsel %vm4619_vm13, %v528_v3, %v702_v19  ;;  %v2287_v61 = vrot.slane %v2285_v6, 4  ;;  %v2291_v55 = vshll.u32 %v5809_v24, 16 }
 0x159   : > { %v4236_v48 = vcombine.low %v5804_v14, %v1919_v21  ;;  %704 = vst [vmem:[#allocation2 + $0xbc] sm:$0x1] %v703_v35  ;;  %v2278_v57 = vor.u32 %v2277_v17, %v2274_v51  ;;  %v2283_v53 = vrot.slane %v2281_v0, 5  ;;  %v5836_v22 = vsel %vm3361_vm1, %v5788_v5, %v5689_v20  ;;  %v5860_v3 = vpop.permute.xlu0 %2847 }
 0x15a   : > { %v1709_v52 = vsel %vm4596_vm11, %v1704_v54, %v1708_v41  ;;  %v2293_v38 = vrot.slane %v2291_v55, 5  ;;  %v1100_v43 = vshrl.u32 %v5824_v26, 16  ;;  %v1103_v37 = vshll.u32 %v5824_v26, 16  ;;  %v5855_v41 = vld [vmem:[#allocation2 + $0xb0] sm:$0x1] }
 0x15b   : > { %v4220_v7 = vcombine.low %v1699_v45, %v1709_v52  ;;  %v5844_v4 = vld [vmem:[#allocation2 + $0xb8] sm:$0xf]  ;;  %v2279_v18 = vrot.slane %v2278_v57, 4  ;;  %v2288_v56 = vor.u32 %v2287_v61, %v2283_v53  ;;  %v1109_v42 = vshll.u32 %v5830_v23, 16 }
 0x15c   : > { %v1961_v12 = vld [vmem:[#allocation2 + $0xb4] sm:$0xf]  ;;  %v2309_v15 = vshrl.u32 %v5844_v4, 16  ;;  %v2305_v25 = vshll.u32 %v5844_v4, 16  ;;  %v1102_v14 = vrot.slane %v1100_v43, 4  ;;  %v1105_v51 = vrot.slane %v1103_v37, 5 }
 0x15d   : > { %v2296_v20 = vshrl.u32 %v1961_v12, 16  ;;  %v2299_v5 = vshll.u32 %v1961_v12, 16  ;;  %v4252_v47 = vcombine.low %v1961_v12, %v5844_v4  ;;  %2937 = vrot.lane.b32.xlu1 %v4220_v7, %s4480_s24  ;;  %v2284_v11 = vsel %vm4596_vm11, %v2279_v18, %v2283_v53  ;;  %v5869_v7 = vpop.permute.xlu1 %2753 }
 0x15e   : > { %v2289_v8 = vrot.slane %v2288_v56, 4  ;;  %v2311_v33 = vrot.slane %v2309_v15, 4  ;;  %v2307_v6 = vrot.slane %v2305_v25, 5  ;;  %v1111_v21 = vrot.slane %v1109_v42, 5  ;;  %v5881_v25 = vld [vmem:[#allocation2 + $0xb8] sm:$0xf] }
 0x15f   : > { %v2298_v2 = vrot.slane %v2296_v20, 4  ;;  %v2301_v19 = vrot.slane %v2299_v5, 5  ;;  %v1113_v28 = vshrl.u32 %v5830_v23, 16  ;;  %v1106_v54 = vor.u32 %v1105_v51, %v1102_v14  ;;  %v2380_v51 = vld [vmem:[#allocation2 + $0xb4] sm:$0xe] }
 0x160   : > { %v2294_v58 = vsel %vm4596_vm11, %v2289_v8, %v2293_v38  ;;  %v5862_v45 = vld [vmem:[#allocation2 + $0xbc] sm:$0x1]  ;;  %v1119_v35 = vshll.u32 %v5855_v41, 16  ;;  %v2312_v61 = vor.u32 %v2311_v33, %v2307_v6  ;;  %v4139_v53 = vrot.slane %v2379_v62, 9 }
 0x161   : > { %v2302_v17 = vor.u32 %v2301_v19, %v2298_v2  ;;  %v4267_v0 = vcombine.low %v2284_v11, %v2294_v58  ;;  %3017 = vrot.lane.b32.xlu1 %v4236_v48, %s4478_s22  ;;  %v2315_v55 = vshll.u32 %v5862_v45, 16  ;;  %v1115_v57 = vrot.slane %v1113_v28, 4  ;;  %v5872_v48 = vld [vmem:[#allocation2 + $0xb4] sm:$0xf] }
 0x162   : > { %v1107_v38 = vrot.slane %v1106_v54, 4  ;;  %v1121_v43 = vrot.slane %v1119_v35, 5  ;;  %v2517_v37 = vrot.slane %v5793_v59, 5  ;;  %v2313_v12 = vrot.slane %v2312_v61, 4 }
 0x163   : > { %v2303_v52 = vrot.slane %v2302_v17, 4  ;;  %3191 = vrot.lane.b32.xlu0 %v4267_v0, %s4481_s25  ;;  %v2317_v18 = vrot.slane %v2315_v55, 5  ;;  %v1116_v56 = vor.u32 %v1115_v57, %v1111_v21  ;;  %v2520_v42 = vrot.slane %v5809_v24, 5  ;;  %v5901_v0 = vpop.permute.xlu1 %2849  ;;  %v1162_v57 = vld [vmem:[#allocation2 + $0xb4] sm:$0xe] }
 0x164   : > { %v3375_v5 = vsel %vm3361_vm1, %v5821_v60, %v5652_v31  ;;  %v2518_v15 = vsel %vm4576_vm7, %v4139_v53, %v2517_v37  ;;  %v2519_v59 = vrot.slane %v2517_v37, 4  ;;  %v1112_v11 = vsel %vm4596_vm11, %v1107_v38, %v1111_v21  ;;  %v759_v31 = vld [vmem:[#allocation2 + $0xbc] sm:$0x1]  ;;  %v5891_v60 = vpop.permute.xlu0 %2927  ;;  %v1161_v37 = vld [vmem:[#allocation2 + $0xa8] sm:$0xe] }
 0x165   : > { %v2308_v20 = vsel %vm4596_vm11, %v2303_v52, %v2307_v6  ;;  %3113 = vrot.lane.b32.xlu1 %v4252_v47, %s4477_s21  ;;  %v2318_v24 = vsel %vm4596_vm11, %v2313_v12, %v2317_v18  ;;  %v1117_v8 = vrot.slane %v1116_v56, 4  ;;  %v3410_v14 = vsel %vm3394_vm2, %v5836_v22, %v5712_v13 }
 0x166   : > { %v4268_v2 = vcombine.low %v2308_v20, %v2318_v24  ;;  %v2521_v19 = vsel %vm4576_vm7, %v2519_v59, %v2520_v42  ;;  %v1124_v47 = vshrl.u32 %v5872_v48, 16  ;;  %v1127_v33 = vshll.u32 %v5872_v48, 16 }
 0x167   : > { %v1122_v62 = vsel %vm4596_vm11, %v1117_v8, %v1121_v43  ;;  %v4283_v6 = vcombine.low %v2518_v15, %v2521_v19  ;;  %v1133_v58 = vshll.u32 %v5881_v25, 16  ;;  %v1137_v13 = vshrl.u32 %v5881_v25, 16  ;;  %v269_v19 = vld [vmem:[%s4574_s17 + $0x78] sm:$0xf] }
 0x168   : > { %v4173_v22 = vcombine.low %v1112_v11, %v1122_v62  ;;  %v1126_v21 = vrot.slane %v1124_v47, 4  ;;  %v1129_v28 = vrot.slane %v1127_v33, 5  ;;  %v1143_v17 = vshll.u32 %v759_v31, 16  ;;  %v5913_v20 = vpop.permute.xlu0 %3007 }
 0x169   : > { %3193 = vrot.lane.b32.xlu1 %v4268_v2, %s4481_s25  ;;  %3271 = vrot.lane.b32.xlu0 %v4283_v6, %s4479_s23  ;;  %v1135_v54 = vrot.slane %v1133_v58, 5  ;;  %v1139_v35 = vrot.slane %v1137_v13, 4  ;;  %v4140_v61 = vrot.slane %v2380_v51, 9  ;;  %v2524_v55 = vrot.slane %v5844_v4, 5  ;;  %v270_v6 = vld [vmem:[%s4574_s17 + $0x7c] sm:$0xf] }
 0x16a   : > { %v3408_v53 = vsel %vm3394_vm2, %v3375_v5, %v5679_v46  ;;  %v1130_v52 = vor.u32 %v1129_v28, %v1126_v21  ;;  %v1145_v38 = vrot.slane %v1143_v17, 5  ;;  %v2527_v43 = vrot.slane %v5862_v45, 5  ;;  %v1354_v58 = vld [vmem:[#allocation2 + $0xb4] sm:$0xf]  ;;  %v5940_v17 = vld [vmem:[#allocation2 + $0xb8] sm:$0xf] }
 0x16b   : > { %v1140_v12 = vor.u32 %v1139_v35, %v1135_v54  ;;  %v2525_v18 = vsel %vm4576_vm7, %v4140_v61, %v2524_v55  ;;  %v2526_v56 = vrot.slane %v2524_v55, 4  ;;  %v3443_v42 = vsel %vm3427_vm3, %v3410_v14, %v5739_v27 }
 0x16c   : > { %v1131_v4 = vrot.slane %v1130_v52, 4  ;;  %v4110_v15 = vrot.slane %v1162_v57, 9  ;;  %v1321_v46 = vrot.slane %v5881_v25, 5  ;;  %v1324_v5 = vrot.slane %v759_v31, 5  ;;  %v5925_v31 = vpop.permute.xlu1 %2929  ;;  %v5944_v55 = vpop.permute.xlu0 %3103 }
 0x16d   : > { %2683 = vrot.lane.b32.xlu1 %v4173_v22, %s4475_s19  ;;  %v1141_v45 = vrot.slane %v1140_v12, 4  ;;  %v2528_v59 = vsel %vm4576_vm7, %v2526_v56, %v2527_v43  ;;  %v4109_v24 = vrot.slane %v1161_v37, 9  ;;  %v1314_v11 = vrot.slane %v5830_v23, 5  ;;  %v5950_v12 = vld [vmem:[#allocation2 + $0xbc] sm:$0x1] }
 0x16e   : > { %v1136_v27 = vsel %vm4596_vm11, %v1131_v4, %v1135_v54  ;;  %v4284_v8 = vcombine.low %v2525_v18, %v2528_v59  ;;  %v1322_v14 = vsel %vm4576_vm7, %v4110_v15, %v1321_v46  ;;  %v1323_v2 = vrot.slane %v1321_v46, 4  ;;  %v705_v56 = vld [vmem:[#allocation2 + $0xc0] sm:$0xf]  ;;  %v709_v59 = vld [vmem:[#allocation2 + $0xc8] sm:$0x1] }
 0x16f   : > { %v1146_v47 = vsel %vm4596_vm11, %v1141_v45, %v1145_v38  ;;  %v1315_v33 = vsel %vm4576_vm7, %v4109_v24, %v1314_v11  ;;  %v1316_v51 = vrot.slane %v1314_v11, 4  ;;  %v1317_v62 = vrot.slane %v5855_v41, 5 }
 0x170   : > { %v4174_v13 = vcombine.low %v1136_v27, %v1146_v47  ;;  %3273 = vrot.lane.b32.xlu0 %v4284_v8, %s4479_s23  ;;  %v3441_v22 = vsel %vm3427_vm3, %v3408_v53, %v5697_v39  ;;  %v1325_v21 = vsel %vm4576_vm7, %v1323_v2, %v1324_v5  ;;  %v3476_v28 = vsel %vm3460_vm5, %v3443_v42, %v5767_v9  ;;  %v5956_v46 = vpop.permute.xlu1 %3009  ;;  %v1772_v2 = vld [vmem:[#allocation2 + $0xb4] sm:$0xe] }
 0x171   : > { %v4190_v54 = vcombine.low %v1322_v14, %v1325_v21  ;;  %v1318_v41 = vsel %vm4576_vm7, %v1316_v51, %v1317_v62  ;;  %v530_v35 = vshrl.u32 %v269_v19, 16  ;;  %v533_v61 = vshll.u32 %v269_v19, 16 }
 0x172   : > { %2685 = vrot.lane.b32.xlu1 %v4174_v13, %s4475_s19  ;;  %v4189_v57 = vcombine.low %v1315_v33, %v1318_v41  ;;  %v538_v39 = vshrl.u32 %v270_v6, 16  ;;  %v541_v53 = vshll.u32 %v270_v6, 16  ;;  %v1711_v52 = vshrl.u32 %v1354_v58, 16  ;;  %v4454_v13 = vld [vmem:[#allocation2 + $0x64] sm:$0xf] }
 0x173   : > { %v3474_v38 = vsel %vm3460_vm5, %v3441_v22, %v5734_v32  ;;  %v532_v9 = vrot.slane %v530_v35, 7  ;;  %v1714_v43 = vshll.u32 %v1354_v58, 16  ;;  %v1724_v37 = vshrl.u32 %v5940_v17, 16  ;;  %v4455_v35 = vld [vmem:[#allocation2 + $0x6c] sm:$0xf] }
 0x174   : > { %2763 = vrot.lane.b32.xlu0 %v4189_v57, %s4474_s18  ;;  %v540_v18 = vrot.slane %v538_v39, 7  ;;  %v1713_v42 = vrot.slane %v1711_v52, 4  ;;  %v4205_v4 = vcombine.low %v1354_v58, %v5940_v17  ;;  %v3509_v15 = vsel %vm3493_vm6, %v3476_v28, %v5791_v40  ;;  %v4453_v58 = vld [vmem:[#allocation2 + $0x60] sm:$0xf]  ;;  %v5982_v39 = vpop.permute.xlu1 %3105 }
 0x175   : > { %v535_v5 = vor.u32 %v533_v61, %v532_v9  ;;  %v536_v32 = vrot.slane %v532_v9, 4  ;;  %v1716_v45 = vrot.slane %v1714_v43, 5  ;;  %v1720_v24 = vshll.u32 %v5940_v17, 16  ;;  %v4456_v61 = vld [vmem:[#allocation2 + $0x70] sm:$0xf] }
 0x176   : > { %2765 = vrot.lane.b32.xlu1 %v4190_v54, %s4474_s18  ;;  %v543_v11 = vor.u32 %v541_v53, %v540_v18  ;;  %v545_v27 = vrot.slane %v540_v18, 4  ;;  %v1726_v8 = vrot.slane %v1724_v37, 4  ;;  %v1730_v14 = vshll.u32 %v5950_v12, 16  ;;  %v5965_v51 = vpop.permute.xlu0 %3183  ;;  %v5989_v43 = vld [vmem:[#allocation2 + $0xd0] sm:$0xf]  ;;  %s181_s18 = scalar_lea.vmem %s6313_s3, %s4094_s15 }
 0x177   : > { %v706_v19 = vsel %vm4590_vm10, %v535_v5, %v705_v56  ;;  %v3507_v40 = vsel %vm3493_vm6, %v3474_v38, %v5748_v16  ;;  %v1717_v47 = vor.u32 %v1716_v45, %v1713_v42  ;;  %v1722_v33 = vrot.slane %v1720_v24, 5  ;;  %v5974_v16 = vld [vmem:[#allocation2 + $0xcc] sm:$0xf] }
 0x178   : > { %v544_v62 = vsel %vm4604_vm12, %v536_v32, %v543_v11  ;;  %707 = vst [vmem:[#allocation2 + $0xc0] sm:$0xf] %v706_v19  ;;  %2859 = vrot.lane.b32.xlu0 %v4205_v4, %s4476_s20  ;;  %v710_v6 = vsel %vm4619_vm13, %v545_v27, %v709_v59  ;;  %v4151_v34 = vcombine.low %v4453_v58, %v4454_v13  ;;  %v1732_v28 = vrot.slane %v1730_v14, 5 }
 0x179   : > { %v3540_v22 = vsel %vm3526_vm8, %v3507_v40, %v5782_v10  ;;  %708 = vst.msk [vmem:[#allocation2 + $0xc4] sm:$0xf] %vm183_vm0, %v544_v62  ;;  %711 = vst [vmem:[#allocation2 + $0xc8] sm:$0x1] %v710_v6  ;;  %v1718_v21 = vrot.slane %v1717_v47, 4  ;;  %v1727_v44 = vor.u32 %v1726_v8, %v1722_v33  ;;  %v4125_v54 = vrot.slane %v1772_v2, 9 }
 0x17a   : > { %4355 = vmatprep.mubr.msk.bf16.mxu0 %vm3595_vm9, %v3540_v22  ;;  %v1922_v63 = vrot.slane %v5940_v17, 5  ;;  %v1925_v41 = vrot.slane %v5950_v12, 5  ;;  %v4152_v57 = vcombine.low %v4455_v35, %v4456_v61  ;;  %v3542_v10 = vsel %vm3526_vm8, %v3509_v15, %v5800_v49 }
 0x17b   : > { %v1723_v53 = vsel %vm4596_vm11, %v1718_v21, %v1722_v33  ;;  %v1728_v52 = vrot.slane %v1727_v44, 4  ;;  %v2344_v38 = vshrl.u32 %v5974_v16, 16  ;;  %v2347_v9 = vshll.u32 %v5974_v16, 16  ;;  %4356 = vmatmul.mubr.msk.bf16.gmra.mrb[12].mxu0 %vm3595_vm9, %v3542_v10  ;;  %v5991_v37 = vpop.permute.xlu0 %3263 }
 0x17c   : > { %v1924_v17 = vrot.slane %v1922_v63, 4  ;;  %v1923_v12 = vsel %vm4576_vm7, %v4125_v54, %v1922_v63  ;;  %v3306_v4 = vsel %vm3279_vm14, %v4151_v34, %v5814_v50  ;;  %v3309_v5 = vsel %vm3279_vm14, %v4152_v57, %v5849_v29 }
 0x17d   : > { %v1733_v49 = vsel %vm4596_vm11, %v1728_v52, %v1732_v28  ;;  %v5997_v18 = vrot.slane %v2344_v38, 4  ;;  %v5999_v56 = vrot.slane %v2347_v9, 5  ;;  %v2357_v59 = vshrl.u32 %v5989_v43, 16  ;;  %v6029_v9 = vld [vmem:[#allocation2 + $0xd4] sm:$0x1] }
 0x17e   : > { %v4221_v42 = vcombine.low %v1723_v53, %v1733_v49  ;;  %v1926_v15 = vsel %vm4576_vm7, %v1924_v17, %v1925_v41  ;;  %v4254_v24 = vcombine.low %v5974_v16, %v5989_v43  ;;  %v3348_v11 = vsel %vm3328_vm15, %v3309_v5, %v5869_v7  ;;  %v6017_v40 = vpop.permute.xlu1 %3185 }
 0x17f   : > { %v1356_v32 = vld [vmem:[#allocation2 + $0xc0] sm:$0xf]  ;;  %v3346_v27 = vsel %vm3328_vm15, %v3306_v4, %v5838_v30  ;;  %v4237_v29 = vcombine.low %v1923_v12, %v1926_v15  ;;  %v2350_v19 = vor.u32 %v5999_v56, %v5997_v18  ;;  %v3381_v63 = vsel %vm3361_vm1, %v3348_v11, %v5901_v0 }
 0x180   : > { %v1773_v45 = vld [vmem:[#allocation2 + $0xc0] sm:$0xe]  ;;  %v1357_v50 = vld [vmem:[#allocation2 + $0xc4] sm:$0xf]  ;;  %v1735_v8 = vshrl.u32 %v1356_v32, 16  ;;  %v1738_v14 = vshll.u32 %v1356_v32, 16  ;;  %2939 = vrot.lane.b32.xlu0 %v4221_v42, %s4480_s24  ;;  %v3379_v0 = vsel %vm3361_vm1, %v3346_v27, %v5860_v3 }
 0x181   : > { %v1373_v2 = vld [vmem:[#allocation2 + $0xc8] sm:$0x1]  ;;  %v1748_v47 = vshrl.u32 %v1357_v50, 16  ;;  %v4206_v33 = vcombine.low %v1356_v32, %v1357_v50  ;;  %v1744_v62 = vshll.u32 %v1357_v50, 16  ;;  %v1963_v7 = vld [vmem:[#allocation2 + $0xc0] sm:$0xf] }
 0x182   : > { %v1754_v6 = vshll.u32 %v1373_v2, 16  ;;  %v1737_v58 = vrot.slane %v1735_v8, 4  ;;  %v1740_v13 = vrot.slane %v1738_v14, 5  ;;  %v4126_v30 = vrot.slane %v1773_v45, 9  ;;  %v6019_v22 = vld [vmem:[#allocation2 + $0xc4] sm:$0xf]  ;;  %v6021_v21 = vpop.permute.xlu0 %3265  ;;  %v6035_v18 = vpop.permute.xlu1 %2675 }
 0x183   : > { %v1929_v34 = vrot.slane %v1357_v50, 5  ;;  %2861 = vrot.lane.b32.xlu1 %v4206_v33, %s4476_s20  ;;  %v1746_v44 = vrot.slane %v1744_v62, 5  ;;  %v1750_v28 = vrot.slane %v1748_v47, 4  ;;  %v1932_v54 = vrot.slane %v1373_v2, 5  ;;  %v1981_v5 = vld [vmem:[#allocation2 + $0xc8] sm:$0x1] }
 0x184   : > { %v1741_v41 = vor.u32 %v1740_v13, %v1737_v58  ;;  %v1756_v35 = vrot.slane %v1754_v6, 5  ;;  %3019 = vrot.lane.b32.xlu0 %v4237_v29, %s4478_s22  ;;  %v2320_v57 = vshrl.u32 %v1963_v7, 16  ;;  %v2323_v53 = vshll.u32 %v1963_v7, 16  ;;  %v2381_v6 = vld [vmem:[#allocation2 + $0xc0] sm:$0xe] }
 0x185   : > { %v1931_v61 = vrot.slane %v1929_v34, 4  ;;  %v1751_v10 = vor.u32 %v1750_v28, %v1746_v44  ;;  %v2333_v52 = vshrl.u32 %v6019_v22, 16  ;;  %v4253_v38 = vcombine.low %v1963_v7, %v6019_v22  ;;  %v2382_v28 = vld [vmem:[#allocation2 + $0xcc] sm:$0xe] }
 0x186   : > { %v1742_v17 = vrot.slane %v1741_v41, 4  ;;  %v1930_v49 = vsel %vm4576_vm7, %v4126_v30, %v1929_v34  ;;  %v2322_v12 = vrot.slane %v2320_v57, 4  ;;  %v2325_v4 = vrot.slane %v2323_v53, 5  ;;  %v6040_v32 = vpop.permute.xlu0 %2755  ;;  %v6053_v41 = vpop.permute.xlu1 %2677 }
 0x187   : > { %v1752_v56 = vrot.slane %v1751_v10, 4  ;;  %v1933_v42 = vsel %vm4576_vm7, %v1931_v61, %v1932_v54  ;;  %v2353_v15 = vshll.u32 %v5989_v43, 16  ;;  %v2359_v11 = vrot.slane %v2357_v59, 4 }
 0x188   : > { %v1747_v45 = vsel %vm4596_vm11, %v1742_v17, %v1746_v44  ;;  %3115 = vrot.lane.b32.xlu0 %v4253_v38, %s4477_s21  ;;  %v2363_v3 = vshll.u32 %v6029_v9, 16  ;;  %v2329_v27 = vshll.u32 %v6019_v22, 16  ;;  %v2326_v14 = vor.u32 %v2325_v4, %v2322_v12 }
 0x189   : > { %v1757_v50 = vsel %vm4596_vm11, %v1752_v56, %v1756_v35  ;;  %v2355_v8 = vrot.slane %v2353_v15, 5  ;;  %v2335_v2 = vrot.slane %v2333_v52, 4  ;;  %v2351_v47 = vrot.slane %v2350_v19, 4 }
 0x18a   : > { %v4222_v29 = vcombine.low %v1747_v45, %v1757_v50  ;;  %v2331_v33 = vrot.slane %v2329_v27, 5  ;;  %v2339_v62 = vshll.u32 %v1981_v5, 16  ;;  %v4238_v7 = vcombine.low %v1930_v49, %v1933_v42  ;;  %v2852_v10 = vpop.permute.xlu0 %2851  ;;  %v2758_v45 = vpop.permute.xlu1 %2757 }
 0x18b   : > { %v2360_v58 = vor.u32 %v2359_v11, %v2355_v8  ;;  %v2327_v13 = vrot.slane %v2326_v14, 4  ;;  %v3414_v59 = vsel %vm3394_vm2, %v3381_v63, %v5925_v31  ;;  %v2365_v30 = vrot.slane %v2363_v3, 5 }
 0x18c   : > { %2941 = vrot.lane.b32.xlu1 %v4222_v29, %s4480_s24  ;;  %v2336_v34 = vor.u32 %v2335_v2, %v2331_v33  ;;  %v2341_v44 = vrot.slane %v2339_v62, 5  ;;  %v2538_v54 = vrot.slane %v5989_v43, 5  ;;  %v4141_v35 = vrot.slane %v2381_v6, 9 }
 0x18d   : > { %v2361_v19 = vrot.slane %v2360_v58, 4  ;;  %v2531_v61 = vrot.slane %v6019_v22, 5  ;;  %v3412_v57 = vsel %vm3394_vm2, %v3379_v0, %v5891_v60  ;;  %v2356_v31 = vsel %vm4596_vm11, %v2351_v47, %v2355_v8  ;;  %v4458_v8 = vld [vmem:[#allocation2 + $0x7c] sm:$0xf]  ;;  %v4460_v58 = vld [vmem:[#allocation2 + $0x88] sm:$0xf] }
 0x18e   : > { %v2332_v63 = vsel %vm4596_vm11, %v2327_v13, %v2331_v33  ;;  %v2337_v53 = vrot.slane %v2336_v34, 4  ;;  %v2534_v52 = vrot.slane %v1981_v5, 5  ;;  %v4142_v38 = vrot.slane %v2382_v28, 9 }
 0x18f   : > { %v2540_v17 = vrot.slane %v2538_v54, 4  ;;  %v2541_v49 = vrot.slane %v6029_v9, 5  ;;  %v2533_v12 = vrot.slane %v2531_v61, 4  ;;  %v2366_v22 = vsel %vm4596_vm11, %v2361_v19, %v2365_v30 }
 0x190   : > { %3021 = vrot.lane.b32.xlu1 %v4238_v7, %s4478_s22  ;;  %v2342_v60 = vsel %vm4596_vm11, %v2337_v53, %v2341_v44  ;;  %v2532_v0 = vsel %vm4576_vm7, %v4141_v35, %v2531_v61  ;;  %v3447_v56 = vsel %vm3427_vm3, %v3414_v59, %v5956_v46  ;;  %v3445_v9 = vsel %vm3427_vm3, %v3412_v57, %v5913_v20  ;;  %v4459_v7 = vld [vmem:[#allocation2 + $0x84] sm:$0xf] }
 0x191   : > { %v4269_v42 = vcombine.low %v2332_v63, %v2342_v60  ;;  %v2535_v4 = vsel %vm4576_vm7, %v2533_v12, %v2534_v52  ;;  %v3480_v15 = vsel %vm3460_vm5, %v3447_v56, %v5982_v39  ;;  %v3478_v36 = vsel %vm3460_vm5, %v3445_v9, %v5944_v55 }
 0x192   : > { %v3513_v5 = vsel %vm3493_vm6, %v3480_v15, %v6017_v40  ;;  %v4285_v46 = vcombine.low %v2532_v0, %v2535_v4  ;;  %v3511_v11 = vsel %vm3493_vm6, %v3478_v36, %v5965_v51  ;;  %v4270_v55 = vcombine.low %v2356_v31, %v2366_v22 }
 0x193   : > { %3195 = vrot.lane.b32.xlu0 %v4269_v42, %s4481_s25  ;;  %v3546_v3 = vsel %vm3526_vm8, %v3513_v5, %v6021_v21  ;;  %v2932_v20 = vpop.permute.xlu0 %2931  ;;  %v3544_v39 = vsel %vm3526_vm8, %v3511_v11, %v5991_v37  ;;  %v4157_v40 = vcombine.low %v5824_v26, %v5830_v23  ;;  %v2539_v27 = vsel %vm4576_vm7, %v4142_v38, %v2538_v54 }
 0x194   : > { %3117 = vrot.lane.b32.xlu1 %v4254_v24, %s4477_s21  ;;  %v2542_v51 = vsel %vm4576_vm7, %v2540_v17, %v2541_v49  ;;  %4359 = vmatprep.mubr.msk.bf16.mxu1 %vm3595_vm9, %v3544_v39  ;;  %v4158_v21 = vcombine.low %v5872_v48, %v5881_v25  ;;  %v4153_v14 = vcombine.low %v4457_v1, %v4458_v8  ;;  %vm3995_vm0 = vcmask 1040384  }
 0x195   : > { %4360 = vmatmul.mubr.msk.bf16.vlgmr.msra.gmra.mrb[0].mxu1 %vm3595_vm9, %v3546_v3  ;;  %v4286_v16 = vcombine.low %v2539_v27, %v2542_v51  ;;  %v2854_v43 = vpop.permute.xlu1 %2853  ;;  %v4154_v13 = vcombine.low %v4459_v7, %v4460_v58  ;;  %v4461_v3 = vld [vmem:[#allocation2 + $0x90] sm:$0xf]  ;;  %v4463_v58 = vld [vmem:[#allocation2 + $0x9c] sm:$0xf]  ;;  %vm3997_vm7 = vcmask 58368  }
 0x196   : > { %v3312_v29 = vsel %vm3279_vm14, %v4153_v14, %v6035_v18 }
 0x197   : > { %3275 = vrot.lane.b32.xlu0 %v4285_v46, %s4479_s23  ;;  %v3012_v37 = vpop.permute.xlu0 %3011  ;;  %v3350_v33 = vsel %vm3328_vm15, %v3312_v29, %v6040_v32  ;;  %v3315_v32 = vsel %vm3279_vm14, %v4154_v13, %v6053_v41  ;;  %v4464_v13 = vld [vmem:[#allocation2 + $0xa0] sm:$0xf] }
 0x198   : > { %3197 = vrot.lane.b32.xlu1 %v4270_v55, %s4481_s25  ;;  %v3383_v62 = vsel %vm3361_vm1, %v3350_v33, %v2852_v10  ;;  %v3352_v54 = vsel %vm3328_vm15, %v3315_v32, %v2758_v45 }
 0x199   : > { %v3416_v6 = vsel %vm3394_vm2, %v3383_v62, %v2932_v20  ;;  %v3385_v19 = vsel %vm3361_vm1, %v3352_v54, %v2854_v43  ;;  %v4462_v20 = vld [vmem:[#allocation2 + $0x94] sm:$0xf] }
 0x19a   : > { %v3449_v59 = vsel %vm3427_vm3, %v3416_v6, %v3012_v37  ;;  %v4155_v55 = vcombine.low %v4461_v3, %v4462_v20 }
 0x19b   : > { %v3108_v50 = vpop.permute.xlu0 %3107 }
 0x19c   : > { %3277 = vrot.lane.b32.xlu1 %v4286_v16, %s4479_s23  ;;  %v3482_v34 = vsel %vm3460_vm5, %v3449_v59, %v3108_v50  ;;  %v4156_v59 = vcombine.low %v4463_v58, %v4464_v13 }
 0x19e   : > { %v2934_v24 = vpop.permute.xlu1 %2933 }
 0x19f   : > { %v3418_v35 = vsel %vm3394_vm2, %v3385_v19, %v2934_v24 }
 0x1a2   : > { %v3014_v2 = vpop.permute.xlu1 %3013 }
 0x1a3   : > { %v3451_v57 = vsel %vm3427_vm3, %v3418_v35, %v3014_v2 }
 0x1a5   : > { %v3188_v47 = vpop.permute.xlu0 %3187 }
 0x1a6   : > { %v3110_v30 = vpop.permute.xlu1 %3109  ;;  %v3515_v44 = vsel %vm3493_vm6, %v3482_v34, %v3188_v47 }
 0x1a7   : > { %v3484_v10 = vsel %vm3460_vm5, %v3451_v57, %v3110_v30 }
 0x1ab   : > { %v3268_v28 = vpop.permute.xlu0 %3267 }
 0x1ac   : > { %v3548_v18 = vsel %vm3526_vm8, %v3515_v44, %v3268_v28  ;;  %v3190_v61 = vpop.permute.xlu1 %3189 }
 0x1ad   : > { %4363 = vmatprep.mubr.msk.bf16.mxu1 %vm3595_vm9, %v3548_v18  ;;  %v3517_v31 = vsel %vm3493_vm6, %v3484_v10, %v3190_v61 }
 0x1b0   : > { %v2680_v41 = vpop.permute.xlu1 %2679 }
 0x1b1   : > { %v3318_v14 = vsel %vm3279_vm14, %v4155_v55, %v2680_v41 }
 0x1b3   : > { %v3270_v63 = vpop.permute.xlu0 %3269 }
 0x1b4   : > { %v3550_v53 = vsel %vm3526_vm8, %v3517_v31, %v3270_v63 }
 0x1b5   : > { %4364 = vmatmul.mubr.msk.bf16.gmra.mrb[4].mxu1 %vm3595_vm9, %v3550_v53  ;;  %v2682_v17 = vpop.permute.xlu1 %2681 }
 0x1b6   : > { %v3321_v54 = vsel %vm3279_vm14, %v4156_v59, %v2682_v17 }
 0x1b7   : > { %v2760_v52 = vpop.permute.xlu0 %2759 }
 0x1b8   : > { %v3354_v33 = vsel %vm3328_vm15, %v3318_v14, %v2760_v52 }
 0x1b9   : > { %v2762_v12 = vpop.permute.xlu1 %2761 }
 0x1ba   : > { %v3356_v35 = vsel %vm3328_vm15, %v3321_v54, %v2762_v12 }
 0x1bb   : > { %v2856_v38 = vpop.permute.xlu0 %2855 }
 0x1bc   : > { %v3387_v6 = vsel %vm3361_vm1, %v3354_v33, %v2856_v38 }
 0x1c2   : > { %v2936_v49 = vpop.permute.xlu0 %2935 }
 0x1c3   : > { %v3420_v30 = vsel %vm3394_vm2, %v3387_v6, %v2936_v49 }
 0x1c6   : > { %v3016_v22 = vpop.permute.xlu0 %3015  ;;  %v2858_v60 = vpop.permute.xlu1 %2857 }
 0x1c7   : > { %v3453_v34 = vsel %vm3427_vm3, %v3420_v30, %v3016_v22  ;;  %v3389_v61 = vsel %vm3361_vm1, %v3356_v35, %v2858_v60 }
 0x1ca   : > { %v3112_v42 = vpop.permute.xlu0 %3111 }
 0x1cb   : > { %v3486_v28 = vsel %vm3460_vm5, %v3453_v34, %v3112_v42 }
 0x1cc   : > { %v4345_v0 = vpop.f32.mrb[0].mxu0 }
 0x1cd   : > { %3965 = vst.msk [vmem:[%s6131_s14 + $0x10] sm:$0xff] %vm3279_vm14, %v4345_v0  ;;  %v3666_v56 = vpop.f32.mrb[1].mxu0  ;;  %v3864_v5 = vmul.f32 %v4345_v0, %v4345_v0  ;;  %v3796_v27 = vsel %vm3279_vm14, %v4345_v0, 0.0 }
 0x1ce   : > { %v3862_v4 = vmul.f32 %v3666_v56, %v3666_v56  ;;  %3963 = vst.msk [vmem:[%s6131_s14] sm:$0xff] %vm3279_vm14, %v3666_v56  ;;  %v4346_v9 = vpop.f32.mrb[2].mxu0  ;;  %v3793_v45 = vsel %vm3279_vm14, %v3666_v56, 0.0 }
 0x1cf   : > { %v2938_v15 = vpop.permute.xlu1 %2937  ;;  %3966 = vst.msk [vmem:[%s6131_s14 + $0x18] sm:$0xff] %vm3279_vm14, %v4346_v9  ;;  %v3669_v36 = vpop.f32.mrb[3].mxu0  ;;  %v3865_v16 = vmul.f32 %v4346_v9, %v4346_v9  ;;  %v3897_v1 = vsel %vm3279_vm14, %v3864_v5, 0.0  ;;  %v3798_v8 = vsel %vm3279_vm14, %v4346_v9, 0.0 }
 0x1d0   : > { %v3794_v46 = vsel %vm3279_vm14, %v3669_v36, 0.0  ;;  %v3863_v11 = vmul.f32 %v3669_v36, %v3669_v36  ;;  %3964 = vst.msk [vmem:[%s6131_s14 + $0x8] sm:$0xff] %vm3279_vm14, %v3669_v36  ;;  %v3894_v51 = vsel %vm3279_vm14, %v3862_v4, 0.0  ;;  %v3422_v57 = vsel %vm3394_vm2, %v3389_v61, %v2938_v15 }
 0x1d1   : > { %v3795_v39 = vadd.f32 %v3794_v46, %v3793_v45  ;;  %v3899_v62 = vsel %vm3279_vm14, %v3865_v16, 0.0 }
 0x1d2   : > { %v3895_v43 = vsel %vm3279_vm14, %v3863_v11, 0.0 }
 0x1d3   : > { %v3018_v37 = vpop.permute.xlu1 %3017  ;;  %v3797_v24 = vadd.f32 %v3796_v27, %v3795_v39  ;;  %v3896_v50 = vadd.f32 %v3895_v43, %v3894_v51 }
 0x1d4   : > { %v3455_v31 = vsel %vm3427_vm3, %v3422_v57, %v3018_v37 }
 0x1d5   : > { %v3192_v2 = vpop.permute.xlu0 %3191  ;;  %v3898_v29 = vadd.f32 %v3897_v1, %v3896_v50  ;;  %v3799_v47 = vadd.f32 %v3798_v8, %v3797_v24 }
 0x1d6   : > { %v3519_v18 = vsel %vm3493_vm6, %v3486_v28, %v3192_v2 }
 0x1d7   : > { %v3900_v7 = vadd.f32 %v3899_v62, %v3898_v29  ;;  %v3114_v44 = vpop.permute.xlu1 %3113 }
 0x1d8   : > { %v3488_v63 = vsel %vm3460_vm5, %v3455_v31, %v3114_v44 }
 0x1db   : > { %v3272_v32 = vpop.permute.xlu0 %3271  ;;  %v3194_v10 = vpop.permute.xlu1 %3193 }
 0x1dc   : > { %v3552_v19 = vsel %vm3526_vm8, %v3519_v18, %v3272_v32  ;;  %v3521_v53 = vsel %vm3493_vm6, %v3488_v63, %v3194_v10 }
 0x1dd   : > { %4367 = vmatprep.mubr.msk.bf16.mxu1 %vm3595_vm9, %v3552_v19 }
 0x1df   : > { %v2684_v38 = vpop.permute.xlu1 %2683 }
 0x1e0   : > { %v3324_v62 = vsel %vm3279_vm14, %v4157_v40, %v2684_v38 }
 0x1e2   : > { %v3274_v41 = vpop.permute.xlu0 %3273 }
 0x1e3   : > { %v3554_v52 = vsel %vm3526_vm8, %v3521_v53, %v3274_v41 }
 0x1e4   : > { %4368 = vmatmul.mubr.msk.bf16.gmra.mrb[8].mxu1 %vm3595_vm9, %v3554_v52  ;;  %v2686_v49 = vpop.permute.xlu1 %2685 }
 0x1e5   : > { %v3327_v34 = vsel %vm3279_vm14, %v4158_v21, %v2686_v49 }
 0x1e6   : > { %v2764_v17 = vpop.permute.xlu0 %2763 }
 0x1e7   : > { %v3358_v6 = vsel %vm3328_vm15, %v3324_v62, %v2764_v17 }
 0x1e8   : > { %v2766_v4 = vpop.permute.xlu1 %2765 }
 0x1e9   : > { %v3360_v26 = vsel %vm3328_vm15, %v3327_v34, %v2766_v4 }
 0x1ea   : > { %v2860_v12 = vpop.permute.xlu0 %2859 }
 0x1ee   : > { %v4349_v22 = vpop.f32.mrb[4].mxu0 }
 0x1ef   : > { %3969 = vst.msk [vmem:[%s6131_s14 + $0x30] sm:$0xff] %vm3279_vm14, %v4349_v22  ;;  %v3682_v60 = vpop.f32.mrb[5].mxu0  ;;  %v3868_v5 = vmul.f32 %v4349_v22, %v4349_v22  ;;  %v3804_v55 = vsel %vm3279_vm14, %v4349_v22, 0.0 }
 0x1f0   : > { %v3800_v0 = vsel %vm3279_vm14, %v3682_v60, 0.0  ;;  %v3866_v56 = vmul.f32 %v3682_v60, %v3682_v60  ;;  %3967 = vst.msk [vmem:[%s6131_s14 + $0x20] sm:$0xff] %vm3279_vm14, %v3682_v60  ;;  %v4350_v42 = vpop.f32.mrb[6].mxu0 }
 0x1f1   : > { %v3801_v9 = vadd.f32 %v3800_v0, %v3799_v47  ;;  %3970 = vst.msk [vmem:[%s6131_s14 + $0x38] sm:$0xff] %vm3279_vm14, %v4350_v42  ;;  %v3685_v15 = vpop.f32.mrb[7].mxu0  ;;  %v3869_v39 = vmul.f32 %v4350_v42, %v4350_v42  ;;  %v3905_v43 = vsel %vm3279_vm14, %v3868_v5, 0.0  ;;  %v3806_v37 = vsel %vm3279_vm14, %v4350_v42, 0.0 }
 0x1f2   : > { %v2940_v36 = vpop.permute.xlu0 %2939  ;;  %v3901_v45 = vsel %vm3279_vm14, %v3866_v56, 0.0  ;;  %v3802_v46 = vsel %vm3279_vm14, %v3685_v15, 0.0  ;;  %v3867_v11 = vmul.f32 %v3685_v15, %v3685_v15  ;;  %3968 = vst.msk [vmem:[%s6131_s14 + $0x28] sm:$0xff] %vm3279_vm14, %v3685_v15 }
 0x1f3   : > { %v3902_v3 = vadd.f32 %v3901_v45, %v3900_v7  ;;  %v3803_v20 = vadd.f32 %v3802_v46, %v3801_v9  ;;  %v3907_v14 = vsel %vm3279_vm14, %v3869_v39, 0.0  ;;  %v3391_v7 = vsel %vm3361_vm1, %v3358_v6, %v2860_v12 }
 0x1f4   : > { %v3903_v27 = vsel %vm3279_vm14, %v3867_v11, 0.0  ;;  %v3424_v13 = vsel %vm3394_vm2, %v3391_v7, %v2940_v36 }
 0x1f5   : > { %v3805_v51 = vadd.f32 %v3804_v55, %v3803_v20  ;;  %v3904_v16 = vadd.f32 %v3903_v27, %v3902_v3  ;;  %v2862_v24 = vpop.permute.xlu1 %2861 }
 0x1f6   : > { %v3020_v8 = vpop.permute.xlu0 %3019  ;;  %v3393_v28 = vsel %vm3361_vm1, %v3360_v26, %v2862_v24 }
 0x1f7   : > { %v3906_v50 = vadd.f32 %v3905_v43, %v3904_v16  ;;  %v3807_v1 = vadd.f32 %v3806_v37, %v3805_v51  ;;  %v3457_v30 = vsel %vm3427_vm3, %v3424_v13, %v3020_v8 }
 0x1f9   : > { %v3908_v2 = vadd.f32 %v3907_v14, %v3906_v50 }
 0x1fa   : > { %v3116_v47 = vpop.permute.xlu0 %3115 }
 0x1fb   : > { %v3490_v44 = vsel %vm3460_vm5, %v3457_v30, %v3116_v47 }
 0x1fe   : > { %v2942_v29 = vpop.permute.xlu1 %2941 }
 0x1ff   : > { %v3426_v54 = vsel %vm3394_vm2, %v3393_v28, %v2942_v29 }
 0x202   : > { %v3022_v33 = vpop.permute.xlu1 %3021 }
 0x203   : > { %v3459_v48 = vsel %vm3427_vm3, %v3426_v54, %v3022_v33 }
 0x205   : > { %v3196_v58 = vpop.permute.xlu0 %3195 }
 0x206   : > { %v3118_v59 = vpop.permute.xlu1 %3117  ;;  %v3523_v23 = vsel %vm3493_vm6, %v3490_v44, %v3196_v58 }
 0x207   : > { %v3492_v25 = vsel %vm3460_vm5, %v3459_v48, %v3118_v59 }
 0x209   : > { %v3276_v40 = vpop.permute.xlu0 %3275 }
 0x20a   : > { %v3198_v18 = vpop.permute.xlu1 %3197  ;;  %v3556_v32 = vsel %vm3526_vm8, %v3523_v23, %v3276_v40 }
 0x20b   : > { %4371 = vmatprep.mubr.msk.bf16.mxu1 %vm3595_vm9, %v3556_v32  ;;  %v3525_v21 = vsel %vm3493_vm6, %v3492_v25, %v3198_v18 }
 0x20e   : > { %v3278_v19 = vpop.permute.xlu1 %3277 }
 0x20f   : > { %v3558_v35 = vsel %vm3526_vm8, %v3525_v21, %v3278_v19 }
 0x210   : > { %4372 = vmatmul.mubr.msk.bf16.gmra.mrb[12].mxu1 %vm3595_vm9, %v3558_v35 }
 0x21e   : > { %v4353_v61 = vpop.f32.mrb[8].mxu0 }
 0x21f   : > { %3973 = vst.msk [vmem:[%s6131_s14 + $0x50] sm:$0xff] %vm3279_vm14, %v4353_v61  ;;  %v3698_v57 = vpop.f32.mrb[9].mxu0  ;;  %v3872_v52 = vmul.f32 %v4353_v61, %v4353_v61  ;;  %v3812_v60 = vsel %vm3279_vm14, %v4353_v61, 0.0 }
 0x220   : > { %v3808_v10 = vsel %vm3279_vm14, %v3698_v57, 0.0  ;;  %v3870_v31 = vmul.f32 %v3698_v57, %v3698_v57  ;;  %3971 = vst.msk [vmem:[%s6131_s14 + $0x40] sm:$0xff] %vm3279_vm14, %v3698_v57  ;;  %v4354_v63 = vpop.f32.mrb[10].mxu0 }
 0x221   : > { %v3809_v53 = vadd.f32 %v3808_v10, %v3807_v1  ;;  %3974 = vst.msk [vmem:[%s6131_s14 + $0x58] sm:$0xff] %vm3279_vm14, %v4354_v63  ;;  %v3701_v41 = vpop.f32.mrb[11].mxu0  ;;  %v3873_v0 = vmul.f32 %v4354_v63, %v4354_v63  ;;  %v3913_v9 = vsel %vm3279_vm14, %v3872_v52, 0.0  ;;  %v3814_v15 = vsel %vm3279_vm14, %v4354_v63, 0.0 }
 0x222   : > { %v3909_v38 = vsel %vm3279_vm14, %v3870_v31, 0.0  ;;  %v3810_v17 = vsel %vm3279_vm14, %v3701_v41, 0.0  ;;  %v3871_v49 = vmul.f32 %v3701_v41, %v3701_v41  ;;  %3972 = vst.msk [vmem:[%s6131_s14 + $0x48] sm:$0xff] %vm3279_vm14, %v3701_v41 }
 0x223   : > { %v3910_v12 = vadd.f32 %v3909_v38, %v3908_v2  ;;  %v3811_v22 = vadd.f32 %v3810_v17, %v3809_v53  ;;  %v3915_v45 = vsel %vm3279_vm14, %v3873_v0, 0.0 }
 0x224   : > { %v3911_v56 = vsel %vm3279_vm14, %v3871_v49, 0.0 }
 0x225   : > { %v3813_v42 = vadd.f32 %v3812_v60, %v3811_v22  ;;  %v3912_v4 = vadd.f32 %v3911_v56, %v3910_v12 }
 0x227   : > { %v3914_v36 = vadd.f32 %v3913_v9, %v3912_v4  ;;  %v3815_v5 = vadd.f32 %v3814_v15, %v3813_v42 }
 0x229   : > { %v3916_v46 = vadd.f32 %v3915_v45, %v3914_v36 }
 0x24e   : > { %v4357_v11 = vpop.f32.mrb[12].mxu0 }
 0x24f   : > { %3977 = vst.msk [vmem:[%s6131_s14 + $0x70] sm:$0xff] %vm3279_vm14, %v4357_v11  ;;  %v3714_v3 = vpop.f32.mrb[13].mxu0  ;;  %v3876_v16 = vmul.f32 %v4357_v11, %v4357_v11  ;;  %v3820_v8 = vsel %vm3279_vm14, %v4357_v11, 0.0 }
 0x250   : > { %v3816_v20 = vsel %vm3279_vm14, %v3714_v3, 0.0  ;;  %v3874_v55 = vmul.f32 %v3714_v3, %v3714_v3  ;;  %3975 = vst.msk [vmem:[%s6131_s14 + $0x60] sm:$0xff] %vm3279_vm14, %v3714_v3  ;;  %v4358_v39 = vpop.f32.mrb[14].mxu0 }
 0x251   : > { %v3817_v27 = vadd.f32 %v3816_v20, %v3815_v5  ;;  %3978 = vst.msk [vmem:[%s6131_s14 + $0x78] sm:$0xff] %vm3279_vm14, %v4358_v39  ;;  %v3717_v51 = vpop.f32.mrb[15].mxu0  ;;  %v3877_v14 = vmul.f32 %v4358_v39, %v4358_v39  ;;  %v3921_v33 = vsel %vm3279_vm14, %v3876_v16, 0.0  ;;  %v3822_v62 = vsel %vm3279_vm14, %v4358_v39, 0.0 }
 0x252   : > { %v3917_v43 = vsel %vm3279_vm14, %v3874_v55, 0.0  ;;  %v3818_v37 = vsel %vm3279_vm14, %v3717_v51, 0.0  ;;  %v3875_v24 = vmul.f32 %v3717_v51, %v3717_v51  ;;  %3976 = vst.msk [vmem:[%s6131_s14 + $0x68] sm:$0xff] %vm3279_vm14, %v3717_v51 }
 0x253   : > { %v3918_v50 = vadd.f32 %v3917_v43, %v3916_v46  ;;  %v3819_v1 = vadd.f32 %v3818_v37, %v3817_v27  ;;  %v3923_v58 = vsel %vm3279_vm14, %v3877_v14, 0.0 }
 0x254   : > { %v3919_v2 = vsel %vm3279_vm14, %v3875_v24, 0.0 }
 0x255   : > { %v3821_v29 = vadd.f32 %v3820_v8, %v3819_v1  ;;  %v3920_v47 = vadd.f32 %v3919_v2, %v3918_v50 }
 0x257   : > { %v3922_v6 = vadd.f32 %v3921_v33, %v3920_v47  ;;  %v3823_v7 = vadd.f32 %v3822_v62, %v3821_v29 }
 0x259   : > { %v3924_v13 = vadd.f32 %v3923_v58, %v3922_v6 }
 0x268   : > { %v4361_v59 = vpop.f32.mrb[0].mxu1 }
 0x269   : > { %3981 = vst.msk [vmem:[%s6131_s14 + $0x90] sm:$0xff] %vm3279_vm14, %v4361_v59  ;;  %v3730_v30 = vpop.f32.mrb[1].mxu1  ;;  %v3880_v28 = vmul.f32 %v4361_v59, %v4361_v59  ;;  %v3828_v21 = vsel %vm3279_vm14, %v4361_v59, 0.0 }
 0x26a   : > { %v3824_v34 = vsel %vm3279_vm14, %v3730_v30, 0.0  ;;  %v3878_v44 = vmul.f32 %v3730_v30, %v3730_v30  ;;  %3979 = vst.msk [vmem:[%s6131_s14 + $0x80] sm:$0xff] %vm3279_vm14, %v3730_v30  ;;  %v4362_v26 = vpop.f32.mrb[2].mxu1 }
 0x26b   : > { %v3825_v23 = vadd.f32 %v3824_v34, %v3823_v7  ;;  %3982 = vst.msk [vmem:[%s6131_s14 + $0x98] sm:$0xff] %vm3279_vm14, %v4362_v26  ;;  %v3733_v40 = vpop.f32.mrb[3].mxu1  ;;  %v3881_v19 = vmul.f32 %v4362_v26, %v4362_v26  ;;  %v3929_v10 = vsel %vm3279_vm14, %v3880_v28, 0.0  ;;  %v3830_v31 = vsel %vm3279_vm14, %v4362_v26, 0.0 }
 0x26c   : > { %v3925_v18 = vsel %vm3279_vm14, %v3878_v44, 0.0  ;;  %v3826_v32 = vsel %vm3279_vm14, %v3733_v40, 0.0  ;;  %v3879_v54 = vmul.f32 %v3733_v40, %v3733_v40  ;;  %3980 = vst.msk [vmem:[%s6131_s14 + $0x88] sm:$0xff] %vm3279_vm14, %v3733_v40 }
 0x26d   : > { %v3926_v48 = vadd.f32 %v3925_v18, %v3924_v13  ;;  %v3827_v25 = vadd.f32 %v3826_v32, %v3825_v23  ;;  %v3931_v41 = vsel %vm3279_vm14, %v3881_v19, 0.0 }
 0x26e   : > { %v3927_v35 = vsel %vm3279_vm14, %v3879_v54, 0.0 }
 0x26f   : > { %v3829_v61 = vadd.f32 %v3828_v21, %v3827_v25  ;;  %v3928_v57 = vadd.f32 %v3927_v35, %v3926_v48 }
 0x271   : > { %v3930_v63 = vadd.f32 %v3929_v10, %v3928_v57  ;;  %v3831_v53 = vadd.f32 %v3830_v31, %v3829_v61 }
 0x273   : > { %v3932_v52 = vadd.f32 %v3931_v41, %v3930_v63 }
 0x288   : > { %v4365_v38 = vpop.f32.mrb[4].mxu1 }
 0x289   : > { %3985 = vst.msk [vmem:[%s6131_s14 + $0xb0] sm:$0xff] %vm3279_vm14, %v4365_v38  ;;  %v3746_v17 = vpop.f32.mrb[5].mxu1  ;;  %v3884_v56 = vmul.f32 %v4365_v38, %v4365_v38  ;;  %v3836_v5 = vsel %vm3279_vm14, %v4365_v38, 0.0 }
 0x28a   : > { %v3832_v49 = vsel %vm3279_vm14, %v3746_v17, 0.0  ;;  %v3882_v12 = vmul.f32 %v3746_v17, %v3746_v17  ;;  %3983 = vst.msk [vmem:[%s6131_s14 + $0xa0] sm:$0xff] %vm3279_vm14, %v3746_v17  ;;  %v4366_v22 = vpop.f32.mrb[6].mxu1 }
 0x28b   : > { %v3833_v60 = vadd.f32 %v3832_v49, %v3831_v53  ;;  %3986 = vst.msk [vmem:[%s6131_s14 + $0xb8] sm:$0xff] %vm3279_vm14, %v4366_v22  ;;  %v3749_v0 = vpop.f32.mrb[7].mxu1  ;;  %v3885_v45 = vmul.f32 %v4366_v22, %v4366_v22  ;;  %v3937_v20 = vsel %vm3279_vm14, %v3884_v56, 0.0  ;;  %v3838_v55 = vsel %vm3279_vm14, %v4366_v22, 0.0 }
 0x28c   : > { %v3933_v42 = vsel %vm3279_vm14, %v3882_v12, 0.0  ;;  %v3834_v4 = vsel %vm3279_vm14, %v3749_v0, 0.0  ;;  %v3883_v9 = vmul.f32 %v3749_v0, %v3749_v0  ;;  %3984 = vst.msk [vmem:[%s6131_s14 + $0xa8] sm:$0xff] %vm3279_vm14, %v3749_v0 }
 0x28d   : > { %v3934_v15 = vadd.f32 %v3933_v42, %v3932_v52  ;;  %v3835_v36 = vadd.f32 %v3834_v4, %v3833_v60  ;;  %v3939_v51 = vsel %vm3279_vm14, %v3885_v45, 0.0 }
 0x28e   : > { %v3935_v46 = vsel %vm3279_vm14, %v3883_v9, 0.0 }
 0x28f   : > { %v3837_v11 = vadd.f32 %v3836_v5, %v3835_v36  ;;  %v3936_v3 = vadd.f32 %v3935_v46, %v3934_v15 }
 0x291   : > { %v3938_v39 = vadd.f32 %v3937_v20, %v3936_v3  ;;  %v3839_v27 = vadd.f32 %v3838_v55, %v3837_v11 }
 0x293   : > { %v3940_v16 = vadd.f32 %v3939_v51, %v3938_v39 }
 0x2b7   : > { %v4369_v43 = vpop.f32.mrb[8].mxu1 }
 0x2b8   : > { %3989 = vst.msk [vmem:[%s6131_s14 + $0xd0] sm:$0xff] %vm3279_vm14, %v4369_v43  ;;  %v3762_v37 = vpop.f32.mrb[9].mxu1  ;;  %v3888_v2 = vmul.f32 %v4369_v43, %v4369_v43  ;;  %v3844_v7 = vsel %vm3279_vm14, %v4369_v43, 0.0 }
 0x2b9   : > { %v3840_v24 = vsel %vm3279_vm14, %v3762_v37, 0.0  ;;  %v3886_v50 = vmul.f32 %v3762_v37, %v3762_v37  ;;  %3987 = vst.msk [vmem:[%s6131_s14 + $0xc0] sm:$0xff] %vm3279_vm14, %v3762_v37  ;;  %v4370_v1 = vpop.f32.mrb[10].mxu1 }
 0x2ba   : > { %v3841_v8 = vadd.f32 %v3840_v24, %v3839_v27  ;;  %3990 = vst.msk [vmem:[%s6131_s14 + $0xd8] sm:$0xff] %vm3279_vm14, %v4370_v1  ;;  %v3765_v14 = vpop.f32.mrb[11].mxu1  ;;  %v3889_v58 = vmul.f32 %v4370_v1, %v4370_v1  ;;  %v3945_v34 = vsel %vm3279_vm14, %v3888_v2, 0.0  ;;  %v3846_v44 = vsel %vm3279_vm14, %v4370_v1, 0.0 }
 0x2bb   : > { %v3941_v29 = vsel %vm3279_vm14, %v3886_v50, 0.0  ;;  %v3842_v47 = vsel %vm3279_vm14, %v3765_v14, 0.0  ;;  %v3887_v33 = vmul.f32 %v3765_v14, %v3765_v14  ;;  %3988 = vst.msk [vmem:[%s6131_s14 + $0xc8] sm:$0xff] %vm3279_vm14, %v3765_v14 }
 0x2bc   : > { %v3942_v62 = vadd.f32 %v3941_v29, %v3940_v16  ;;  %v3843_v6 = vadd.f32 %v3842_v47, %v3841_v8  ;;  %v3947_v40 = vsel %vm3279_vm14, %v3889_v58, 0.0 }
 0x2bd   : > { %v3943_v13 = vsel %vm3279_vm14, %v3887_v33, 0.0 }
 0x2be   : > { %v3845_v59 = vadd.f32 %v3844_v7, %v3843_v6  ;;  %v3944_v30 = vadd.f32 %v3943_v13, %v3942_v62 }
 0x2c0   : > { %v3946_v26 = vadd.f32 %v3945_v34, %v3944_v30  ;;  %v3847_v23 = vadd.f32 %v3846_v44, %v3845_v59 }
 0x2c2   : > { %v3948_v28 = vadd.f32 %v3947_v40, %v3946_v26 }
 0x2e3   : > { %v4373_v18 = vpop.f32.mrb[12].mxu1 }
 0x2e4   : > { %3993 = vst.msk [vmem:[%s6131_s14 + $0xf0] sm:$0xff] %vm3279_vm14, %v4373_v18  ;;  %v3778_v32 = vpop.f32.mrb[13].mxu1  ;;  %v3892_v35 = vmul.f32 %v4373_v18, %v4373_v18  ;;  %v3852_v53 = vsel %vm3279_vm14, %v4373_v18, 0.0 }
 0x2e5   : > { %v3848_v54 = vsel %vm3279_vm14, %v3778_v32, 0.0  ;;  %v3890_v48 = vmul.f32 %v3778_v32, %v3778_v32  ;;  %3991 = vst.msk [vmem:[%s6131_s14 + $0xe0] sm:$0xff] %vm3279_vm14, %v3778_v32  ;;  %v4374_v25 = vpop.f32.mrb[14].mxu1 }
 0x2e6   : > { %v3849_v21 = vadd.f32 %v3848_v54, %v3847_v23  ;;  %3994 = vst.msk [vmem:[%s6131_s14 + $0xf8] sm:$0xff] %vm3279_vm14, %v4374_v25  ;;  %v3781_v19 = vpop.f32.mrb[15].mxu1  ;;  %v3893_v41 = vmul.f32 %v4374_v25, %v4374_v25  ;;  %v3953_v49 = vsel %vm3279_vm14, %v3892_v35, 0.0  ;;  %v3854_v12 = vsel %vm3279_vm14, %v4374_v25, 0.0 }
 0x2e7   : > { %v3949_v61 = vsel %vm3279_vm14, %v3890_v48, 0.0  ;;  %v3850_v57 = vsel %vm3279_vm14, %v3781_v19, 0.0  ;;  %v3891_v10 = vmul.f32 %v3781_v19, %v3781_v19  ;;  %3992 = vst.msk [vmem:[%s6131_s14 + $0xe8] sm:$0xff] %vm3279_vm14, %v3781_v19 }
 0x2e8   : > { %v3950_v31 = vadd.f32 %v3949_v61, %v3948_v28  ;;  %v3851_v63 = vadd.f32 %v3850_v57, %v3849_v21  ;;  %v3955_v0 = vsel %vm3279_vm14, %v3893_v41, 0.0 }
 0x2e9   : > { %v3951_v52 = vsel %vm3279_vm14, %v3891_v10, 0.0 }
 0x2ea   : > { %v3853_v38 = vadd.f32 %v3852_v53, %v3851_v63  ;;  %v3952_v17 = vadd.f32 %v3951_v52, %v3950_v31 }
 0x2ec   : > { %v3855_v22 = vadd.f32 %v3854_v12, %v3853_v38  ;;  %v3954_v60 = vadd.f32 %v3953_v49, %v3952_v17 }
 0x2ee   : > { %v3856_v56 = vrot.slane %v3855_v22, 4  ;;  %v3956_v42 = vadd.f32 %v3955_v0, %v3954_v60 }
 0x2f0   : > { %v3857_v4 = vadd.f32 %v3856_v56, %v3855_v22  ;;  %v3957_v9 = vrot.slane %v3956_v42, 4 }
 0x2f2   : > { %v3858_v15 = vrot.slane %v3857_v4, 2  ;;  %v3958_v36 = vadd.f32 %v3957_v9, %v3956_v42 }
 0x2f4   : > { %v3859_v5 = vadd.f32 %v3858_v15, %v3857_v4  ;;  %v3959_v45 = vrot.slane %v3958_v36, 2 }
 0x2f6   : > { %v3860_v46 = vrot.slane %v3859_v5, 1  ;;  %v3960_v11 = vadd.f32 %v3959_v45, %v3958_v36 }
 0x2f8   : > { %v3961_v3 = vrot.slane %v3960_v11, 1  ;;  %v3861_v20 = vadd.f32 %v3860_v46, %v3859_v5 }
 0x2fa   : > { %v3962_v55 = vadd.f32 %v3961_v3, %v3960_v11 }
 0x2fc   : > { %v3996_v39 = vsel %vm3995_vm0, %v3861_v20, %v3962_v55 }
 0x2fd   : > { %3998 = vst.msk [vmem:[%s181_s18] sm:$0x3] %vm3997_vm7, %v3996_v39 }
 0x2fe PF: > { %s14_s12 = sadd.s32 1, %s4471_s12  }
 0x2ff   : > { %p11_p4 = scmp.ge.s32.totalorder %s14_s12, 4  }
 0x301   :  { %13 = sbr.rel (!%p11_p4) target bundleno = 1 (0x1), region = 72 }

</bundles_post_ra>
